<compile_context>
chip_gen: v7x
topology: tpu7x:2x2x1
jax: 0.10.0
libtpu: 0.0.40
codegen_flags: <defaults>
</compile_context>

<pallas_src>
import math
import numpy as np

import jax
import jax.numpy as jnp
from jax.experimental import pallas as pl
from jax.experimental.pallas import tpu as pltpu

# ----------------------------- model constants ------------------------------
SAMPLERATE = 22050.0
N_SAMPLES = 1024          # scaled down from 2**15
N_FRAMES = 16             # scaled down
STEP = N_SAMPLES // N_FRAMES
MODEL_DIM = 32            # scaled down from 128
EVENT_LATENT_DIM = MODEL_DIM
N_EVENTS = 4              # scaled down from 16
N_BANDS = 16              # scaled down mel scale bands (from 128)
RESOLUTION = 8            # scaled down from 32
POS_FREQS = 16            # -> 33 positional channels
DILATIONS = [1, 3, 9, 27, 1]
WEIGHT_INIT = 0.1

_VMEM = pltpu.MemorySpace.VMEM


def _vspec(n=1):
    return [pl.BlockSpec(memory_space=_VMEM) for _ in range(n)]


# ------------------------------ Pallas kernels ------------------------------
def _matmul_kernel(epilogue):
    def kern(a_ref, b_ref, bias_ref, o_ref):
        a = a_ref[...].astype(jnp.bfloat16)
        b = b_ref[...].astype(jnp.bfloat16)
        o = jnp.dot(a, b, preferred_element_type=jnp.float32) + bias_ref[...]
        if epilogue == 'abs':
            o = jnp.abs(o)
        elif epilogue == 'leaky':
            o = jnp.where(o > 0, o, 0.2 * o)
        elif epilogue == 'square':
            o = o * o
        o_ref[...] = o
    return kern


def matmul_bias(a, b, bias, epilogue='none'):
    """Single-block (M,K)@(K,N)+bias with fused epilogue.  bf16 MXU operands,
    f32 accumulation, whole arrays resident in VMEM."""
    a = a.astype(jnp.float32)
    b = b.astype(jnp.float32)
    M, K = a.shape
    _, N = b.shape
    # TODO(synk): at production sizes (MODEL_DIM=128, N_SAMPLES=2**15) switch to
    # a (tm,tn,tk) grid + VMEM accumulator with
    # dimension_semantics=("parallel","parallel","arbitrary").
    return pl.pallas_call(
        _matmul_kernel(epilogue),
        out_shape=jax.ShapeDtypeStruct((M, N), jnp.float32),
        in_specs=_vspec(3),
        out_specs=pl.BlockSpec(memory_space=_VMEM),
    )(a, b, bias.reshape(1, N).astype(jnp.float32))


# ----------------- fused encoder (reduce + dilated stack) -------------------
def _dilated_shift_matrices(B, T):
    """Block-diagonal (over batch) 0/1 shift matrices, one per layer/tap."""
    L, K = len(DILATIONS), 3
    S = np.zeros((L, K, B * T, B * T), np.float32)
    for li, d in enumerate(DILATIONS):
        for k in range(K):
            s = (k - 1) * d
            if abs(s) >= T:
                continue
            for b in range(B):
                for t in range(T):
                    ts = t + s
                    if 0 <= ts < T:
                        S[li, k, b * T + t, b * T + ts] = 1.0
    return jnp.asarray(S)


def _example_norm_rows(x, B, T):
    # TODO(synk): ExampleNorm source not provided; per-example std normalization.
    parts = []
    for b in range(B):
        sub = x[b * T:(b + 1) * T, :]
        mu = jnp.mean(sub, keepdims=True)
        var = jnp.mean((sub - mu) ** 2, keepdims=True)
        parts.append(sub / (jnp.sqrt(var) + 1e-8))
    return jnp.concatenate(parts, axis=0)


def encoder_pallas(feat, pos, params, B, T):
    """One kernel: ExampleNorm -> reduce 1x1 conv on (feat || pos) ->
    5-layer dilated stack (dilated conv3 + 1x1 + residual + leaky) -> ExampleNorm.
    Row layout (B*T, C); convs are shift-matrix matmuls on the MXU."""
    BT, C = feat.shape
    smats = _dilated_shift_matrices(B, T)

    def kernel(feat_ref, pos_ref, rwf_ref, rwp_ref, rb_ref,
               s_ref, dw_ref, db_ref, cw_ref, cb_ref, o_ref):
        x = _example_norm_rows(feat_ref[...], B, T)
        x = (jnp.dot(x.astype(jnp.bfloat16), rwf_ref[...].astype(jnp.bfloat16),
                     preferred_element_type=jnp.float32)
             + jnp.dot(pos_ref[...].astype(jnp.bfloat16),
                       rwp_ref[...].astype(jnp.bfloat16),
                       preferred_element_type=jnp.float32)
             + rb_ref[...])
        # TODO(synk): DilatedStack source not provided; dilated conv3 + 1x1 + residual.
        for li, d in enumerate(DILATIONS):
            h = jnp.zeros_like(x)
            for k in range(3):
                s = (k - 1) * d
                if abs(s) >= T:            # tap entirely outside 'same' window
                    continue
                xk = x if s == 0 else jnp.dot(
                    s_ref[li, k], x, preferred_element_type=jnp.float32)
                h = h + jnp.dot(xk.astype(jnp.bfloat16),
                                dw_ref[li, k].astype(jnp.bfloat16),
                                preferred_element_type=jnp.float32)
            h = h + db_ref[li]
            c = jnp.dot(h.astype(jnp.bfloat16), cw_ref[li].astype(jnp.bfloat16),
                        preferred_element_type=jnp.float32) + cb_ref[li]
            z = c + x
            x = jnp.where(z > 0, z, 0.2 * z)
        o_ref[...] = _example_norm_rows(x, B, T)

    return pl.pallas_call(
        kernel,
        out_shape=jax.ShapeDtypeStruct((BT, C), jnp.float32),
        in_specs=_vspec(10),
        out_specs=pl.BlockSpec(memory_space=_VMEM),
    )(feat, pos, params['reduce_wf'], params['reduce_wp'], params['reduce_b'],
      smats, params['dil_dw'], params['dil_db'], params['dil_cw'], params['dil_cb'])


# ------------------------- fused ConvUpsample kernel -------------------------
def _up_matrix(Tin, BE):
    m = np.zeros((2 * Tin * BE, Tin * BE), np.float32)
    for t2 in range(2 * Tin):
        for be in range(BE):
            m[t2 * BE + be, (t2 // 2) * BE + be] = 1.0
    return jnp.asarray(m)


def _shift_matrix(T, s, BE):
    m = np.zeros((T * BE, T * BE), np.float32)
    for t in range(T):
        ts = t + s
        if 0 <= ts < T:
            for be in range(BE):
                m[t * BE + be, ts * BE + be] = 1.0
    return jnp.asarray(m)


def conv_upsample_fused(latent, p, start, out_channels, square_out=False):
    """Fused ConvUpsample stand-in: Linear -> [x2 nearest + conv3 + leaky]*n
    -> final conv3 (optionally **2) in ONE pallas_call.  Rows are t-major
    (row = t*BE + be); upsample / conv shifts are host-built 0/1 matrices.
    TODO(synk): ConvUpsample source not provided; structural stand-in."""
    BE, _ = latent.shape
    n_stages = len(p['convs'])
    T_final = start * (2 ** n_stages)

    inputs = [latent.astype(jnp.float32), p['init_w'], p['init_b']]
    for i in range(n_stages):
        Tin = start * (2 ** i)
        Tout = 2 * Tin
        inputs += [_up_matrix(Tin, BE),
                   _shift_matrix(Tout, -1, BE), _shift_matrix(Tout, +1, BE),
                   p['convs'][i]['w'], p['convs'][i]['b']]
    inputs += [p['final_w'], p['final_b']]

    def conv3(xv, sm_ref, sp_ref, w3_ref, b_ref):
        xm = jnp.dot(sm_ref[...], xv, preferred_element_type=jnp.float32)
        xp = jnp.dot(sp_ref[...], xv, preferred_element_type=jnp.float32)
        return (jnp.dot(xm.astype(jnp.bfloat16), w3_ref[0].astype(jnp.bfloat16),
                        preferred_element_type=jnp.float32)
                + jnp.dot(xv.astype(jnp.bfloat16), w3_ref[1].astype(jnp.bfloat16),
                          preferred_element_type=jnp.float32)
                + jnp.dot(xp.astype(jnp.bfloat16), w3_ref[2].astype(jnp.bfloat16),
                          preferred_element_type=jnp.float32)
                + b_ref[...])

    def kernel(*refs):
        latent_ref, iw_ref, ib_ref = refs[0], refs[1], refs[2]
        stage_refs = [refs[3 + 5 * i: 3 + 5 * (i + 1)] for i in range(n_stages)]
        wf_ref, bf_ref = refs[3 + 5 * n_stages], refs[4 + 5 * n_stages]
        o_ref = refs[5 + 5 * n_stages]

        lat = latent_ref[...].astype(jnp.bfloat16)
        x = jnp.concatenate(
            [jnp.dot(lat, iw_ref[t].astype(jnp.bfloat16),
                     preferred_element_type=jnp.float32) + ib_ref[t]
             for t in range(start)], axis=0)                    # (start*BE, C)

        for (r_ref, sm_ref, sp_ref, w_ref, b_ref) in stage_refs:
            x = jnp.dot(r_ref[...], x, preferred_element_type=jnp.float32)  # x2 up
            h = conv3(x, sm_ref, sp_ref, w_ref, b_ref)
            x = jnp.where(h > 0, h, 0.2 * h)

        out = conv3(x, stage_refs[-1][1], stage_refs[-1][2], wf_ref, bf_ref)
        if square_out:
            out = out * out
        o_ref[...] = out

    out = pl.pallas_call(
        kernel,
        out_shape=jax.ShapeDtypeStruct((T_final * BE, out_channels), jnp.float32),
        in_specs=_vspec(len(inputs)),
        out_specs=pl.BlockSpec(memory_space=_VMEM),
    )(*inputs)
    # t-major rows -> (BE, out_channels, T_final)
    return out.reshape(T_final, BE, out_channels).transpose(1, 2, 0)


# ------------------------------ band-mix kernel ------------------------------
def band_mix_pallas(decay, sin_table):
    """out[e,0,t] = mean_band(decay[e,band,t] * sin[band,t]); one grid-less block."""
    BE, NB, N = decay.shape
    inv_nb = 1.0 / NB

    def kernel(d_ref, s_ref, o_ref):
        o_ref[...] = jnp.sum(d_ref[...] * s_ref[...][None, :, :],
                             axis=1, keepdims=True) * inv_nb

    return pl.pallas_call(
        kernel,
        out_shape=jax.ShapeDtypeStruct((BE, 1, N), jnp.float32),
        in_specs=_vspec(2),
        out_specs=pl.BlockSpec(memory_space=_VMEM),
    )(decay.astype(jnp.float32), sin_table.astype(jnp.float32))


# ------------------------------ XLA glue pieces ------------------------------
def pos_encoded_rows(batch, time, n_freqs):
    pos = jnp.linspace(-1.0, 1.0, time)
    feats = [pos]
    for i in range(n_freqs):
        feats.append(jnp.sin(pos * (2.0 ** i) * jnp.pi))
        feats.append(jnp.cos(pos * (2.0 ** i) * jnp.pi))
    pe = jnp.stack(feats, axis=1)                                # (time, 33)
    return jnp.tile(pe, (batch, 1)).astype(jnp.float32)          # (batch*time, 33)


def vectorwise_sparsity(ctx, B, T, keep):
    # TODO(synk): VectorwiseSparsity source not provided; top-k by vector norm
    # kept in XLA (no Pallas top-k primitive).
    x = ctx.reshape(B, T, MODEL_DIM)
    norms = jnp.sqrt(jnp.sum(x ** 2, axis=-1))                   # (B, T)
    _, idx = jax.lax.top_k(norms, keep)                          # (B, keep)
    sel = jnp.take_along_axis(x, idx[..., None], axis=1)         # (B, keep, C)
    sel = sel / (jnp.sqrt(jnp.sum(sel ** 2, axis=-1, keepdims=True)) + 1e-8)
    return sel, idx


def linear_interp(x, out_size):
    """PyTorch F.interpolate(mode='linear', align_corners=False)."""
    B, C, T = x.shape
    scale = T / out_size
    coords = (jnp.arange(out_size) + 0.5) * scale - 0.5
    coords = jnp.clip(coords, 0.0, T - 1)
    lo = jnp.floor(coords).astype(jnp.int32)
    hi = jnp.minimum(lo + 1, T - 1)
    w = (coords - lo).astype(jnp.float32)
    return x[..., lo] * (1.0 - w) + x[..., hi] * w


def mel_freqs(n_bands, fmin, fmax):
    def hz_to_mel(f):
        return 2595.0 * np.log10(1.0 + f / 700.0)

    def mel_to_hz(m):
        return 700.0 * (10.0 ** (m / 2595.0) - 1.0)

    mels = np.linspace(hz_to_mel(fmin), hz_to_mel(fmax), n_bands)
    return jnp.asarray(mel_to_hz(mels), jnp.float32)


def fft_convolve(env, tf_sig):
    """Ortho-norm FFT convolution of zero-padded signals, truncated to N;
    exact match to the reference torch fft_convolve.
    TODO(synk): no Pallas TPU FFT primitive; rfft/irfft run in XLA."""
    n = env.shape[-1]
    env_p = jnp.pad(env, ((0, 0), (0, 0), (0, n)))
    tf_p = jnp.pad(tf_sig, ((0, 0), (0, 0), (0, n)))
    spec = (jnp.fft.rfft(env_p, axis=-1, norm='ortho')
            * jnp.fft.rfft(tf_p, axis=-1, norm='ortho'))
    final = jnp.fft.irfft(spec, n=2 * n, axis=-1, norm='ortho')
    return final[..., :n]


def transfer_function(tf_logits, gumbel_key):
    # TODO(synk): TransferFunction source not provided; gumbel-hard selection of
    # a per-band resonance -> per-frame exponential decay * band sinusoid, band-mean.
    u = jax.random.uniform(gumbel_key, tf_logits.shape,
                           minval=1e-6, maxval=1.0 - 1e-6)
    g = -jnp.log(-jnp.log(u))
    sel_idx = jnp.argmax(tf_logits + g, axis=-1)                 # (BE, NB)
    onehot = jax.nn.one_hot(sel_idx, RESOLUTION, dtype=jnp.float32)
    res_values = jnp.linspace(0.5, 0.9999, RESOLUTION)
    sel = jnp.sum(onehot * res_values, axis=-1)                  # (BE, NB)

    frame_exp = jnp.arange(1, N_FRAMES + 1, dtype=jnp.float32)
    decay = sel[..., None] ** frame_exp                          # (BE, NB, F)
    decay = jnp.repeat(decay, STEP, axis=-1)                     # (BE, NB, N)

    t = jnp.arange(N_SAMPLES, dtype=jnp.float32)
    freqs = mel_freqs(N_BANDS, 30.0, SAMPLERATE / 2.0)
    sin_table = jnp.sin(2.0 * jnp.pi * freqs[:, None] * t[None, :] / SAMPLERATE)
    return band_mix_pallas(decay, sin_table)                     # (BE, 1, N)


def segment_generator(params, time_lat, transfer_lat, noise_key, gumbel_key):
    env = conv_upsample_fused(time_lat, params['env_up'], start=4,
                              out_channels=1, square_out=True)   # (BE,1,2F), **2 fused
    orig_env = env
    env = linear_interp(env, N_SAMPLES)                          # (BE,1,N)
    # TODO(synk): original samples one shared noise vector; kept identical.
    noise = jax.random.uniform(noise_key, (1, 1, N_SAMPLES),
                               jnp.float32, -1.0, 1.0)
    env = env * noise

    tfu = conv_upsample_fused(transfer_lat, params['tf_up'], start=8,
                              out_channels=RESOLUTION)           # (BE,RES,NB)
    tfu = tfu.transpose(0, 2, 1)                                 # (BE,NB,RES)
    tf_sig = transfer_function(tfu, gumbel_key)                  # (BE,1,N)

    final = fft_convolve(env, tf_sig)                            # (BE,1,N)
    final = jnp.mean(final, axis=1, keepdims=True)
    return final, orig_env, 0.0, None


def model_forward(params, x, noise_key, gumbel_key):
    B = x.shape[0]
    x = x.reshape(-1, 1, N_SAMPLES)

    # TODO(synk): exp.fb filterbank + temporal_pooling approximated by a framed
    # learned projection; |.| fused into the matmul kernel.
    frames = x.reshape(B * N_FRAMES, STEP)
    feat = matmul_bias(frames, params['fb_w'], params['fb_b'],
                       epilogue='abs')                           # (B*F, C)

    pos = pos_encoded_rows(B, N_FRAMES, POS_FREQS)               # (B*F, 33)
    ctx = encoder_pallas(feat, pos, params, B, N_FRAMES)         # (B*F, C)

    sel, indices = vectorwise_sparsity(ctx, B, N_FRAMES, N_EVENTS)
    encoded = sel
    flat = sel.reshape(B * N_EVENTS, MODEL_DIM)

    # fused to_time / to_transfer projection (one lane-denser matmul)
    tt = matmul_bias(flat, params['tt_w'], params['tt_b'])       # (BE, 2C)
    time_lat = tt[:, :EVENT_LATENT_DIM]
    transfer_lat = tt[:, EVENT_LATENT_DIM:]
    # VQ layers are passthrough=True -> identity, zero loss.
    t_loss, tf_loss = 0.0, 0.0

    final, orig_env, _, orig_tf = segment_generator(
        params, time_lat, transfer_lat, noise_key, gumbel_key)

    x_out = final.reshape(B, N_EVENTS, N_SAMPLES)
    output = jnp.sum(x_out, axis=1, keepdims=True)               # (B,1,N)
    loss = t_loss + tf_loss
    return (output, indices, encoded,
            orig_env.reshape(B, N_EVENTS, -1), loss, orig_tf,
            time_lat, transfer_lat)


# ------------------------------- parameters ---------------------------------
def init_params(seed=0):
    key = jax.random.PRNGKey(seed)
    state = {'key': key}

    def w(*shape):
        state['key'], sub = jax.random.split(state['key'])
        return jax.random.normal(sub, shape, jnp.float32) * WEIGHT_INIT

    params = {}
    params['fb_w'] = w(STEP, MODEL_DIM)
    params['fb_b'] = w(1, MODEL_DIM)
    params['reduce_wf'] = w(MODEL_DIM, MODEL_DIM)
    params['reduce_wp'] = w(2 * POS_FREQS + 1, MODEL_DIM)
    params['reduce_b'] = w(1, MODEL_DIM)
    L = len(DILATIONS)
    params['dil_dw'] = w(L, 3, MODEL_DIM, MODEL_DIM)
    params['dil_db'] = w(L, 1, MODEL_DIM)
    params['dil_cw'] = w(L, MODEL_DIM, MODEL_DIM)
    params['dil_cb'] = w(L, 1, MODEL_DIM)
    params['tt_w'] = w(MODEL_DIM, 2 * EVENT_LATENT_DIM)
    params['tt_b'] = w(1, 2 * EVENT_LATENT_DIM)

    def up(start, end, out_ch):
        n_st = int(math.log2(end // start))
        return {
            'init_w': w(start, EVENT_LATENT_DIM, MODEL_DIM),
            'init_b': w(start, 1, MODEL_DIM),
            'convs': [{'w': w(3, MODEL_DIM, MODEL_DIM), 'b': w(1, MODEL_DIM)}
                      for _ in range(n_st)],
            'final_w': w(3, MODEL_DIM, out_ch),
            'final_b': w(1, out_ch),
        }

    params['env_up'] = up(4, 2 * N_FRAMES, 1)
    params['tf_up'] = up(8, N_BANDS, RESOLUTION)
    return params


# ---------------------------------- main -------------------------------------
if __name__ == "__main__":
    params = init_params(0)
    key = jax.random.PRNGKey(0)
    kx, knoise, kgumbel = jax.random.split(key, 3)

    x = jax.random.uniform(kx, (2, 1, N_SAMPLES), jnp.float32, -1.0, 1.0)

    fwd = jax.jit(model_forward)
    (output, indices, encoded, env, loss, tf, time_lat, transfer_lat) = \
        fwd(params, x, knoise, kgumbel)

    jax.block_until_ready(output)
    jax.block_until_ready(encoded)
    assert output.shape == (2, 1, N_SAMPLES)
    assert encoded.shape == (2, N_EVENTS, MODEL_DIM)
    assert env.shape == (2, N_EVENTS, 2 * N_FRAMES)
    print("KERNEL_OK")
</pallas_src>

<mosaic_0001>
module attributes {stable_mosaic.version = 11 : i64} {
  func.func @kern(%arg0: memref<32x64xf32, #tpu.memory_space<vmem>>, %arg1: memref<64x32xf32, #tpu.memory_space<vmem>>, %arg2: memref<1x32xf32, #tpu.memory_space<vmem>>, %arg3: memref<32x32xf32, #tpu.memory_space<vmem>>) attributes {dimension_semantics = [], scalar_prefetch = 0 : i64, scratch_operands = 0 : i64, tpu.core_type = #tpu.core_type<tc>} {
    %c0 = arith.constant 0 : index
    %c0_0 = arith.constant 0 : index
    %0 = vector.load %arg0[%c0, %c0_0] : memref<32x64xf32, #tpu.memory_space<vmem>>, vector<32x64xf32>
    %1 = arith.truncf %0 : vector<32x64xf32> to vector<32x64xbf16>
    %c0_1 = arith.constant 0 : index
    %c0_2 = arith.constant 0 : index
    %2 = vector.load %arg1[%c0_1, %c0_2] : memref<64x32xf32, #tpu.memory_space<vmem>>, vector<64x32xf32>
    %3 = arith.truncf %2 : vector<64x32xf32> to vector<64x32xbf16>
    %cst = arith.constant dense<0.000000e+00> : vector<32x32xf32>
    %4 = tpu.matmul %1, %3, %cst {dimension_numbers = #tpu.dot_dimension_numbers<[1], [0], [0], [1], [0, 0, 1, 1], [], []>} : vector<32x64xbf16>, vector<64x32xbf16>, vector<32x32xf32> -> vector<32x32xf32>
    %c0_3 = arith.constant 0 : index
    %c0_4 = arith.constant 0 : index
    %5 = vector.load %arg2[%c0_3, %c0_4] : memref<1x32xf32, #tpu.memory_space<vmem>>, vector<1x32xf32>
    %6 = vector.broadcast %5 : vector<1x32xf32> to vector<32x32xf32>
    %7 = arith.addf %4, %6 : vector<32x32xf32>
    %8 = math.absf %7 : vector<32x32xf32>
    %c0_5 = arith.constant 0 : index
    %c0_6 = arith.constant 0 : index
    %9 = vector.load %arg3[%c0_5, %c0_6] : memref<32x32xf32, #tpu.memory_space<vmem>>, vector<32x32xf32>
    tpu.vector_store %arg3[%c0_5, %c0_6], %8 {strides = array<i32>} : memref<32x32xf32, #tpu.memory_space<vmem>>, vector<32x32xf32>,
    return
  }
}

module attributes {stable_mosaic.version = 11 : i64} {
  func.func @kernel(%arg0: memref<32x32xf32, #tpu.memory_space<vmem>>, %arg1: memref<32x33xf32, #tpu.memory_space<vmem>>, %arg2: memref<32x32xf32, #tpu.memory_space<vmem>>, %arg3: memref<33x32xf32, #tpu.memory_space<vmem>>, %arg4: memref<1x32xf32, #tpu.memory_space<vmem>>, %arg5: memref<5x3x32x32xf32, #tpu.memory_space<vmem>>, %arg6: memref<5x3x32x32xf32, #tpu.memory_space<vmem>>, %arg7: memref<5x1x32xf32, #tpu.memory_space<vmem>>, %arg8: memref<5x32x32xf32, #tpu.memory_space<vmem>>, %arg9: memref<5x1x32xf32, #tpu.memory_space<vmem>>, %arg10: memref<32x32xf32, #tpu.memory_space<vmem>>) attributes {dimension_semantics = [], scalar_prefetch = 0 : i64, scratch_operands = 0 : i64, tpu.core_type = #tpu.core_type<tc>} {
    %c0 = arith.constant 0 : index
    %c0_0 = arith.constant 0 : index
    %0 = vector.load %arg0[%c0, %c0_0] : memref<32x32xf32, #tpu.memory_space<vmem>>, vector<32x32xf32>
    %1 = vector.extract_strided_slice %0 {offsets = [0, 0], sizes = [16, 32], strides = [1, 1]} : vector<32x32xf32> to vector<16x32xf32>
    %2 = vector.shape_cast %1 : vector<16x32xf32> to vector<1x16x32xf32>
    %cst = arith.constant dense<0.000000e+00> : vector<1xf32>
    %3 = vector.multi_reduction <add>, %2, %cst [1, 2] : vector<1x16x32xf32> to vector<1xf32>
    %4 = vector.shape_cast %3 : vector<1xf32> to vector<1x1x1xf32>
    %5 = vector.extract %4[0, 0, 0] : f32 from vector<1x1x1xf32>
    %6 = vector.broadcast %5 : f32 to vector<1x1xf32>
    %cst_1 = arith.constant 5.120000e+02 : f32
    %7 = vector.broadcast %cst_1 : f32 to vector<1x1xf32>
    %8 = arith.divf %6, %7 : vector<1x1xf32>
    %9 = vector.broadcast %8 : vector<1x1xf32> to vector<16x32xf32>
    %10 = arith.subf %1, %9 : vector<16x32xf32>
    %11 = arith.mulf %10, %10 : vector<16x32xf32>
    %12 = vector.shape_cast %11 : vector<16x32xf32> to vector<1x16x32xf32>
    %cst_2 = arith.constant dense<0.000000e+00> : vector<1xf32>
    %13 = vector.multi_reduction <add>, %12, %cst_2 [1, 2] : vector<1x16x32xf32> to vector<1xf32>
    %14 = vector.shape_cast %13 : vector<1xf32> to vector<1x1x1xf32>
    %15 = vector.extract %14[0, 0, 0] : f32 from vector<1x1x1xf32>
    %16 = vector.broadcast %15 : f32 to vector<1x1xf32>
    %cst_3 = arith.constant 5.120000e+02 : f32
    %17 = vector.broadcast %cst_3 : f32 to vector<1x1xf32>
    %18 = arith.divf %16, %17 : vector<1x1xf32>
    %19 = math.sqrt %18 : vector<1x1xf32>
    %cst_4 = arith.constant 9.99999993E-9 : f32
    %20 = vector.broadcast %cst_4 : f32 to vector<1x1xf32>
    %21 = arith.addf %19, %20 : vector<1x1xf32>
    %22 = vector.broadcast %21 : vector<1x1xf32> to vector<16x32xf32>
    %23 = arith.divf %1, %22 : vector<16x32xf32>
    %24 = vector.extract_strided_slice %0 {offsets = [16, 0], sizes = [16, 32], strides = [1, 1]} : vector<32x32xf32> to vector<16x32xf32>
    %25 = vector.shape_cast %24 : vector<16x32xf32> to vector<1x16x32xf32>
    %cst_5 = arith.constant dense<0.000000e+00> : vector<1xf32>
    %26 = vector.multi_reduction <add>, %25, %cst_5 [1, 2] : vector<1x16x32xf32> to vector<1xf32>
    %27 = vector.shape_cast %26 : vector<1xf32> to vector<1x1x1xf32>
    %28 = vector.extract %27[0, 0, 0] : f32 from vector<1x1x1xf32>
    %29 = vector.broadcast %28 : f32 to vector<1x1xf32>
    %cst_6 = arith.constant 5.120000e+02 : f32
    %30 = vector.broadcast %cst_6 : f32 to vector<1x1xf32>
    %31 = arith.divf %29, %30 : vector<1x1xf32>
    %32 = vector.broadcast %31 : vector<1x1xf32> to vector<16x32xf32>
    %33 = arith.subf %24, %32 : vector<16x32xf32>
    %34 = arith.mulf %33, %33 : vector<16x32xf32>
    %35 = vector.shape_cast %34 : vector<16x32xf32> to vector<1x16x32xf32>
    %cst_7 = arith.constant dense<0.000000e+00> : vector<1xf32>
    %36 = vector.multi_reduction <add>, %35, %cst_7 [1, 2] : vector<1x16x32xf32> to vector<1xf32>
    %37 = vector.shape_cast %36 : vector<1xf32> to vector<1x1x1xf32>
    %38 = vector.extract %37[0, 0, 0] : f32 from vector<1x1x1xf32>
    %39 = vector.broadcast %38 : f32 to vector<1x1xf32>
    %cst_8 = arith.constant 5.120000e+02 : f32
    %40 = vector.broadcast %cst_8 : f32 to vector<1x1xf32>
    %41 = arith.divf %39, %40 : vector<1x1xf32>
    %42 = math.sqrt %41 : vector<1x1xf32>
    %cst_9 = arith.constant 9.99999993E-9 : f32
    %43 = vector.broadcast %cst_9 : f32 to vector<1x1xf32>
    %44 = arith.addf %42, %43 : vector<1x1xf32>
    %45 = vector.broadcast %44 : vector<1x1xf32> to vector<16x32xf32>
    %46 = arith.divf %24, %45 : vector<16x32xf32>
    %47 = tpu.concatenate %23, %46 in 0 : vector<16x32xf32>, vector<16x32xf32> -> vector<32x32xf32>
    %48 = arith.truncf %47 : vector<32x32xf32> to vector<32x32xbf16>
    %c0_10 = arith.constant 0 : index
    %c0_11 = arith.constant 0 : index
    %49 = vector.load %arg2[%c0_10, %c0_11] : memref<32x32xf32, #tpu.memory_space<vmem>>, vector<32x32xf32>
    %50 = arith.truncf %49 : vector<32x32xf32> to vector<32x32xbf16>
    %cst_12 = arith.constant dense<0.000000e+00> : vector<32x32xf32>
    %51 = tpu.matmul %48, %50, %cst_12 {dimension_numbers = #tpu.dot_dimension_numbers<[1], [0], [0], [1], [0, 0, 1, 1], [], []>} : vector<32x32xbf16>, vector<32x32xbf16>, vector<32x32xf32> -> vector<32x32xf32>
    %c0_13 = arith.constant 0 : index
    %c0_14 = arith.constant 0 : index
    %52 = vector.load %arg1[%c0_13, %c0_14] : memref<32x33xf32, #tpu.memory_space<vmem>>, vector<32x33xf32>
    %53 = arith.truncf %52 : vector<32x33xf32> to vector<32x33xbf16>
    %c0_15 = arith.constant 0 : index
    %c0_16 = arith.constant 0 : index
    %54 = vector.load %arg3[%c0_15, %c0_16] : memref<33x32xf32, #tpu.memory_space<vmem>>, vector<33x32xf32>
    %55 = arith.truncf %54 : vector<33x32xf32> to vector<33x32xbf16>
    %cst_17 = arith.constant dense<0.000000e+00> : vector<32x32xf32>
    %56 = tpu.matmul %53, %55, %cst_17 {dimension_numbers = #tpu.dot_dimension_numbers<[1], [0], [0], [1], [0, 0, 1, 1], [], []>} : vector<32x33xbf16>, vector<33x32xbf16>, vector<32x32xf32> -> vector<32x32xf32>
    %57 = arith.addf %51, %56 : vector<32x32xf32>
    %c0_18 = arith.constant 0 : index
    %c0_19 = arith.constant 0 : index
    %58 = vector.load %arg4[%c0_18, %c0_19] : memref<1x32xf32, #tpu.memory_space<vmem>>, vector<1x32xf32>
    %59 = vector.broadcast %58 : vector<1x32xf32> to vector<32x32xf32>
    %60 = arith.addf %57, %59 : vector<32x32xf32>
    %cst_20 = arith.constant 0.000000e+00 : f32
    %61 = vector.broadcast %cst_20 : f32 to vector<32x32xf32>
    %c0_21 = arith.constant 0 : index
    %c0_22 = arith.constant 0 : index
    %c0_23 = arith.constant 0 : index
    %c0_24 = arith.constant 0 : index
    %62 = vector.load %arg5[%c0_21, %c0_22, %c0_23, %c0_24] : memref<5x3x32x32xf32, #tpu.memory_space<vmem>>, vector<1x1x32x32xf32>
    %63 = vector.shape_cast %62 : vector<1x1x32x32xf32> to vector<32x32xf32>
    %cst_25 = arith.constant dense<0.000000e+00> : vector<32x32xf32>
    %64 = tpu.matmul %63, %60, %cst_25 {dimension_numbers = #tpu.dot_dimension_numbers<[1], [0], [0], [1], [0, 0, 1, 1], [], []>} : vector<32x32xf32>, vector<32x32xf32>, vector<32x32xf32> -> vector<32x32xf32>
    %65 = arith.truncf %64 : vector<32x32xf32> to vector<32x32xbf16>
    %c0_26 = arith.constant 0 : index
    %c0_27 = arith.constant 0 : index
    %c0_28 = arith.constant 0 : index
    %c0_29 = arith.constant 0 : index
    %66 = vector.load %arg6[%c0_26, %c0_27, %c0_28, %c0_29] : memref<5x3x32x32xf32, #tpu.memory_space<vmem>>, vector<1x1x32x32xf32>
    %67 = vector.shape_cast %66 : vector<1x1x32x32xf32> to vector<32x32xf32>
    %68 = arith.truncf %67 : vector<32x32xf32> to vector<32x32xbf16>
    %cst_30 = arith.constant dense<0.000000e+00> : vector<32x32xf32>
    %69 = tpu.matmul %65, %68, %cst_30 {dimension_numbers = #tpu.dot_dimension_numbers<[1], [0], [0], [1], [0, 0, 1, 1], [], []>} : vector<32x32xbf16>, vector<32x32xbf16>, vector<32x32xf32> -> vector<32x32xf32>
    %70 = arith.addf %61, %69 : vector<32x32xf32>
    %71 = arith.truncf %60 : vector<32x32xf32> to vector<32x32xbf16>
    %c0_31 = arith.constant 0 : index
    %c1 = arith.constant 1 : index
    %c0_32 = arith.constant 0 : index
    %c0_33 = arith.constant 0 : index
    %72 = vector.load %arg6[%c0_31, %c1, %c0_32, %c0_33] : memref<5x3x32x32xf32, #tpu.memory_space<vmem>>, vector<1x1x32x32xf32>
    %73 = vector.shape_cast %72 : vector<1x1x32x32xf32> to vector<32x32xf32>
    %74 = arith.truncf %73 : vector<32x32xf32> to vector<32x32xbf16>
    %cst_34 = arith.constant dense<0.000000e+00> : vector<32x32xf32>
    %75 = tpu.matmul %71, %74, %cst_34 {dimension_numbers = #tpu.dot_dimension_numbers<[1], [0], [0], [1], [0, 0, 1, 1], [], []>} : vector<32x32xbf16>, vector<32x32xbf16>, vector<32x32xf32> -> vector<32x32xf32>
    %76 = arith.addf %70, %75 : vector<32x32xf32>
    %c0_35 = arith.constant 0 : index
    %c2 = arith.constant 2 : index
    %c0_36 = arith.constant 0 : index
    %c0_37 = arith.constant 0 : index
    %77 = vector.load %arg5[%c0_35, %c2, %c0_36, %c0_37] : memref<5x3x32x32xf32, #tpu.memory_space<vmem>>, vector<1x1x32x32xf32>
    %78 = vector.shape_cast %77 : vector<1x1x32x32xf32> to vector<32x32xf32>
    %cst_38 = arith.constant dense<0.000000e+00> : vector<32x32xf32>
    %79 = tpu.matmul %78, %60, %cst_38 {dimension_numbers = #tpu.dot_dimension_numbers<[1], [0], [0], [1], [0, 0, 1, 1], [], []>} : vector<32x32xf32>, vector<32x32xf32>, vector<32x32xf32> -> vector<32x32xf32>
    %80 = arith.truncf %79 : vector<32x32xf32> to vector<32x32xbf16>
    %c0_39 = arith.constant 0 : index
    %c2_40 = arith.constant 2 : index
    %c0_41 = arith.constant 0 : index
    %c0_42 = arith.constant 0 : index
    %81 = vector.load %arg6[%c0_39, %c2_40, %c0_41, %c0_42] : memref<5x3x32x32xf32, #tpu.memory_space<vmem>>, vector<1x1x32x32xf32>
    %82 = vector.shape_cast %81 : vector<1x1x32x32xf32> to vector<32x32xf32>
    %83 = arith.truncf %82 : vector<32x32xf32> to vector<32x32xbf16>
    %cst_43 = arith.constant dense<0.000000e+00> : vector<32x32xf32>
    %84 = tpu.matmul %80, %83, %cst_43 {dimension_numbers = #tpu.dot_dimension_numbers<[1], [0], [0], [1], [0, 0, 1, 1], [], []>} : vector<32x32xbf16>, vector<32x32xbf16>, vector<32x32xf32> -> vector<32x32xf32>
    %85 = arith.addf %76, %84 : vector<32x32xf32>
    %c0_44 = arith.constant 0 : index
    %c0_45 = arith.constant 0 : index
    %c0_46 = arith.constant 0 : index
    %86 = vector.load %arg7[%c0_44, %c0_45, %c0_46] : memref<5x1x32xf32, #tpu.memory_space<vmem>>, vector<1x1x32xf32>
    %87 = vector.shape_cast %86 : vector<1x1x32xf32> to vector<1x32xf32>
    %88 = vector.broadcast %87 : vector<1x32xf32> to vector<32x32xf32>
    %89 = arith.addf %85, %88 : vector<32x32xf32>
    %90 = arith.truncf %89 : vector<32x32xf32> to vector<32x32xbf16>
    %c0_47 = arith.constant 0 : index
    %c0_48 = arith.constant 0 : index
    %c0_49 = arith.constant 0 : index
    %91 = vector.load %arg8[%c0_47, %c0_48, %c0_49] : memref<5x32x32xf32, #tpu.memory_space<vmem>>, vector<1x32x32xf32>
    %92 = vector.shape_cast %91 : vector<1x32x32xf32> to vector<32x32xf32>
    %93 = arith.truncf %92 : vector<32x32xf32> to vector<32x32xbf16>
    %cst_50 = arith.constant dense<0.000000e+00> : vector<32x32xf32>
    %94 = tpu.matmul %90, %93, %cst_50 {dimension_numbers = #tpu.dot_dimension_numbers<[1], [0], [0], [1], [0, 0, 1, 1], [], []>} : vector<32x32xbf16>, vector<32x32xbf16>, vector<32x32xf32> -> vector<32x32xf32>
    %c0_51 = arith.constant 0 : index
    %c0_52 = arith.constant 0 : index
    %c0_53 = arith.constant 0 : index
    %95 = vector.load %arg9[%c0_51, %c0_52, %c0_53] : memref<5x1x32xf32, #tpu.memory_space<vmem>>, vector<1x1x32xf32>
    %96 = vector.shape_cast %95 : vector<1x1x32xf32> to vector<1x32xf32>
    %97 = vector.broadcast %96 : vector<1x32xf32> to vector<32x32xf32>
    %98 = arith.addf %94, %97 : vector<32x32xf32>
    %99 = arith.addf %98, %60 : vector<32x32xf32>
    %cst_54 = arith.constant 0.000000e+00 : f32
    %100 = vector.broadcast %cst_54 : f32 to vector<32x32xf32>
    %101 = arith.cmpf ogt, %99, %100 : vector<32x32xf32>
    %cst_55 = arith.constant 2.000000e-01 : f32
    %102 = vector.broadcast %cst_55 : f32 to vector<32x32xf32>
    %103 = arith.mulf %102, %99 : vector<32x32xf32>
    %104 = arith.select %101, %99, %103 : vector<32x32xi1>, vector<32x32xf32>
    %cst_56 = arith.constant 0.000000e+00 : f32
    %105 = vector.broadcast %cst_56 : f32 to vector<32x32xf32>
    %c1_57 = arith.constant 1 : index
    %c0_58 = arith.constant 0 : index
    %c0_59 = arith.constant 0 : index
    %c0_60 = arith.constant 0 : index
    %106 = vector.load %arg5[%c1_57, %c0_58, %c0_59, %c0_60] : memref<5x3x32x32xf32, #tpu.memory_space<vmem>>, vector<1x1x32x32xf32>
    %107 = vector.shape_cast %106 : vector<1x1x32x32xf32> to vector<32x32xf32>
    %cst_61 = arith.constant dense<0.000000e+00> : vector<32x32xf32>
    %108 = tpu.matmul %107, %104, %cst_61 {dimension_numbers = #tpu.dot_dimension_numbers<[1], [0], [0], [1], [0, 0, 1, 1], [], []>} : vector<32x32xf32>, vector<32x32xf32>, vector<32x32xf32> -> vector<32x32xf32>
    %109 = arith.truncf %108 : vector<32x32xf32> to vector<32x32xbf16>
    %c1_62 = arith.constant 1 : index
    %c0_63 = arith.constant 0 : index
    %c0_64 = arith.constant 0 : index
    %c0_65 = arith.constant 0 : index
    %110 = vector.load %arg6[%c1_62, %c0_63, %c0_64, %c0_65] : memref<5x3x32x32xf32, #tpu.memory_space<vmem>>, vector<1x1x32x32xf32>
    %111 = vector.shape_cast %110 : vector<1x1x32x32xf32> to vector<32x32xf32>
    %112 = arith.truncf %111 : vector<32x32xf32> to vector<32x32xbf16>
    %cst_66 = arith.constant dense<0.000000e+00> : vector<32x32xf32>
    %113 = tpu.matmul %109, %112, %cst_66 {dimension_numbers = #tpu.dot_dimension_numbers<[1], [0], [0], [1], [0, 0, 1, 1], [], []>} : vector<32x32xbf16>, vector<32x32xbf16>, vector<32x32xf32> -> vector<32x32xf32>
    %114 = arith.addf %105, %113 : vector<32x32xf32>
    %115 = arith.truncf %104 : vector<32x32xf32> to vector<32x32xbf16>
    %c1_67 = arith.constant 1 : index
    %c1_68 = arith.constant 1 : index
    %c0_69 = arith.constant 0 : index
    %c0_70 = arith.constant 0 : index
    %116 = vector.load %arg6[%c1_67, %c1_68, %c0_69, %c0_70] : memref<5x3x32x32xf32, #tpu.memory_space<vmem>>, vector<1x1x32x32xf32>
    %117 = vector.shape_cast %116 : vector<1x1x32x32xf32> to vector<32x32xf32>
    %118 = arith.truncf %117 : vector<32x32xf32> to vector<32x32xbf16>
    %cst_71 = arith.constant dense<0.000000e+00> : vector<32x32xf32>
    %119 = tpu.matmul %115, %118, %cst_71 {dimension_numbers = #tpu.dot_dimension_numbers<[1], [0], [0], [1], [0, 0, 1, 1], [], []>} : vector<32x32xbf16>, vector<32x32xbf16>, vector<32x32xf32> -> vector<32x32xf32>
    %120 = arith.addf %114, %119 : vector<32x32xf32>
    %c1_72 = arith.constant 1 : index
    %c2_73 = arith.constant 2 : index
    %c0_74 = arith.constant 0 : index
    %c0_75 = arith.constant 0 : index
    %121 = vector.load %arg5[%c1_72, %c2_73, %c0_74, %c0_75] : memref<5x3x32x32xf32, #tpu.memory_space<vmem>>, vector<1x1x32x32xf32>
    %122 = vector.shape_cast %121 : vector<1x1x32x32xf32> to vector<32x32xf32>
    %cst_76 = arith.constant dense<0.000000e+00> : vector<32x32xf32>
    %123 = tpu.matmul %122, %104, %cst_76 {dimension_numbers = #tpu.dot_dimension_numbers<[1], [0], [0], [1], [0, 0, 1, 1], [], []>} : vector<32x32xf32>, vector<32x32xf32>, vector<32x32xf32> -> vector<32x32xf32>
    %124 = arith.truncf %123 : vector<32x32xf32> to vector<32x32xbf16>
    %c1_77 = arith.constant 1 : index
    %c2_78 = arith.constant 2 : index
    %c0_79 = arith.constant 0 : index
    %c0_80 = arith.constant 0 : index
    %125 = vector.load %arg6[%c1_77, %c2_78, %c0_79, %c0_80] : memref<5x3x32x32xf32, #tpu.memory_space<vmem>>, vector<1x1x32x32xf32>
    %126 = vector.shape_cast %125 : vector<1x1x32x32xf32> to vector<32x32xf32>
    %127 = arith.truncf %126 : vector<32x32xf32> to vector<32x32xbf16>
    %cst_81 = arith.constant dense<0.000000e+00> : vector<32x32xf32>
    %128 = tpu.matmul %124, %127, %cst_81 {dimension_numbers = #tpu.dot_dimension_numbers<[1], [0], [0], [1], [0, 0, 1, 1], [], []>} : vector<32x32xbf16>, vector<32x32xbf16>, vector<32x32xf32> -> vector<32x32xf32>
    %129 = arith.addf %120, %128 : vector<32x32xf32>
    %c1_82 = arith.constant 1 : index
    %c0_83 = arith.constant 0 : index
    %c0_84 = arith.constant 0 : index
    %130 = vector.load %arg7[%c1_82, %c0_83, %c0_84] : memref<5x1x32xf32, #tpu.memory_space<vmem>>, vector<1x1x32xf32>
    %131 = vector.shape_cast %130 : vector<1x1x32xf32> to vector<1x32xf32>
    %132 = vector.broadcast %131 : vector<1x32xf32> to vector<32x32xf32>
    %133 = arith.addf %129, %132 : vector<32x32xf32>
    %134 = arith.truncf %133 : vector<32x32xf32> to vector<32x32xbf16>
    %c1_85 = arith.constant 1 : index
    %c0_86 = arith.constant 0 : index
    %c0_87 = arith.constant 0 : index
    %135 = vector.load %arg8[%c1_85, %c0_86, %c0_87] : memref<5x32x32xf32, #tpu.memory_space<vmem>>, vector<1x32x32xf32>
    %136 = vector.shape_cast %135 : vector<1x32x32xf32> to vector<32x32xf32>
    %137 = arith.truncf %136 : vector<32x32xf32> to vector<32x32xbf16>
    %cst_88 = arith.constant dense<0.000000e+00> : vector<32x32xf32>
    %138 = tpu.matmul %134, %137, %cst_88 {dimension_numbers = #tpu.dot_dimension_numbers<[1], [0], [0], [1], [0, 0, 1, 1], [], []>} : vector<32x32xbf16>, vector<32x32xbf16>, vector<32x32xf32> -> vector<32x32xf32>
    %c1_89 = arith.constant 1 : index
    %c0_90 = arith.constant 0 : index
    %c0_91 = arith.constant 0 : index
    %139 = vector.load %arg9[%c1_89, %c0_90, %c0_91] : memref<5x1x32xf32, #tpu.memory_space<vmem>>, vector<1x1x32xf32>
    %140 = vector.shape_cast %139 : vector<1x1x32xf32> to vector<1x32xf32>
    %141 = vector.broadcast %140 : vector<1x32xf32> to vector<32x32xf32>
    %142 = arith.addf %138, %141 : vector<32x32xf32>
    %143 = arith.addf %142, %104 : vector<32x32xf32>
    %cst_92 = arith.constant 0.000000e+00 : f32
    %144 = vector.broadcast %cst_92 : f32 to vector<32x32xf32>
    %145 = arith.cmpf ogt, %143, %144 : vector<32x32xf32>
    %cst_93 = arith.constant 2.000000e-01 : f32
    %146 = vector.broadcast %cst_93 : f32 to vector<32x32xf32>
    %147 = arith.mulf %146, %143 : vector<32x32xf32>
    %148 = arith.select %145, %143, %147 : vector<32x32xi1>, vector<32x32xf32>
    %cst_94 = arith.constant 0.000000e+00 : f32
    %149 = vector.broadcast %cst_94 : f32 to vector<32x32xf32>
    %c2_95 = arith.constant 2 : index
    %c0_96 = arith.constant 0 : index
    %c0_97 = arith.constant 0 : index
    %c0_98 = arith.constant 0 : index
    %150 = vector.load %arg5[%c2_95, %c0_96, %c0_97, %c0_98] : memref<5x3x32x32xf32, #tpu.memory_space<vmem>>, vector<1x1x32x32xf32>
    %151 = vector.shape_cast %150 : vector<1x1x32x32xf32> to vector<32x32xf32>
    %cst_99 = arith.constant dense<0.000000e+00> : vector<32x32xf32>
    %152 = tpu.matmul %151, %148, %cst_99 {dimension_numbers = #tpu.dot_dimension_numbers<[1], [0], [0], [1], [0, 0, 1, 1], [], []>} : vector<32x32xf32>, vector<32x32xf32>, vector<32x32xf32> -> vector<32x32xf32>
    %153 = arith.truncf %152 : vector<32x32xf32> to vector<32x32xbf16>
    %c2_100 = arith.constant 2 : index
    %c0_101 = arith.constant 0 : index
    %c0_102 = arith.constant 0 : index
    %c0_103 = arith.constant 0 : index
    %154 = vector.load %arg6[%c2_100, %c0_101, %c0_102, %c0_103] : memref<5x3x32x32xf32, #tpu.memory_space<vmem>>, vector<1x1x32x32xf32>
    %155 = vector.shape_cast %154 : vector<1x1x32x32xf32> to vector<32x32xf32>
    %156 = arith.truncf %155 : vector<32x32xf32> to vector<32x32xbf16>
    %cst_104 = arith.constant dense<0.000000e+00> : vector<32x32xf32>
    %157 = tpu.matmul %153, %156, %cst_104 {dimension_numbers = #tpu.dot_dimension_numbers<[1], [0], [0], [1], [0, 0, 1, 1], [], []>} : vector<32x32xbf16>, vector<32x32xbf16>, vector<32x32xf32> -> vector<32x32xf32>
    %158 = arith.addf %149, %157 : vector<32x32xf32>
    %159 = arith.truncf %148 : vector<32x32xf32> to vector<32x32xbf16>
    %c2_105 = arith.constant 2 : index
    %c1_106 = arith.constant 1 : index
    %c0_107 = arith.constant 0 : index
    %c0_108 = arith.constant 0 : index
    %160 = vector.load %arg6[%c2_105, %c1_106, %c0_107, %c0_108] : memref<5x3x32x32xf32, #tpu.memory_space<vmem>>, vector<1x1x32x32xf32>
    %161 = vector.shape_cast %160 : vector<1x1x32x32xf32> to vector<32x32xf32>
    %162 = arith.truncf %161 : vector<32x32xf32> to vector<32x32xbf16>
    %cst_109 = arith.constant dense<0.000000e+00> : vector<32x32xf32>
    %163 = tpu.matmul %159, %162, %cst_109 {dimension_numbers = #tpu.dot_dimension_numbers<[1], [0], [0], [1], [0, 0, 1, 1], [], []>} : vector<32x32xbf16>, vector<32x32xbf16>, vector<32x32xf32> -> vector<32x32xf32>
    %164 = arith.addf %158, %163 : vector<32x32xf32>
    %c2_110 = arith.constant 2 : index
    %c2_111 = arith.constant 2 : index
    %c0_112 = arith.constant 0 : index
    %c0_113 = arith.constant 0 : index
    %165 = vector.load %arg5[%c2_110, %c2_111, %c0_112, %c0_113] : memref<5x3x32x32xf32, #tpu.memory_space<vmem>>, vector<1x1x32x32xf32>
    %166 = vector.shape_cast %165 : vector<1x1x32x32xf32> to vector<32x32xf32>
    %cst_114 = arith.constant dense<0.000000e+00> : vector<32x32xf32>
    %167 = tpu.matmul %166, %148, %cst_114 {dimension_numbers = #tpu.dot_dimension_numbers<[1], [0], [0], [1], [0, 0, 1, 1], [], []>} : vector<32x32xf32>, vector<32x32xf32>, vector<32x32xf32> -> vector<32x32xf32>
    %168 = arith.truncf %167 : vector<32x32xf32> to vector<32x32xbf16>
    %c2_115 = arith.constant 2 : index
    %c2_116 = arith.constant 2 : index
    %c0_117 = arith.constant 0 : index
    %c0_118 = arith.constant 0 : index
    %169 = vector.load %arg6[%c2_115, %c2_116, %c0_117, %c0_118] : memref<5x3x32x32xf32, #tpu.memory_space<vmem>>, vector<1x1x32x32xf32>
    %170 = vector.shape_cast %169 : vector<1x1x32x32xf32> to vector<32x32xf32>
    %171 = arith.truncf %170 : vector<32x32xf32> to vector<32x32xbf16>
    %cst_119 = arith.constant dense<0.000000e+00> : vector<32x32xf32>
    %172 = tpu.matmul %168, %171, %cst_119 {dimension_numbers = #tpu.dot_dimension_numbers<[1], [0], [0], [1], [0, 0, 1, 1], [], []>} : vector<32x32xbf16>, vector<32x32xbf16>, vector<32x32xf32> -> vector<32x32xf32>
    %173 = arith.addf %164, %172 : vector<32x32xf32>
    %c2_120 = arith.constant 2 : index
    %c0_121 = arith.constant 0 : index
    %c0_122 = arith.constant 0 : index
    %174 = vector.load %arg7[%c2_120, %c0_121, %c0_122] : memref<5x1x32xf32, #tpu.memory_space<vmem>>, vector<1x1x32xf32>
    %175 = vector.shape_cast %174 : vector<1x1x32xf32> to vector<1x32xf32>
    %176 = vector.broadcast %175 : vector<1x32xf32> to vector<32x32xf32>
    %177 = arith.addf %173, %176 : vector<32x32xf32>
    %178 = arith.truncf %177 : vector<32x32xf32> to vector<32x32xbf16>
    %c2_123 = arith.constant 2 : index
    %c0_124 = arith.constant 0 : index
    %c0_125 = arith.constant 0 : index
    %179 = vector.load %arg8[%c2_123, %c0_124, %c0_125] : memref<5x32x32xf32, #tpu.memory_space<vmem>>, vector<1x32x32xf32>
    %180 = vector.shape_cast %179 : vector<1x32x32xf32> to vector<32x32xf32>
    %181 = arith.truncf %180 : vector<32x32xf32> to vector<32x32xbf16>
    %cst_126 = arith.constant dense<0.000000e+00> : vector<32x32xf32>
    %182 = tpu.matmul %178, %181, %cst_126 {dimension_numbers = #tpu.dot_dimension_numbers<[1], [0], [0], [1], [0, 0, 1, 1], [], []>} : vector<32x32xbf16>, vector<32x32xbf16>, vector<32x32xf32> -> vector<32x32xf32>
    %c2_127 = arith.constant 2 : index
    %c0_128 = arith.constant 0 : index
    %c0_129 = arith.constant 0 : index
    %183 = vector.load %arg9[%c2_127, %c0_128, %c0_129] : memref<5x1x32xf32, #tpu.memory_space<vmem>>, vector<1x1x32xf32>
    %184 = vector.shape_cast %183 : vector<1x1x32xf32> to vector<1x32xf32>
    %185 = vector.broadcast %184 : vector<1x32xf32> to vector<32x32xf32>
    %186 = arith.addf %182, %185 : vector<32x32xf32>
    %187 = arith.addf %186, %148 : vector<32x32xf32>
    %cst_130 = arith.constant 0.000000e+00 : f32
    %188 = vector.broadcast %cst_130 : f32 to vector<32x32xf32>
    %189 = arith.cmpf ogt, %187, %188 : vector<32x32xf32>
    %cst_131 = arith.constant 2.000000e-01 : f32
    %190 = vector.broadcast %cst_131 : f32 to vector<32x32xf32>
    %191 = arith.mulf %190, %187 : vector<32x32xf32>
    %192 = arith.select %189, %187, %191 : vector<32x32xi1>, vector<32x32xf32>
    %cst_132 = arith.constant 0.000000e+00 : f32
    %193 = vector.broadcast %cst_132 : f32 to vector<32x32xf32>
    %194 = arith.truncf %192 : vector<32x32xf32> to vector<32x32xbf16>
    %c3 = arith.constant 3 : index
    %c1_133 = arith.constant 1 : index
    %c0_134 = arith.constant 0 : index
    %c0_135 = arith.constant 0 : index
    %195 = vector.load %arg6[%c3, %c1_133, %c0_134, %c0_135] : memref<5x3x32x32xf32, #tpu.memory_space<vmem>>, vector<1x1x32x32xf32>
    %196 = vector.shape_cast %195 : vector<1x1x32x32xf32> to vector<32x32xf32>
    %197 = arith.truncf %196 : vector<32x32xf32> to vector<32x32xbf16>
    %cst_136 = arith.constant dense<0.000000e+00> : vector<32x32xf32>
    %198 = tpu.matmul %194, %197, %cst_136 {dimension_numbers = #tpu.dot_dimension_numbers<[1], [0], [0], [1], [0, 0, 1, 1], [], []>} : vector<32x32xbf16>, vector<32x32xbf16>, vector<32x32xf32> -> vector<32x32xf32>
    %199 = arith.addf %193, %198 : vector<32x32xf32>
    %c3_137 = arith.constant 3 : index
    %c0_138 = arith.constant 0 : index
    %c0_139 = arith.constant 0 : index
    %200 = vector.load %arg7[%c3_137, %c0_138, %c0_139] : memref<5x1x32xf32, #tpu.memory_space<vmem>>, vector<1x1x32xf32>
    %201 = vector.shape_cast %200 : vector<1x1x32xf32> to vector<1x32xf32>
    %202 = vector.broadcast %201 : vector<1x32xf32> to vector<32x32xf32>
    %203 = arith.addf %199, %202 : vector<32x32xf32>
    %204 = arith.truncf %203 : vector<32x32xf32> to vector<32x32xbf16>
    %c3_140 = arith.constant 3 : index
    %c0_141 = arith.constant 0 : index
    %c0_142 = arith.constant 0 : index
    %205 = vector.load %arg8[%c3_140, %c0_141, %c0_142] : memref<5x32x32xf32, #tpu.memory_space<vmem>>, vector<1x32x32xf32>
    %206 = vector.shape_cast %205 : vector<1x32x32xf32> to vector<32x32xf32>
    %207 = arith.truncf %206 : vector<32x32xf32> to vector<32x32xbf16>
    %cst_143 = arith.constant dense<0.000000e+00> : vector<32x32xf32>
    %208 = tpu.matmul %204, %207, %cst_143 {dimension_numbers = #tpu.dot_dimension_numbers<[1], [0], [0], [1], [0, 0, 1, 1], [], []>} : vector<32x32xbf16>, vector<32x32xbf16>, vector<32x32xf32> -> vector<32x32xf32>
    %c3_144 = arith.constant 3 : index
    %c0_145 = arith.constant 0 : index
    %c0_146 = arith.constant 0 : index
    %209 = vector.load %arg9[%c3_144, %c0_145, %c0_146] : memref<5x1x32xf32, #tpu.memory_space<vmem>>, vector<1x1x32xf32>
    %210 = vector.shape_cast %209 : vector<1x1x32xf32> to vector<1x32xf32>
    %211 = vector.broadcast %210 : vector<1x32xf32> to vector<32x32xf32>
    %212 = arith.addf %208, %211 : vector<32x32xf32>
    %213 = arith.addf %212, %192 : vector<32x32xf32>
    %cst_147 = arith.constant 0.000000e+00 : f32
    %214 = vector.broadcast %cst_147 : f32 to vector<32x32xf32>
    %215 = arith.cmpf ogt, %213, %214 : vector<32x32xf32>
    %cst_148 = arith.constant 2.000000e-01 : f32
    %216 = vector.broadcast %cst_148 : f32 to vector<32x32xf32>
    %217 = arith.mulf %216, %213 : vector<32x32xf32>
    %218 = arith.select %215, %213, %217 : vector<32x32xi1>, vector<32x32xf32>
    %cst_149 = arith.constant 0.000000e+00 : f32
    %219 = vector.broadcast %cst_149 : f32 to vector<32x32xf32>
    %c4 = arith.constant 4 : index
    %c0_150 = arith.constant 0 : index
    %c0_151 = arith.constant 0 : index
    %c0_152 = arith.constant 0 : index
    %220 = vector.load %arg5[%c4, %c0_150, %c0_151, %c0_152] : memref<5x3x32x32xf32, #tpu.memory_space<vmem>>, vector<1x1x32x32xf32>
    %221 = vector.shape_cast %220 : vector<1x1x32x32xf32> to vector<32x32xf32>
    %cst_153 = arith.constant dense<0.000000e+00> : vector<32x32xf32>
    %222 = tpu.matmul %221, %218, %cst_153 {dimension_numbers = #tpu.dot_dimension_numbers<[1], [0], [0], [1], [0, 0, 1, 1], [], []>} : vector<32x32xf32>, vector<32x32xf32>, vector<32x32xf32> -> vector<32x32xf32>
    %223 = arith.truncf %222 : vector<32x32xf32> to vector<32x32xbf16>
    %c4_154 = arith.constant 4 : index
    %c0_155 = arith.constant 0 : index
    %c0_156 = arith.constant 0 : index
    %c0_157 = arith.constant 0 : index
    %224 = vector.load %arg6[%c4_154, %c0_155, %c0_156, %c0_157] : memref<5x3x32x32xf32, #tpu.memory_space<vmem>>, vector<1x1x32x32xf32>
    %225 = vector.shape_cast %224 : vector<1x1x32x32xf32> to vector<32x32xf32>
    %226 = arith.truncf %225 : vector<32x32xf32> to vector<32x32xbf16>
    %cst_158 = arith.constant dense<0.000000e+00> : vector<32x32xf32>
    %227 = tpu.matmul %223, %226, %cst_158 {dimension_numbers = #tpu.dot_dimension_numbers<[1], [0], [0], [1], [0, 0, 1, 1], [], []>} : vector<32x32xbf16>, vector<32x32xbf16>, vector<32x32xf32> -> vector<32x32xf32>
    %228 = arith.addf %219, %227 : vector<32x32xf32>
    %229 = arith.truncf %218 : vector<32x32xf32> to vector<32x32xbf16>
    %c4_159 = arith.constant 4 : index
    %c1_160 = arith.constant 1 : index
    %c0_161 = arith.constant 0 : index
    %c0_162 = arith.constant 0 : index
    %230 = vector.load %arg6[%c4_159, %c1_160, %c0_161, %c0_162] : memref<5x3x32x32xf32, #tpu.memory_space<vmem>>, vector<1x1x32x32xf32>
    %231 = vector.shape_cast %230 : vector<1x1x32x32xf32> to vector<32x32xf32>
    %232 = arith.truncf %231 : vector<32x32xf32> to vector<32x32xbf16>
    %cst_163 = arith.constant dense<0.000000e+00> : vector<32x32xf32>
    %233 = tpu.matmul %229, %232, %cst_163 {dimension_numbers = #tpu.dot_dimension_numbers<[1], [0], [0], [1], [0, 0, 1, 1], [], []>} : vector<32x32xbf16>, vector<32x32xbf16>, vector<32x32xf32> -> vector<32x32xf32>
    %234 = arith.addf %228, %233 : vector<32x32xf32>
    %c4_164 = arith.constant 4 : index
    %c2_165 = arith.constant 2 : index
    %c0_166 = arith.constant 0 : index
    %c0_167 = arith.constant 0 : index
    %235 = vector.load %arg5[%c4_164, %c2_165, %c0_166, %c0_167] : memref<5x3x32x32xf32, #tpu.memory_space<vmem>>, vector<1x1x32x32xf32>
    %236 = vector.shape_cast %235 : vector<1x1x32x32xf32> to vector<32x32xf32>
    %cst_168 = arith.constant dense<0.000000e+00> : vector<32x32xf32>
    %237 = tpu.matmul %236, %218, %cst_168 {dimension_numbers = #tpu.dot_dimension_numbers<[1], [0], [0], [1], [0, 0, 1, 1], [], []>} : vector<32x32xf32>, vector<32x32xf32>, vector<32x32xf32> -> vector<32x32xf32>
    %238 = arith.truncf %237 : vector<32x32xf32> to vector<32x32xbf16>
    %c4_169 = arith.constant 4 : index
    %c2_170 = arith.constant 2 : index
    %c0_171 = arith.constant 0 : index
    %c0_172 = arith.constant 0 : index
    %239 = vector.load %arg6[%c4_169, %c2_170, %c0_171, %c0_172] : memref<5x3x32x32xf32, #tpu.memory_space<vmem>>, vector<1x1x32x32xf32>
    %240 = vector.shape_cast %239 : vector<1x1x32x32xf32> to vector<32x32xf32>
    %241 = arith.truncf %240 : vector<32x32xf32> to vector<32x32xbf16>
    %cst_173 = arith.constant dense<0.000000e+00> : vector<32x32xf32>
    %242 = tpu.matmul %238, %241, %cst_173 {dimension_numbers = #tpu.dot_dimension_numbers<[1], [0], [0], [1], [0, 0, 1, 1], [], []>} : vector<32x32xbf16>, vector<32x32xbf16>, vector<32x32xf32> -> vector<32x32xf32>
    %243 = arith.addf %234, %242 : vector<32x32xf32>
    %c4_174 = arith.constant 4 : index
    %c0_175 = arith.constant 0 : index
    %c0_176 = arith.constant 0 : index
    %244 = vector.load %arg7[%c4_174, %c0_175, %c0_176] : memref<5x1x32xf32, #tpu.memory_space<vmem>>, vector<1x1x32xf32>
    %245 = vector.shape_cast %244 : vector<1x1x32xf32> to vector<1x32xf32>
    %246 = vector.broadcast %245 : vector<1x32xf32> to vector<32x32xf32>
    %247 = arith.addf %243, %246 : vector<32x32xf32>
    %248 = arith.truncf %247 : vector<32x32xf32> to vector<32x32xbf16>
    %c4_177 = arith.constant 4 : index
    %c0_178 = arith.constant 0 : index
    %c0_179 = arith.constant 0 : index
    %249 = vector.load %arg8[%c4_177, %c0_178, %c0_179] : memref<5x32x32xf32, #tpu.memory_space<vmem>>, vector<1x32x32xf32>
    %250 = vector.shape_cast %249 : vector<1x32x32xf32> to vector<32x32xf32>
    %251 = arith.truncf %250 : vector<32x32xf32> to vector<32x32xbf16>
    %cst_180 = arith.constant dense<0.000000e+00> : vector<32x32xf32>
    %252 = tpu.matmul %248, %251, %cst_180 {dimension_numbers = #tpu.dot_dimension_numbers<[1], [0], [0], [1], [0, 0, 1, 1], [], []>} : vector<32x32xbf16>, vector<32x32xbf16>, vector<32x32xf32> -> vector<32x32xf32>
    %c4_181 = arith.constant 4 : index
    %c0_182 = arith.constant 0 : index
    %c0_183 = arith.constant 0 : index
    %253 = vector.load %arg9[%c4_181, %c0_182, %c0_183] : memref<5x1x32xf32, #tpu.memory_space<vmem>>, vector<1x1x32xf32>
    %254 = vector.shape_cast %253 : vector<1x1x32xf32> to vector<1x32xf32>
    %255 = vector.broadcast %254 : vector<1x32xf32> to vector<32x32xf32>
    %256 = arith.addf %252, %255 : vector<32x32xf32>
    %257 = arith.addf %256, %218 : vector<32x32xf32>
    %cst_184 = arith.constant 0.000000e+00 : f32
    %258 = vector.broadcast %cst_184 : f32 to vector<32x32xf32>
    %259 = arith.cmpf ogt, %257, %258 : vector<32x32xf32>
    %cst_185 = arith.constant 2.000000e-01 : f32
    %260 = vector.broadcast %cst_185 : f32 to vector<32x32xf32>
    %261 = arith.mulf %260, %257 : vector<32x32xf32>
    %262 = arith.select %259, %257, %261 : vector<32x32xi1>, vector<32x32xf32>
    %263 = vector.extract_strided_slice %262 {offsets = [0, 0], sizes = [16, 32], strides = [1, 1]} : vector<32x32xf32> to vector<16x32xf32>
    %264 = vector.shape_cast %263 : vector<16x32xf32> to vector<1x16x32xf32>
    %cst_186 = arith.constant dense<0.000000e+00> : vector<1xf32>
    %265 = vector.multi_reduction <add>, %264, %cst_186 [1, 2] : vector<1x16x32xf32> to vector<1xf32>
    %266 = vector.shape_cast %265 : vector<1xf32> to vector<1x1x1xf32>
    %267 = vector.extract %266[0, 0, 0] : f32 from vector<1x1x1xf32>
    %268 = vector.broadcast %267 : f32 to vector<1x1xf32>
    %cst_187 = arith.constant 5.120000e+02 : f32
    %269 = vector.broadcast %cst_187 : f32 to vector<1x1xf32>
    %270 = arith.divf %268, %269 : vector<1x1xf32>
    %271 = vector.broadcast %270 : vector<1x1xf32> to vector<16x32xf32>
    %272 = arith.subf %263, %271 : vector<16x32xf32>
    %273 = arith.mulf %272, %272 : vector<16x32xf32>
    %274 = vector.shape_cast %273 : vector<16x32xf32> to vector<1x16x32xf32>
    %cst_188 = arith.constant dense<0.000000e+00> : vector<1xf32>
    %275 = vector.multi_reduction <add>, %274, %cst_188 [1, 2] : vector<1x16x32xf32> to vector<1xf32>
    %276 = vector.shape_cast %275 : vector<1xf32> to vector<1x1x1xf32>
    %277 = vector.extract %276[0, 0, 0] : f32 from vector<1x1x1xf32>
    %278 = vector.broadcast %277 : f32 to vector<1x1xf32>
    %cst_189 = arith.constant 5.120000e+02 : f32
    %279 = vector.broadcast %cst_189 : f32 to vector<1x1xf32>
    %280 = arith.divf %278, %279 : vector<1x1xf32>
    %281 = math.sqrt %280 : vector<1x1xf32>
    %cst_190 = arith.constant 9.99999993E-9 : f32
    %282 = vector.broadcast %cst_190 : f32 to vector<1x1xf32>
    %283 = arith.addf %281, %282 : vector<1x1xf32>
    %284 = vector.broadcast %283 : vector<1x1xf32> to vector<16x32xf32>
    %285 = arith.divf %263, %284 : vector<16x32xf32>
    %286 = vector.extract_strided_slice %262 {offsets = [16, 0], sizes = [16, 32], strides = [1, 1]} : vector<32x32xf32> to vector<16x32xf32>
    %287 = vector.shape_cast %286 : vector<16x32xf32> to vector<1x16x32xf32>
    %cst_191 = arith.constant dense<0.000000e+00> : vector<1xf32>
    %288 = vector.multi_reduction <add>, %287, %cst_191 [1, 2] : vector<1x16x32xf32> to vector<1xf32>
    %289 = vector.shape_cast %288 : vector<1xf32> to vector<1x1x1xf32>
    %290 = vector.extract %289[0, 0, 0] : f32 from vector<1x1x1xf32>
    %291 = vector.broadcast %290 : f32 to vector<1x1xf32>
    %cst_192 = arith.constant 5.120000e+02 : f32
    %292 = vector.broadcast %cst_192 : f32 to vector<1x1xf32>
    %293 = arith.divf %291, %292 : vector<1x1xf32>
    %294 = vector.broadcast %293 : vector<1x1xf32> to vector<16x32xf32>
    %295 = arith.subf %286, %294 : vector<16x32xf32>
    %296 = arith.mulf %295, %295 : vector<16x32xf32>
    %297 = vector.shape_cast %296 : vector<16x32xf32> to vector<1x16x32xf32>
    %cst_193 = arith.constant dense<0.000000e+00> : vector<1xf32>
    %298 = vector.multi_reduction <add>, %297, %cst_193 [1, 2] : vector<1x16x32xf32> to vector<1xf32>
    %299 = vector.shape_cast %298 : vector<1xf32> to vector<1x1x1xf32>
    %300 = vector.extract %299[0, 0, 0] : f32 from vector<1x1x1xf32>
    %301 = vector.broadcast %300 : f32 to vector<1x1xf32>
    %cst_194 = arith.constant 5.120000e+02 : f32
    %302 = vector.broadcast %cst_194 : f32 to vector<1x1xf32>
    %303 = arith.divf %301, %302 : vector<1x1xf32>
    %304 = math.sqrt %303 : vector<1x1xf32>
    %cst_195 = arith.constant 9.99999993E-9 : f32
    %305 = vector.broadcast %cst_195 : f32 to vector<1x1xf32>
    %306 = arith.addf %304, %305 : vector<1x1xf32>
    %307 = vector.broadcast %306 : vector<1x1xf32> to vector<16x32xf32>
    %308 = arith.divf %286, %307 : vector<16x32xf32>
    %309 = tpu.concatenate %285, %308 in 0 : vector<16x32xf32>, vector<16x32xf32> -> vector<32x32xf32>
    %c0_196 = arith.constant 0 : index
    %c0_197 = arith.constant 0 : index
    %310 = vector.load %arg10[%c0_196, %c0_197] : memref<32x32xf32, #tpu.memory_space<vmem>>, vector<32x32xf32>
    tpu.vector_store %arg10[%c0_196, %c0_197], %309 {strides = array<i32>} : memref<32x32xf32, #tpu.memory_space<vmem>>, vector<32x32xf32>,
    return
  }
}

module attributes {stable_mosaic.version = 11 : i64} {
  func.func @kern(%arg0: memref<8x32xf32, #tpu.memory_space<vmem>>, %arg1: memref<32x64xf32, #tpu.memory_space<vmem>>, %arg2: memref<1x64xf32, #tpu.memory_space<vmem>>, %arg3: memref<8x64xf32, #tpu.memory_space<vmem>>) attributes {dimension_semantics = [], scalar_prefetch = 0 : i64, scratch_operands = 0 : i64, tpu.core_type = #tpu.core_type<tc>} {
    %c0 = arith.constant 0 : index
    %c0_0 = arith.constant 0 : index
    %0 = vector.load %arg0[%c0, %c0_0] : memref<8x32xf32, #tpu.memory_space<vmem>>, vector<8x32xf32>
    %1 = arith.truncf %0 : vector<8x32xf32> to vector<8x32xbf16>
    %c0_1 = arith.constant 0 : index
    %c0_2 = arith.constant 0 : index
    %2 = vector.load %arg1[%c0_1, %c0_2] : memref<32x64xf32, #tpu.memory_space<vmem>>, vector<32x64xf32>
    %3 = arith.truncf %2 : vector<32x64xf32> to vector<32x64xbf16>
    %cst = arith.constant dense<0.000000e+00> : vector<8x64xf32>
    %4 = tpu.matmul %1, %3, %cst {dimension_numbers = #tpu.dot_dimension_numbers<[1], [0], [0], [1], [0, 0, 1, 1], [], []>} : vector<8x32xbf16>, vector<32x64xbf16>, vector<8x64xf32> -> vector<8x64xf32>
    %c0_3 = arith.constant 0 : index
    %c0_4 = arith.constant 0 : index
    %5 = vector.load %arg2[%c0_3, %c0_4] : memref<1x64xf32, #tpu.memory_space<vmem>>, vector<1x64xf32>
    %6 = vector.broadcast %5 : vector<1x64xf32> to vector<8x64xf32>
    %7 = arith.addf %4, %6 : vector<8x64xf32>
    %c0_5 = arith.constant 0 : index
    %c0_6 = arith.constant 0 : index
    %8 = vector.load %arg3[%c0_5, %c0_6] : memref<8x64xf32, #tpu.memory_space<vmem>>, vector<8x64xf32>
    tpu.vector_store %arg3[%c0_5, %c0_6], %7 {strides = array<i32>} : memref<8x64xf32, #tpu.memory_space<vmem>>, vector<8x64xf32>,
    return
  }
}

module attributes {stable_mosaic.version = 11 : i64} {
  func.func @kernel(%arg0: memref<8x32xf32, #tpu.memory_space<vmem>>, %arg1: memref<4x32x32xf32, #tpu.memory_space<vmem>>, %arg2: memref<4x1x32xf32, #tpu.memory_space<vmem>>, %arg3: memref<64x32xf32, #tpu.memory_space<vmem>>, %arg4: memref<64x64xf32, #tpu.memory_space<vmem>>, %arg5: memref<64x64xf32, #tpu.memory_space<vmem>>, %arg6: memref<3x32x32xf32, #tpu.memory_space<vmem>>, %arg7: memref<1x32xf32, #tpu.memory_space<vmem>>, %arg8: memref<128x64xf32, #tpu.memory_space<vmem>>, %arg9: memref<128x128xf32, #tpu.memory_space<vmem>>, %arg10: memref<128x128xf32, #tpu.memory_space<vmem>>, %arg11: memref<3x32x32xf32, #tpu.memory_space<vmem>>, %arg12: memref<1x32xf32, #tpu.memory_space<vmem>>, %arg13: memref<256x128xf32, #tpu.memory_space<vmem>>, %arg14: memref<256x256xf32, #tpu.memory_space<vmem>>, %arg15: memref<256x256xf32, #tpu.memory_space<vmem>>, %arg16: memref<3x32x32xf32, #tpu.memory_space<vmem>>, %arg17: memref<1x32xf32, #tpu.memory_space<vmem>>, %arg18: memref<3x32x1xf32, #tpu.memory_space<vmem>>, %arg19: memref<1x1xf32, #tpu.memory_space<vmem>>, %arg20: memref<256x1xf32, #tpu.memory_space<vmem>>) attributes {dimension_semantics = [], scalar_prefetch = 0 : i64, scratch_operands = 0 : i64, tpu.core_type = #tpu.core_type<tc>} {
    %c0 = arith.constant 0 : index
    %c0_0 = arith.constant 0 : index
    %0 = vector.load %arg0[%c0, %c0_0] : memref<8x32xf32, #tpu.memory_space<vmem>>, vector<8x32xf32>
    %1 = arith.truncf %0 : vector<8x32xf32> to vector<8x32xbf16>
    %c0_1 = arith.constant 0 : index
    %c0_2 = arith.constant 0 : index
    %c0_3 = arith.constant 0 : index
    %2 = vector.load %arg1[%c0_1, %c0_2, %c0_3] : memref<4x32x32xf32, #tpu.memory_space<vmem>>, vector<1x32x32xf32>
    %3 = vector.shape_cast %2 : vector<1x32x32xf32> to vector<32x32xf32>
    %4 = arith.truncf %3 : vector<32x32xf32> to vector<32x32xbf16>
    %cst = arith.constant dense<0.000000e+00> : vector<8x32xf32>
    %5 = tpu.matmul %1, %4, %cst {dimension_numbers = #tpu.dot_dimension_numbers<[1], [0], [0], [1], [0, 0, 1, 1], [], []>} : vector<8x32xbf16>, vector<32x32xbf16>, vector<8x32xf32> -> vector<8x32xf32>
    %c0_4 = arith.constant 0 : index
    %c0_5 = arith.constant 0 : index
    %c0_6 = arith.constant 0 : index
    %6 = vector.load %arg2[%c0_4, %c0_5, %c0_6] : memref<4x1x32xf32, #tpu.memory_space<vmem>>, vector<1x1x32xf32>
    %7 = vector.shape_cast %6 : vector<1x1x32xf32> to vector<1x32xf32>
    %8 = vector.broadcast %7 : vector<1x32xf32> to vector<8x32xf32>
    %9 = arith.addf %5, %8 : vector<8x32xf32>
    %c1 = arith.constant 1 : index
    %c0_7 = arith.constant 0 : index
    %c0_8 = arith.constant 0 : index
    %10 = vector.load %arg1[%c1, %c0_7, %c0_8] : memref<4x32x32xf32, #tpu.memory_space<vmem>>, vector<1x32x32xf32>
    %11 = vector.shape_cast %10 : vector<1x32x32xf32> to vector<32x32xf32>
    %12 = arith.truncf %11 : vector<32x32xf32> to vector<32x32xbf16>
    %cst_9 = arith.constant dense<0.000000e+00> : vector<8x32xf32>
    %13 = tpu.matmul %1, %12, %cst_9 {dimension_numbers = #tpu.dot_dimension_numbers<[1], [0], [0], [1], [0, 0, 1, 1], [], []>} : vector<8x32xbf16>, vector<32x32xbf16>, vector<8x32xf32> -> vector<8x32xf32>
    %c1_10 = arith.constant 1 : index
    %c0_11 = arith.constant 0 : index
    %c0_12 = arith.constant 0 : index
    %14 = vector.load %arg2[%c1_10, %c0_11, %c0_12] : memref<4x1x32xf32, #tpu.memory_space<vmem>>, vector<1x1x32xf32>
    %15 = vector.shape_cast %14 : vector<1x1x32xf32> to vector<1x32xf32>
    %16 = vector.broadcast %15 : vector<1x32xf32> to vector<8x32xf32>
    %17 = arith.addf %13, %16 : vector<8x32xf32>
    %c2 = arith.constant 2 : index
    %c0_13 = arith.constant 0 : index
    %c0_14 = arith.constant 0 : index
    %18 = vector.load %arg1[%c2, %c0_13, %c0_14] : memref<4x32x32xf32, #tpu.memory_space<vmem>>, vector<1x32x32xf32>
    %19 = vector.shape_cast %18 : vector<1x32x32xf32> to vector<32x32xf32>
    %20 = arith.truncf %19 : vector<32x32xf32> to vector<32x32xbf16>
    %cst_15 = arith.constant dense<0.000000e+00> : vector<8x32xf32>
    %21 = tpu.matmul %1, %20, %cst_15 {dimension_numbers = #tpu.dot_dimension_numbers<[1], [0], [0], [1], [0, 0, 1, 1], [], []>} : vector<8x32xbf16>, vector<32x32xbf16>, vector<8x32xf32> -> vector<8x32xf32>
    %c2_16 = arith.constant 2 : index
    %c0_17 = arith.constant 0 : index
    %c0_18 = arith.constant 0 : index
    %22 = vector.load %arg2[%c2_16, %c0_17, %c0_18] : memref<4x1x32xf32, #tpu.memory_space<vmem>>, vector<1x1x32xf32>
    %23 = vector.shape_cast %22 : vector<1x1x32xf32> to vector<1x32xf32>
    %24 = vector.broadcast %23 : vector<1x32xf32> to vector<8x32xf32>
    %25 = arith.addf %21, %24 : vector<8x32xf32>
    %c3 = arith.constant 3 : index
    %c0_19 = arith.constant 0 : index
    %c0_20 = arith.constant 0 : index
    %26 = vector.load %arg1[%c3, %c0_19, %c0_20] : memref<4x32x32xf32, #tpu.memory_space<vmem>>, vector<1x32x32xf32>
    %27 = vector.shape_cast %26 : vector<1x32x32xf32> to vector<32x32xf32>
    %28 = arith.truncf %27 : vector<32x32xf32> to vector<32x32xbf16>
    %cst_21 = arith.constant dense<0.000000e+00> : vector<8x32xf32>
    %29 = tpu.matmul %1, %28, %cst_21 {dimension_numbers = #tpu.dot_dimension_numbers<[1], [0], [0], [1], [0, 0, 1, 1], [], []>} : vector<8x32xbf16>, vector<32x32xbf16>, vector<8x32xf32> -> vector<8x32xf32>
    %c3_22 = arith.constant 3 : index
    %c0_23 = arith.constant 0 : index
    %c0_24 = arith.constant 0 : index
    %30 = vector.load %arg2[%c3_22, %c0_23, %c0_24] : memref<4x1x32xf32, #tpu.memory_space<vmem>>, vector<1x1x32xf32>
    %31 = vector.shape_cast %30 : vector<1x1x32xf32> to vector<1x32xf32>
    %32 = vector.broadcast %31 : vector<1x32xf32> to vector<8x32xf32>
    %33 = arith.addf %29, %32 : vector<8x32xf32>
    %34 = tpu.concatenate %9, %17, %25, %33 in 0 : vector<8x32xf32>, vector<8x32xf32>, vector<8x32xf32>, vector<8x32xf32> -> vector<32x32xf32>
    %c0_25 = arith.constant 0 : index
    %c0_26 = arith.constant 0 : index
    %35 = vector.load %arg3[%c0_25, %c0_26] : memref<64x32xf32, #tpu.memory_space<vmem>>, vector<64x32xf32>
    %cst_27 = arith.constant dense<0.000000e+00> : vector<64x32xf32>
    %36 = tpu.matmul %35, %34, %cst_27 {dimension_numbers = #tpu.dot_dimension_numbers<[1], [0], [0], [1], [0, 0, 1, 1], [], []>} : vector<64x32xf32>, vector<32x32xf32>, vector<64x32xf32> -> vector<64x32xf32>
    %c0_28 = arith.constant 0 : index
    %c0_29 = arith.constant 0 : index
    %37 = vector.load %arg4[%c0_28, %c0_29] : memref<64x64xf32, #tpu.memory_space<vmem>>, vector<64x64xf32>
    %cst_30 = arith.constant dense<0.000000e+00> : vector<64x32xf32>
    %38 = tpu.matmul %37, %36, %cst_30 {dimension_numbers = #tpu.dot_dimension_numbers<[1], [0], [0], [1], [0, 0, 1, 1], [], []>} : vector<64x64xf32>, vector<64x32xf32>, vector<64x32xf32> -> vector<64x32xf32>
    %c0_31 = arith.constant 0 : index
    %c0_32 = arith.constant 0 : index
    %39 = vector.load %arg5[%c0_31, %c0_32] : memref<64x64xf32, #tpu.memory_space<vmem>>, vector<64x64xf32>
    %cst_33 = arith.constant dense<0.000000e+00> : vector<64x32xf32>
    %40 = tpu.matmul %39, %36, %cst_33 {dimension_numbers = #tpu.dot_dimension_numbers<[1], [0], [0], [1], [0, 0, 1, 1], [], []>} : vector<64x64xf32>, vector<64x32xf32>, vector<64x32xf32> -> vector<64x32xf32>
    %41 = arith.truncf %38 : vector<64x32xf32> to vector<64x32xbf16>
    %c0_34 = arith.constant 0 : index
    %c0_35 = arith.constant 0 : index
    %c0_36 = arith.constant 0 : index
    %42 = vector.load %arg6[%c0_34, %c0_35, %c0_36] : memref<3x32x32xf32, #tpu.memory_space<vmem>>, vector<1x32x32xf32>
    %43 = vector.shape_cast %42 : vector<1x32x32xf32> to vector<32x32xf32>
    %44 = arith.truncf %43 : vector<32x32xf32> to vector<32x32xbf16>
    %cst_37 = arith.constant dense<0.000000e+00> : vector<64x32xf32>
    %45 = tpu.matmul %41, %44, %cst_37 {dimension_numbers = #tpu.dot_dimension_numbers<[1], [0], [0], [1], [0, 0, 1, 1], [], []>} : vector<64x32xbf16>, vector<32x32xbf16>, vector<64x32xf32> -> vector<64x32xf32>
    %46 = arith.truncf %36 : vector<64x32xf32> to vector<64x32xbf16>
    %c1_38 = arith.constant 1 : index
    %c0_39 = arith.constant 0 : index
    %c0_40 = arith.constant 0 : index
    %47 = vector.load %arg6[%c1_38, %c0_39, %c0_40] : memref<3x32x32xf32, #tpu.memory_space<vmem>>, vector<1x32x32xf32>
    %48 = vector.shape_cast %47 : vector<1x32x32xf32> to vector<32x32xf32>
    %49 = arith.truncf %48 : vector<32x32xf32> to vector<32x32xbf16>
    %cst_41 = arith.constant dense<0.000000e+00> : vector<64x32xf32>
    %50 = tpu.matmul %46, %49, %cst_41 {dimension_numbers = #tpu.dot_dimension_numbers<[1], [0], [0], [1], [0, 0, 1, 1], [], []>} : vector<64x32xbf16>, vector<32x32xbf16>, vector<64x32xf32> -> vector<64x32xf32>
    %51 = arith.addf %45, %50 : vector<64x32xf32>
    %52 = arith.truncf %40 : vector<64x32xf32> to vector<64x32xbf16>
    %c2_42 = arith.constant 2 : index
    %c0_43 = arith.constant 0 : index
    %c0_44 = arith.constant 0 : index
    %53 = vector.load %arg6[%c2_42, %c0_43, %c0_44] : memref<3x32x32xf32, #tpu.memory_space<vmem>>, vector<1x32x32xf32>
    %54 = vector.shape_cast %53 : vector<1x32x32xf32> to vector<32x32xf32>
    %55 = arith.truncf %54 : vector<32x32xf32> to vector<32x32xbf16>
    %cst_45 = arith.constant dense<0.000000e+00> : vector<64x32xf32>
    %56 = tpu.matmul %52, %55, %cst_45 {dimension_numbers = #tpu.dot_dimension_numbers<[1], [0], [0], [1], [0, 0, 1, 1], [], []>} : vector<64x32xbf16>, vector<32x32xbf16>, vector<64x32xf32> -> vector<64x32xf32>
    %57 = arith.addf %51, %56 : vector<64x32xf32>
    %c0_46 = arith.constant 0 : index
    %c0_47 = arith.constant 0 : index
    %58 = vector.load %arg7[%c0_46, %c0_47] : memref<1x32xf32, #tpu.memory_space<vmem>>, vector<1x32xf32>
    %59 = vector.broadcast %58 : vector<1x32xf32> to vector<64x32xf32>
    %60 = arith.addf %57, %59 : vector<64x32xf32>
    %cst_48 = arith.constant 0.000000e+00 : f32
    %61 = vector.broadcast %cst_48 : f32 to vector<64x32xf32>
    %62 = arith.cmpf ogt, %60, %61 : vector<64x32xf32>
    %cst_49 = arith.constant 2.000000e-01 : f32
    %63 = vector.broadcast %cst_49 : f32 to vector<64x32xf32>
    %64 = arith.mulf %63, %60 : vector<64x32xf32>
    %65 = arith.select %62, %60, %64 : vector<64x32xi1>, vector<64x32xf32>
    %c0_50 = arith.constant 0 : index
    %c0_51 = arith.constant 0 : index
    %66 = vector.load %arg8[%c0_50, %c0_51] : memref<128x64xf32, #tpu.memory_space<vmem>>, vector<128x64xf32>
    %cst_52 = arith.constant dense<0.000000e+00> : vector<128x32xf32>
    %67 = tpu.matmul %66, %65, %cst_52 {dimension_numbers = #tpu.dot_dimension_numbers<[1], [0], [0], [1], [0, 0, 1, 1], [], []>} : vector<128x64xf32>, vector<64x32xf32>, vector<128x32xf32> -> vector<128x32xf32>
    %c0_53 = arith.constant 0 : index
    %c0_54 = arith.constant 0 : index
    %68 = vector.load %arg9[%c0_53, %c0_54] : memref<128x128xf32, #tpu.memory_space<vmem>>, vector<128x128xf32>
    %cst_55 = arith.constant dense<0.000000e+00> : vector<128x32xf32>
    %69 = tpu.matmul %68, %67, %cst_55 {dimension_numbers = #tpu.dot_dimension_numbers<[1], [0], [0], [1], [0, 0, 1, 1], [], []>} : vector<128x128xf32>, vector<128x32xf32>, vector<128x32xf32> -> vector<128x32xf32>
    %c0_56 = arith.constant 0 : index
    %c0_57 = arith.constant 0 : index
    %70 = vector.load %arg10[%c0_56, %c0_57] : memref<128x128xf32, #tpu.memory_space<vmem>>, vector<128x128xf32>
    %cst_58 = arith.constant dense<0.000000e+00> : vector<128x32xf32>
    %71 = tpu.matmul %70, %67, %cst_58 {dimension_numbers = #tpu.dot_dimension_numbers<[1], [0], [0], [1], [0, 0, 1, 1], [], []>} : vector<128x128xf32>, vector<128x32xf32>, vector<128x32xf32> -> vector<128x32xf32>
    %72 = arith.truncf %69 : vector<128x32xf32> to vector<128x32xbf16>
    %c0_59 = arith.constant 0 : index
    %c0_60 = arith.constant 0 : index
    %c0_61 = arith.constant 0 : index
    %73 = vector.load %arg11[%c0_59, %c0_60, %c0_61] : memref<3x32x32xf32, #tpu.memory_space<vmem>>, vector<1x32x32xf32>
    %74 = vector.shape_cast %73 : vector<1x32x32xf32> to vector<32x32xf32>
    %75 = arith.truncf %74 : vector<32x32xf32> to vector<32x32xbf16>
    %cst_62 = arith.constant dense<0.000000e+00> : vector<128x32xf32>
    %76 = tpu.matmul %72, %75, %cst_62 {dimension_numbers = #tpu.dot_dimension_numbers<[1], [0], [0], [1], [0, 0, 1, 1], [], []>} : vector<128x32xbf16>, vector<32x32xbf16>, vector<128x32xf32> -> vector<128x32xf32>
    %77 = arith.truncf %67 : vector<128x32xf32> to vector<128x32xbf16>
    %c1_63 = arith.constant 1 : index
    %c0_64 = arith.constant 0 : index
    %c0_65 = arith.constant 0 : index
    %78 = vector.load %arg11[%c1_63, %c0_64, %c0_65] : memref<3x32x32xf32, #tpu.memory_space<vmem>>, vector<1x32x32xf32>
    %79 = vector.shape_cast %78 : vector<1x32x32xf32> to vector<32x32xf32>
    %80 = arith.truncf %79 : vector<32x32xf32> to vector<32x32xbf16>
    %cst_66 = arith.constant dense<0.000000e+00> : vector<128x32xf32>
    %81 = tpu.matmul %77, %80, %cst_66 {dimension_numbers = #tpu.dot_dimension_numbers<[1], [0], [0], [1], [0, 0, 1, 1], [], []>} : vector<128x32xbf16>, vector<32x32xbf16>, vector<128x32xf32> -> vector<128x32xf32>
    %82 = arith.addf %76, %81 : vector<128x32xf32>
    %83 = arith.truncf %71 : vector<128x32xf32> to vector<128x32xbf16>
    %c2_67 = arith.constant 2 : index
    %c0_68 = arith.constant 0 : index
    %c0_69 = arith.constant 0 : index
    %84 = vector.load %arg11[%c2_67, %c0_68, %c0_69] : memref<3x32x32xf32, #tpu.memory_space<vmem>>, vector<1x32x32xf32>
    %85 = vector.shape_cast %84 : vector<1x32x32xf32> to vector<32x32xf32>
    %86 = arith.truncf %85 : vector<32x32xf32> to vector<32x32xbf16>
    %cst_70 = arith.constant dense<0.000000e+00> : vector<128x32xf32>
    %87 = tpu.matmul %83, %86, %cst_70 {dimension_numbers = #tpu.dot_dimension_numbers<[1], [0], [0], [1], [0, 0, 1, 1], [], []>} : vector<128x32xbf16>, vector<32x32xbf16>, vector<128x32xf32> -> vector<128x32xf32>
    %88 = arith.addf %82, %87 : vector<128x32xf32>
    %c0_71 = arith.constant 0 : index
    %c0_72 = arith.constant 0 : index
    %89 = vector.load %arg12[%c0_71, %c0_72] : memref<1x32xf32, #tpu.memory_space<vmem>>, vector<1x32xf32>
    %90 = vector.broadcast %89 : vector<1x32xf32> to vector<128x32xf32>
    %91 = arith.addf %88, %90 : vector<128x32xf32>
    %cst_73 = arith.constant 0.000000e+00 : f32
    %92 = vector.broadcast %cst_73 : f32 to vector<128x32xf32>
    %93 = arith.cmpf ogt, %91, %92 : vector<128x32xf32>
    %cst_74 = arith.constant 2.000000e-01 : f32
    %94 = vector.broadcast %cst_74 : f32 to vector<128x32xf32>
    %95 = arith.mulf %94, %91 : vector<128x32xf32>
    %96 = arith.select %93, %91, %95 : vector<128x32xi1>, vector<128x32xf32>
    %c0_75 = arith.constant 0 : index
    %c0_76 = arith.constant 0 : index
    %97 = vector.load %arg13[%c0_75, %c0_76] : memref<256x128xf32, #tpu.memory_space<vmem>>, vector<256x128xf32>
    %cst_77 = arith.constant dense<0.000000e+00> : vector<256x32xf32>
    %98 = tpu.matmul %97, %96, %cst_77 {dimension_numbers = #tpu.dot_dimension_numbers<[1], [0], [0], [1], [0, 0, 1, 1], [], []>} : vector<256x128xf32>, vector<128x32xf32>, vector<256x32xf32> -> vector<256x32xf32>
    %c0_78 = arith.constant 0 : index
    %c0_79 = arith.constant 0 : index
    %99 = vector.load %arg14[%c0_78, %c0_79] : memref<256x256xf32, #tpu.memory_space<vmem>>, vector<256x256xf32>
    %cst_80 = arith.constant dense<0.000000e+00> : vector<256x32xf32>
    %100 = tpu.matmul %99, %98, %cst_80 {dimension_numbers = #tpu.dot_dimension_numbers<[1], [0], [0], [1], [0, 0, 1, 1], [], []>} : vector<256x256xf32>, vector<256x32xf32>, vector<256x32xf32> -> vector<256x32xf32>
    %c0_81 = arith.constant 0 : index
    %c0_82 = arith.constant 0 : index
    %101 = vector.load %arg15[%c0_81, %c0_82] : memref<256x256xf32, #tpu.memory_space<vmem>>, vector<256x256xf32>
    %cst_83 = arith.constant dense<0.000000e+00> : vector<256x32xf32>
    %102 = tpu.matmul %101, %98, %cst_83 {dimension_numbers = #tpu.dot_dimension_numbers<[1], [0], [0], [1], [0, 0, 1, 1], [], []>} : vector<256x256xf32>, vector<256x32xf32>, vector<256x32xf32> -> vector<256x32xf32>
    %103 = arith.truncf %100 : vector<256x32xf32> to vector<256x32xbf16>
    %c0_84 = arith.constant 0 : index
    %c0_85 = arith.constant 0 : index
    %c0_86 = arith.constant 0 : index
    %104 = vector.load %arg16[%c0_84, %c0_85, %c0_86] : memref<3x32x32xf32, #tpu.memory_space<vmem>>, vector<1x32x32xf32>
    %105 = vector.shape_cast %104 : vector<1x32x32xf32> to vector<32x32xf32>
    %106 = arith.truncf %105 : vector<32x32xf32> to vector<32x32xbf16>
    %cst_87 = arith.constant dense<0.000000e+00> : vector<256x32xf32>
    %107 = tpu.matmul %103, %106, %cst_87 {dimension_numbers = #tpu.dot_dimension_numbers<[1], [0], [0], [1], [0, 0, 1, 1], [], []>} : vector<256x32xbf16>, vector<32x32xbf16>, vector<256x32xf32> -> vector<256x32xf32>
    %108 = arith.truncf %98 : vector<256x32xf32> to vector<256x32xbf16>
    %c1_88 = arith.constant 1 : index
    %c0_89 = arith.constant 0 : index
    %c0_90 = arith.constant 0 : index
    %109 = vector.load %arg16[%c1_88, %c0_89, %c0_90] : memref<3x32x32xf32, #tpu.memory_space<vmem>>, vector<1x32x32xf32>
    %110 = vector.shape_cast %109 : vector<1x32x32xf32> to vector<32x32xf32>
    %111 = arith.truncf %110 : vector<32x32xf32> to vector<32x32xbf16>
    %cst_91 = arith.constant dense<0.000000e+00> : vector<256x32xf32>
    %112 = tpu.matmul %108, %111, %cst_91 {dimension_numbers = #tpu.dot_dimension_numbers<[1], [0], [0], [1], [0, 0, 1, 1], [], []>} : vector<256x32xbf16>, vector<32x32xbf16>, vector<256x32xf32> -> vector<256x32xf32>
    %113 = arith.addf %107, %112 : vector<256x32xf32>
    %114 = arith.truncf %102 : vector<256x32xf32> to vector<256x32xbf16>
    %c2_92 = arith.constant 2 : index
    %c0_93 = arith.constant 0 : index
    %c0_94 = arith.constant 0 : index
    %115 = vector.load %arg16[%c2_92, %c0_93, %c0_94] : memref<3x32x32xf32, #tpu.memory_space<vmem>>, vector<1x32x32xf32>
    %116 = vector.shape_cast %115 : vector<1x32x32xf32> to vector<32x32xf32>
    %117 = arith.truncf %116 : vector<32x32xf32> to vector<32x32xbf16>
    %cst_95 = arith.constant dense<0.000000e+00> : vector<256x32xf32>
    %118 = tpu.matmul %114, %117, %cst_95 {dimension_numbers = #tpu.dot_dimension_numbers<[1], [0], [0], [1], [0, 0, 1, 1], [], []>} : vector<256x32xbf16>, vector<32x32xbf16>, vector<256x32xf32> -> vector<256x32xf32>
    %119 = arith.addf %113, %118 : vector<256x32xf32>
    %c0_96 = arith.constant 0 : index
    %c0_97 = arith.constant 0 : index
    %120 = vector.load %arg17[%c0_96, %c0_97] : memref<1x32xf32, #tpu.memory_space<vmem>>, vector<1x32xf32>
    %121 = vector.broadcast %120 : vector<1x32xf32> to vector<256x32xf32>
    %122 = arith.addf %119, %121 : vector<256x32xf32>
    %cst_98 = arith.constant 0.000000e+00 : f32
    %123 = vector.broadcast %cst_98 : f32 to vector<256x32xf32>
    %124 = arith.cmpf ogt, %122, %123 : vector<256x32xf32>
    %cst_99 = arith.constant 2.000000e-01 : f32
    %125 = vector.broadcast %cst_99 : f32 to vector<256x32xf32>
    %126 = arith.mulf %125, %122 : vector<256x32xf32>
    %127 = arith.select %124, %122, %126 : vector<256x32xi1>, vector<256x32xf32>
    %c0_100 = arith.constant 0 : index
    %c0_101 = arith.constant 0 : index
    %128 = vector.load %arg14[%c0_100, %c0_101] : memref<256x256xf32, #tpu.memory_space<vmem>>, vector<256x256xf32>
    %cst_102 = arith.constant dense<0.000000e+00> : vector<256x32xf32>
    %129 = tpu.matmul %128, %127, %cst_102 {dimension_numbers = #tpu.dot_dimension_numbers<[1], [0], [0], [1], [0, 0, 1, 1], [], []>} : vector<256x256xf32>, vector<256x32xf32>, vector<256x32xf32> -> vector<256x32xf32>
    %c0_103 = arith.constant 0 : index
    %c0_104 = arith.constant 0 : index
    %130 = vector.load %arg15[%c0_103, %c0_104] : memref<256x256xf32, #tpu.memory_space<vmem>>, vector<256x256xf32>
    %cst_105 = arith.constant dense<0.000000e+00> : vector<256x32xf32>
    %131 = tpu.matmul %130, %127, %cst_105 {dimension_numbers = #tpu.dot_dimension_numbers<[1], [0], [0], [1], [0, 0, 1, 1], [], []>} : vector<256x256xf32>, vector<256x32xf32>, vector<256x32xf32> -> vector<256x32xf32>
    %132 = arith.truncf %129 : vector<256x32xf32> to vector<256x32xbf16>
    %c0_106 = arith.constant 0 : index
    %c0_107 = arith.constant 0 : index
    %c0_108 = arith.constant 0 : index
    %133 = vector.load %arg18[%c0_106, %c0_107, %c0_108] : memref<3x32x1xf32, #tpu.memory_space<vmem>>, vector<1x32x1xf32>
    %134 = vector.shape_cast %133 : vector<1x32x1xf32> to vector<32x1xf32>
    %135 = arith.truncf %134 : vector<32x1xf32> to vector<32x1xbf16>
    %cst_109 = arith.constant dense<0.000000e+00> : vector<256x1xf32>
    %136 = tpu.matmul %132, %135, %cst_109 {dimension_numbers = #tpu.dot_dimension_numbers<[1], [0], [0], [1], [0, 0, 1, 1], [], []>} : vector<256x32xbf16>, vector<32x1xbf16>, vector<256x1xf32> -> vector<256x1xf32>
    %137 = arith.truncf %127 : vector<256x32xf32> to vector<256x32xbf16>
    %c1_110 = arith.constant 1 : index
    %c0_111 = arith.constant 0 : index
    %c0_112 = arith.constant 0 : index
    %138 = vector.load %arg18[%c1_110, %c0_111, %c0_112] : memref<3x32x1xf32, #tpu.memory_space<vmem>>, vector<1x32x1xf32>
    %139 = vector.shape_cast %138 : vector<1x32x1xf32> to vector<32x1xf32>
    %140 = arith.truncf %139 : vector<32x1xf32> to vector<32x1xbf16>
    %cst_113 = arith.constant dense<0.000000e+00> : vector<256x1xf32>
    %141 = tpu.matmul %137, %140, %cst_113 {dimension_numbers = #tpu.dot_dimension_numbers<[1], [0], [0], [1], [0, 0, 1, 1], [], []>} : vector<256x32xbf16>, vector<32x1xbf16>, vector<256x1xf32> -> vector<256x1xf32>
    %142 = arith.addf %136, %141 : vector<256x1xf32>
    %143 = arith.truncf %131 : vector<256x32xf32> to vector<256x32xbf16>
    %c2_114 = arith.constant 2 : index
    %c0_115 = arith.constant 0 : index
    %c0_116 = arith.constant 0 : index
    %144 = vector.load %arg18[%c2_114, %c0_115, %c0_116] : memref<3x32x1xf32, #tpu.memory_space<vmem>>, vector<1x32x1xf32>
    %145 = vector.shape_cast %144 : vector<1x32x1xf32> to vector<32x1xf32>
    %146 = arith.truncf %145 : vector<32x1xf32> to vector<32x1xbf16>
    %cst_117 = arith.constant dense<0.000000e+00> : vector<256x1xf32>
    %147 = tpu.matmul %143, %146, %cst_117 {dimension_numbers = #tpu.dot_dimension_numbers<[1], [0], [0], [1], [0, 0, 1, 1], [], []>} : vector<256x32xbf16>, vector<32x1xbf16>, vector<256x1xf32> -> vector<256x1xf32>
    %148 = arith.addf %142, %147 : vector<256x1xf32>
    %c0_118 = arith.constant 0 : index
    %c0_119 = arith.constant 0 : index
    %149 = vector.load %arg19[%c0_118, %c0_119] : memref<1x1xf32, #tpu.memory_space<vmem>>, vector<1x1xf32>
    %150 = vector.broadcast %149 : vector<1x1xf32> to vector<256x1xf32>
    %151 = arith.addf %148, %150 : vector<256x1xf32>
    %152 = arith.mulf %151, %151 : vector<256x1xf32>
    %c0_120 = arith.constant 0 : index
    %c0_121 = arith.constant 0 : index
    %153 = vector.load %arg20[%c0_120, %c0_121] : memref<256x1xf32, #tpu.memory_space<vmem>>, vector<256x1xf32>
    tpu.vector_store %arg20[%c0_120, %c0_121], %152 {strides = array<i32>} : memref<256x1xf32, #tpu.memory_space<vmem>>, vector<256x1xf32>,
    return
  }
}

module attributes {stable_mosaic.version = 11 : i64} {
  func.func @kernel(%arg0: memref<8x32xf32, #tpu.memory_space<vmem>>, %arg1: memref<8x32x32xf32, #tpu.memory_space<vmem>>, %arg2: memref<8x1x32xf32, #tpu.memory_space<vmem>>, %arg3: memref<128x64xf32, #tpu.memory_space<vmem>>, %arg4: memref<128x128xf32, #tpu.memory_space<vmem>>, %arg5: memref<128x128xf32, #tpu.memory_space<vmem>>, %arg6: memref<3x32x32xf32, #tpu.memory_space<vmem>>, %arg7: memref<1x32xf32, #tpu.memory_space<vmem>>, %arg8: memref<3x32x8xf32, #tpu.memory_space<vmem>>, %arg9: memref<1x8xf32, #tpu.memory_space<vmem>>, %arg10: memref<128x8xf32, #tpu.memory_space<vmem>>) attributes {dimension_semantics = [], scalar_prefetch = 0 : i64, scratch_operands = 0 : i64, tpu.core_type = #tpu.core_type<tc>} {
    %c0 = arith.constant 0 : index
    %c0_0 = arith.constant 0 : index
    %0 = vector.load %arg0[%c0, %c0_0] : memref<8x32xf32, #tpu.memory_space<vmem>>, vector<8x32xf32>
    %1 = arith.truncf %0 : vector<8x32xf32> to vector<8x32xbf16>
    %c0_1 = arith.constant 0 : index
    %c0_2 = arith.constant 0 : index
    %c0_3 = arith.constant 0 : index
    %2 = vector.load %arg1[%c0_1, %c0_2, %c0_3] : memref<8x32x32xf32, #tpu.memory_space<vmem>>, vector<1x32x32xf32>
    %3 = vector.shape_cast %2 : vector<1x32x32xf32> to vector<32x32xf32>
    %4 = arith.truncf %3 : vector<32x32xf32> to vector<32x32xbf16>
    %cst = arith.constant dense<0.000000e+00> : vector<8x32xf32>
    %5 = tpu.matmul %1, %4, %cst {dimension_numbers = #tpu.dot_dimension_numbers<[1], [0], [0], [1], [0, 0, 1, 1], [], []>} : vector<8x32xbf16>, vector<32x32xbf16>, vector<8x32xf32> -> vector<8x32xf32>
    %c0_4 = arith.constant 0 : index
    %c0_5 = arith.constant 0 : index
    %c0_6 = arith.constant 0 : index
    %6 = vector.load %arg2[%c0_4, %c0_5, %c0_6] : memref<8x1x32xf32, #tpu.memory_space<vmem>>, vector<1x1x32xf32>
    %7 = vector.shape_cast %6 : vector<1x1x32xf32> to vector<1x32xf32>
    %8 = vector.broadcast %7 : vector<1x32xf32> to vector<8x32xf32>
    %9 = arith.addf %5, %8 : vector<8x32xf32>
    %c1 = arith.constant 1 : index
    %c0_7 = arith.constant 0 : index
    %c0_8 = arith.constant 0 : index
    %10 = vector.load %arg1[%c1, %c0_7, %c0_8] : memref<8x32x32xf32, #tpu.memory_space<vmem>>, vector<1x32x32xf32>
    %11 = vector.shape_cast %10 : vector<1x32x32xf32> to vector<32x32xf32>
    %12 = arith.truncf %11 : vector<32x32xf32> to vector<32x32xbf16>
    %cst_9 = arith.constant dense<0.000000e+00> : vector<8x32xf32>
    %13 = tpu.matmul %1, %12, %cst_9 {dimension_numbers = #tpu.dot_dimension_numbers<[1], [0], [0], [1], [0, 0, 1, 1], [], []>} : vector<8x32xbf16>, vector<32x32xbf16>, vector<8x32xf32> -> vector<8x32xf32>
    %c1_10 = arith.constant 1 : index
    %c0_11 = arith.constant 0 : index
    %c0_12 = arith.constant 0 : index
    %14 = vector.load %arg2[%c1_10, %c0_11, %c0_12] : memref<8x1x32xf32, #tpu.memory_space<vmem>>, vector<1x1x32xf32>
    %15 = vector.shape_cast %14 : vector<1x1x32xf32> to vector<1x32xf32>
    %16 = vector.broadcast %15 : vector<1x32xf32> to vector<8x32xf32>
    %17 = arith.addf %13, %16 : vector<8x32xf32>
    %c2 = arith.constant 2 : index
    %c0_13 = arith.constant 0 : index
    %c0_14 = arith.constant 0 : index
    %18 = vector.load %arg1[%c2, %c0_13, %c0_14] : memref<8x32x32xf32, #tpu.memory_space<vmem>>, vector<1x32x32xf32>
    %19 = vector.shape_cast %18 : vector<1x32x32xf32> to vector<32x32xf32>
    %20 = arith.truncf %19 : vector<32x32xf32> to vector<32x32xbf16>
    %cst_15 = arith.constant dense<0.000000e+00> : vector<8x32xf32>
    %21 = tpu.matmul %1, %20, %cst_15 {dimension_numbers = #tpu.dot_dimension_numbers<[1], [0], [0], [1], [0, 0, 1, 1], [], []>} : vector<8x32xbf16>, vector<32x32xbf16>, vector<8x32xf32> -> vector<8x32xf32>
    %c2_16 = arith.constant 2 : index
    %c0_17 = arith.constant 0 : index
    %c0_18 = arith.constant 0 : index
    %22 = vector.load %arg2[%c2_16, %c0_17, %c0_18] : memref<8x1x32xf32, #tpu.memory_space<vmem>>, vector<1x1x32xf32>
    %23 = vector.shape_cast %22 : vector<1x1x32xf32> to vector<1x32xf32>
    %24 = vector.broadcast %23 : vector<1x32xf32> to vector<8x32xf32>
    %25 = arith.addf %21, %24 : vector<8x32xf32>
    %c3 = arith.constant 3 : index
    %c0_19 = arith.constant 0 : index
    %c0_20 = arith.constant 0 : index
    %26 = vector.load %arg1[%c3, %c0_19, %c0_20] : memref<8x32x32xf32, #tpu.memory_space<vmem>>, vector<1x32x32xf32>
    %27 = vector.shape_cast %26 : vector<1x32x32xf32> to vector<32x32xf32>
    %28 = arith.truncf %27 : vector<32x32xf32> to vector<32x32xbf16>
    %cst_21 = arith.constant dense<0.000000e+00> : vector<8x32xf32>
    %29 = tpu.matmul %1, %28, %cst_21 {dimension_numbers = #tpu.dot_dimension_numbers<[1], [0], [0], [1], [0, 0, 1, 1], [], []>} : vector<8x32xbf16>, vector<32x32xbf16>, vector<8x32xf32> -> vector<8x32xf32>
    %c3_22 = arith.constant 3 : index
    %c0_23 = arith.constant 0 : index
    %c0_24 = arith.constant 0 : index
    %30 = vector.load %arg2[%c3_22, %c0_23, %c0_24] : memref<8x1x32xf32, #tpu.memory_space<vmem>>, vector<1x1x32xf32>
    %31 = vector.shape_cast %30 : vector<1x1x32xf32> to vector<1x32xf32>
    %32 = vector.broadcast %31 : vector<1x32xf32> to vector<8x32xf32>
    %33 = arith.addf %29, %32 : vector<8x32xf32>
    %c4 = arith.constant 4 : index
    %c0_25 = arith.constant 0 : index
    %c0_26 = arith.constant 0 : index
    %34 = vector.load %arg1[%c4, %c0_25, %c0_26] : memref<8x32x32xf32, #tpu.memory_space<vmem>>, vector<1x32x32xf32>
    %35 = vector.shape_cast %34 : vector<1x32x32xf32> to vector<32x32xf32>
    %36 = arith.truncf %35 : vector<32x32xf32> to vector<32x32xbf16>
    %cst_27 = arith.constant dense<0.000000e+00> : vector<8x32xf32>
    %37 = tpu.matmul %1, %36, %cst_27 {dimension_numbers = #tpu.dot_dimension_numbers<[1], [0], [0], [1], [0, 0, 1, 1], [], []>} : vector<8x32xbf16>, vector<32x32xbf16>, vector<8x32xf32> -> vector<8x32xf32>
    %c4_28 = arith.constant 4 : index
    %c0_29 = arith.constant 0 : index
    %c0_30 = arith.constant 0 : index
    %38 = vector.load %arg2[%c4_28, %c0_29, %c0_30] : memref<8x1x32xf32, #tpu.memory_space<vmem>>, vector<1x1x32xf32>
    %39 = vector.shape_cast %38 : vector<1x1x32xf32> to vector<1x32xf32>
    %40 = vector.broadcast %39 : vector<1x32xf32> to vector<8x32xf32>
    %41 = arith.addf %37, %40 : vector<8x32xf32>
    %c5 = arith.constant 5 : index
    %c0_31 = arith.constant 0 : index
    %c0_32 = arith.constant 0 : index
    %42 = vector.load %arg1[%c5, %c0_31, %c0_32] : memref<8x32x32xf32, #tpu.memory_space<vmem>>, vector<1x32x32xf32>
    %43 = vector.shape_cast %42 : vector<1x32x32xf32> to vector<32x32xf32>
    %44 = arith.truncf %43 : vector<32x32xf32> to vector<32x32xbf16>
    %cst_33 = arith.constant dense<0.000000e+00> : vector<8x32xf32>
    %45 = tpu.matmul %1, %44, %cst_33 {dimension_numbers = #tpu.dot_dimension_numbers<[1], [0], [0], [1], [0, 0, 1, 1], [], []>} : vector<8x32xbf16>, vector<32x32xbf16>, vector<8x32xf32> -> vector<8x32xf32>
    %c5_34 = arith.constant 5 : index
    %c0_35 = arith.constant 0 : index
    %c0_36 = arith.constant 0 : index
    %46 = vector.load %arg2[%c5_34, %c0_35, %c0_36] : memref<8x1x32xf32, #tpu.memory_space<vmem>>, vector<1x1x32xf32>
    %47 = vector.shape_cast %46 : vector<1x1x32xf32> to vector<1x32xf32>
    %48 = vector.broadcast %47 : vector<1x32xf32> to vector<8x32xf32>
    %49 = arith.addf %45, %48 : vector<8x32xf32>
    %c6 = arith.constant 6 : index
    %c0_37 = arith.constant 0 : index
    %c0_38 = arith.constant 0 : index
    %50 = vector.load %arg1[%c6, %c0_37, %c0_38] : memref<8x32x32xf32, #tpu.memory_space<vmem>>, vector<1x32x32xf32>
    %51 = vector.shape_cast %50 : vector<1x32x32xf32> to vector<32x32xf32>
    %52 = arith.truncf %51 : vector<32x32xf32> to vector<32x32xbf16>
    %cst_39 = arith.constant dense<0.000000e+00> : vector<8x32xf32>
    %53 = tpu.matmul %1, %52, %cst_39 {dimension_numbers = #tpu.dot_dimension_numbers<[1], [0], [0], [1], [0, 0, 1, 1], [], []>} : vector<8x32xbf16>, vector<32x32xbf16>, vector<8x32xf32> -> vector<8x32xf32>
    %c6_40 = arith.constant 6 : index
    %c0_41 = arith.constant 0 : index
    %c0_42 = arith.constant 0 : index
    %54 = vector.load %arg2[%c6_40, %c0_41, %c0_42] : memref<8x1x32xf32, #tpu.memory_space<vmem>>, vector<1x1x32xf32>
    %55 = vector.shape_cast %54 : vector<1x1x32xf32> to vector<1x32xf32>
    %56 = vector.broadcast %55 : vector<1x32xf32> to vector<8x32xf32>
    %57 = arith.addf %53, %56 : vector<8x32xf32>
    %c7 = arith.constant 7 : index
    %c0_43 = arith.constant 0 : index
    %c0_44 = arith.constant 0 : index
    %58 = vector.load %arg1[%c7, %c0_43, %c0_44] : memref<8x32x32xf32, #tpu.memory_space<vmem>>, vector<1x32x32xf32>
    %59 = vector.shape_cast %58 : vector<1x32x32xf32> to vector<32x32xf32>
    %60 = arith.truncf %59 : vector<32x32xf32> to vector<32x32xbf16>
    %cst_45 = arith.constant dense<0.000000e+00> : vector<8x32xf32>
    %61 = tpu.matmul %1, %60, %cst_45 {dimension_numbers = #tpu.dot_dimension_numbers<[1], [0], [0], [1], [0, 0, 1, 1], [], []>} : vector<8x32xbf16>, vector<32x32xbf16>, vector<8x32xf32> -> vector<8x32xf32>
    %c7_46 = arith.constant 7 : index
    %c0_47 = arith.constant 0 : index
    %c0_48 = arith.constant 0 : index
    %62 = vector.load %arg2[%c7_46, %c0_47, %c0_48] : memref<8x1x32xf32, #tpu.memory_space<vmem>>, vector<1x1x32xf32>
    %63 = vector.shape_cast %62 : vector<1x1x32xf32> to vector<1x32xf32>
    %64 = vector.broadcast %63 : vector<1x32xf32> to vector<8x32xf32>
    %65 = arith.addf %61, %64 : vector<8x32xf32>
    %66 = tpu.concatenate %9, %17, %25, %33, %41, %49, %57, %65 in 0 : vector<8x32xf32>, vector<8x32xf32>, vector<8x32xf32>, vector<8x32xf32>, vector<8x32xf32>, vector<8x32xf32>, vector<8x32xf32>, vector<8x32xf32> -> vector<64x32xf32>
    %c0_49 = arith.constant 0 : index
    %c0_50 = arith.constant 0 : index
    %67 = vector.load %arg3[%c0_49, %c0_50] : memref<128x64xf32, #tpu.memory_space<vmem>>, vector<128x64xf32>
    %cst_51 = arith.constant dense<0.000000e+00> : vector<128x32xf32>
    %68 = tpu.matmul %67, %66, %cst_51 {dimension_numbers = #tpu.dot_dimension_numbers<[1], [0], [0], [1], [0, 0, 1, 1], [], []>} : vector<128x64xf32>, vector<64x32xf32>, vector<128x32xf32> -> vector<128x32xf32>
    %c0_52 = arith.constant 0 : index
    %c0_53 = arith.constant 0 : index
    %69 = vector.load %arg4[%c0_52, %c0_53] : memref<128x128xf32, #tpu.memory_space<vmem>>, vector<128x128xf32>
    %cst_54 = arith.constant dense<0.000000e+00> : vector<128x32xf32>
    %70 = tpu.matmul %69, %68, %cst_54 {dimension_numbers = #tpu.dot_dimension_numbers<[1], [0], [0], [1], [0, 0, 1, 1], [], []>} : vector<128x128xf32>, vector<128x32xf32>, vector<128x32xf32> -> vector<128x32xf32>
    %c0_55 = arith.constant 0 : index
    %c0_56 = arith.constant 0 : index
    %71 = vector.load %arg5[%c0_55, %c0_56] : memref<128x128xf32, #tpu.memory_space<vmem>>, vector<128x128xf32>
    %cst_57 = arith.constant dense<0.000000e+00> : vector<128x32xf32>
    %72 = tpu.matmul %71, %68, %cst_57 {dimension_numbers = #tpu.dot_dimension_numbers<[1], [0], [0], [1], [0, 0, 1, 1], [], []>} : vector<128x128xf32>, vector<128x32xf32>, vector<128x32xf32> -> vector<128x32xf32>
    %73 = arith.truncf %70 : vector<128x32xf32> to vector<128x32xbf16>
    %c0_58 = arith.constant 0 : index
    %c0_59 = arith.constant 0 : index
    %c0_60 = arith.constant 0 : index
    %74 = vector.load %arg6[%c0_58, %c0_59, %c0_60] : memref<3x32x32xf32, #tpu.memory_space<vmem>>, vector<1x32x32xf32>
    %75 = vector.shape_cast %74 : vector<1x32x32xf32> to vector<32x32xf32>
    %76 = arith.truncf %75 : vector<32x32xf32> to vector<32x32xbf16>
    %cst_61 = arith.constant dense<0.000000e+00> : vector<128x32xf32>
    %77 = tpu.matmul %73, %76, %cst_61 {dimension_numbers = #tpu.dot_dimension_numbers<[1], [0], [0], [1], [0, 0, 1, 1], [], []>} : vector<128x32xbf16>, vector<32x32xbf16>, vector<128x32xf32> -> vector<128x32xf32>
    %78 = arith.truncf %68 : vector<128x32xf32> to vector<128x32xbf16>
    %c1_62 = arith.constant 1 : index
    %c0_63 = arith.constant 0 : index
    %c0_64 = arith.constant 0 : index
    %79 = vector.load %arg6[%c1_62, %c0_63, %c0_64] : memref<3x32x32xf32, #tpu.memory_space<vmem>>, vector<1x32x32xf32>
    %80 = vector.shape_cast %79 : vector<1x32x32xf32> to vector<32x32xf32>
    %81 = arith.truncf %80 : vector<32x32xf32> to vector<32x32xbf16>
    %cst_65 = arith.constant dense<0.000000e+00> : vector<128x32xf32>
    %82 = tpu.matmul %78, %81, %cst_65 {dimension_numbers = #tpu.dot_dimension_numbers<[1], [0], [0], [1], [0, 0, 1, 1], [], []>} : vector<128x32xbf16>, vector<32x32xbf16>, vector<128x32xf32> -> vector<128x32xf32>
    %83 = arith.addf %77, %82 : vector<128x32xf32>
    %84 = arith.truncf %72 : vector<128x32xf32> to vector<128x32xbf16>
    %c2_66 = arith.constant 2 : index
    %c0_67 = arith.constant 0 : index
    %c0_68 = arith.constant 0 : index
    %85 = vector.load %arg6[%c2_66, %c0_67, %c0_68] : memref<3x32x32xf32, #tpu.memory_space<vmem>>, vector<1x32x32xf32>
    %86 = vector.shape_cast %85 : vector<1x32x32xf32> to vector<32x32xf32>
    %87 = arith.truncf %86 : vector<32x32xf32> to vector<32x32xbf16>
    %cst_69 = arith.constant dense<0.000000e+00> : vector<128x32xf32>
    %88 = tpu.matmul %84, %87, %cst_69 {dimension_numbers = #tpu.dot_dimension_numbers<[1], [0], [0], [1], [0, 0, 1, 1], [], []>} : vector<128x32xbf16>, vector<32x32xbf16>, vector<128x32xf32> -> vector<128x32xf32>
    %89 = arith.addf %83, %88 : vector<128x32xf32>
    %c0_70 = arith.constant 0 : index
    %c0_71 = arith.constant 0 : index
    %90 = vector.load %arg7[%c0_70, %c0_71] : memref<1x32xf32, #tpu.memory_space<vmem>>, vector<1x32xf32>
    %91 = vector.broadcast %90 : vector<1x32xf32> to vector<128x32xf32>
    %92 = arith.addf %89, %91 : vector<128x32xf32>
    %cst_72 = arith.constant 0.000000e+00 : f32
    %93 = vector.broadcast %cst_72 : f32 to vector<128x32xf32>
    %94 = arith.cmpf ogt, %92, %93 : vector<128x32xf32>
    %cst_73 = arith.constant 2.000000e-01 : f32
    %95 = vector.broadcast %cst_73 : f32 to vector<128x32xf32>
    %96 = arith.mulf %95, %92 : vector<128x32xf32>
    %97 = arith.select %94, %92, %96 : vector<128x32xi1>, vector<128x32xf32>
    %c0_74 = arith.constant 0 : index
    %c0_75 = arith.constant 0 : index
    %98 = vector.load %arg4[%c0_74, %c0_75] : memref<128x128xf32, #tpu.memory_space<vmem>>, vector<128x128xf32>
    %cst_76 = arith.constant dense<0.000000e+00> : vector<128x32xf32>
    %99 = tpu.matmul %98, %97, %cst_76 {dimension_numbers = #tpu.dot_dimension_numbers<[1], [0], [0], [1], [0, 0, 1, 1], [], []>} : vector<128x128xf32>, vector<128x32xf32>, vector<128x32xf32> -> vector<128x32xf32>
    %c0_77 = arith.constant 0 : index
    %c0_78 = arith.constant 0 : index
    %100 = vector.load %arg5[%c0_77, %c0_78] : memref<128x128xf32, #tpu.memory_space<vmem>>, vector<128x128xf32>
    %cst_79 = arith.constant dense<0.000000e+00> : vector<128x32xf32>
    %101 = tpu.matmul %100, %97, %cst_79 {dimension_numbers = #tpu.dot_dimension_numbers<[1], [0], [0], [1], [0, 0, 1, 1], [], []>} : vector<128x128xf32>, vector<128x32xf32>, vector<128x32xf32> -> vector<128x32xf32>
    %102 = arith.truncf %99 : vector<128x32xf32> to vector<128x32xbf16>
    %c0_80 = arith.constant 0 : index
    %c0_81 = arith.constant 0 : index
    %c0_82 = arith.constant 0 : index
    %103 = vector.load %arg8[%c0_80, %c0_81, %c0_82] : memref<3x32x8xf32, #tpu.memory_space<vmem>>, vector<1x32x8xf32>
    %104 = vector.shape_cast %103 : vector<1x32x8xf32> to vector<32x8xf32>
    %105 = arith.truncf %104 : vector<32x8xf32> to vector<32x8xbf16>
    %cst_83 = arith.constant dense<0.000000e+00> : vector<128x8xf32>
    %106 = tpu.matmul %102, %105, %cst_83 {dimension_numbers = #tpu.dot_dimension_numbers<[1], [0], [0], [1], [0, 0, 1, 1], [], []>} : vector<128x32xbf16>, vector<32x8xbf16>, vector<128x8xf32> -> vector<128x8xf32>
    %107 = arith.truncf %97 : vector<128x32xf32> to vector<128x32xbf16>
    %c1_84 = arith.constant 1 : index
    %c0_85 = arith.constant 0 : index
    %c0_86 = arith.constant 0 : index
    %108 = vector.load %arg8[%c1_84, %c0_85, %c0_86] : memref<3x32x8xf32, #tpu.memory_space<vmem>>, vector<1x32x8xf32>
    %109 = vector.shape_cast %108 : vector<1x32x8xf32> to vector<32x8xf32>
    %110 = arith.truncf %109 : vector<32x8xf32> to vector<32x8xbf16>
    %cst_87 = arith.constant dense<0.000000e+00> : vector<128x8xf32>
    %111 = tpu.matmul %107, %110, %cst_87 {dimension_numbers = #tpu.dot_dimension_numbers<[1], [0], [0], [1], [0, 0, 1, 1], [], []>} : vector<128x32xbf16>, vector<32x8xbf16>, vector<128x8xf32> -> vector<128x8xf32>
    %112 = arith.addf %106, %111 : vector<128x8xf32>
    %113 = arith.truncf %101 : vector<128x32xf32> to vector<128x32xbf16>
    %c2_88 = arith.constant 2 : index
    %c0_89 = arith.constant 0 : index
    %c0_90 = arith.constant 0 : index
    %114 = vector.load %arg8[%c2_88, %c0_89, %c0_90] : memref<3x32x8xf32, #tpu.memory_space<vmem>>, vector<1x32x8xf32>
    %115 = vector.shape_cast %114 : vector<1x32x8xf32> to vector<32x8xf32>
    %116 = arith.truncf %115 : vector<32x8xf32> to vector<32x8xbf16>
    %cst_91 = arith.constant dense<0.000000e+00> : vector<128x8xf32>
    %117 = tpu.matmul %113, %116, %cst_91 {dimension_numbers = #tpu.dot_dimension_numbers<[1], [0], [0], [1], [0, 0, 1, 1], [], []>} : vector<128x32xbf16>, vector<32x8xbf16>, vector<128x8xf32> -> vector<128x8xf32>
    %118 = arith.addf %112, %117 : vector<128x8xf32>
    %c0_92 = arith.constant 0 : index
    %c0_93 = arith.constant 0 : index
    %119 = vector.load %arg9[%c0_92, %c0_93] : memref<1x8xf32, #tpu.memory_space<vmem>>, vector<1x8xf32>
    %120 = vector.broadcast %119 : vector<1x8xf32> to vector<128x8xf32>
    %121 = arith.addf %118, %120 : vector<128x8xf32>
    %c0_94 = arith.constant 0 : index
    %c0_95 = arith.constant 0 : index
    %122 = vector.load %arg10[%c0_94, %c0_95] : memref<128x8xf32, #tpu.memory_space<vmem>>, vector<128x8xf32>
    tpu.vector_store %arg10[%c0_94, %c0_95], %121 {strides = array<i32>} : memref<128x8xf32, #tpu.memory_space<vmem>>, vector<128x8xf32>,
    return
  }
}

module attributes {stable_mosaic.version = 11 : i64} {
  func.func @kernel(%arg0: memref<8x16x1024xf32, #tpu.memory_space<vmem>>, %arg1: memref<16x1024xf32, #tpu.memory_space<vmem>>, %arg2: memref<8x1x1024xf32, #tpu.memory_space<vmem>>) attributes {dimension_semantics = [], scalar_prefetch = 0 : i64, scratch_operands = 0 : i64, tpu.core_type = #tpu.core_type<tc>} {
    %c0 = arith.constant 0 : index
    %c0_0 = arith.constant 0 : index
    %c0_1 = arith.constant 0 : index
    %0 = vector.load %arg0[%c0, %c0_0, %c0_1] : memref<8x16x1024xf32, #tpu.memory_space<vmem>>, vector<8x16x1024xf32>
    %c0_2 = arith.constant 0 : index
    %c0_3 = arith.constant 0 : index
    %1 = vector.load %arg1[%c0_2, %c0_3] : memref<16x1024xf32, #tpu.memory_space<vmem>>, vector<16x1024xf32>
    %2 = vector.shape_cast %1 : vector<16x1024xf32> to vector<1x16x1024xf32>
    %3 = vector.broadcast %2 : vector<1x16x1024xf32> to vector<8x16x1024xf32>
    %4 = arith.mulf %0, %3 : vector<8x16x1024xf32>
    %cst = arith.constant dense<0.000000e+00> : vector<8x1024xf32>
    %5 = vector.multi_reduction <add>, %4, %cst [1] : vector<8x16x1024xf32> to vector<8x1024xf32>
    %6 = vector.shape_cast %5 : vector<8x1024xf32> to vector<8x1x1024xf32>
    %cst_4 = arith.constant 6.250000e-02 : f32
    %7 = vector.broadcast %cst_4 : f32 to vector<8x1x1024xf32>
    %8 = arith.mulf %6, %7 : vector<8x1x1024xf32>
    %c0_5 = arith.constant 0 : index
    %c0_6 = arith.constant 0 : index
    %c0_7 = arith.constant 0 : index
    %9 = vector.load %arg2[%c0_5, %c0_6, %c0_7] : memref<8x1x1024xf32, #tpu.memory_space<vmem>>, vector<8x1x1024xf32>
    tpu.vector_store %arg2[%c0_5, %c0_6, %c0_7], %8 {strides = array<i32>} : memref<8x1x1024xf32, #tpu.memory_space<vmem>>, vector<8x1x1024xf32>,
    return
  }
}

</mosaic_0001>

<bundles_post_ra>
// kernel: model_forward.8
= control target key start
LH: loop header
LB: loop body
LE: loop exit
PB: predicated region body
PF: predicated region fallthrough
CT: control target
= control target key end

     0   :  { %8 = vsyncpa [#allocation3], 0  ;;  %s133_s12 = smov [#allocation2]   ;;  %s186_s0 = inlined_call_operand.vmem [shape: f32[8,32], index: 0, kind: input, shape index: {}]   ;;  %s187_s1 = inlined_call_operand.vmem [shape: f32[32,64], index: 1, kind: input, shape index: {}]   ;;  %s188_s2 = inlined_call_operand.hbm [shape: f32[1,64], index: 2, kind: input, shape index: {}]   ;;  %s189_s3 = inlined_call_operand.vmem [shape: f32[8,64], index: 3, kind: output, shape index: {}]  }
   0x1   :  { %s19_s13 = sshll.u32 %s133_s12, 4  ;;  %s109_s16 = scalar_lea.hbm %s188_s2, 16  ;;  %s20_s13 = int_to_ptr.vmem [resolvable:$true] %s19_s13 }
   0x2   :  { %p110_p0 = scmp.ne.s32.totalorder %s188_s2, %s109_s16  ;;  %p113_p1 = scmp.lt.u32.totalorder %s109_s16, %s188_s2 }
   0x4   :  { %p115_p2 = pnand %p113_p1, %p110_p0 }
   0x6   :  { %118 = shalt.err (!%p115_p2)
}
   0x7   :  { %s119_s21 = scalar_lea.vmem %s20_s13, 16  ;;  %s123_s22 = scalar_lea.vmem %s20_s13, 32 }
   0x8   :  { %p120_p3 = scmp.ne.s32.totalorder %s20_s13, %s119_s21  ;;  %p124_p4 = scmp.lt.s32.totalorder %s20_s13, %s20_s13 }
   0x9   :  { %p125_p5 = scmp.lt.s32.totalorder %s123_s22, %s119_s21 }
   0xb   :  { %p126_p6 = por %p125_p5, %p124_p4 }
   0xd   :  { %p127_p7 = pnand %p126_p6, %p120_p3 }
   0xf   :  { %130 = shalt.err (!%p127_p7)
}
  0x10   :  { %22 = dma.hbm_to_vmem [thread:$0]  %s188_s2, 16, %s20_s13, [#allocation3]  }
  0x11   :  { %131 = dma.done.wait [#allocation3], 16  }
  0x12   :  { %132 = vsyncadd [#allocation3], 4294967280  ;;  %v134_v0 = vmov 0.0   ;;  %vm135_vm0 = vmmov 0   ;;  %v29_v1 = vld [vmem:[%s187_s1] sm:$0xff]  ;;  %v30_v2 = vld [vmem:[%s187_s1 + $0x8] sm:$0xff] }
  0x13   :  { %98 = vmatprep.subr.bf16.mxu0 %v134_v0  ;;  %102 = vmatprep.mubr.msk.bf16.mxu0 %vm135_vm0, %v134_v0  ;;  %v31_v3 = vld [vmem:[%s187_s1 + $0x10] sm:$0xff]  ;;  %v33_v4 = vpack.c.bf16 %v30_v2, %v29_v1  ;;  %v32_v5 = vld [vmem:[%s187_s1 + $0x18] sm:$0xff]  ;;  %v27_v7 = vld [vmem:[%s186_s0] sm:$0xff]  ;;  %vm42_vm1 = vcmask 261120   ;;  %vm86_vm2 = vcmask 523264  }
  0x14   :  { %v34_v6 = vpack.c.bf16 %v32_v5, %v31_v3  ;;  %v28_v8 = vpack.c.bf16 %v27_v7, %v27_v7  ;;  %v93_v9 = vld [vmem:[#allocation2] ss:$0 sm:$0xff] }
  0x15   :  { %99 = vmatpush3.bf16.msra.mxu0 %v33_v4 }
  0x16   :  { %100 = vmatprep.subr.bf16.mxu0 %v134_v0 }
  0x19   :  { %101 = vmatpush3.bf16.msra.mxu0 %v34_v6 }
  0x1c   :  { %103 = vmatmul.mubr.msk.bf16.vlgmr.msra.gmra.mrb[0].mxu0 %vm42_vm1, %v28_v8 }
  0xef   :  { %v80_v10 = vpop.f32.mrb[0].mxu0 }
  0xf0   :  { %v81_v11 = vadd.f32 %v93_v9, %v80_v10  ;;  %v104_v12 = vpop.f32.mrb[1].mxu0 }
  0xf1   :  { %v83_v13 = vpop.f32.mrb[2].mxu0 }
  0xf2   :  { %87 = vst.msk [vmem:[%s189_s3] sm:$0xff] %vm86_vm2, %v81_v11  ;;  %v105_v14 = vpop.f32.mrb[3].mxu0 }
  0xf3   :  { %92 = vsyncpa [#allocation3], 1 }

// kernel: model_forward.6
= control target key start
LH: loop header
LB: loop body
LE: loop exit
PB: predicated region body
PF: predicated region fallthrough
CT: control target
= control target key end

     0   :  { %vm40_vm0 = vcmask 523264   ;;  %vm100_vm1 = vcmask 261120   ;;  %s203_s1 = inlined_call_operand.vmem [shape: f32[64,32], index: 1, kind: input, shape index: {}]   ;;  %s204_s0 = inlined_call_operand.vmem [shape: f32[32,64], index: 0, kind: input, shape index: {}]   ;;  %s205_s2 = inlined_call_operand.vmem [shape: f32[1,32], index: 2, kind: input, shape index: {}]   ;;  %s206_s3 = inlined_call_operand.vmem [shape: f32[32,32], index: 3, kind: output, shape index: {}]  }
   0x1   :  { %v21_v0 = vld [vmem:[%s203_s1] sm:$0xff]  ;;  %v22_v1 = vld [vmem:[%s203_s1 + $0x8] sm:$0xff]  ;;  %v23_v2 = vld [vmem:[%s203_s1 + $0x10] sm:$0xff] }
   0x2   :  { %v29_v3 = vpack.c.bf16 %v22_v1, %v21_v0  ;;  %v24_v4 = vld [vmem:[%s203_s1 + $0x18] sm:$0xff]  ;;  %v25_v6 = vld [vmem:[%s203_s1 + $0x20] sm:$0xff]  ;;  %v26_v7 = vld [vmem:[%s203_s1 + $0x28] sm:$0xff] }
   0x3   :  { %v30_v5 = vpack.c.bf16 %v24_v4, %v23_v2  ;;  %v15_v8 = vld [vmem:[%s204_s0] sm:$0xff]  ;;  %v16_v9 = vld [vmem:[%s204_s0 + $0x8] sm:$0xff]  ;;  %v31_v11 = vpack.c.bf16 %v26_v7, %v25_v6  ;;  %v27_v12 = vld [vmem:[%s203_s1 + $0x30] sm:$0xff] }
   0x4   :  { %118 = vmatprep.subr.bf16.mxu0 %v29_v3  ;;  %v19_v10 = vpack.c.bf16 %v16_v9, %v15_v8  ;;  %v28_v13 = vld [vmem:[%s203_s1 + $0x38] sm:$0xff]  ;;  %v17_v15 = vld [vmem:[%s204_s0 + $0x10] sm:$0xff]  ;;  %v109_v18 = vld [vmem:[%s205_s2] ss:$0 sm:$0xff] }
   0x5   :  { %119 = vmatpush3.bf16.msra.mxu0 %v29_v3  ;;  %v32_v14 = vpack.c.bf16 %v28_v13, %v27_v12  ;;  %v18_v16 = vld [vmem:[%s204_s0 + $0x18] sm:$0xff] }
   0x6   :  { %120 = vmatprep.subr.bf16.mxu0 %v30_v5  ;;  %126 = vmatprep.mubr.msk.bf16.mxu0 %vm40_vm0, %v19_v10  ;;  %v20_v17 = vpack.c.bf16 %v18_v16, %v17_v15 }
   0x9   :  { %121 = vmatpush3.bf16.msra.mxu0 %v30_v5 }
   0xa   :  { %122 = vmatprep.subr.bf16.mxu0 %v31_v11 }
   0xd   :  { %123 = vmatpush3.bf16.msra.mxu0 %v31_v11 }
   0xe   :  { %124 = vmatprep.subr.bf16.mxu0 %v32_v14 }
  0x11   :  { %125 = vmatpush3.bf16.msra.mxu0 %v32_v14 }
  0x14   :  { %127 = vmatmul.mubr.msk.bf16.vlgmr.msra.gmra.mrb[0].mxu0 %vm40_vm0, %v20_v17 }
  0xe7   :  { %v128_v19 = vpop.f32.mrb[0].mxu0 }
  0xe8   :  { %v90_v20 = vadd.f32 %v128_v19, %v109_v18  ;;  %v81_v21 = vpop.f32.mrb[1].mxu0 }
  0xe9   :  { %v82_v22 = vadd.f32 %v109_v18, %v81_v21  ;;  %v129_v23 = vpop.f32.mrb[2].mxu0 }
  0xea   :  { %v98_v24 = vand.u32 2147483647, %v90_v20  ;;  %v93_v25 = vadd.f32 %v129_v23, %v109_v18  ;;  %v84_v26 = vpop.f32.mrb[3].mxu0 }
  0xeb   :  { %v96_v27 = vand.u32 2147483647, %v82_v22  ;;  %v85_v28 = vadd.f32 %v109_v18, %v84_v26 }
  0xec   :  { %103 = vst.msk [vmem:[%s206_s3 + $0x10] sm:$0xff] %vm100_vm1, %v98_v24  ;;  %v99_v29 = vand.u32 2147483647, %v93_v25 }
  0xed   :  { %101 = vst.msk [vmem:[%s206_s3] sm:$0xff] %vm100_vm1, %v96_v27  ;;  %v97_v30 = vand.u32 2147483647, %v85_v28 }
  0xee   :  { %104 = vst.msk [vmem:[%s206_s3 + $0x18] sm:$0xff] %vm100_vm1, %v99_v29 }
  0xef   :  { %102 = vst.msk [vmem:[%s206_s3 + $0x8] sm:$0xff] %vm100_vm1, %v97_v30 }

// kernel: model_forward.7
= control target key start
LH: loop header
LB: loop body
LE: loop exit
PB: predicated region body
PF: predicated region fallthrough
CT: control target
= control target key end

     0   :  { %15 = vsyncpa [#allocation3], 0  ;;  %s3300_s13 = smov [#allocation2]   ;;  %s3968_s0 = inlined_call_operand.vmem [shape: f32[32,32], index: 0, kind: input, shape index: {}]   ;;  %s3969_s1 = inlined_call_operand.vmem [shape: f32[32,33], index: 1, kind: input, shape index: {}]   ;;  %s3970_s2 = inlined_call_operand.vmem [shape: f32[32,32], index: 2, kind: input, shape index: {}]   ;;  %s3971_s3 = inlined_call_operand.vmem [shape: f32[33,32], index: 3, kind: input, shape index: {}]   ;;  %s3972_s4 = inlined_call_operand.hbm [shape: f32[1,32], index: 4, kind: input, shape index: {}]   ;;  %s3973_s5 = inlined_call_operand.vmem [shape: f32[5,3,32,32], index: 5, kind: input, shape index: {}]   ;;  %s3974_s6 = inlined_call_operand.vmem [shape: f32[5,3,32,32], index: 6, kind: input, shape index: {}]   ;;  %s3975_s7 = inlined_call_operand.vmem [shape: f32[5,1,32], index: 7, kind: input, shape index: {}]   ;;  %s3976_s8 = inlined_call_operand.vmem [shape: f32[5,32,32], index: 8, kind: input, shape index: {}]   ;;  %s3977_s9 = inlined_call_operand.vmem [shape: f32[5,1,32], index: 9, kind: input, shape index: {}]   ;;  %s3978_s10 = inlined_call_operand.vmem [shape: f32[32,32], index: 10, kind: output, shape index: {}]  }
   0x1   :  { %s30_s14 = sshll.u32 %s3300_s13, 4  ;;  %s3276_s17 = scalar_lea.hbm %s3972_s4, 16  ;;  %s31_s14 = int_to_ptr.vmem [resolvable:$true] %s30_s14 }
   0x2   :  { %p3277_p0 = scmp.ne.s32.totalorder %s3972_s4, %s3276_s17  ;;  %p3280_p1 = scmp.lt.u32.totalorder %s3276_s17, %s3972_s4 }
   0x4   :  { %p3282_p2 = pnand %p3280_p1, %p3277_p0 }
   0x6   :  { %3285 = shalt.err (!%p3282_p2)
}
   0x7   :  { %s3286_s22 = scalar_lea.vmem %s31_s14, 16  ;;  %s3290_s23 = scalar_lea.vmem %s31_s14, 32 }
   0x8   :  { %p3287_p3 = scmp.ne.s32.totalorder %s31_s14, %s3286_s22  ;;  %p3291_p4 = scmp.lt.s32.totalorder %s31_s14, %s31_s14 }
   0x9   :  { %p3292_p5 = scmp.lt.s32.totalorder %s3290_s23, %s3286_s22 }
   0xb   :  { %p3293_p6 = por %p3292_p5, %p3291_p4 }
   0xd   :  { %p3294_p7 = pnand %p3293_p6, %p3287_p3 }
   0xf   :  { %3297 = shalt.err (!%p3294_p7)
}
  0x10   :  { %33 = dma.hbm_to_vmem [thread:$0]  %s3972_s4, 16, %s31_s14, [#allocation3]  }
  0x11   :  { %3298 = dma.done.wait [#allocation3], 16  }
  0x12   :  { %3299 = vsyncadd [#allocation3], 4294967280  ;;  %vm52_vm0 = vcmask 261120   ;;  %v3372_v0 = vld [vmem:[%s3968_s0] sm:$0xff]  ;;  %v3377_v1 = vld [vmem:[%s3968_s0 + $0x8] sm:$0xff]  ;;  %vm169_vm1 = vcmask 1040384  }
  0x13   :  { %v53_v2 = vsel %vm52_vm0, %v3372_v0, 0.0  ;;  %v54_v3 = vsel %vm52_vm0, %v3377_v1, 0.0  ;;  %v3386_v5 = vld [vmem:[%s3968_s0 + $0x10] sm:$0xff]  ;;  %v3391_v6 = vld [vmem:[%s3968_s0 + $0x18] sm:$0xff]  ;;  %v154_v26 = vld [vmem:[%s3971_s3] sm:$0xff]  ;;  %v3301_v35 = vmov 0  }
  0x14   :  { %v55_v4 = vadd.f32 %v54_v3, %v53_v2  ;;  %v97_v7 = vsel %vm52_vm0, %v3386_v5, 0.0  ;;  %v98_v8 = vsel %vm52_vm0, %v3391_v6, 0.0  ;;  %v155_v27 = vld [vmem:[%s3971_s3 + $0x8] sm:$0xff]  ;;  %v156_v28 = vld [vmem:[%s3971_s3 + $0x10] sm:$0xff]  ;;  %v157_v30 = vld [vmem:[%s3971_s3 + $0x18] sm:$0xff]  ;;  %v171_v36 = vsel %vm169_vm1, 65535, %v3301_v35 }
  0x15   :  { %v99_v9 = vadd.f32 %v98_v8, %v97_v7  ;;  %v159_v29 = vpack.c.bf16 %v155_v27, %v154_v26  ;;  %v158_v31 = vld [vmem:[%s3971_s3 + $0x20] sm:$0x1]  ;;  %v160_v33 = vpack.c.bf16 %v157_v30, %v156_v28  ;;  %v149_v37 = vld [vmem:[%s3969_s1 + $0x8] sm:$0xff]  ;;  %vm162_vm2 = vcmask 269312   ;;  %v150_v40 = vld [vmem:[%s3969_s1 + $0x10] sm:$0xff] }
  0x16   :  { %56 = vadd.xlane.f32.xlu0 %v55_v4  ;;  %v148_v32 = vld [vmem:[%s3969_s1] sm:$0xff]  ;;  %v161_v34 = vpack.c.bf16 %v158_v31, %v158_v31  ;;  %v151_v41 = vld [vmem:[%s3969_s1 + $0x18] sm:$0xff] }
  0x17   :  { %100 = vadd.xlane.f32.xlu1 %v99_v9  ;;  %2868 = vmatprep.subr.bf16.mxu0 %v159_v29  ;;  %v152_v38 = vpack.c.bf16 %v149_v37, %v148_v32  ;;  %v153_v42 = vpack.c.bf16 %v151_v41, %v150_v40  ;;  %v290_v41 = vld [vmem:[%s3973_s5] sm:$0xff] }
  0x18   :  { %2869 = vmatpush3.bf16.msra.mxu0 %v159_v29  ;;  %v173_v39 = vand.u32 %v171_v36, %v161_v34  ;;  %2894 = vmatprep.mubr.msk.f32.mxu1 %vm52_vm0, %v290_v41 }
  0x19   :  { %2870 = vmatprep.subr.bf16.mxu0 %v160_v33  ;;  %2874 = vmatprep.mubr.msk.bf16.mxu0 %vm162_vm2, %v152_v38 }
  0x1c   :  { %2871 = vmatpush3.bf16.msra.mxu0 %v160_v33 }
  0x1d   :  { %2872 = vmatprep.subr.bf16.mxu0 %v173_v39 }
  0x20   :  { %2873 = vmatpush3.bf16.msra.mxu0 %v173_v39 }
  0x23   :  { %2875 = vmatmul.mubr.msk.bf16.vlgmr.msra.gmra.mrb[0].mxu0 %vm162_vm2, %v153_v42  ;;  %v2557_v42 = vld [vmem:[%s3973_s5 + $0x40] sm:$0xff] }
  0xa3   :  { %v57_v10 = vpop.xlane.xlu0 %56 }
  0xa4   :  { %v58_v11 = vrot.slane %v57_v10, 4  ;;  %v101_v43 = vpop.xlane.xlu1 %100 }
  0xa5   :  { %v102_v44 = vrot.slane %v101_v43, 4 }
  0xa6   :  { %v59_v12 = vadd.f32 %v58_v11, %v57_v10 }
  0xa7   :  { %v103_v45 = vadd.f32 %v102_v44, %v101_v43  ;;  %v2544_v44 = vld [vmem:[#allocation2] ss:$0 sm:$0xff] }
  0xa8   :  { %v60_v13 = vrot.slane %v59_v12, 2 }
  0xa9   :  { %v104_v46 = vrot.slane %v103_v45, 2 }
  0xaa   :  { %v61_v14 = vadd.f32 %v60_v13, %v59_v12 }
  0xab   :  { %v105_v50 = vadd.f32 %v104_v46, %v103_v45 }
  0xac   :  { %v62_v15 = vrot.slane %v61_v14, 1 }
  0xad   :  { %v106_v53 = vrot.slane %v105_v50, 1 }
  0xae   :  { %v63_v16 = vadd.f32 %v62_v15, %v61_v14 }
  0xaf   :  { %v107_v56 = vadd.f32 %v106_v53, %v105_v50 }
  0xb0   :  { %3242 = vpush %v63_v16 }
  0xe1   :  { %s3243_s13 = spop %3242 }
  0xe2   :  { %v65_v17 = vstv %s3243_s13 }
  0xe3   :  { %v67_v18 = vmul.f32 0.001953125, %v65_v17 }
  0xe5   :  { %v68_v19 = vsub.f32 %v3372_v0, %v67_v18  ;;  %v69_v20 = vsub.f32 %v3377_v1, %v67_v18  ;;  %v142_v18 = vld [vmem:[%s3970_s2] sm:$0xff] }
  0xe7   :  { %v70_v21 = vmul.f32 %v68_v19, %v68_v19  ;;  %v71_v22 = vmul.f32 %v69_v20, %v69_v20  ;;  %v143_v19 = vld [vmem:[%s3970_s2 + $0x8] sm:$0xff]  ;;  %v144_v20 = vld [vmem:[%s3970_s2 + $0x10] sm:$0xff] }
  0xe9   :  { %v72_v23 = vsel %vm52_vm0, %v70_v21, 0.0  ;;  %v73_v24 = vsel %vm52_vm0, %v71_v22, 0.0  ;;  %v146_v21 = vpack.c.bf16 %v143_v19, %v142_v18  ;;  %v2567_v19 = vld [vmem:[%s3974_s6 + $0x50] sm:$0xff] }
  0xea   :  { %v74_v25 = vadd.f32 %v73_v24, %v72_v23 }
  0xeb   :  { %2878 = vmatprep.subr.bf16.mxu0 %v146_v21 }
  0xec   :  { %75 = vadd.xlane.f32.xlu0 %v74_v25  ;;  %2879 = vmatpush3.bf16.msra.mxu0 %v146_v21 }
 0x179   :  { %v76_v47 = vpop.xlane.xlu0 %75 }
 0x17a   :  { %v77_v48 = vrot.slane %v76_v47, 4 }
 0x17c   :  { %v78_v49 = vadd.f32 %v77_v48, %v76_v47 }
 0x17e   :  { %v79_v51 = vrot.slane %v78_v49, 2 }
 0x180   :  { %v80_v52 = vadd.f32 %v79_v51, %v78_v49  ;;  %v2549_v51 = vld [vmem:[%s3974_s6 + $0x20] sm:$0xff] }
 0x182   :  { %v81_v54 = vrot.slane %v80_v52, 1 }
 0x184   :  { %v82_v55 = vadd.f32 %v81_v54, %v80_v52  ;;  %v2550_v52 = vld [vmem:[%s3974_s6 + $0x28] sm:$0xff] }
 0x185   :  { %v406_v54 = vpack.c.bf16 %v2550_v52, %v2549_v51  ;;  %v2575_v51 = vld [vmem:[%s3973_s5 + $0x60] sm:$0xff] }
 0x186   :  { %3244 = vpush %v82_v55  ;;  %v2551_v55 = vld [vmem:[%s3974_s6 + $0x30] sm:$0xff]  ;;  %v2583_v52 = vld [vmem:[%s3974_s6 + $0x60] sm:$0xff] }
 0x187   :  { %3246 = vpush %v107_v56  ;;  %v2552_v56 = vld [vmem:[%s3974_s6 + $0x38] sm:$0xff] }
 0x1b7   :  { %s3245_s1 = spop %3244 }
 0x1b8   :  { %v84_v57 = vstv %s3245_s1  ;;  %s3247_s4 = spop %3246 }
 0x1b9   :  { %v85_v58 = vmul.f32 0.001953125, %v84_v57  ;;  %v109_v59 = vstv %s3247_s4  ;;  %v291_v57 = vld [vmem:[%s3973_s5 + $0x8] sm:$0xff] }
 0x1ba   :  { %v110_v60 = vmul.f32 0.001953125, %v109_v59  ;;  %v292_v59 = vld [vmem:[%s3973_s5 + $0x10] sm:$0xff] }
 0x1bb   :  { %3260 = vrsqrt.f32 %v85_v58  ;;  %vm88_vm3 = vcmp.eq.f32.partialorder %v85_v58, inf  ;;  %v91_v10 = vand.u32 2147483648, %v85_v58  ;;  %vm90_vm4 = vcmp.eq.f32.partialorder %v85_v58, 0.0 }
 0x1bc   :  { %v111_v61 = vsub.f32 %v3386_v5, %v110_v60  ;;  %v112_v62 = vsub.f32 %v3391_v6, %v110_v60  ;;  %v407_v60 = vpack.c.bf16 %v2552_v56, %v2551_v55  ;;  %v2572_v55 = vld [vmem:[%s3977_s9] ss:$0 sm:$0xff] }
 0x1be   :  { %v113_v63 = vmul.f32 %v111_v61, %v111_v61  ;;  %v114_v2 = vmul.f32 %v112_v62, %v112_v62  ;;  %v2559_v61 = vld [vmem:[%s3973_s5 + $0x50] sm:$0xff]  ;;  %v393_v62 = vld [vmem:[%s3974_s6] sm:$0xff] }
 0x1c0   :  { %v115_v3 = vsel %vm52_vm0, %v113_v63, 0.0  ;;  %v116_v4 = vsel %vm52_vm0, %v114_v2, 0.0  ;;  %v394_v63 = vld [vmem:[%s3974_s6 + $0x8] sm:$0xff]  ;;  %v293_v2 = vld [vmem:[%s3973_s5 + $0x18] sm:$0xff] }
 0x1c1   :  { %v117_v7 = vadd.f32 %v116_v4, %v115_v3  ;;  %v2560_v3 = vld [vmem:[%s3973_s5 + $0x58] sm:$0xff]  ;;  %v397_v4 = vpack.c.bf16 %v394_v63, %v393_v62 }
 0x1c3   :  { %118 = vadd.xlane.f32.xlu1 %v117_v7  ;;  %v395_v7 = vld [vmem:[%s3974_s6 + $0x10] sm:$0xff] }
 0x1c5   :  { %v3261_v8 = vpop.eup %3260 }
 0x1c6   :  { %v87_v9 = vmul.f32 %v3261_v8, %v85_v58  ;;  %v396_v8 = vld [vmem:[%s3974_s6 + $0x18] sm:$0xff] }
 0x1c8   :  { %v89_v11 = vsel %vm88_vm3, %v85_v58, %v87_v9  ;;  %v2558_v58 = vld [vmem:[%s3973_s5 + $0x48] sm:$0xff]  ;;  %v398_v9 = vpack.c.bf16 %v396_v8, %v395_v7 }
 0x1c9   :  { %v92_v12 = vsel %vm90_vm4, %v91_v10, %v89_v11  ;;  %v2565_v10 = vld [vmem:[%s3974_s6 + $0x40] sm:$0xff]  ;;  %v2566_v11 = vld [vmem:[%s3974_s6 + $0x48] sm:$0xff] }
 0x1ca   :  { %v93_v13 = vadd.f32 1e-08, %v92_v12  ;;  %v627_v12 = vpack.c.bf16 %v2566_v11, %v2565_v10 }
 0x1cc   :  { %3262 = vrcp.f32 %v93_v13 }
 0x1d6   :  { %v3263_v14 = vpop.eup %3262 }
 0x1d7   :  { %v95_v15 = vmul.f32 %v3263_v14, %v3372_v0  ;;  %v96_v16 = vmul.f32 %v3263_v14, %v3377_v1  ;;  %v145_v0 = vld [vmem:[%s3970_s2 + $0x18] sm:$0xff] }
 0x1d8   :  { %v147_v1 = vpack.c.bf16 %v145_v0, %v144_v20  ;;  %v2568_v20 = vld [vmem:[%s3974_s6 + $0x58] sm:$0xff] }
 0x1d9   :  { %v140_v17 = vpack.c.bf16 %v96_v16, %v95_v15 }
 0x1da   :  { %2880 = vmatprep.subr.bf16.mxu0 %v147_v1 }
 0x1db   :  { %2882 = vmatprep.mubr.msk.bf16.mxu0 %vm52_vm0, %v140_v17  ;;  %2881 = vmatpush3.bf16.msra.mxu0 %v147_v1 }
 0x250   :  { %v119_v22 = vpop.xlane.xlu1 %118 }
 0x251   :  { %v120_v23 = vrot.slane %v119_v22, 4 }
 0x253   :  { %v121_v24 = vadd.f32 %v120_v23, %v119_v22 }
 0x255   :  { %v122_v25 = vrot.slane %v121_v24, 2 }
 0x257   :  { %v123_v26 = vadd.f32 %v122_v25, %v121_v24  ;;  %v628_v24 = vpack.c.bf16 %v2568_v20, %v2567_v19  ;;  %v2597_v19 = vld [vmem:[%s3973_s5 + $0xb0] sm:$0xff]  ;;  %v2598_v20 = vld [vmem:[%s3973_s5 + $0xb8] sm:$0xff] }
 0x259   :  { %v124_v27 = vrot.slane %v123_v26, 1 }
 0x25b   :  { %v125_v28 = vadd.f32 %v124_v27, %v123_v26  ;;  %v701_v26 = vld [vmem:[%s3976_s8] sm:$0xff]  ;;  %v702_v27 = vld [vmem:[%s3976_s8 + $0x8] sm:$0xff] }
 0x25d   :  { %3248 = vpush %v125_v28  ;;  %v705_v28 = vpack.c.bf16 %v702_v27, %v701_v26 }
 0x28e   :  { %s3249_s17 = spop %3248 }
 0x28f   :  { %v127_v29 = vstv %s3249_s17 }
 0x290   :  { %v128_v30 = vmul.f32 0.001953125, %v127_v29  ;;  %v703_v29 = vld [vmem:[%s3976_s8 + $0x10] sm:$0xff] }
 0x292   :  { %3264 = vrsqrt.f32 %v128_v30  ;;  %vm131_vm5 = vcmp.eq.f32.partialorder %v128_v30, inf  ;;  %v134_v33 = vand.u32 2147483648, %v128_v30  ;;  %vm133_vm6 = vcmp.eq.f32.partialorder %v128_v30, 0.0 }
 0x29c   :  { %v3265_v31 = vpop.eup %3264 }
 0x29d   :  { %v130_v32 = vmul.f32 %v3265_v31, %v128_v30 }
 0x29f   :  { %v132_v34 = vsel %vm131_vm5, %v128_v30, %v130_v32  ;;  %v704_v30 = vld [vmem:[%s3976_s8 + $0x18] sm:$0xff] }
 0x2a0   :  { %v135_v35 = vsel %vm133_vm6, %v134_v33, %v132_v34  ;;  %v706_v31 = vpack.c.bf16 %v704_v30, %v703_v29  ;;  %v2571_v33 = vld [vmem:[%s3975_s7] ss:$0 sm:$0xff]  ;;  %v2606_v29 = vld [vmem:[%s3974_s6 + $0xb8] sm:$0xff] }
 0x2a1   :  { %v136_v36 = vadd.f32 1e-08, %v135_v35 }
 0x2a3   :  { %3266 = vrcp.f32 %v136_v36 }
 0x2ad   :  { %v3267_v37 = vpop.eup %3266 }
 0x2ae   :  { %v138_v38 = vmul.f32 %v3267_v37, %v3386_v5  ;;  %v139_v39 = vmul.f32 %v3267_v37, %v3391_v6 }
 0x2b0   :  { %v141_v40 = vpack.c.bf16 %v139_v39, %v138_v38 }
 0x2b2   :  { %2883 = vmatmul.mubr.msk.bf16.vlgmr.msra.gmra.mrb[0].mxu0 %vm52_vm0, %v141_v40 }
 0x2b3   :  { %2924 = vmatprep.mubr.msk.f32.mxu0 %vm52_vm0, %v2557_v42 }
 0x385   :  { %v2884_v43 = vpop.f32.mrb[0].mxu0 }
 0x386   :  { %v264_v5 = vpop.f32.mrb[1].mxu0  ;;  %v3464_v49 = vadd.f32 %v2884_v43, %v2544_v44  ;;  %v2587_v43 = vld [vmem:[%s3974_s6 + $0x80] sm:$0xff] }
 0x387   :  { %v2885_v45 = vpop.f32.mrb[2].mxu0  ;;  %v3458_v46 = vadd.f32 %v2544_v44, %v264_v5 }
 0x388   :  { %v267_v6 = vpop.f32.mrb[3].mxu0  ;;  %v3460_v47 = vadd.f32 %v2885_v45, %v2544_v44  ;;  %v2589_v45 = vld [vmem:[%s3974_s6 + $0x90] sm:$0xff] }
 0x389   :  { %v3462_v48 = vadd.f32 %v2544_v44, %v267_v6  ;;  %v2588_v44 = vld [vmem:[%s3974_s6 + $0x88] sm:$0xff]  ;;  %v2590_v6 = vld [vmem:[%s3974_s6 + $0x98] sm:$0xff] }
 0x38a   :  { %v3146_v53 = vpack.c.bf16 %v3460_v47, %v3464_v49  ;;  %v903_v5 = vpack.c.bf16 %v2588_v44, %v2587_v43  ;;  %v2613_v43 = vld [vmem:[%s3976_s8 + $0x30] sm:$0xff]  ;;  %v2614_v44 = vld [vmem:[%s3976_s8 + $0x38] sm:$0xff] }
 0x38b   :  { %v3142_v50 = vpack.c.bf16 %v3462_v48, %v3458_v46 }
 0x38d   :  { %3143 = vmatprep.subr.bf16.mxu1 %v3142_v50  ;;  %3151 = vmatprep.subr.bf16.mxu0 %v3142_v50 }
 0x38e   :  { %3145 = vmatpush3.bf16.msra.mxu1 %v3142_v50  ;;  %3153 = vmatpush3.bf16.msra.mxu0 %v3142_v50 }
 0x38f   :  { %3147 = vmatprep.subr.bf16.mxu1 %v3146_v53  ;;  %3155 = vmatprep.subr.bf16.mxu0 %v3146_v53 }
 0x392   :  { %3149 = vmatpush3.bf16.msra.mxu1 %v3146_v53  ;;  %3157 = vmatpush3.bf16.msra.mxu0 %v3146_v53 }
 0x393   :  { %2900 = vmatprep.subr.bf16.mxu1 %v406_v54  ;;  %2938 = vmatprep.subr.bf16.mxu0 %v705_v28 }
 0x395   :  { %2895 = vmatmul.mubr.msk.f32.vlgmr.msra.gmra.mrb[0].mxu1 %vm52_vm0, %v291_v57  ;;  %2925 = vmatmul.mubr.msk.f32.vlgmr.msra.gmra.mrb[4].mxu0 %vm52_vm0, %v2558_v58 }
 0x396   :  { %2901 = vmatpush3.bf16.msra.mxu1 %v406_v54  ;;  %2897 = vmatprep.mubr.msk.f32.mxu1 %vm52_vm0, %v292_v59 }
 0x397   :  { %2902 = vmatprep.subr.bf16.mxu1 %v407_v60  ;;  %2927 = vmatprep.mubr.msk.f32.mxu0 %vm52_vm0, %v2559_v61 }
 0x398   :  { %2939 = vmatpush3.bf16.msra.mxu0 %v705_v28  ;;  %v2605_v28 = vld [vmem:[%s3974_s6 + $0xb0] sm:$0xff] }
 0x399   :  { %2898 = vmatmul.mubr.msk.f32.gmra.mrb[2].mxu1 %vm52_vm0, %v293_v2  ;;  %2928 = vmatmul.mubr.msk.f32.gmra.mrb[6].mxu0 %vm52_vm0, %v2560_v3 }
 0x39a   :  { %2903 = vmatpush3.bf16.msra.mxu1 %v407_v60  ;;  %2904 = vmatprep.mubr.msk.bf16.mxu1 %vm52_vm0, %v3142_v50  ;;  %v904_v50 = vpack.c.bf16 %v2590_v6, %v2589_v45  ;;  %v2610_v6 = vld [vmem:[%s3975_s7 + $0x1] ss:$0 sm:$0xff] }
 0x39b   :  { %2908 = vmatprep.subr.bf16.mxu1 %v397_v4  ;;  %2940 = vmatprep.subr.bf16.mxu0 %v706_v31 }
 0x39c   :  { %2941 = vmatpush3.bf16.msra.mxu0 %v706_v31 }
 0x39d   :  { %2905 = vmatmul.mubr.msk.bf16.vlgmr.msra.gmra.mrb[4].mxu1 %vm52_vm0, %v3146_v53  ;;  %2960 = vmatprep.subr.bf16.mxu0 %v903_v5  ;;  %v2584_v53 = vld [vmem:[%s3974_s6 + $0x68] sm:$0xff] }
 0x39e   :  { %2909 = vmatpush3.bf16.msra.mxu1 %v397_v4  ;;  %v894_v54 = vpack.c.bf16 %v2584_v53, %v2583_v52 }
 0x39f   :  { %2910 = vmatprep.subr.bf16.mxu1 %v398_v9 }
 0x3a2   :  { %2911 = vmatpush3.bf16.msra.mxu1 %v398_v9 }
 0x3a3   :  { %2930 = vmatprep.subr.bf16.mxu1 %v627_v12 }
 0x468   :  { %v2896_v13 = vpop.f32.mrb[0].mxu1  ;;  %v2926_v14 = vpop.f32.mrb[4].mxu0 }
 0x469   :  { %v372_v15 = vpop.f32.mrb[1].mxu1  ;;  %v601_v16 = vpop.f32.mrb[5].mxu0 }
 0x46a   :  { %v391_v17 = vpack.c.bf16 %v2896_v13, %v372_v15  ;;  %v620_v18 = vpack.c.bf16 %v2926_v14, %v601_v16  ;;  %v2576_v14 = vld [vmem:[%s3973_s5 + $0x68] sm:$0xff]  ;;  %v2577_v15 = vld [vmem:[%s3973_s5 + $0x70] sm:$0xff]  ;;  %v2578_v16 = vld [vmem:[%s3973_s5 + $0x78] sm:$0xff] }
 0x46c   :  { %v2899_v21 = vpop.f32.mrb[2].mxu1  ;;  %2912 = vmatprep.mubr.msk.bf16.mxu1 %vm52_vm0, %v391_v17  ;;  %v2929_v0 = vpop.f32.mrb[6].mxu0  ;;  %v2595_v17 = vld [vmem:[%s3973_s5 + $0xa0] sm:$0xff] }
 0x46d   :  { %v382_v1 = vpop.f32.mrb[3].mxu1  ;;  %v611_v22 = vpop.f32.mrb[7].mxu0 }
 0x46e   :  { %v392_v23 = vpack.c.bf16 %v2899_v21, %v382_v1  ;;  %v621_v25 = vpack.c.bf16 %v2929_v0, %v611_v22  ;;  %v2585_v21 = vld [vmem:[%s3974_s6 + $0x70] sm:$0xff]  ;;  %v2586_v0 = vld [vmem:[%s3974_s6 + $0x78] sm:$0xff]  ;;  %v2603_v22 = vld [vmem:[%s3974_s6 + $0xa0] sm:$0xff] }
 0x46f   :  { %v895_v1 = vpack.c.bf16 %v2586_v0, %v2585_v21 }
 0x470   :  { %2913 = vmatmul.mubr.msk.bf16.vlgmr.msra.gmra.mrb[4].mxu1 %vm52_vm0, %v392_v23  ;;  %v2604_v23 = vld [vmem:[%s3974_s6 + $0xa8] sm:$0xff] }
 0x471   :  { %2931 = vmatpush3.bf16.msra.mxu1 %v627_v12  ;;  %2934 = vmatprep.mubr.msk.bf16.mxu1 %vm52_vm0, %v620_v18  ;;  %v2596_v18 = vld [vmem:[%s3973_s5 + $0xa8] sm:$0xff] }
 0x472   :  { %2932 = vmatprep.subr.bf16.mxu1 %v628_v24 }
 0x475   :  { %2933 = vmatpush3.bf16.msra.mxu1 %v628_v24  ;;  %v1124_v24 = vpack.c.bf16 %v2604_v23, %v2603_v22 }
 0x47c   :  { %2935 = vmatmul.mubr.msk.bf16.vlgmr.msra.gmra.mrb[4].mxu1 %vm52_vm0, %v621_v25 }
 0x47d   :  { %2954 = vmatprep.mubr.msk.f32.mxu1 %vm52_vm0, %v2575_v51 }
 0x54f   :  { %v2936_v32 = vpop.f32.mrb[4].mxu1 }
 0x550   :  { %v669_v34 = vpop.f32.mrb[5].mxu1  ;;  %v697_v36 = vadd.f32 %v2936_v32, %v2571_v33 }
 0x551   :  { %v2937_v35 = vpop.f32.mrb[6].mxu1  ;;  %v695_v39 = vadd.f32 %v2571_v33, %v669_v34 }
 0x552   :  { %v698_v37 = vadd.f32 %v2937_v35, %v2571_v33  ;;  %v672_v38 = vpop.f32.mrb[7].mxu1 }
 0x553   :  { %v696_v40 = vadd.f32 %v2571_v33, %v672_v38  ;;  %v1125_v33 = vpack.c.bf16 %v2606_v29, %v2605_v28  ;;  %v2622_v28 = vld [vmem:[%s3973_s5 + $0xd8] sm:$0xff]  ;;  %v2639_v29 = vld [vmem:[%s3973_s5 + $0x100] sm:$0xff] }
 0x554   :  { %v700_v41 = vpack.c.bf16 %v698_v37, %v697_v36 }
 0x555   :  { %v699_v42 = vpack.c.bf16 %v696_v40, %v695_v39  ;;  %v2611_v40 = vld [vmem:[%s3976_s8 + $0x20] sm:$0xff] }
 0x557   :  { %2942 = vmatprep.mubr.msk.bf16.mxu0 %vm52_vm0, %v699_v42 }
 0x558   :  { %2943 = vmatmul.mubr.msk.bf16.vlgmr.msra.gmra.mrb[8].mxu0 %vm52_vm0, %v700_v41  ;;  %v2612_v41 = vld [vmem:[%s3976_s8 + $0x28] sm:$0xff] }
 0x559   :  { %2961 = vmatpush3.bf16.msra.mxu0 %v903_v5  ;;  %v1204_v42 = vpack.c.bf16 %v2612_v41, %v2611_v40  ;;  %v1205_v5 = vpack.c.bf16 %v2614_v44, %v2613_v43  ;;  %v2650_v43 = vld [vmem:[%s3974_s6 + $0x118] sm:$0xff] }
 0x55a   :  { %2962 = vmatprep.subr.bf16.mxu0 %v904_v50 }
 0x55d   :  { %2963 = vmatpush3.bf16.msra.mxu0 %v904_v50 }
 0x55e   :  { %2968 = vmatprep.subr.bf16.mxu0 %v894_v54 }
 0x62b   :  { %v2944_v56 = vpop.f32.mrb[8].mxu0 }
 0x62c   :  { %v763_v57 = vadd.f32 %v2944_v56, %v2572_v55  ;;  %v754_v58 = vpop.f32.mrb[9].mxu0 }
 0x62d   :  { %v755_v59 = vadd.f32 %v2572_v55, %v754_v58  ;;  %v2945_v60 = vpop.f32.mrb[10].mxu0 }
 0x62e   :  { %v771_v61 = vadd.f32 %v763_v57, %v3464_v49  ;;  %v766_v62 = vadd.f32 %v2945_v60, %v2572_v55  ;;  %v757_v63 = vpop.f32.mrb[11].mxu0  ;;  %v2632_v60 = vld [vmem:[%s3974_s6 + $0xe8] sm:$0xff] }
 0x62f   :  { %v769_v2 = vadd.f32 %v755_v59, %v3458_v46  ;;  %v758_v3 = vadd.f32 %v2572_v55, %v757_v63  ;;  %v2631_v59 = vld [vmem:[%s3974_s6 + $0xe0] sm:$0xff]  ;;  %v2634_v63 = vld [vmem:[%s3974_s6 + $0xf8] sm:$0xff] }
 0x630   :  { %v772_v4 = vadd.f32 %v766_v62, %v3460_v47  ;;  %v779_v9 = vmul.f32 0.2, %v771_v61  ;;  %vm775_vm9 = vcmp.gt.f32.partialorder %v771_v61, 0.0  ;;  %v2633_v62 = vld [vmem:[%s3974_s6 + $0xf0] sm:$0xff] }
 0x631   :  { %v777_v7 = vmul.f32 0.2, %v769_v2  ;;  %v770_v8 = vadd.f32 %v758_v3, %v3462_v48  ;;  %vm773_vm7 = vcmp.gt.f32.partialorder %v769_v2, 0.0  ;;  %v2619_v3 = vld [vmem:[%s3973_s5 + $0xc0] sm:$0xff] }
 0x632   :  { %vm776_vm8 = vcmp.gt.f32.partialorder %v772_v4, 0.0  ;;  %v780_v10 = vmul.f32 0.2, %v772_v4  ;;  %v3588_v46 = vsel %vm775_vm9, %v771_v61, %v779_v9  ;;  %v1403_v61 = vpack.c.bf16 %v2632_v60, %v2631_v59  ;;  %v2616_v9 = vld [vmem:[%s3977_s9 + $0x1] ss:$0 sm:$0xff]  ;;  %v2657_v59 = vld [vmem:[%s3976_s8 + $0x50] sm:$0xff] }
 0x633   :  { %vm774_vm10 = vcmp.gt.f32.partialorder %v770_v8, 0.0  ;;  %v778_v11 = vmul.f32 0.2, %v770_v8  ;;  %v3584_v49 = vsel %vm773_vm7, %v769_v2, %v777_v7  ;;  %v1404_v2 = vpack.c.bf16 %v2634_v63, %v2633_v62  ;;  %v2628_v7 = vld [vmem:[%s3974_s6 + $0xc8] sm:$0xff]  ;;  %v2658_v60 = vld [vmem:[%s3976_s8 + $0x58] sm:$0xff] }
 0x634   :  { %v3582_v12 = vsel %vm776_vm8, %v772_v4, %v780_v10  ;;  %v2627_v4 = vld [vmem:[%s3974_s6 + $0xc0] sm:$0xff] }
 0x635   :  { %v3586_v13 = vsel %vm774_vm10, %v770_v8, %v778_v11  ;;  %v3162_v48 = vpack.c.bf16 %v3582_v12, %v3588_v46  ;;  %v1394_v8 = vpack.c.bf16 %v2628_v7, %v2627_v4  ;;  %v2654_v63 = vld [vmem:[%s3975_s7 + $0x2] ss:$0 sm:$0xff] }
 0x636   :  { %v3158_v47 = vpack.c.bf16 %v3586_v13, %v3584_v49 }
 0x638   :  { %3159 = vmatprep.subr.bf16.mxu1 %v3158_v47  ;;  %2964 = vmatprep.mubr.msk.bf16.mxu0 %vm52_vm0, %v3158_v47 }
 0x639   :  { %3161 = vmatpush3.bf16.msra.mxu1 %v3158_v47  ;;  %2965 = vmatmul.mubr.msk.bf16.vlgmr.msra.gmra.mrb[12].mxu0 %vm52_vm0, %v3162_v48 }
 0x63a   :  { %3163 = vmatprep.subr.bf16.mxu1 %v3162_v48  ;;  %2969 = vmatpush3.bf16.msra.mxu0 %v894_v54 }
 0x63b   :  { %2970 = vmatprep.subr.bf16.mxu0 %v895_v1 }
 0x63d   :  { %3165 = vmatpush3.bf16.msra.mxu1 %v3162_v48 }
 0x63e   :  { %3167 = vmatprep.subr.bf16.mxu1 %v3158_v47  ;;  %2971 = vmatpush3.bf16.msra.mxu0 %v895_v1 }
 0x63f   :  { %2990 = vmatprep.subr.bf16.mxu0 %v1124_v24 }
 0x640   :  { %2955 = vmatmul.mubr.msk.f32.vlgmr.msra.gmra.mrb[8].mxu1 %vm52_vm0, %v2576_v14 }
 0x641   :  { %3169 = vmatpush3.bf16.msra.mxu1 %v3158_v47  ;;  %2957 = vmatprep.mubr.msk.f32.mxu1 %vm52_vm0, %v2577_v15 }
 0x642   :  { %3171 = vmatprep.subr.bf16.mxu1 %v3162_v48 }
 0x644   :  { %2958 = vmatmul.mubr.msk.f32.gmra.mrb[10].mxu1 %vm52_vm0, %v2578_v16 }
 0x645   :  { %3173 = vmatpush3.bf16.msra.mxu1 %v3162_v48  ;;  %2984 = vmatprep.mubr.msk.f32.mxu1 %vm52_vm0, %v2595_v17 }
 0x646   :  { %2998 = vmatprep.subr.bf16.mxu1 %v1204_v42 }
 0x648   :  { %2985 = vmatmul.mubr.msk.f32.vlgmr.msra.gmra.mrb[12].mxu1 %vm52_vm0, %v2596_v18 }
 0x649   :  { %2987 = vmatprep.mubr.msk.f32.mxu1 %vm52_vm0, %v2597_v19  ;;  %2999 = vmatpush3.bf16.msra.mxu1 %v1204_v42  ;;  %v2649_v42 = vld [vmem:[%s3974_s6 + $0x110] sm:$0xff] }
 0x64a   :  { %3000 = vmatprep.subr.bf16.mxu1 %v1205_v5 }
 0x64c   :  { %2988 = vmatmul.mubr.msk.f32.gmra.mrb[14].mxu1 %vm52_vm0, %v2598_v20 }
 0x64d   :  { %3001 = vmatpush3.bf16.msra.mxu1 %v1205_v5 }
 0x713   :  { %v2956_v25 = vpop.f32.mrb[8].mxu1 }
 0x714   :  { %v868_v26 = vpop.f32.mrb[9].mxu1 }
 0x715   :  { %v887_v27 = vpack.c.bf16 %v2956_v25, %v868_v26  ;;  %v2620_v26 = vld [vmem:[%s3973_s5 + $0xc8] sm:$0xff] }
 0x717   :  { %v2959_v30 = vpop.f32.mrb[10].mxu1  ;;  %2972 = vmatprep.mubr.msk.bf16.mxu0 %vm52_vm0, %v887_v27  ;;  %v2621_v27 = vld [vmem:[%s3973_s5 + $0xd0] sm:$0xff] }
 0x718   :  { %v878_v31 = vpop.f32.mrb[11].mxu1 }
 0x719   :  { %v888_v32 = vpack.c.bf16 %v2959_v30, %v878_v31  ;;  %v2640_v30 = vld [vmem:[%s3973_s5 + $0x108] sm:$0xff]  ;;  %v2641_v31 = vld [vmem:[%s3973_s5 + $0x110] sm:$0xff] }
 0x71b   :  { %2973 = vmatmul.mubr.msk.bf16.vlgmr.msra.gmra.mrb[12].mxu0 %vm52_vm0, %v888_v32  ;;  %v2986_v34 = vpop.f32.mrb[12].mxu1  ;;  %v2642_v32 = vld [vmem:[%s3973_s5 + $0x118] sm:$0xff] }
 0x71c   :  { %2991 = vmatpush3.bf16.msra.mxu0 %v1124_v24  ;;  %v1098_v35 = vpop.f32.mrb[13].mxu1 }
 0x71d   :  { %v1117_v36 = vpack.c.bf16 %v2986_v34, %v1098_v35  ;;  %2992 = vmatprep.subr.bf16.mxu0 %v1125_v33  ;;  %v2630_v34 = vld [vmem:[%s3974_s6 + $0xd8] sm:$0xff] }
 0x71f   :  { %v2989_v37 = vpop.f32.mrb[14].mxu1  ;;  %2994 = vmatprep.mubr.msk.bf16.mxu0 %vm52_vm0, %v1117_v36  ;;  %v2647_v36 = vld [vmem:[%s3974_s6 + $0x100] sm:$0xff] }
 0x720   :  { %2993 = vmatpush3.bf16.msra.mxu0 %v1125_v33  ;;  %v1108_v38 = vpop.f32.mrb[15].mxu1  ;;  %v2629_v33 = vld [vmem:[%s3974_s6 + $0xd0] sm:$0xff] }
 0x721   :  { %v1118_v39 = vpack.c.bf16 %v2989_v37, %v1108_v38  ;;  %3020 = vmatprep.subr.bf16.mxu0 %v1403_v61  ;;  %v1395_v35 = vpack.c.bf16 %v2630_v34, %v2629_v33  ;;  %v2648_v37 = vld [vmem:[%s3974_s6 + $0x108] sm:$0xff] }
 0x722   :  { %v1624_v38 = vpack.c.bf16 %v2648_v37, %v2647_v36 }
 0x727   :  { %2995 = vmatmul.mubr.msk.bf16.vlgmr.msra.gmra.mrb[12].mxu0 %vm52_vm0, %v1118_v39 }
 0x728   :  { %3021 = vmatpush3.bf16.msra.mxu0 %v1403_v61  ;;  %v1705_v61 = vpack.c.bf16 %v2658_v60, %v2657_v59  ;;  %v2694_v59 = vld [vmem:[%s3974_s6 + $0x1b8] sm:$0xff] }
 0x729   :  { %3022 = vmatprep.subr.bf16.mxu0 %v1404_v2 }
 0x72c   :  { %3023 = vmatpush3.bf16.msra.mxu0 %v1404_v2 }
 0x72d   :  { %3028 = vmatprep.subr.bf16.mxu0 %v1394_v8 }
 0x7fa   :  { %v2996_v45 = vpop.f32.mrb[12].mxu0 }
 0x7fb   :  { %v1166_v50 = vpop.f32.mrb[13].mxu0  ;;  %v1195_v52 = vadd.f32 %v2996_v45, %v2610_v6 }
 0x7fc   :  { %v2997_v51 = vpop.f32.mrb[14].mxu0  ;;  %v1193_v55 = vadd.f32 %v2610_v6, %v1166_v50 }
 0x7fd   :  { %v1196_v53 = vadd.f32 %v2997_v51, %v2610_v6  ;;  %v1169_v54 = vpop.f32.mrb[15].mxu0 }
 0x7fe   :  { %v1194_v56 = vadd.f32 %v2610_v6, %v1169_v54  ;;  %v1625_v6 = vpack.c.bf16 %v2650_v43, %v2649_v42  ;;  %v2668_v43 = vld [vmem:[%s3975_s7 + $0x3] ss:$0 sm:$0xff] }
 0x7ff   :  { %v1198_v57 = vpack.c.bf16 %v1196_v53, %v1195_v52 }
 0x800   :  { %v1197_v58 = vpack.c.bf16 %v1194_v56, %v1193_v55  ;;  %v2655_v56 = vld [vmem:[%s3976_s8 + $0x40] sm:$0xff] }
 0x802   :  { %3002 = vmatprep.mubr.msk.bf16.mxu1 %vm52_vm0, %v1197_v58 }
 0x803   :  { %3003 = vmatmul.mubr.msk.bf16.vlgmr.msra.gmra.mrb[16].mxu1 %vm52_vm0, %v1198_v57  ;;  %v2656_v57 = vld [vmem:[%s3976_s8 + $0x48] sm:$0xff] }
 0x804   :  { %3014 = vmatprep.mubr.msk.f32.mxu1 %vm52_vm0, %v2619_v3  ;;  %v1704_v58 = vpack.c.bf16 %v2656_v57, %v2655_v56  ;;  %v2692_v56 = vld [vmem:[%s3974_s6 + $0x1a8] sm:$0xff] }
 0x8d6   :  { %v3004_v10 = vpop.f32.mrb[16].mxu1 }
 0x8d7   :  { %v1263_v11 = vadd.f32 %v3004_v10, %v2616_v9  ;;  %v1254_v47 = vpop.f32.mrb[17].mxu1 }
 0x8d8   :  { %v1255_v48 = vadd.f32 %v2616_v9, %v1254_v47  ;;  %v3005_v14 = vpop.f32.mrb[18].mxu1 }
 0x8d9   :  { %v1271_v15 = vadd.f32 %v1263_v11, %v3588_v46  ;;  %v1266_v16 = vadd.f32 %v3005_v14, %v2616_v9  ;;  %v1257_v17 = vpop.f32.mrb[19].mxu1  ;;  %v2664_v14 = vld [vmem:[%s3974_s6 + $0x148] sm:$0xff] }
 0x8da   :  { %v1269_v18 = vadd.f32 %v1255_v48, %v3584_v49  ;;  %v1258_v19 = vadd.f32 %v2616_v9, %v1257_v17  ;;  %v2663_v48 = vld [vmem:[%s3974_s6 + $0x140] sm:$0xff]  ;;  %v2666_v17 = vld [vmem:[%s3974_s6 + $0x158] sm:$0xff] }
 0x8db   :  { %v1272_v20 = vadd.f32 %v1266_v16, %v3582_v12  ;;  %v1279_v1 = vmul.f32 0.2, %v1271_v15  ;;  %vm1275_vm13 = vcmp.gt.f32.partialorder %v1271_v15, 0.0  ;;  %v2665_v16 = vld [vmem:[%s3974_s6 + $0x150] sm:$0xff] }
 0x8dc   :  { %v1277_v21 = vmul.f32 0.2, %v1269_v18  ;;  %v1270_v0 = vadd.f32 %v1258_v19, %v3586_v13  ;;  %vm1273_vm11 = vcmp.gt.f32.partialorder %v1269_v18, 0.0  ;;  %v2660_v19 = vld [vmem:[%s3977_s9 + $0x2] ss:$0 sm:$0xff] }
 0x8dd   :  { %vm1276_vm12 = vcmp.gt.f32.partialorder %v1272_v20, 0.0  ;;  %v1280_v22 = vmul.f32 0.2, %v1272_v20  ;;  %v3698_v49 = vsel %vm1275_vm13, %v1271_v15, %v1279_v1  ;;  %v1792_v15 = vpack.c.bf16 %v2664_v14, %v2663_v48 }
 0x8de   :  { %vm1274_vm14 = vcmp.gt.f32.partialorder %v1270_v0, 0.0  ;;  %v1278_v23 = vmul.f32 0.2, %v1270_v0  ;;  %v3694_v46 = vsel %vm1273_vm11, %v1269_v18, %v1277_v21  ;;  %v1793_v18 = vpack.c.bf16 %v2666_v17, %v2665_v16 }
 0x8df   :  { %v3692_v24 = vsel %vm1276_vm12, %v1272_v20, %v1280_v22 }
 0x8e0   :  { %v3696_v25 = vsel %vm1274_vm14, %v1270_v0, %v1278_v23  ;;  %v3178_v13 = vpack.c.bf16 %v3692_v24, %v3698_v49 }
 0x8e1   :  { %v3174_v12 = vpack.c.bf16 %v3696_v25, %v3694_v46 }
 0x8e3   :  { %3175 = vmatprep.subr.bf16.mxu1 %v3174_v12  ;;  %3024 = vmatprep.mubr.msk.bf16.mxu0 %vm52_vm0, %v3174_v12 }
 0x8e4   :  { %3177 = vmatpush3.bf16.msra.mxu1 %v3174_v12  ;;  %3025 = vmatmul.mubr.msk.bf16.vlgmr.msra.gmra.mrb[16].mxu0 %vm52_vm0, %v3178_v13 }
 0x8e5   :  { %3179 = vmatprep.subr.bf16.mxu1 %v3178_v13  ;;  %3029 = vmatpush3.bf16.msra.mxu0 %v1394_v8 }
 0x8e6   :  { %3030 = vmatprep.subr.bf16.mxu0 %v1395_v35 }
 0x8e8   :  { %3181 = vmatpush3.bf16.msra.mxu1 %v3178_v13 }
 0x8e9   :  { %3183 = vmatprep.subr.bf16.mxu1 %v3174_v12  ;;  %3031 = vmatpush3.bf16.msra.mxu0 %v1395_v35 }
 0x8ea   :  { %3050 = vmatprep.subr.bf16.mxu0 %v1624_v38 }
 0x8eb   :  { %3015 = vmatmul.mubr.msk.f32.vlgmr.msra.gmra.mrb[20].mxu1 %vm52_vm0, %v2620_v26 }
 0x8ec   :  { %3185 = vmatpush3.bf16.msra.mxu1 %v3174_v12  ;;  %3017 = vmatprep.mubr.msk.f32.mxu1 %vm52_vm0, %v2621_v27 }
 0x8ed   :  { %3187 = vmatprep.subr.bf16.mxu1 %v3178_v13 }
 0x8ef   :  { %3018 = vmatmul.mubr.msk.f32.gmra.mrb[22].mxu1 %vm52_vm0, %v2622_v28 }
 0x8f0   :  { %3189 = vmatpush3.bf16.msra.mxu1 %v3178_v13  ;;  %3044 = vmatprep.mubr.msk.f32.mxu1 %vm52_vm0, %v2639_v29 }
 0x8f1   :  { %3058 = vmatprep.subr.bf16.mxu1 %v1704_v58 }
 0x8f3   :  { %3045 = vmatmul.mubr.msk.f32.vlgmr.msra.gmra.mrb[24].mxu1 %vm52_vm0, %v2640_v30 }
 0x8f4   :  { %3047 = vmatprep.mubr.msk.f32.mxu1 %vm52_vm0, %v2641_v31  ;;  %3059 = vmatpush3.bf16.msra.mxu1 %v1704_v58  ;;  %v2693_v58 = vld [vmem:[%s3974_s6 + $0x1b0] sm:$0xff] }
 0x8f5   :  { %3060 = vmatprep.subr.bf16.mxu1 %v1705_v61  ;;  %v2064_v60 = vpack.c.bf16 %v2694_v59, %v2693_v58  ;;  %v2714_v59 = vld [vmem:[%s3975_s7 + $0x4] ss:$0 sm:$0xff] }
 0x8f7   :  { %3048 = vmatmul.mubr.msk.f32.gmra.mrb[26].mxu1 %vm52_vm0, %v2642_v32 }
 0x8f8   :  { %3061 = vmatpush3.bf16.msra.mxu1 %v1705_v61  ;;  %v2679_v61 = vld [vmem:[%s3973_s5 + $0x180] sm:$0xff] }
 0x8f9   :  { %3066 = vmatprep.subr.bf16.mxu1 %v1792_v15 }
 0x9be   :  { %v3016_v39 = vpop.f32.mrb[20].mxu1 }
 0x9bf   :  { %v1368_v40 = vpop.f32.mrb[21].mxu1 }
 0x9c0   :  { %v1387_v41 = vpack.c.bf16 %v3016_v39, %v1368_v40  ;;  %v2673_v39 = vld [vmem:[%s3976_s8 + $0x70] sm:$0xff]  ;;  %v2674_v40 = vld [vmem:[%s3976_s8 + $0x78] sm:$0xff] }
 0x9c2   :  { %v3019_v44 = vpop.f32.mrb[22].mxu1  ;;  %3032 = vmatprep.mubr.msk.bf16.mxu0 %vm52_vm0, %v1387_v41  ;;  %v1865_v41 = vpack.c.bf16 %v2674_v40, %v2673_v39  ;;  %v2710_v39 = vld [vmem:[%s3974_s6 + $0x1d8] sm:$0xff] }
 0x9c3   :  { %v1378_v5 = vpop.f32.mrb[23].mxu1 }
 0x9c4   :  { %v1388_v45 = vpack.c.bf16 %v3019_v44, %v1378_v5 }
 0x9c6   :  { %3033 = vmatmul.mubr.msk.bf16.vlgmr.msra.gmra.mrb[16].mxu0 %vm52_vm0, %v1388_v45  ;;  %v3046_v50 = vpop.f32.mrb[24].mxu1 }
 0x9c7   :  { %3051 = vmatpush3.bf16.msra.mxu0 %v1624_v38  ;;  %v1598_v51 = vpop.f32.mrb[25].mxu1 }
 0x9c8   :  { %v1617_v52 = vpack.c.bf16 %v3046_v50, %v1598_v51  ;;  %3052 = vmatprep.subr.bf16.mxu0 %v1625_v6 }
 0x9ca   :  { %v3049_v53 = vpop.f32.mrb[26].mxu1  ;;  %3054 = vmatprep.mubr.msk.bf16.mxu0 %vm52_vm0, %v1617_v52 }
 0x9cb   :  { %3053 = vmatpush3.bf16.msra.mxu0 %v1625_v6  ;;  %v1608_v54 = vpop.f32.mrb[27].mxu1 }
 0x9cc   :  { %v1618_v55 = vpack.c.bf16 %v3049_v53, %v1608_v54 }
 0x9d2   :  { %3055 = vmatmul.mubr.msk.bf16.vlgmr.msra.gmra.mrb[16].mxu0 %vm52_vm0, %v1618_v55  ;;  %v2691_v55 = vld [vmem:[%s3974_s6 + $0x1a0] sm:$0xff] }
 0x9d3   :  { %v2063_v57 = vpack.c.bf16 %v2692_v56, %v2691_v55  ;;  %v2717_v55 = vld [vmem:[%s3976_s8 + $0x90] sm:$0xff]  ;;  %v2718_v56 = vld [vmem:[%s3976_s8 + $0x98] sm:$0xff] }
 0xaa5   :  { %v3056_v62 = vpop.f32.mrb[16].mxu0 }
 0xaa6   :  { %v1666_v2 = vpop.f32.mrb[17].mxu0  ;;  %v1695_v4 = vadd.f32 %v3056_v62, %v2654_v63  ;;  %v2687_v62 = vld [vmem:[%s3974_s6 + $0x180] sm:$0xff] }
 0xaa7   :  { %v3057_v3 = vpop.f32.mrb[18].mxu0  ;;  %v1693_v9 = vadd.f32 %v2654_v63, %v1666_v2 }
 0xaa8   :  { %v1696_v7 = vadd.f32 %v3057_v3, %v2654_v63  ;;  %v1669_v8 = vpop.f32.mrb[19].mxu0  ;;  %v2676_v3 = vld [vmem:[%s3977_s9 + $0x3] ss:$0 sm:$0xff] }
 0xaa9   :  { %v1694_v10 = vadd.f32 %v2654_v63, %v1669_v8  ;;  %v2688_v63 = vld [vmem:[%s3974_s6 + $0x188] sm:$0xff] }
 0xaaa   :  { %v1698_v11 = vpack.c.bf16 %v1696_v7, %v1695_v4  ;;  %v2054_v2 = vpack.c.bf16 %v2688_v63, %v2687_v62 }
 0xaab   :  { %v1697_v47 = vpack.c.bf16 %v1694_v10, %v1693_v9 }
 0xaad   :  { %3062 = vmatprep.mubr.msk.bf16.mxu1 %vm52_vm0, %v1697_v47 }
 0xaae   :  { %3063 = vmatmul.mubr.msk.bf16.vlgmr.msra.gmra.mrb[28].mxu1 %vm52_vm0, %v1698_v11 }
 0xaaf   :  { %3067 = vmatpush3.bf16.msra.mxu1 %v1792_v15 }
 0xab0   :  { %3068 = vmatprep.subr.bf16.mxu1 %v1793_v18 }
 0xab3   :  { %3069 = vmatpush3.bf16.msra.mxu1 %v1793_v18 }
 0xb81   :  { %v3064_v20 = vpop.f32.mrb[28].mxu1 }
 0xb82   :  { %v1763_v21 = vadd.f32 %v3064_v20, %v2660_v19  ;;  %v1754_v0 = vpop.f32.mrb[29].mxu1 }
 0xb83   :  { %v1755_v1 = vadd.f32 %v2660_v19, %v1754_v0  ;;  %v3065_v22 = vpop.f32.mrb[30].mxu1 }
 0xb84   :  { %v1771_v23 = vadd.f32 %v1763_v21, %v3698_v49  ;;  %v1766_v12 = vadd.f32 %v3065_v22, %v2660_v19  ;;  %v1757_v13 = vpop.f32.mrb[31].mxu1 }
 0xb85   :  { %v1769_v26 = vadd.f32 %v1755_v1, %v3694_v46  ;;  %v1758_v27 = vadd.f32 %v2660_v19, %v1757_v13  ;;  %v2672_v46 = vld [vmem:[%s3976_s8 + $0x68] sm:$0xff] }
 0xb86   :  { %v1772_v28 = vadd.f32 %v1766_v12, %v3692_v24  ;;  %v1779_v31 = vmul.f32 0.2, %v1771_v23  ;;  %vm1775_vm2 = vcmp.gt.f32.partialorder %v1771_v23, 0.0  ;;  %v2671_v24 = vld [vmem:[%s3976_s8 + $0x60] sm:$0xff] }
 0xb87   :  { %v1777_v29 = vmul.f32 0.2, %v1769_v26  ;;  %v1770_v30 = vadd.f32 %v1758_v27, %v3696_v25  ;;  %vm1773_vm15 = vcmp.gt.f32.partialorder %v1769_v26, 0.0  ;;  %v1864_v25 = vpack.c.bf16 %v2672_v46, %v2671_v24  ;;  %v2681_v27 = vld [vmem:[%s3973_s5 + $0x190] sm:$0xff] }
 0xb88   :  { %vm1776_vm1 = vcmp.gt.f32.partialorder %v1772_v28, 0.0  ;;  %v1780_v32 = vmul.f32 0.2, %v1772_v28  ;;  %v1783_v36 = vsel %vm1775_vm2, %v1771_v23, %v1779_v31  ;;  %v2701_v31 = vld [vmem:[%s3973_s5 + $0x1d0] sm:$0xff] }
 0xb89   :  { %vm1774_vm3 = vcmp.gt.f32.partialorder %v1770_v30, 0.0  ;;  %v1778_v33 = vmul.f32 0.2, %v1770_v30  ;;  %v1781_v35 = vsel %vm1773_vm15, %v1769_v26, %v1777_v29  ;;  %3074 = vmatprep.subr.bf16.mxu0 %v1864_v25  ;;  %v2680_v26 = vld [vmem:[%s3973_s5 + $0x188] sm:$0xff]  ;;  %v2699_v29 = vld [vmem:[%s3973_s5 + $0x1c0] sm:$0xff] }
 0xb8a   :  { %v1784_v34 = vsel %vm1776_vm1, %v1772_v28, %v1780_v32  ;;  %3075 = vmatpush3.bf16.msra.mxu0 %v1864_v25  ;;  %v2682_v28 = vld [vmem:[%s3973_s5 + $0x198] sm:$0xff]  ;;  %v2709_v25 = vld [vmem:[%s3974_s6 + $0x1d0] sm:$0xff] }
 0xb8b   :  { %v1782_v49 = vsel %vm1774_vm3, %v1770_v30, %v1778_v33  ;;  %v1786_v38 = vpack.c.bf16 %v1784_v34, %v1783_v36  ;;  %3076 = vmatprep.subr.bf16.mxu0 %v1865_v41  ;;  %v2700_v30 = vld [vmem:[%s3973_s5 + $0x1c8] sm:$0xff]  ;;  %v2702_v32 = vld [vmem:[%s3973_s5 + $0x1d8] sm:$0xff]  ;;  %v2689_v33 = vld [vmem:[%s3974_s6 + $0x190] sm:$0xff] }
 0xb8c   :  { %v1785_v37 = vpack.c.bf16 %v1782_v49, %v1781_v35 }
 0xb8e   :  { %3070 = vmatprep.mubr.msk.bf16.mxu1 %vm52_vm0, %v1785_v37  ;;  %3077 = vmatpush3.bf16.msra.mxu0 %v1865_v41 }
 0xb8f   :  { %3071 = vmatmul.mubr.msk.bf16.vlgmr.msra.gmra.mrb[32].mxu1 %vm52_vm0, %v1786_v38  ;;  %3096 = vmatprep.subr.bf16.mxu0 %v2063_v57 }
 0xb90   :  { %3090 = vmatprep.mubr.msk.f32.mxu1 %vm52_vm0, %v2679_v61 }
 0xc62   :  { %v3072_v42 = vpop.f32.mrb[32].mxu1 }
 0xc63   :  { %v1842_v44 = vpop.f32.mrb[33].mxu1  ;;  %v1851_v45 = vadd.f32 %v3072_v42, %v2668_v43 }
 0xc64   :  { %v3073_v5 = vpop.f32.mrb[34].mxu1  ;;  %v1843_v51 = vadd.f32 %v2668_v43, %v1842_v44 }
 0xc65   :  { %v1854_v6 = vadd.f32 %v3073_v5, %v2668_v43  ;;  %v1845_v50 = vpop.f32.mrb[35].mxu1 }
 0xc66   :  { %v1846_v52 = vadd.f32 %v2668_v43, %v1845_v50  ;;  %v2285_v43 = vpack.c.bf16 %v2710_v39, %v2709_v25 }
 0xc67   :  { %v1858_v53 = vpack.c.bf16 %v1854_v6, %v1851_v45 }
 0xc68   :  { %v1857_v54 = vpack.c.bf16 %v1846_v52, %v1843_v51  ;;  %v2715_v52 = vld [vmem:[%s3976_s8 + $0x80] sm:$0xff] }
 0xc6a   :  { %3078 = vmatprep.mubr.msk.bf16.mxu0 %vm52_vm0, %v1857_v54 }
 0xc6b   :  { %3079 = vmatmul.mubr.msk.bf16.vlgmr.msra.gmra.mrb[20].mxu0 %vm52_vm0, %v1858_v53  ;;  %v2716_v53 = vld [vmem:[%s3976_s8 + $0x88] sm:$0xff] }
 0xc6c   :  { %3097 = vmatpush3.bf16.msra.mxu0 %v2063_v57  ;;  %v2364_v54 = vpack.c.bf16 %v2716_v53, %v2715_v52  ;;  %v2365_v57 = vpack.c.bf16 %v2718_v56, %v2717_v55 }
 0xc6d   :  { %3098 = vmatprep.subr.bf16.mxu0 %v2064_v60 }
 0xc70   :  { %3099 = vmatpush3.bf16.msra.mxu0 %v2064_v60 }
 0xc71   :  { %3104 = vmatprep.subr.bf16.mxu0 %v2054_v2 }
 0xd3e   :  { %v3080_v4 = vpop.f32.mrb[20].mxu0 }
 0xd3f   :  { %v1923_v7 = vadd.f32 %v3080_v4, %v2676_v3  ;;  %v1914_v8 = vpop.f32.mrb[21].mxu0 }
 0xd40   :  { %v1915_v9 = vadd.f32 %v2676_v3, %v1914_v8  ;;  %v3081_v10 = vpop.f32.mrb[22].mxu0 }
 0xd41   :  { %v1931_v11 = vadd.f32 %v1923_v7, %v1783_v36  ;;  %v1926_v47 = vadd.f32 %v3081_v10, %v2676_v3  ;;  %v1917_v48 = vpop.f32.mrb[23].mxu0  ;;  %v2708_v36 = vld [vmem:[%s3974_s6 + $0x1c8] sm:$0xff] }
 0xd42   :  { %v1929_v14 = vadd.f32 %v1915_v9, %v1781_v35  ;;  %v1918_v15 = vadd.f32 %v2676_v3, %v1917_v48  ;;  %v2720_v9 = vld [vmem:[%s3977_s9 + $0x4] ss:$0 sm:$0xff] }
 0xd43   :  { %v1932_v16 = vadd.f32 %v1926_v47, %v1784_v34  ;;  %v1939_v19 = vmul.f32 0.2, %v1931_v11  ;;  %vm1935_vm6 = vcmp.gt.f32.partialorder %v1931_v11, 0.0  ;;  %v2690_v34 = vld [vmem:[%s3974_s6 + $0x198] sm:$0xff] }
 0xd44   :  { %v1937_v17 = vmul.f32 0.2, %v1929_v14  ;;  %v1930_v18 = vadd.f32 %v1918_v15, %v1782_v49  ;;  %vm1933_vm4 = vcmp.gt.f32.partialorder %v1929_v14, 0.0  ;;  %v2055_v35 = vpack.c.bf16 %v2690_v34, %v2689_v33  ;;  %v2707_v49 = vld [vmem:[%s3974_s6 + $0x1c0] sm:$0xff] }
 0xd45   :  { %vm1936_vm5 = vcmp.gt.f32.partialorder %v1932_v16, 0.0  ;;  %v1940_v20 = vmul.f32 0.2, %v1932_v16  ;;  %v3842_v23 = vsel %vm1935_vm6, %v1931_v11, %v1939_v19  ;;  %v2284_v37 = vpack.c.bf16 %v2708_v36, %v2707_v49 }
 0xd46   :  { %vm1934_vm7 = vcmp.gt.f32.partialorder %v1930_v18, 0.0  ;;  %v1938_v21 = vmul.f32 0.2, %v1930_v18  ;;  %v3838_v1 = vsel %vm1933_vm4, %v1929_v14, %v1937_v17 }
 0xd47   :  { %v3836_v0 = vsel %vm1936_vm5, %v1932_v16, %v1940_v20 }
 0xd48   :  { %v3840_v22 = vsel %vm1934_vm7, %v1930_v18, %v1938_v21  ;;  %v3194_v13 = vpack.c.bf16 %v3836_v0, %v3842_v23 }
 0xd49   :  { %v3190_v12 = vpack.c.bf16 %v3840_v22, %v3838_v1 }
 0xd4b   :  { %3191 = vmatprep.subr.bf16.mxu1 %v3190_v12  ;;  %3100 = vmatprep.mubr.msk.bf16.mxu0 %vm52_vm0, %v3190_v12 }
 0xd4c   :  { %3193 = vmatpush3.bf16.msra.mxu1 %v3190_v12  ;;  %3101 = vmatmul.mubr.msk.bf16.vlgmr.msra.gmra.mrb[24].mxu0 %vm52_vm0, %v3194_v13 }
 0xd4d   :  { %3195 = vmatprep.subr.bf16.mxu1 %v3194_v13  ;;  %3105 = vmatpush3.bf16.msra.mxu0 %v2054_v2 }
 0xd4e   :  { %3106 = vmatprep.subr.bf16.mxu0 %v2055_v35 }
 0xd50   :  { %3197 = vmatpush3.bf16.msra.mxu1 %v3194_v13 }
 0xd51   :  { %3199 = vmatprep.subr.bf16.mxu1 %v3190_v12  ;;  %3107 = vmatpush3.bf16.msra.mxu0 %v2055_v35 }
 0xd52   :  { %3126 = vmatprep.subr.bf16.mxu0 %v2284_v37 }
 0xd53   :  { %3091 = vmatmul.mubr.msk.f32.vlgmr.msra.gmra.mrb[36].mxu1 %vm52_vm0, %v2680_v26 }
 0xd54   :  { %3201 = vmatpush3.bf16.msra.mxu1 %v3190_v12  ;;  %3093 = vmatprep.mubr.msk.f32.mxu1 %vm52_vm0, %v2681_v27 }
 0xd55   :  { %3203 = vmatprep.subr.bf16.mxu1 %v3194_v13 }
 0xd57   :  { %3094 = vmatmul.mubr.msk.f32.gmra.mrb[38].mxu1 %vm52_vm0, %v2682_v28 }
 0xd58   :  { %3205 = vmatpush3.bf16.msra.mxu1 %v3194_v13  ;;  %3120 = vmatprep.mubr.msk.f32.mxu1 %vm52_vm0, %v2699_v29 }
 0xd59   :  { %3134 = vmatprep.subr.bf16.mxu1 %v2364_v54 }
 0xd5b   :  { %3121 = vmatmul.mubr.msk.f32.vlgmr.msra.gmra.mrb[40].mxu1 %vm52_vm0, %v2700_v30 }
 0xd5c   :  { %3123 = vmatprep.mubr.msk.f32.mxu1 %vm52_vm0, %v2701_v31  ;;  %3135 = vmatpush3.bf16.msra.mxu1 %v2364_v54 }
 0xd5d   :  { %3136 = vmatprep.subr.bf16.mxu1 %v2365_v57 }
 0xd5f   :  { %3124 = vmatmul.mubr.msk.f32.gmra.mrb[42].mxu1 %vm52_vm0, %v2702_v32 }
 0xd60   :  { %3137 = vmatpush3.bf16.msra.mxu1 %v2365_v57 }
 0xe26   :  { %v3092_v38 = vpop.f32.mrb[36].mxu1 }
 0xe27   :  { %v2028_v24 = vpop.f32.mrb[37].mxu1 }
 0xe28   :  { %v2047_v46 = vpack.c.bf16 %v3092_v38, %v2028_v24 }
 0xe2a   :  { %v3095_v40 = vpop.f32.mrb[38].mxu1  ;;  %3108 = vmatprep.mubr.msk.bf16.mxu0 %vm52_vm0, %v2047_v46 }
 0xe2b   :  { %v2038_v41 = vpop.f32.mrb[39].mxu1 }
 0xe2c   :  { %v2048_v42 = vpack.c.bf16 %v3095_v40, %v2038_v41 }
 0xe2e   :  { %3109 = vmatmul.mubr.msk.bf16.vlgmr.msra.gmra.mrb[24].mxu0 %vm52_vm0, %v2048_v42  ;;  %v3122_v44 = vpop.f32.mrb[40].mxu1 }
 0xe2f   :  { %3127 = vmatpush3.bf16.msra.mxu0 %v2284_v37  ;;  %v2258_v5 = vpop.f32.mrb[41].mxu1 }
 0xe30   :  { %v2277_v45 = vpack.c.bf16 %v3122_v44, %v2258_v5  ;;  %3128 = vmatprep.subr.bf16.mxu0 %v2285_v43 }
 0xe32   :  { %v3125_v6 = vpop.f32.mrb[42].mxu1  ;;  %3130 = vmatprep.mubr.msk.bf16.mxu0 %vm52_vm0, %v2277_v45 }
 0xe33   :  { %3129 = vmatpush3.bf16.msra.mxu0 %v2285_v43  ;;  %v2268_v50 = vpop.f32.mrb[43].mxu1 }
 0xe34   :  { %v2278_v51 = vpack.c.bf16 %v3125_v6, %v2268_v50 }
 0xe3a   :  { %3131 = vmatmul.mubr.msk.bf16.vlgmr.msra.gmra.mrb[24].mxu0 %vm52_vm0, %v2278_v51 }
 0xf0d   :  { %v3132_v58 = vpop.f32.mrb[24].mxu0 }
 0xf0e   :  { %v2326_v60 = vpop.f32.mrb[25].mxu0  ;;  %v2355_v62 = vadd.f32 %v3132_v58, %v2714_v59 }
 0xf0f   :  { %v3133_v61 = vpop.f32.mrb[26].mxu0  ;;  %v2353_v3 = vadd.f32 %v2714_v59, %v2326_v60 }
 0xf10   :  { %v2356_v63 = vadd.f32 %v3133_v61, %v2714_v59  ;;  %v2329_v2 = vpop.f32.mrb[27].mxu0 }
 0xf11   :  { %v2354_v4 = vadd.f32 %v2714_v59, %v2329_v2 }
 0xf12   :  { %v2358_v7 = vpack.c.bf16 %v2356_v63, %v2355_v62 }
 0xf13   :  { %v2357_v8 = vpack.c.bf16 %v2354_v4, %v2353_v3 }
 0xf15   :  { %3138 = vmatprep.mubr.msk.bf16.mxu1 %vm52_vm0, %v2357_v8 }
 0xf16   :  { %3139 = vmatmul.mubr.msk.bf16.vlgmr.msra.gmra.mrb[44].mxu1 %vm52_vm0, %v2358_v7 }
 0xfe9   :  { %v3140_v10 = vpop.f32.mrb[44].mxu1 }
 0xfea   :  { %v2423_v11 = vadd.f32 %v3140_v10, %v2720_v9  ;;  %v2414_v47 = vpop.f32.mrb[45].mxu1 }
 0xfeb   :  { %v2415_v48 = vadd.f32 %v2720_v9, %v2414_v47  ;;  %v3141_v14 = vpop.f32.mrb[46].mxu1 }
 0xfec   :  { %v2426_v15 = vadd.f32 %v3141_v14, %v2720_v9  ;;  %v2417_v16 = vpop.f32.mrb[47].mxu1  ;;  %v2431_v17 = vadd.f32 %v2423_v11, %v3842_v23 }
 0xfed   :  { %v2429_v18 = vadd.f32 %v2415_v48, %v3838_v1  ;;  %v2418_v19 = vadd.f32 %v2720_v9, %v2417_v16 }
 0xfee   :  { %v2432_v20 = vadd.f32 %v2426_v15, %v3836_v0  ;;  %v2439_v26 = vmul.f32 0.2, %v2431_v17  ;;  %vm2435_vm11 = vcmp.gt.f32.partialorder %v2431_v17, 0.0 }
 0xfef   :  { %v2437_v21 = vmul.f32 0.2, %v2429_v18  ;;  %v2430_v12 = vadd.f32 %v2418_v19, %v3840_v22  ;;  %vm2433_vm8 = vcmp.gt.f32.partialorder %v2429_v18, 0.0 }
 0xff0   :  { %v2440_v13 = vmul.f32 0.2, %v2432_v20  ;;  %vm2436_vm9 = vcmp.gt.f32.partialorder %v2432_v20, 0.0  ;;  %v3934_v30 = vsel %vm2435_vm11, %v2431_v17, %v2439_v26 }
 0xff1   :  { %v2438_v27 = vmul.f32 0.2, %v2430_v12  ;;  %vm2434_vm10 = vcmp.gt.f32.partialorder %v2430_v12, 0.0  ;;  %v3924_v28 = vsel %vm2433_vm8, %v2429_v18, %v2437_v21  ;;  %v2488_v32 = vsel %vm52_vm0, %v3934_v30, 0.0 }
 0xff2   :  { %v3928_v23 = vsel %vm2436_vm9, %v2432_v20, %v2440_v13  ;;  %v2445_v1 = vsel %vm52_vm0, %v3924_v28, 0.0 }
 0xff3   :  { %v3926_v29 = vsel %vm2434_vm10, %v2430_v12, %v2438_v27  ;;  %v2489_v31 = vsel %vm52_vm0, %v3928_v23, 0.0 }
 0xff4   :  { %v2446_v0 = vsel %vm52_vm0, %v3926_v29, 0.0  ;;  %v2490_v33 = vadd.f32 %v2489_v31, %v2488_v32 }
 0xff5   :  { %v2447_v22 = vadd.f32 %v2446_v0, %v2445_v1 }
 0xff7   :  { %2448 = vadd.xlane.f32.xlu0 %v2447_v22 }
 0xffb   :  { %2491 = vadd.xlane.f32.xlu0 %v2490_v33 }
0x1084   :  { %v2449_v34 = vpop.xlane.xlu0 %2448 }
0x1085   :  { %v2450_v35 = vrot.slane %v2449_v34, 4 }
0x1087   :  { %v2451_v49 = vadd.f32 %v2450_v35, %v2449_v34 }
0x1088   :  { %v2492_v45 = vpop.xlane.xlu0 %2491 }
0x1089   :  { %v2452_v36 = vrot.slane %v2451_v49, 2  ;;  %v2493_v6 = vrot.slane %v2492_v45, 4 }
0x108b   :  { %v2453_v37 = vadd.f32 %v2452_v36, %v2451_v49  ;;  %v2494_v50 = vadd.f32 %v2493_v6, %v2492_v45 }
0x108d   :  { %v2454_v38 = vrot.slane %v2453_v37, 1  ;;  %v2495_v51 = vrot.slane %v2494_v50, 2 }
0x108f   :  { %v2455_v24 = vadd.f32 %v2454_v38, %v2453_v37  ;;  %v2496_v55 = vadd.f32 %v2495_v51, %v2494_v50 }
0x1091   :  { %3250 = vpush %v2455_v24  ;;  %v2497_v58 = vrot.slane %v2496_v55, 1 }
0x1093   :  { %v2498_v61 = vadd.f32 %v2497_v58, %v2496_v55 }
0x10c2   :  { %s3251_s7 = spop %3250 }
0x10c3   :  { %v2457_v46 = vstv %s3251_s7 }
0x10c4   :  { %v2458_v25 = vmul.f32 0.001953125, %v2457_v46 }
0x10c6   :  { %v2459_v39 = vsub.f32 %v3924_v28, %v2458_v25  ;;  %v2460_v40 = vsub.f32 %v3926_v29, %v2458_v25 }
0x10c8   :  { %v2461_v41 = vmul.f32 %v2459_v39, %v2459_v39  ;;  %v2462_v42 = vmul.f32 %v2460_v40, %v2460_v40 }
0x10ca   :  { %v2463_v43 = vsel %vm52_vm0, %v2461_v41, 0.0  ;;  %v2464_v44 = vsel %vm52_vm0, %v2462_v42, 0.0 }
0x10cb   :  { %v2465_v5 = vadd.f32 %v2464_v44, %v2463_v43 }
0x10cd   :  { %2466 = vadd.xlane.f32.xlu1 %v2465_v5 }
0x115a   :  { %v2467_v52 = vpop.xlane.xlu1 %2466 }
0x115b   :  { %v2468_v53 = vrot.slane %v2467_v52, 4 }
0x115d   :  { %v2469_v54 = vadd.f32 %v2468_v53, %v2467_v52 }
0x115f   :  { %v2470_v56 = vrot.slane %v2469_v54, 2 }
0x1161   :  { %v2471_v57 = vadd.f32 %v2470_v56, %v2469_v54 }
0x1163   :  { %v2472_v59 = vrot.slane %v2471_v57, 1 }
0x1165   :  { %v2473_v60 = vadd.f32 %v2472_v59, %v2471_v57 }
0x1167   :  { %3252 = vpush %v2473_v60 }
0x1168   :  { %3254 = vpush %v2498_v61 }
0x1198   :  { %s3253_s9 = spop %3252 }
0x1199   :  { %v2475_v62 = vstv %s3253_s9  ;;  %s3255_s2 = spop %3254 }
0x119a   :  { %v2476_v63 = vmul.f32 0.001953125, %v2475_v62  ;;  %v2500_v2 = vstv %s3255_s2 }
0x119b   :  { %v2501_v3 = vmul.f32 0.001953125, %v2500_v2 }
0x119c   :  { %3268 = vrsqrt.f32 %v2476_v63  ;;  %vm2479_vm12 = vcmp.eq.f32.partialorder %v2476_v63, inf  ;;  %v2482_v15 = vand.u32 2147483648, %v2476_v63  ;;  %vm2481_vm13 = vcmp.eq.f32.partialorder %v2476_v63, 0.0 }
0x119d   :  { %v2502_v4 = vsub.f32 %v3934_v30, %v2501_v3  ;;  %v2503_v7 = vsub.f32 %v3928_v23, %v2501_v3 }
0x119f   :  { %v2504_v8 = vmul.f32 %v2502_v4, %v2502_v4  ;;  %v2505_v9 = vmul.f32 %v2503_v7, %v2503_v7 }
0x11a1   :  { %v2506_v10 = vsel %vm52_vm0, %v2504_v8, 0.0  ;;  %v2507_v11 = vsel %vm52_vm0, %v2505_v9, 0.0 }
0x11a2   :  { %v2508_v47 = vadd.f32 %v2507_v11, %v2506_v10 }
0x11a4   :  { %2509 = vadd.xlane.f32.xlu1 %v2508_v47 }
0x11a6   :  { %v3269_v48 = vpop.eup %3268 }
0x11a7   :  { %v2478_v14 = vmul.f32 %v3269_v48, %v2476_v63 }
0x11a9   :  { %v2480_v16 = vsel %vm2479_vm12, %v2476_v63, %v2478_v14 }
0x11aa   :  { %v2483_v17 = vsel %vm2481_vm13, %v2482_v15, %v2480_v16 }
0x11ab   :  { %v2484_v18 = vadd.f32 1e-08, %v2483_v17 }
0x11ad   :  { %3270 = vrcp.f32 %v2484_v18 }
0x11b7   :  { %v3271_v19 = vpop.eup %3270 }
0x11b8   :  { %v2486_v20 = vmul.f32 %v3271_v19, %v3924_v28  ;;  %v2487_v21 = vmul.f32 %v3271_v19, %v3926_v29 }
0x11ba   :  { %2531 = vst.msk [vmem:[%s3978_s10] sm:$0xff] %vm52_vm0, %v2486_v20  ;;  %2532 = vst.msk [vmem:[%s3978_s10 + $0x8] sm:$0xff] %vm52_vm0, %v2487_v21 }
0x1231   :  { %v2510_v12 = vpop.xlane.xlu1 %2509 }
0x1232   :  { %v2511_v13 = vrot.slane %v2510_v12, 4 }
0x1234   :  { %v2512_v26 = vadd.f32 %v2511_v13, %v2510_v12 }
0x1236   :  { %v2513_v27 = vrot.slane %v2512_v26, 2 }
0x1238   :  { %v2514_v1 = vadd.f32 %v2513_v27, %v2512_v26 }
0x123a   :  { %v2515_v0 = vrot.slane %v2514_v1, 1 }
0x123c   :  { %v2516_v22 = vadd.f32 %v2515_v0, %v2514_v1 }
0x123e   :  { %3256 = vpush %v2516_v22 }
0x126f   :  { %s3257_s22 = spop %3256 }
0x1270   :  { %v2518_v28 = vstv %s3257_s22 }
0x1271   :  { %v2519_v29 = vmul.f32 0.001953125, %v2518_v28 }
0x1273   :  { %3272 = vrsqrt.f32 %v2519_v29  ;;  %vm2522_vm14 = vcmp.eq.f32.partialorder %v2519_v29, inf  ;;  %v2525_v33 = vand.u32 2147483648, %v2519_v29  ;;  %vm2524_vm15 = vcmp.eq.f32.partialorder %v2519_v29, 0.0 }
0x127d   :  { %v3273_v31 = vpop.eup %3272 }
0x127e   :  { %v2521_v32 = vmul.f32 %v3273_v31, %v2519_v29 }
0x1280   :  { %v2523_v34 = vsel %vm2522_vm14, %v2519_v29, %v2521_v32 }
0x1281   :  { %v2526_v35 = vsel %vm2524_vm15, %v2525_v33, %v2523_v34 }
0x1282   :  { %v2527_v49 = vadd.f32 1e-08, %v2526_v35 }
0x1284   :  { %3274 = vrcp.f32 %v2527_v49 }
0x128e   :  { %v3275_v36 = vpop.eup %3274 }
0x128f   :  { %v2529_v37 = vmul.f32 %v3275_v36, %v3934_v30  ;;  %v2530_v38 = vmul.f32 %v3275_v36, %v3928_v23 }
0x1291   :  { %2533 = vst.msk [vmem:[%s3978_s10 + $0x10] sm:$0xff] %vm52_vm0, %v2529_v37  ;;  %2534 = vst.msk [vmem:[%s3978_s10 + $0x18] sm:$0xff] %vm52_vm0, %v2530_v38 }
0x1292   :  { %2539 = vsyncpa [#allocation3], 1 }

// kernel: model_forward.9
= control target key start
LH: loop header
LB: loop body
LE: loop exit
PB: predicated region body
PF: predicated region fallthrough
CT: control target
= control target key end

     0   :  { %s9326_s0 = inlined_call_operand.vmem [shape: f32[8,32], index: 0, kind: input, shape index: {}]   ;;  %s9327_s1 = inlined_call_operand.vmem [shape: f32[4,32,32], index: 1, kind: input, shape index: {}]   ;;  %s9328_s2 = inlined_call_operand.hbm [shape: f32[4,1,32], index: 2, kind: input, shape index: {}]   ;;  %s9329_s3 = inlined_call_operand.vmem [shape: f32[64,32], index: 3, kind: input, shape index: {}]   ;;  %s9330_s4 = inlined_call_operand.vmem [shape: f32[64,64], index: 4, kind: input, shape index: {}]   ;;  %s9331_s5 = inlined_call_operand.vmem [shape: f32[64,64], index: 5, kind: input, shape index: {}]   ;;  %s9332_s6 = inlined_call_operand.vmem [shape: f32[3,32,32], index: 6, kind: input, shape index: {}]   ;;  %s9333_s7 = inlined_call_operand.hbm [shape: f32[1,32], index: 7, kind: input, shape index: {}]   ;;  %s9334_s8 = inlined_call_operand.vmem [shape: f32[128,64], index: 8, kind: input, shape index: {}]   ;;  %s9335_s9 = inlined_call_operand.vmem [shape: f32[128,128], index: 9, kind: input, shape index: {}]   ;;  %s9336_s10 = inlined_call_operand.vmem [shape: f32[128,128], index: 10, kind: input, shape index: {}]   ;;  %s9337_s11 = inlined_call_operand.vmem [shape: f32[3,32,32], index: 11, kind: input, shape index: {}]   ;;  %s9338_s12 = inlined_call_operand.hbm [shape: f32[1,32], index: 12, kind: input, shape index: {}]   ;;  %s9339_s13 = inlined_call_operand.vmem [shape: f32[256,128], index: 13, kind: input, shape index: {}]   ;;  %s9340_s14 = inlined_call_operand.vmem [shape: f32[256,256], index: 14, kind: input, shape index: {}]   ;;  %s9341_s15 = inlined_call_operand.vmem [shape: f32[256,256], index: 15, kind: input, shape index: {}]   ;;  %s9342_s16 = inlined_call_operand.vmem [shape: f32[3,32,32], index: 16, kind: input, shape index: {}]   ;;  %s9343_s17 = inlined_call_operand.hbm [shape: f32[1,32], index: 17, kind: input, shape index: {}]   ;;  %s9344_s18 = inlined_call_operand.vmem [shape: f32[3,32,1], index: 18, kind: input, shape index: {}]   ;;  %s9345_s19 = inlined_call_operand.<no memory space> [shape: f32[1,1], index: 19, kind: input, shape index: {}]   ;;  %s9346_s20 = inlined_call_operand.vmem [shape: f32[256,1], index: 20, kind: output, shape index: {}]  }
   0x1   :  { %9351 = sst [smem:[#allocation13_spill]] %s9326_s0  ;;  %v25_v0 = vstv %s9345_s19 }
   0x2   :  { %9352 = sst [smem:[#allocation14_spill]] %s9327_s1  ;;  %26 = vst [vmem:[#allocation2] sm:$0x1] %v25_v0 }
   0x3   :  { %9353 = sst [smem:[#allocation15_spill]] %s9328_s2 }
   0x4   :  { %9354 = sst [smem:[#allocation16_spill]] %s9329_s3 }
   0x5   :  { %9355 = sst [smem:[#allocation17_spill]] %s9330_s4 }
   0x6   :  { %27 = vsyncpa [#allocation4], 0 }
   0x7   :  { %28 = vsyncpa [#allocation6], 0 }
   0x8   :  { %29 = vsyncpa [#allocation9], 0  ;;  %s7055_s23 = smov [#allocation5]   ;;  %s7056_s2 = smov [#allocation3]  }
   0x9   :  { %s60_s24 = sshll.u32 %s7055_s23, 4  ;;  %s39_s25 = sshll.u32 %s7056_s2, 4  ;;  %s61_s24 = int_to_ptr.vmem [resolvable:$true] %s60_s24  ;;  %s7172_s25 = int_to_ptr.vmem [resolvable:$true] %s39_s25 }
   0xa   :  { %s6961_s27 = scalar_lea.hbm %s9333_s7, 16 }
   0xb   :  { %p6962_p0 = scmp.ne.s32.totalorder %s9333_s7, %s6961_s27  ;;  %p6965_p1 = scmp.lt.u32.totalorder %s6961_s27, %s9333_s7 }
   0xd   :  { %p6967_p2 = pnand %p6965_p1, %p6962_p0 }
   0xf   :  { %6970 = shalt.err (!%p6967_p2)
}
  0x10   :  { %s6971_s30 = scalar_lea.vmem %s61_s24, 16  ;;  %s6975_s0 = scalar_lea.vmem %s61_s24, 32 }
  0x11   :  { %p6972_p3 = scmp.ne.s32.totalorder %s61_s24, %s6971_s30  ;;  %p6976_p4 = scmp.lt.s32.totalorder %s61_s24, %s61_s24 }
  0x12   :  { %p6977_p5 = scmp.lt.s32.totalorder %s6975_s0, %s6971_s30 }
  0x14   :  { %p6978_p6 = por %p6977_p5, %p6976_p4 }
  0x16   :  { %p6979_p7 = pnand %p6978_p6, %p6972_p3 }
  0x18   :  { %6982 = shalt.err (!%p6979_p7)
}
  0x19   :  { %63 = dma.hbm_to_vmem [thread:$0]  %s9333_s7, 16, %s61_s24, [#allocation6]  }
  0x1a   :  { %s9356_s2 = sld [smem:[#allocation15_spill]] }
  0x20   :  { %s6983_s3 = scalar_lea.hbm %s9356_s2, 64 }
  0x21   :  { %p6984_p8 = scmp.ne.s32.totalorder %s9356_s2, %s6983_s3  ;;  %p6987_p9 = scmp.lt.u32.totalorder %s6983_s3, %s9356_s2 }
  0x23   :  { %p6989_p10 = pnand %p6987_p9, %p6984_p8 }
  0x25   :  { %6992 = shalt.err (!%p6989_p10)
}
  0x26   :  { %s6993_s19 = scalar_lea.vmem %s7172_s25, 64  ;;  %p6998_p12 = scmp.lt.s32.totalorder %s7172_s25, %s7172_s25 }
  0x27   :  { %p6994_p11 = scmp.ne.s32.totalorder %s7172_s25, %s6993_s19  ;;  %p6999_p13 = scmp.lt.s32.totalorder %s6993_s19, %s6993_s19 }
  0x29   :  { %p7000_p0 = por %p6999_p13, %p6998_p12 }
  0x2b   :  { %p7001_p1 = pnand %p7000_p0, %p6994_p11 }
  0x2d   :  { %7004 = shalt.err (!%p7001_p1)
}
  0x2e   :  { %s7057_s7 = smov 16   ;;  %s7058_s24 = smov 1  }
  0x2f   :  { %45 = dma.hbm_to_vmem [thread:$0]  %s9356_s2, 64, %s7172_s25, [#allocation4], %s7057_s7, %s7057_s7, %s7058_s24  }
  0x30   :  { %s7059_s0 = smov [#allocation7]   ;;  %s7060_s1 = smov [#allocation8]  }
  0x31   :  { %s78_s21 = sshll.u32 %s7059_s0, 4  ;;  %s96_s22 = sshll.u32 %s7060_s1, 4  ;;  %s79_s21 = int_to_ptr.vmem [resolvable:$true] %s78_s21  ;;  %s97_s22 = int_to_ptr.vmem [resolvable:$true] %s96_s22 }
  0x32   :  { %s7005_s26 = scalar_lea.hbm %s9338_s12, 16 }
  0x33   :  { %p7006_p2 = scmp.ne.s32.totalorder %s9338_s12, %s7005_s26  ;;  %p7009_p3 = scmp.lt.u32.totalorder %s7005_s26, %s9338_s12 }
  0x35   :  { %p7011_p4 = pnand %p7009_p3, %p7006_p2 }
  0x37   :  { %7014 = shalt.err (!%p7011_p4)
}
  0x38   :  { %s7015_s25 = scalar_lea.vmem %s79_s21, 16  ;;  %s7019_s2 = scalar_lea.vmem %s79_s21, 32 }
  0x39   :  { %p7016_p5 = scmp.ne.s32.totalorder %s79_s21, %s7015_s25  ;;  %p7020_p6 = scmp.lt.s32.totalorder %s79_s21, %s79_s21 }
  0x3a   :  { %p7021_p7 = scmp.lt.s32.totalorder %s7019_s2, %s7015_s25 }
  0x3c   :  { %p7022_p8 = por %p7021_p7, %p7020_p6 }
  0x3e   :  { %p7023_p9 = pnand %p7022_p8, %p7016_p5 }
  0x40   :  { %7026 = shalt.err (!%p7023_p9)
}
  0x41   :  { %81 = dma.hbm_to_vmem [thread:$0]  %s9338_s12, 16, %s79_s21, [#allocation6]  }
  0x42   :  { %s7027_s0 = scalar_lea.hbm %s9343_s17, 16 }
  0x43   :  { %p7028_p10 = scmp.ne.s32.totalorder %s9343_s17, %s7027_s0  ;;  %p7031_p11 = scmp.lt.u32.totalorder %s7027_s0, %s9343_s17 }
  0x45   :  { %p7033_p12 = pnand %p7031_p11, %p7028_p10 }
  0x47   :  { %7036 = shalt.err (!%p7033_p12)
}
  0x48   :  { %s7037_s27 = scalar_lea.vmem %s97_s22, 16  ;;  %s7041_s28 = scalar_lea.vmem %s97_s22, 32 }
  0x49   :  { %p7038_p13 = scmp.ne.s32.totalorder %s97_s22, %s7037_s27  ;;  %p7042_p0 = scmp.lt.s32.totalorder %s97_s22, %s97_s22 }
  0x4a   :  { %p7043_p1 = scmp.lt.s32.totalorder %s7041_s28, %s7037_s27 }
  0x4c   :  { %p7044_p2 = por %p7043_p1, %p7042_p0 }
  0x4e   :  { %p7045_p3 = pnand %p7044_p2, %p7038_p13 }
  0x50   :  { %7048 = shalt.err (!%p7045_p3)
}
  0x51   :  { %99 = dma.hbm_to_vmem [thread:$0]  %s9343_s17, 16, %s97_s22, [#allocation9]  }
  0x52   :  { %7049 = dma.done.wait [#allocation4], 64  }
  0x53   :  { %7050 = vsyncadd [#allocation4], 4294967232 }
  0x54   :  { %7051 = dma.done.wait [#allocation6], 32  }
  0x55   :  { %7052 = vsyncadd [#allocation6], 4294967264 }
  0x56   :  { %7053 = dma.done.wait [#allocation9], 16  }
  0x57   :  { %7054 = vsyncadd [#allocation9], 4294967280  ;;  %v7061_v1 = vmov 0.0   ;;  %vm7062_vm0 = vmmov 0   ;;  %s9357_s25 = sld [smem:[#allocation14_spill]]  ;;  %s9358_s4 = sld [smem:[#allocation13_spill]] }
  0x58   :  { %5649 = vmatprep.subr.bf16.mxu0 %v7061_v1  ;;  %5657 = vmatprep.subr.bf16.mxu1 %v7061_v1  ;;  %vm132_vm1 = vcmask 261120   ;;  %v5073_v29 = vld [vmem:[#allocation3] ss:$0 sm:$0xff]  ;;  %v5079_v30 = vld [vmem:[#allocation3 + $0x1] ss:$0 sm:$0xff]  ;;  %vm486_vm2 = vcmask 523264  }
  0x59   :  { %5653 = vmatprep.mubr.msk.bf16.mxu0 %vm7062_vm0, %v7061_v1  ;;  %5661 = vmatprep.mubr.msk.bf16.mxu1 %vm7062_vm0, %v7061_v1  ;;  %v5085_v42 = vld [vmem:[#allocation3 + $0x2] ss:$0 sm:$0xff]  ;;  %v5091_v43 = vld [vmem:[#allocation3 + $0x3] ss:$0 sm:$0xff] }
  0x5a   :  { %v616_v63 = vld [vmem:[%s9331_s5] sm:$0xff] }
  0x5d   :  { %v119_v2 = vld [vmem:[%s9357_s25] sm:$0xff]  ;;  %v120_v3 = vld [vmem:[%s9357_s25 + $0x8] sm:$0xff]  ;;  %v121_v7 = vld [vmem:[%s9357_s25 + $0x10] sm:$0xff] }
  0x5e   :  { %v5075_v4 = vld [vmem:[%s9357_s25 + $0x20] sm:$0xff]  ;;  %v123_v5 = vpack.c.bf16 %v120_v3, %v119_v2  ;;  %v5076_v6 = vld [vmem:[%s9357_s25 + $0x28] sm:$0xff]  ;;  %v122_v8 = vld [vmem:[%s9357_s25 + $0x18] sm:$0xff] }
  0x5f   :  { %v181_v9 = vpack.c.bf16 %v5076_v6, %v5075_v4  ;;  %v5077_v10 = vld [vmem:[%s9357_s25 + $0x30] sm:$0xff]  ;;  %v5078_v11 = vld [vmem:[%s9357_s25 + $0x38] sm:$0xff]  ;;  %v124_v12 = vpack.c.bf16 %v122_v8, %v121_v7  ;;  %v117_v13 = vld [vmem:[%s9358_s4] sm:$0xff]  ;;  %s9359_s4 = sld [smem:[#allocation16_spill]] }
  0x60   :  { %5650 = vmatpush3.bf16.msra.mxu0 %v123_v5  ;;  %v182_v14 = vpack.c.bf16 %v5078_v11, %v5077_v10  ;;  %v5081_v15 = vld [vmem:[%s9357_s25 + $0x40] sm:$0xff]  ;;  %v5082_v16 = vld [vmem:[%s9357_s25 + $0x48] sm:$0xff]  ;;  %v118_v19 = vpack.c.bf16 %v117_v13, %v117_v13  ;;  %v5083_v22 = vld [vmem:[%s9357_s25 + $0x50] sm:$0xff] }
  0x61   :  { %5658 = vmatpush3.bf16.msra.mxu1 %v181_v9  ;;  %5651 = vmatprep.subr.bf16.mxu0 %v7061_v1  ;;  %v5087_v17 = vld [vmem:[%s9357_s25 + $0x60] sm:$0xff]  ;;  %v5088_v18 = vld [vmem:[%s9357_s25 + $0x68] sm:$0xff]  ;;  %v236_v20 = vpack.c.bf16 %v5082_v16, %v5081_v15  ;;  %v5084_v23 = vld [vmem:[%s9357_s25 + $0x58] sm:$0xff] }
  0x62   :  { %5659 = vmatprep.subr.bf16.mxu1 %v7061_v1  ;;  %v291_v21 = vpack.c.bf16 %v5088_v18, %v5087_v17  ;;  %v5089_v24 = vld [vmem:[%s9357_s25 + $0x70] sm:$0xff]  ;;  %v5090_v25 = vld [vmem:[%s9357_s25 + $0x78] sm:$0xff]  ;;  %v237_v26 = vpack.c.bf16 %v5084_v23, %v5083_v22  ;;  %s9360_s25 = sld [smem:[#allocation17_spill]]  ;;  %v5117_v9 = vld [vmem:[%s9332_s6 + $0x20] sm:$0xff] }
  0x63   :  { %v292_v27 = vpack.c.bf16 %v5090_v25, %v5089_v24  ;;  %v5118_v10 = vld [vmem:[%s9332_s6 + $0x28] sm:$0xff]  ;;  %v5119_v15 = vld [vmem:[%s9332_s6 + $0x30] sm:$0xff]  ;;  %v5120_v16 = vld [vmem:[%s9332_s6 + $0x38] sm:$0xff] }
  0x64   :  { %5652 = vmatpush3.bf16.msra.mxu0 %v124_v12  ;;  %v617_v18 = vld [vmem:[%s9331_s5 + $0x8] sm:$0xff]  ;;  %v619_v23 = vld [vmem:[%s9331_s5 + $0x18] sm:$0xff]  ;;  %v620_v25 = vld [vmem:[%s9331_s5 + $0x20] sm:$0xff] }
  0x65   :  { %5660 = vmatpush3.bf16.msra.mxu1 %v182_v14  ;;  %5665 = vmatprep.subr.bf16.mxu0 %v7061_v1  ;;  %v341_v28 = vld [vmem:[%s9359_s4] sm:$0xff]  ;;  %v342_v55 = vld [vmem:[%s9359_s4 + $0x8] sm:$0xff]  ;;  %v343_v56 = vld [vmem:[%s9359_s4 + $0x10] sm:$0xff]  ;;  %v772_v14 = vpack.c.bf16 %v5118_v10, %v5117_v9 }
  0x66   :  { %5673 = vmatprep.subr.bf16.mxu1 %v7061_v1  ;;  %v344_v57 = vld [vmem:[%s9359_s4 + $0x18] sm:$0xff]  ;;  %v345_v58 = vld [vmem:[%s9359_s4 + $0x20] sm:$0xff]  ;;  %v346_v59 = vld [vmem:[%s9359_s4 + $0x28] sm:$0xff] }
  0x67   :  { %5654 = vmatmul.mubr.msk.bf16.vlgmr.msra.gmra.mrb[0].mxu0 %vm132_vm1, %v118_v19  ;;  %v347_v60 = vld [vmem:[%s9359_s4 + $0x30] sm:$0xff]  ;;  %v348_v61 = vld [vmem:[%s9359_s4 + $0x38] sm:$0xff] }
  0x68   :  { %5662 = vmatmul.mubr.msk.bf16.vlgmr.msra.gmra.mrb[0].mxu1 %vm132_vm1, %v118_v19  ;;  %5666 = vmatpush3.bf16.msra.mxu0 %v236_v20  ;;  %v478_v62 = vld [vmem:[%s9360_s25] sm:$0xff]  ;;  %v479_v17 = vld [vmem:[%s9360_s25 + $0x8] sm:$0xff]  ;;  %v773_v20 = vpack.c.bf16 %v5120_v16, %v5119_v15  ;;  %v481_v22 = vld [vmem:[%s9360_s25 + $0x18] sm:$0xff] }
  0x69   :  { %5674 = vmatpush3.bf16.msra.mxu1 %v291_v21  ;;  %5667 = vmatprep.subr.bf16.mxu0 %v7061_v1  ;;  %v618_v21 = vld [vmem:[%s9331_s5 + $0x10] sm:$0xff]  ;;  %v482_v24 = vld [vmem:[%s9360_s25 + $0x20] sm:$0xff] }
  0x6a   :  { %5675 = vmatprep.subr.bf16.mxu1 %v7061_v1  ;;  %5669 = vmatprep.mubr.msk.bf16.mxu0 %vm7062_vm0, %v7061_v1 }
  0x6b   :  { %5677 = vmatprep.mubr.msk.bf16.mxu1 %vm7062_vm0, %v7061_v1 }
  0x6c   :  { %5668 = vmatpush3.bf16.msra.mxu0 %v237_v26  ;;  %v483_v26 = vld [vmem:[%s9360_s25 + $0x28] sm:$0xff] }
  0x6d   :  { %5676 = vmatpush3.bf16.msra.mxu1 %v292_v27  ;;  %v621_v27 = vld [vmem:[%s9331_s5 + $0x28] sm:$0xff] }
  0x6f   :  { %5670 = vmatmul.mubr.msk.bf16.vlgmr.msra.gmra.mrb[4].mxu0 %vm132_vm1, %v118_v19 }
  0x70   :  { %5678 = vmatmul.mubr.msk.bf16.vlgmr.msra.gmra.mrb[4].mxu1 %vm132_vm1, %v118_v19  ;;  %5689 = vmatprep.mubr.msk.f32.mxu0 %vm132_vm1, %v341_v28  ;;  %v480_v19 = vld [vmem:[%s9360_s25 + $0x10] sm:$0xff] }
  0x71   :  { %5717 = vmatprep.mubr.msk.f32.mxu1 %vm486_vm2, %v478_v62  ;;  %v484_v28 = vld [vmem:[%s9360_s25 + $0x30] sm:$0xff] }
 0x13a   :  { %v170_v31 = vpop.f32.mrb[0].mxu0 }
 0x13b   :  { %v171_v32 = vadd.f32 %v5073_v29, %v170_v31  ;;  %v225_v33 = vpop.f32.mrb[0].mxu1  ;;  %v5655_v34 = vpop.f32.mrb[1].mxu0  ;;  %v622_v29 = vld [vmem:[%s9331_s5 + $0x30] sm:$0xff]  ;;  %v623_v31 = vld [vmem:[%s9331_s5 + $0x38] sm:$0xff] }
 0x13c   :  { %v226_v35 = vadd.f32 %v5079_v30, %v225_v33  ;;  %v5663_v36 = vpop.f32.mrb[1].mxu1  ;;  %v173_v37 = vpop.f32.mrb[2].mxu0  ;;  %v485_v30 = vld [vmem:[%s9360_s25 + $0x38] sm:$0xff]  ;;  %v758_v33 = vld [vmem:[%s9332_s6 + $0x8] sm:$0xff] }
 0x13d   :  { %v228_v38 = vpop.f32.mrb[2].mxu1  ;;  %v5656_v39 = vpop.f32.mrb[3].mxu0  ;;  %v760_v36 = vld [vmem:[%s9332_s6 + $0x18] sm:$0xff] }
 0x13e   :  { %v6301_v40 = vpack.c.bf16 %v226_v35, %v171_v32  ;;  %v5664_v41 = vpop.f32.mrb[3].mxu1  ;;  %v757_v32 = vld [vmem:[%s9332_s6] sm:$0xff]  ;;  %v759_v35 = vld [vmem:[%s9332_s6 + $0x10] sm:$0xff]  ;;  %v5130_v39 = vld [vmem:[%s9332_s6 + $0x48] sm:$0xff] }
 0x13f   :  { %v761_v34 = vpack.c.bf16 %v758_v33, %v757_v32  ;;  %v762_v37 = vpack.c.bf16 %v760_v36, %v759_v35  ;;  %v5129_v38 = vld [vmem:[%s9332_s6 + $0x40] sm:$0xff] }
 0x140   :  { %6302 = vmatprep.subr.bf16.mxu0 %v6301_v40 }
 0x141   :  { %6304 = vmatpush3.bf16.msra.mxu0 %v6301_v40  ;;  %v937_v40 = vpack.c.bf16 %v5130_v39, %v5129_v38 }
 0x142   :  { %v280_v44 = vpop.f32.mrb[4].mxu0 }
 0x143   :  { %v281_v45 = vadd.f32 %v5085_v42, %v280_v44  ;;  %v335_v46 = vpop.f32.mrb[4].mxu1  ;;  %v5671_v47 = vpop.f32.mrb[5].mxu0 }
 0x144   :  { %v336_v48 = vadd.f32 %v5091_v43, %v335_v46  ;;  %v5679_v49 = vpop.f32.mrb[5].mxu1  ;;  %v283_v50 = vpop.f32.mrb[6].mxu0  ;;  %v5131_v47 = vld [vmem:[%s9332_s6 + $0x50] sm:$0xff] }
 0x145   :  { %v338_v51 = vpop.f32.mrb[6].mxu1  ;;  %v5672_v52 = vpop.f32.mrb[7].mxu0 }
 0x146   :  { %v6305_v53 = vpack.c.bf16 %v336_v48, %v281_v45  ;;  %v5680_v54 = vpop.f32.mrb[7].mxu1  ;;  %v5132_v48 = vld [vmem:[%s9332_s6 + $0x58] sm:$0xff] }
 0x148   :  { %6306 = vmatprep.subr.bf16.mxu0 %v6305_v53 }
 0x149   :  { %6308 = vmatpush3.bf16.msra.mxu0 %v6305_v53 }
 0x14c   :  { %5690 = vmatmul.mubr.msk.f32.vlgmr.msra.gmra.mrb[8].mxu0 %vm132_vm1, %v342_v55  ;;  %v938_v55 = vpack.c.bf16 %v5132_v48, %v5131_v47  ;;  %v1069_v47 = vld [vmem:[%s9334_s8 + $0x30] sm:$0xff]  ;;  %v1070_v48 = vld [vmem:[%s9334_s8 + $0x38] sm:$0xff] }
 0x14d   :  { %5692 = vmatprep.mubr.msk.f32.mxu0 %vm132_vm1, %v343_v56 }
 0x150   :  { %5693 = vmatmul.mubr.msk.f32.gmra.mrb[10].mxu0 %vm132_vm1, %v344_v57 }
 0x151   :  { %5695 = vmatprep.mubr.msk.f32.mxu0 %vm132_vm1, %v345_v58 }
 0x154   :  { %5696 = vmatmul.mubr.msk.f32.gmra.mrb[12].mxu0 %vm132_vm1, %v346_v59 }
 0x155   :  { %5698 = vmatprep.mubr.msk.f32.mxu0 %vm132_vm1, %v347_v60 }
 0x158   :  { %5699 = vmatmul.mubr.msk.f32.gmra.mrb[14].mxu0 %vm132_vm1, %v348_v61 }
 0x159   :  { %5745 = vmatprep.mubr.msk.f32.mxu0 %vm486_vm2, %v616_v63 }
 0x21f   :  { %v5691_v0 = vpop.f32.mrb[8].mxu0 }
 0x220   :  { %v439_v1 = vpop.f32.mrb[9].mxu0 }
 0x221   :  { %v7326_v2 = vpack.c.bf16 %v5691_v0, %v439_v1 }
 0x223   :  { %v5694_v3 = vpop.f32.mrb[10].mxu0  ;;  %6310 = vmatprep.subr.bf16.mxu1 %v7326_v2  ;;  %6326 = vmatprep.subr.bf16.mxu0 %v7326_v2 }
 0x224   :  { %v449_v4 = vpop.f32.mrb[11].mxu0  ;;  %6312 = vmatpush3.bf16.msra.mxu1 %v7326_v2  ;;  %6328 = vmatpush3.bf16.msra.mxu0 %v7326_v2 }
 0x225   :  { %v6313_v5 = vpack.c.bf16 %v5694_v3, %v449_v4  ;;  %v1063_v4 = vld [vmem:[%s9334_s8] sm:$0xff] }
 0x227   :  { %v5697_v6 = vpop.f32.mrb[12].mxu0  ;;  %6314 = vmatprep.subr.bf16.mxu1 %v6313_v5  ;;  %6330 = vmatprep.subr.bf16.mxu0 %v6313_v5 }
 0x228   :  { %v459_v7 = vpop.f32.mrb[13].mxu0  ;;  %6316 = vmatpush3.bf16.msra.mxu1 %v6313_v5  ;;  %6332 = vmatpush3.bf16.msra.mxu0 %v6313_v5 }
 0x229   :  { %v6317_v8 = vpack.c.bf16 %v5697_v6, %v459_v7 }
 0x22b   :  { %v5700_v11 = vpop.f32.mrb[14].mxu0  ;;  %6318 = vmatprep.subr.bf16.mxu1 %v6317_v8  ;;  %6334 = vmatprep.subr.bf16.mxu0 %v6317_v8 }
 0x22c   :  { %v469_v12 = vpop.f32.mrb[15].mxu0  ;;  %6320 = vmatpush3.bf16.msra.mxu1 %v6317_v8  ;;  %6336 = vmatpush3.bf16.msra.mxu0 %v6317_v8 }
 0x22d   :  { %v6321_v13 = vpack.c.bf16 %v5700_v11, %v469_v12 }
 0x22f   :  { %6322 = vmatprep.subr.bf16.mxu1 %v6321_v13  ;;  %6338 = vmatprep.subr.bf16.mxu0 %v6321_v13 }
 0x230   :  { %6324 = vmatpush3.bf16.msra.mxu1 %v6321_v13  ;;  %6340 = vmatpush3.bf16.msra.mxu0 %v6321_v13 }
 0x231   :  { %5757 = vmatprep.subr.bf16.mxu1 %v772_v14 }
 0x233   :  { %5718 = vmatmul.mubr.msk.f32.vlgmr.msra.gmra.mrb[8].mxu1 %vm486_vm2, %v479_v17  ;;  %5746 = vmatmul.mubr.msk.f32.vlgmr.msra.gmra.mrb[16].mxu0 %vm486_vm2, %v617_v18 }
 0x234   :  { %5720 = vmatprep.mubr.msk.f32.mxu1 %vm486_vm2, %v480_v19  ;;  %5758 = vmatpush3.bf16.msra.mxu1 %v772_v14 }
 0x235   :  { %5759 = vmatprep.subr.bf16.mxu1 %v773_v20  ;;  %5748 = vmatprep.mubr.msk.f32.mxu0 %vm486_vm2, %v618_v21 }
 0x237   :  { %5721 = vmatmul.mubr.msk.f32.gmra.mrb[10].mxu1 %vm486_vm2, %v481_v22  ;;  %5749 = vmatmul.mubr.msk.f32.gmra.mrb[18].mxu0 %vm486_vm2, %v619_v23 }
 0x238   :  { %5723 = vmatprep.mubr.msk.f32.mxu1 %vm486_vm2, %v482_v24  ;;  %5760 = vmatpush3.bf16.msra.mxu1 %v773_v20 }
 0x239   :  { %5751 = vmatprep.mubr.msk.f32.mxu0 %vm486_vm2, %v620_v25  ;;  %5769 = vmatprep.subr.bf16.mxu1 %v761_v34 }
 0x23b   :  { %5724 = vmatmul.mubr.msk.f32.gmra.mrb[12].mxu1 %vm486_vm2, %v483_v26  ;;  %5752 = vmatmul.mubr.msk.f32.gmra.mrb[20].mxu0 %vm486_vm2, %v621_v27 }
 0x23c   :  { %5726 = vmatprep.mubr.msk.f32.mxu1 %vm486_vm2, %v484_v28  ;;  %5754 = vmatprep.mubr.msk.f32.mxu0 %vm486_vm2, %v622_v29 }
 0x23f   :  { %5727 = vmatmul.mubr.msk.f32.gmra.mrb[14].mxu1 %vm486_vm2, %v485_v30  ;;  %5755 = vmatmul.mubr.msk.f32.gmra.mrb[22].mxu0 %vm486_vm2, %v623_v31 }
 0x240   :  { %5761 = vmatprep.mubr.msk.bf16.mxu1 %vm132_vm1, %v7326_v2  ;;  %5809 = vmatprep.mubr.msk.f32.mxu0 %vm486_vm2, %v1063_v4 }
 0x243   :  { %5762 = vmatmul.mubr.msk.bf16.vlgmr.msra.gmra.mrb[16].mxu1 %vm132_vm1, %v6313_v5  ;;  %v5137_v5 = vld [vmem:[#allocation5] ss:$0 sm:$0xff] }
 0x244   :  { %5765 = vmatprep.mubr.msk.bf16.mxu1 %vm132_vm1, %v6317_v8  ;;  %5770 = vmatpush3.bf16.msra.mxu1 %v761_v34 }
 0x245   :  { %5771 = vmatprep.subr.bf16.mxu1 %v762_v37 }
 0x248   :  { %5772 = vmatpush3.bf16.msra.mxu1 %v762_v37 }
 0x249   :  { %5781 = vmatprep.subr.bf16.mxu1 %v937_v40 }
 0x24b   :  { %5766 = vmatmul.mubr.msk.bf16.gmra.mrb[20].mxu1 %vm132_vm1, %v6321_v13 }
 0x306   :  { %v5719_v41 = vpop.f32.mrb[8].mxu1  ;;  %v5747_v42 = vpop.f32.mrb[16].mxu0 }
 0x307   :  { %v577_v43 = vpop.f32.mrb[9].mxu1  ;;  %v714_v44 = vpop.f32.mrb[17].mxu0 }
 0x308   :  { %v753_v45 = vpack.c.bf16 %v5719_v41, %v577_v43  ;;  %v928_v46 = vpack.c.bf16 %v5747_v42, %v714_v44  ;;  %v1064_v42 = vld [vmem:[%s9334_s8 + $0x8] sm:$0xff]  ;;  %v1065_v43 = vld [vmem:[%s9334_s8 + $0x10] sm:$0xff]  ;;  %v1066_v44 = vld [vmem:[%s9334_s8 + $0x18] sm:$0xff] }
 0x30a   :  { %v5722_v49 = vpop.f32.mrb[10].mxu1  ;;  %5773 = vmatprep.mubr.msk.bf16.mxu1 %vm132_vm1, %v753_v45  ;;  %v5750_v50 = vpop.f32.mrb[18].mxu0  ;;  %v1067_v45 = vld [vmem:[%s9334_s8 + $0x20] sm:$0xff] }
 0x30b   :  { %v587_v51 = vpop.f32.mrb[11].mxu1  ;;  %v724_v52 = vpop.f32.mrb[19].mxu0 }
 0x30c   :  { %v754_v53 = vpack.c.bf16 %v5722_v49, %v587_v51  ;;  %v929_v54 = vpack.c.bf16 %v5750_v50, %v724_v52  ;;  %v1071_v49 = vld [vmem:[%s9334_s8 + $0x40] sm:$0xff]  ;;  %v1072_v50 = vld [vmem:[%s9334_s8 + $0x48] sm:$0xff]  ;;  %v1073_v51 = vld [vmem:[%s9334_s8 + $0x50] sm:$0xff] }
 0x30d   :  { %v1074_v52 = vld [vmem:[%s9334_s8 + $0x58] sm:$0xff] }
 0x30e   :  { %v5725_v56 = vpop.f32.mrb[12].mxu1  ;;  %5774 = vmatmul.mubr.msk.bf16.vlgmr.msra.gmra.mrb[16].mxu1 %vm132_vm1, %v754_v53  ;;  %v5753_v57 = vpop.f32.mrb[20].mxu0  ;;  %v1075_v53 = vld [vmem:[%s9334_s8 + $0x60] sm:$0xff] }
 0x30f   :  { %v597_v58 = vpop.f32.mrb[13].mxu1  ;;  %5782 = vmatpush3.bf16.msra.mxu1 %v937_v40  ;;  %v734_v59 = vpop.f32.mrb[21].mxu0 }
 0x310   :  { %v755_v60 = vpack.c.bf16 %v5725_v56, %v597_v58  ;;  %5783 = vmatprep.subr.bf16.mxu1 %v938_v55  ;;  %v930_v61 = vpack.c.bf16 %v5753_v57, %v734_v59  ;;  %v1078_v56 = vld [vmem:[%s9334_s8 + $0x78] sm:$0xff]  ;;  %v1272_v57 = vld [vmem:[%s9335_s9] sm:$0xff] }
 0x311   :  { %v1433_v58 = vld [vmem:[%s9336_s10] sm:$0xff] }
 0x312   :  { %v5728_v62 = vpop.f32.mrb[14].mxu1  ;;  %5777 = vmatprep.mubr.msk.bf16.mxu1 %vm132_vm1, %v755_v60  ;;  %v5756_v63 = vpop.f32.mrb[22].mxu0 }
 0x313   :  { %v607_v0 = vpop.f32.mrb[15].mxu1  ;;  %5784 = vmatpush3.bf16.msra.mxu1 %v938_v55  ;;  %v744_v1 = vpop.f32.mrb[23].mxu0  ;;  %v1077_v55 = vld [vmem:[%s9334_s8 + $0x70] sm:$0xff] }
 0x314   :  { %v756_v2 = vpack.c.bf16 %v5728_v62, %v607_v0  ;;  %v931_v3 = vpack.c.bf16 %v5756_v63, %v744_v1 }
 0x316   :  { %5778 = vmatmul.mubr.msk.bf16.gmra.mrb[20].mxu1 %vm132_vm1, %v756_v2 }
 0x317   :  { %5785 = vmatprep.mubr.msk.bf16.mxu1 %vm132_vm1, %v928_v46  ;;  %v1068_v46 = vld [vmem:[%s9334_s8 + $0x28] sm:$0xff] }
 0x31e   :  { %5786 = vmatmul.mubr.msk.bf16.vlgmr.msra.gmra.mrb[16].mxu1 %vm132_vm1, %v929_v54  ;;  %v1076_v54 = vld [vmem:[%s9334_s8 + $0x68] sm:$0xff] }
 0x31f   :  { %5789 = vmatprep.mubr.msk.bf16.mxu1 %vm132_vm1, %v930_v61 }
 0x326   :  { %5790 = vmatmul.mubr.msk.bf16.gmra.mrb[20].mxu1 %vm132_vm1, %v931_v3 }
 0x327   :  { %5921 = vmatprep.mubr.f32.mxu1 %v1433_v58  ;;  %v1604_v58 = vld [vmem:[%s9337_s11 + $0x10] sm:$0xff] }
 0x3f1   :  { %v5787_v6 = vpop.f32.mrb[16].mxu1 }
 0x3f2   :  { %v1033_v7 = vadd.f32 %v5787_v6, %v5137_v5  ;;  %v985_v8 = vpop.f32.mrb[17].mxu1 }
 0x3f3   :  { %v1031_v9 = vadd.f32 %v5137_v5, %v985_v8  ;;  %v5788_v10 = vpop.f32.mrb[18].mxu1 }
 0x3f4   :  { %v1049_v11 = vmul.f32 0.2, %v1033_v7  ;;  %v1034_v12 = vadd.f32 %v5788_v10, %v5137_v5  ;;  %v988_v13 = vpop.f32.mrb[19].mxu1  ;;  %vm1041_vm3 = vcmp.gt.f32.partialorder %v1033_v7, 0.0 }
 0x3f5   :  { %v1047_v14 = vmul.f32 0.2, %v1031_v9  ;;  %v1032_v15 = vadd.f32 %v5137_v5, %v988_v13  ;;  %vm1039_vm4 = vcmp.gt.f32.partialorder %v1031_v9, 0.0 }
 0x3f6   :  { %vm1042_vm5 = vcmp.gt.f32.partialorder %v1034_v12, 0.0  ;;  %v1050_v16 = vmul.f32 0.2, %v1034_v12  ;;  %v1057_v18 = vsel %vm1041_vm3, %v1033_v7, %v1049_v11 }
 0x3f7   :  { %vm1040_vm6 = vcmp.gt.f32.partialorder %v1032_v15, 0.0  ;;  %v1048_v17 = vmul.f32 0.2, %v1032_v15  ;;  %v1055_v21 = vsel %vm1039_vm4, %v1031_v9, %v1047_v14 }
 0x3f8   :  { %v1058_v19 = vsel %vm1042_vm5, %v1034_v12, %v1050_v16  ;;  %v5154_v16 = vld [vmem:[%s9337_s11 + $0x20] sm:$0xff] }
 0x3f9   :  { %v5791_v20 = vpop.f32.mrb[20].mxu1  ;;  %v1056_v22 = vsel %vm1040_vm6, %v1032_v15, %v1048_v17  ;;  %v6345_v23 = vpack.c.bf16 %v1058_v19, %v1057_v18  ;;  %v5155_v17 = vld [vmem:[%s9337_s11 + $0x28] sm:$0xff] }
 0x3fa   :  { %v1037_v24 = vadd.f32 %v5791_v20, %v5137_v5  ;;  %v1001_v25 = vpop.f32.mrb[21].mxu1  ;;  %v6341_v26 = vpack.c.bf16 %v1056_v22, %v1055_v21  ;;  %v1621_v21 = vpack.c.bf16 %v5155_v17, %v5154_v16  ;;  %v5156_v22 = vld [vmem:[%s9337_s11 + $0x30] sm:$0xff] }
 0x3fb   :  { %v1035_v27 = vadd.f32 %v5137_v5, %v1001_v25  ;;  %v5792_v28 = vpop.f32.mrb[22].mxu1  ;;  %v1434_v25 = vld [vmem:[%s9336_s10 + $0x8] sm:$0xff] }
 0x3fc   :  { %v1053_v29 = vmul.f32 0.2, %v1037_v24  ;;  %v1038_v30 = vadd.f32 %v5792_v28, %v5137_v5  ;;  %v1004_v31 = vpop.f32.mrb[23].mxu1  ;;  %6342 = vmatprep.subr.bf16.mxu0 %v6341_v26  ;;  %vm1045_vm7 = vcmp.gt.f32.partialorder %v1037_v24, 0.0  ;;  %v1435_v28 = vld [vmem:[%s9336_s10 + $0x10] sm:$0xff] }
 0x3fd   :  { %v1051_v32 = vmul.f32 0.2, %v1035_v27  ;;  %v1036_v33 = vadd.f32 %v5137_v5, %v1004_v31  ;;  %6344 = vmatpush3.bf16.msra.mxu0 %v6341_v26  ;;  %vm1043_vm8 = vcmp.gt.f32.partialorder %v1035_v27, 0.0  ;;  %v1274_v26 = vld [vmem:[%s9335_s9 + $0x10] sm:$0xff]  ;;  %v1276_v31 = vld [vmem:[%s9335_s9 + $0x20] sm:$0xff] }
 0x3fe   :  { %vm1046_vm9 = vcmp.gt.f32.partialorder %v1038_v30, 0.0  ;;  %v1054_v34 = vmul.f32 0.2, %v1038_v30  ;;  %6346 = vmatprep.subr.bf16.mxu0 %v6345_v23  ;;  %v1061_v36 = vsel %vm1045_vm7, %v1037_v24, %v1053_v29  ;;  %v1273_v24 = vld [vmem:[%s9335_s9 + $0x8] sm:$0xff]  ;;  %v1275_v29 = vld [vmem:[%s9335_s9 + $0x18] sm:$0xff] }
 0x3ff   :  { %vm1044_vm10 = vcmp.gt.f32.partialorder %v1036_v33, 0.0  ;;  %v1052_v35 = vmul.f32 0.2, %v1036_v33  ;;  %v1059_v38 = vsel %vm1043_vm8, %v1035_v27, %v1051_v32  ;;  %v1437_v32 = vld [vmem:[%s9336_s10 + $0x20] sm:$0xff] }
 0x400   :  { %v1062_v37 = vsel %vm1046_vm9, %v1038_v30, %v1054_v34  ;;  %v1436_v30 = vld [vmem:[%s9336_s10 + $0x18] sm:$0xff]  ;;  %v1438_v34 = vld [vmem:[%s9336_s10 + $0x28] sm:$0xff] }
 0x401   :  { %6348 = vmatpush3.bf16.msra.mxu0 %v6345_v23  ;;  %v1060_v39 = vsel %vm1044_vm10, %v1036_v33, %v1052_v35  ;;  %v6353_v40 = vpack.c.bf16 %v1062_v37, %v1061_v36  ;;  %v5157_v23 = vld [vmem:[%s9337_s11 + $0x38] sm:$0xff]  ;;  %v1277_v33 = vld [vmem:[%s9335_s9 + $0x28] sm:$0xff]  ;;  %v1278_v35 = vld [vmem:[%s9335_s9 + $0x30] sm:$0xff] }
 0x402   :  { %v6349_v41 = vpack.c.bf16 %v1060_v39, %v1059_v38  ;;  %v1622_v27 = vpack.c.bf16 %v5157_v23, %v5156_v22  ;;  %v1439_v36 = vld [vmem:[%s9336_s10 + $0x30] sm:$0xff]  ;;  %v1279_v37 = vld [vmem:[%s9335_s9 + $0x38] sm:$0xff]  ;;  %v1280_v39 = vld [vmem:[%s9335_s9 + $0x40] sm:$0xff] }
 0x403   :  { %v1440_v38 = vld [vmem:[%s9336_s10 + $0x38] sm:$0xff] }
 0x404   :  { %6350 = vmatprep.subr.bf16.mxu0 %v6349_v41 }
 0x405   :  { %6352 = vmatpush3.bf16.msra.mxu0 %v6349_v41  ;;  %v1281_v41 = vld [vmem:[%s9335_s9 + $0x48] sm:$0xff] }
 0x406   :  { %6354 = vmatprep.subr.bf16.mxu0 %v6353_v40 }
 0x409   :  { %6356 = vmatpush3.bf16.msra.mxu0 %v6353_v40  ;;  %v1441_v40 = vld [vmem:[%s9336_s10 + $0x40] sm:$0xff] }
 0x40c   :  { %5810 = vmatmul.mubr.msk.f32.vlgmr.msra.gmra.mrb[24].mxu0 %vm486_vm2, %v1064_v42  ;;  %v1442_v42 = vld [vmem:[%s9336_s10 + $0x48] sm:$0xff] }
 0x40d   :  { %5812 = vmatprep.mubr.msk.f32.mxu0 %vm486_vm2, %v1065_v43  ;;  %v1282_v43 = vld [vmem:[%s9335_s9 + $0x50] sm:$0xff] }
 0x410   :  { %5813 = vmatmul.mubr.msk.f32.gmra.mrb[26].mxu0 %vm486_vm2, %v1066_v44  ;;  %v1443_v44 = vld [vmem:[%s9336_s10 + $0x50] sm:$0xff] }
 0x411   :  { %5815 = vmatprep.mubr.msk.f32.mxu0 %vm486_vm2, %v1067_v45  ;;  %v1283_v45 = vld [vmem:[%s9335_s9 + $0x58] sm:$0xff] }
 0x414   :  { %5816 = vmatmul.mubr.msk.f32.gmra.mrb[28].mxu0 %vm486_vm2, %v1068_v46  ;;  %v1444_v46 = vld [vmem:[%s9336_s10 + $0x58] sm:$0xff] }
 0x415   :  { %5818 = vmatprep.mubr.msk.f32.mxu0 %vm486_vm2, %v1069_v47  ;;  %v1284_v47 = vld [vmem:[%s9335_s9 + $0x60] sm:$0xff] }
 0x418   :  { %5819 = vmatmul.mubr.msk.f32.gmra.mrb[30].mxu0 %vm486_vm2, %v1070_v48  ;;  %v1445_v48 = vld [vmem:[%s9336_s10 + $0x60] sm:$0xff] }
 0x419   :  { %5821 = vmatprep.mubr.msk.f32.mxu0 %vm486_vm2, %v1071_v49  ;;  %v1285_v49 = vld [vmem:[%s9335_s9 + $0x68] sm:$0xff] }
 0x41c   :  { %5822 = vmatmul.mubr.msk.f32.gmra.mrb[32].mxu0 %vm486_vm2, %v1072_v50  ;;  %v1446_v50 = vld [vmem:[%s9336_s10 + $0x68] sm:$0xff] }
 0x41d   :  { %5824 = vmatprep.mubr.msk.f32.mxu0 %vm486_vm2, %v1073_v51  ;;  %v1286_v51 = vld [vmem:[%s9335_s9 + $0x70] sm:$0xff] }
 0x420   :  { %5825 = vmatmul.mubr.msk.f32.gmra.mrb[34].mxu0 %vm486_vm2, %v1074_v52  ;;  %v1447_v52 = vld [vmem:[%s9336_s10 + $0x70] sm:$0xff] }
 0x421   :  { %5827 = vmatprep.mubr.msk.f32.mxu0 %vm486_vm2, %v1075_v53  ;;  %v1287_v53 = vld [vmem:[%s9335_s9 + $0x78] sm:$0xff] }
 0x424   :  { %5828 = vmatmul.mubr.msk.f32.gmra.mrb[36].mxu0 %vm486_vm2, %v1076_v54  ;;  %v1448_v54 = vld [vmem:[%s9336_s10 + $0x78] sm:$0xff] }
 0x425   :  { %5830 = vmatprep.mubr.msk.f32.mxu0 %vm486_vm2, %v1077_v55  ;;  %v1602_v55 = vld [vmem:[%s9337_s11] sm:$0xff] }
 0x428   :  { %5831 = vmatmul.mubr.msk.f32.gmra.mrb[38].mxu0 %vm486_vm2, %v1078_v56  ;;  %v1603_v56 = vld [vmem:[%s9337_s11 + $0x8] sm:$0xff] }
 0x429   :  { %5865 = vmatprep.mubr.f32.mxu0 %v1272_v57  ;;  %v1606_v57 = vpack.c.bf16 %v1603_v56, %v1602_v55 }
 0x4df   :  { %v5811_v59 = vpop.f32.mrb[24].mxu0 }
 0x4e0   :  { %v1193_v60 = vpop.f32.mrb[25].mxu0 }
 0x4e1   :  { %v7507_v61 = vpack.c.bf16 %v5811_v59, %v1193_v60  ;;  %v1605_v59 = vld [vmem:[%s9337_s11 + $0x18] sm:$0xff] }
 0x4e2   :  { %v1607_v60 = vpack.c.bf16 %v1605_v59, %v1604_v58 }
 0x4e3   :  { %v5814_v62 = vpop.f32.mrb[26].mxu0  ;;  %6358 = vmatprep.subr.bf16.mxu0 %v7507_v61  ;;  %6390 = vmatprep.subr.bf16.mxu1 %v7507_v61 }
 0x4e4   :  { %v1203_v63 = vpop.f32.mrb[27].mxu0  ;;  %6360 = vmatpush3.bf16.msra.mxu0 %v7507_v61  ;;  %6392 = vmatpush3.bf16.msra.mxu1 %v7507_v61 }
 0x4e5   :  { %v7513_v0 = vpack.c.bf16 %v5814_v62, %v1203_v63  ;;  %v5175_v62 = vld [vmem:[%s9337_s11 + $0x48] sm:$0xff] }
 0x4e7   :  { %v5817_v1 = vpop.f32.mrb[28].mxu0  ;;  %6362 = vmatprep.subr.bf16.mxu0 %v7513_v0  ;;  %6394 = vmatprep.subr.bf16.mxu1 %v7513_v0 }
 0x4e8   :  { %v1213_v2 = vpop.f32.mrb[29].mxu0  ;;  %6364 = vmatpush3.bf16.msra.mxu0 %v7513_v0  ;;  %6396 = vmatpush3.bf16.msra.mxu1 %v7513_v0 }
 0x4e9   :  { %v7519_v3 = vpack.c.bf16 %v5817_v1, %v1213_v2 }
 0x4eb   :  { %v5820_v4 = vpop.f32.mrb[30].mxu0  ;;  %6366 = vmatprep.subr.bf16.mxu0 %v7519_v3  ;;  %6398 = vmatprep.subr.bf16.mxu1 %v7519_v3 }
 0x4ec   :  { %v1223_v5 = vpop.f32.mrb[31].mxu0  ;;  %6368 = vmatpush3.bf16.msra.mxu0 %v7519_v3  ;;  %6400 = vmatpush3.bf16.msra.mxu1 %v7519_v3 }
 0x4ed   :  { %v7525_v6 = vpack.c.bf16 %v5820_v4, %v1223_v5 }
 0x4ef   :  { %v5823_v7 = vpop.f32.mrb[32].mxu0  ;;  %6370 = vmatprep.subr.bf16.mxu0 %v7525_v6  ;;  %6402 = vmatprep.subr.bf16.mxu1 %v7525_v6 }
 0x4f0   :  { %v1233_v8 = vpop.f32.mrb[33].mxu0  ;;  %6372 = vmatpush3.bf16.msra.mxu0 %v7525_v6  ;;  %6404 = vmatpush3.bf16.msra.mxu1 %v7525_v6 }
 0x4f1   :  { %v7531_v9 = vpack.c.bf16 %v5823_v7, %v1233_v8  ;;  %v5177_v7 = vld [vmem:[%s9337_s11 + $0x58] sm:$0xff] }
 0x4f3   :  { %v5826_v10 = vpop.f32.mrb[34].mxu0  ;;  %6374 = vmatprep.subr.bf16.mxu0 %v7531_v9  ;;  %6406 = vmatprep.subr.bf16.mxu1 %v7531_v9 }
 0x4f4   :  { %v1243_v11 = vpop.f32.mrb[35].mxu0  ;;  %6376 = vmatpush3.bf16.msra.mxu0 %v7531_v9  ;;  %6408 = vmatpush3.bf16.msra.mxu1 %v7531_v9 }
 0x4f5   :  { %v7537_v12 = vpack.c.bf16 %v5826_v10, %v1243_v11 }
 0x4f7   :  { %v5829_v13 = vpop.f32.mrb[36].mxu0  ;;  %6378 = vmatprep.subr.bf16.mxu0 %v7537_v12  ;;  %6410 = vmatprep.subr.bf16.mxu1 %v7537_v12 }
 0x4f8   :  { %v1253_v14 = vpop.f32.mrb[37].mxu0  ;;  %6380 = vmatpush3.bf16.msra.mxu0 %v7537_v12  ;;  %6412 = vmatpush3.bf16.msra.mxu1 %v7537_v12 }
 0x4f9   :  { %v7543_v15 = vpack.c.bf16 %v5829_v13, %v1253_v14 }
 0x4fb   :  { %v5832_v18 = vpop.f32.mrb[38].mxu0  ;;  %6382 = vmatprep.subr.bf16.mxu0 %v7543_v15  ;;  %6414 = vmatprep.subr.bf16.mxu1 %v7543_v15 }
 0x4fc   :  { %v1263_v19 = vpop.f32.mrb[39].mxu0  ;;  %6384 = vmatpush3.bf16.msra.mxu0 %v7543_v15  ;;  %6416 = vmatpush3.bf16.msra.mxu1 %v7543_v15 }
 0x4fd   :  { %v7555_v20 = vpack.c.bf16 %v5832_v18, %v1263_v19 }
 0x4ff   :  { %6386 = vmatprep.subr.bf16.mxu0 %v7555_v20  ;;  %6418 = vmatprep.subr.bf16.mxu1 %v7555_v20 }
 0x500   :  { %6388 = vmatpush3.bf16.msra.mxu0 %v7555_v20  ;;  %6420 = vmatpush3.bf16.msra.mxu1 %v7555_v20 }
 0x501   :  { %5945 = vmatprep.subr.bf16.mxu0 %v1621_v21 }
 0x503   :  { %5866 = vmatmul.mubr.f32.vlgmr.msra.gmra.mrb[40].mxu0 %v1273_v24  ;;  %5922 = vmatmul.mubr.f32.vlgmr.msra.gmra.mrb[24].mxu1 %v1434_v25 }
 0x504   :  { %5868 = vmatprep.mubr.f32.mxu0 %v1274_v26  ;;  %5946 = vmatpush3.bf16.msra.mxu0 %v1621_v21 }
 0x505   :  { %5947 = vmatprep.subr.bf16.mxu0 %v1622_v27  ;;  %5924 = vmatprep.mubr.f32.mxu1 %v1435_v28 }
 0x507   :  { %5869 = vmatmul.mubr.f32.gmra.mrb[42].mxu0 %v1275_v29  ;;  %5925 = vmatmul.mubr.f32.gmra.mrb[26].mxu1 %v1436_v30 }
 0x508   :  { %5871 = vmatprep.mubr.f32.mxu0 %v1276_v31  ;;  %5948 = vmatpush3.bf16.msra.mxu0 %v1622_v27 }
 0x509   :  { %5927 = vmatprep.mubr.f32.mxu1 %v1437_v32  ;;  %5965 = vmatprep.subr.bf16.mxu0 %v1606_v57 }
 0x50b   :  { %5872 = vmatmul.mubr.f32.gmra.mrb[44].mxu0 %v1277_v33  ;;  %5928 = vmatmul.mubr.f32.gmra.mrb[28].mxu1 %v1438_v34 }
 0x50c   :  { %5874 = vmatprep.mubr.f32.mxu0 %v1278_v35  ;;  %5930 = vmatprep.mubr.f32.mxu1 %v1439_v36 }
 0x50f   :  { %5875 = vmatmul.mubr.f32.gmra.mrb[46].mxu0 %v1279_v37  ;;  %5931 = vmatmul.mubr.f32.gmra.mrb[30].mxu1 %v1440_v38 }
 0x510   :  { %5877 = vmatprep.mubr.f32.mxu0 %v1280_v39  ;;  %5933 = vmatprep.mubr.f32.mxu1 %v1441_v40 }
 0x513   :  { %5878 = vmatmul.mubr.f32.gmra.mrb[48].mxu0 %v1281_v41  ;;  %5934 = vmatmul.mubr.f32.gmra.mrb[32].mxu1 %v1442_v42 }
 0x514   :  { %5880 = vmatprep.mubr.f32.mxu0 %v1282_v43  ;;  %5936 = vmatprep.mubr.f32.mxu1 %v1443_v44 }
 0x517   :  { %5881 = vmatmul.mubr.f32.gmra.mrb[50].mxu0 %v1283_v45  ;;  %5937 = vmatmul.mubr.f32.gmra.mrb[34].mxu1 %v1444_v46 }
 0x518   :  { %5883 = vmatprep.mubr.f32.mxu0 %v1284_v47  ;;  %5939 = vmatprep.mubr.f32.mxu1 %v1445_v48 }
 0x51b   :  { %5884 = vmatmul.mubr.f32.gmra.mrb[52].mxu0 %v1285_v49  ;;  %5940 = vmatmul.mubr.f32.gmra.mrb[36].mxu1 %v1446_v50 }
 0x51c   :  { %5886 = vmatprep.mubr.f32.mxu0 %v1286_v51  ;;  %5942 = vmatprep.mubr.f32.mxu1 %v1447_v52  ;;  %v2088_v51 = vld [vmem:[%s9339_s13] sm:$0xff] }
 0x51d   :  { %v7716_v52 = vld [vmem:[#allocation7] ss:$0 sm:$0xff] }
 0x51f   :  { %5887 = vmatmul.mubr.f32.gmra.mrb[54].mxu0 %v1287_v53  ;;  %5943 = vmatmul.mubr.f32.gmra.mrb[38].mxu1 %v1448_v54 }
 0x520   :  { %5949 = vmatprep.mubr.msk.bf16.mxu0 %vm132_vm1, %v7507_v61  ;;  %v5174_v61 = vld [vmem:[%s9337_s11 + $0x40] sm:$0xff]  ;;  %6037 = vmatprep.mubr.f32.mxu1 %v2088_v51 }
 0x521   :  { %v1878_v63 = vpack.c.bf16 %v5175_v62, %v5174_v61 }
 0x523   :  { %5950 = vmatmul.mubr.msk.bf16.vlgmr.msra.gmra.mrb[56].mxu0 %vm132_vm1, %v7513_v0 }
 0x524   :  { %5953 = vmatprep.mubr.msk.bf16.mxu0 %vm132_vm1, %v7519_v3  ;;  %5966 = vmatpush3.bf16.msra.mxu0 %v1606_v57 }
 0x525   :  { %5967 = vmatprep.subr.bf16.mxu0 %v1607_v60 }
 0x528   :  { %5968 = vmatpush3.bf16.msra.mxu0 %v1607_v60 }
 0x529   :  { %5985 = vmatprep.subr.bf16.mxu0 %v1878_v63 }
 0x52b   :  { %5954 = vmatmul.mubr.msk.bf16.gmra.mrb[60].mxu0 %vm132_vm1, %v7525_v6  ;;  %v5176_v6 = vld [vmem:[%s9337_s11 + $0x50] sm:$0xff] }
 0x52c   :  { %5957 = vmatprep.mubr.msk.bf16.mxu0 %vm132_vm1, %v7531_v9  ;;  %v1879_v14 = vpack.c.bf16 %v5177_v7, %v5176_v6 }
 0x533   :  { %5958 = vmatmul.mubr.msk.bf16.gmra.mrb[64].mxu0 %vm132_vm1, %v7537_v12 }
 0x534   :  { %5961 = vmatprep.mubr.msk.bf16.mxu0 %vm132_vm1, %v7543_v15 }
 0x53b   :  { %5962 = vmatmul.mubr.msk.bf16.gmra.mrb[68].mxu0 %vm132_vm1, %v7555_v20 }
 0x5d6   :  { %v5867_v0 = vpop.f32.mrb[40].mxu0  ;;  %v5923_v1 = vpop.f32.mrb[24].mxu1 }
 0x5d7   :  { %v1354_v2 = vpop.f32.mrb[41].mxu0  ;;  %v1515_v3 = vpop.f32.mrb[25].mxu1 }
 0x5d8   :  { %v1594_v4 = vpack.c.bf16 %v5867_v0, %v1354_v2  ;;  %v1865_v5 = vpack.c.bf16 %v5923_v1, %v1515_v3 }
 0x5da   :  { %v5870_v8 = vpop.f32.mrb[42].mxu0  ;;  %5969 = vmatprep.mubr.msk.bf16.mxu0 %vm132_vm1, %v1594_v4  ;;  %v5926_v9 = vpop.f32.mrb[26].mxu1 }
 0x5db   :  { %v1364_v10 = vpop.f32.mrb[43].mxu0  ;;  %v1525_v11 = vpop.f32.mrb[27].mxu1 }
 0x5dc   :  { %v1595_v12 = vpack.c.bf16 %v5870_v8, %v1364_v10  ;;  %v1866_v13 = vpack.c.bf16 %v5926_v9, %v1525_v11 }
 0x5de   :  { %v5873_v15 = vpop.f32.mrb[44].mxu0  ;;  %5970 = vmatmul.mubr.msk.bf16.vlgmr.msra.gmra.mrb[56].mxu0 %vm132_vm1, %v1595_v12  ;;  %v5929_v16 = vpop.f32.mrb[28].mxu1 }
 0x5df   :  { %v1374_v17 = vpop.f32.mrb[45].mxu0  ;;  %5986 = vmatpush3.bf16.msra.mxu0 %v1878_v63  ;;  %v1535_v18 = vpop.f32.mrb[29].mxu1 }
 0x5e0   :  { %v1596_v19 = vpack.c.bf16 %v5873_v15, %v1374_v17  ;;  %5987 = vmatprep.subr.bf16.mxu0 %v1879_v14  ;;  %v1867_v20 = vpack.c.bf16 %v5929_v16, %v1535_v18 }
 0x5e2   :  { %v5876_v21 = vpop.f32.mrb[46].mxu0  ;;  %5973 = vmatprep.mubr.msk.bf16.mxu0 %vm132_vm1, %v1596_v19  ;;  %v5932_v22 = vpop.f32.mrb[30].mxu1 }
 0x5e3   :  { %v1384_v23 = vpop.f32.mrb[47].mxu0  ;;  %5988 = vmatpush3.bf16.msra.mxu0 %v1879_v14  ;;  %v1545_v24 = vpop.f32.mrb[31].mxu1 }
 0x5e4   :  { %v1597_v25 = vpack.c.bf16 %v5876_v21, %v1384_v23  ;;  %v1868_v26 = vpack.c.bf16 %v5932_v22, %v1545_v24 }
 0x5e6   :  { %v5879_v27 = vpop.f32.mrb[48].mxu0  ;;  %5974 = vmatmul.mubr.msk.bf16.gmra.mrb[60].mxu0 %vm132_vm1, %v1597_v25  ;;  %v5935_v28 = vpop.f32.mrb[32].mxu1 }
 0x5e7   :  { %v1394_v29 = vpop.f32.mrb[49].mxu0  ;;  %v1555_v30 = vpop.f32.mrb[33].mxu1 }
 0x5e8   :  { %v1598_v31 = vpack.c.bf16 %v5879_v27, %v1394_v29  ;;  %v1869_v32 = vpack.c.bf16 %v5935_v28, %v1555_v30 }
 0x5ea   :  { %v5882_v33 = vpop.f32.mrb[50].mxu0  ;;  %5977 = vmatprep.mubr.msk.bf16.mxu0 %vm132_vm1, %v1598_v31  ;;  %v5938_v34 = vpop.f32.mrb[34].mxu1 }
 0x5eb   :  { %v1404_v35 = vpop.f32.mrb[51].mxu0  ;;  %v1565_v36 = vpop.f32.mrb[35].mxu1 }
 0x5ec   :  { %v1599_v37 = vpack.c.bf16 %v5882_v33, %v1404_v35  ;;  %v1870_v38 = vpack.c.bf16 %v5938_v34, %v1565_v36 }
 0x5ee   :  { %v5885_v39 = vpop.f32.mrb[52].mxu0  ;;  %5978 = vmatmul.mubr.msk.bf16.gmra.mrb[64].mxu0 %vm132_vm1, %v1599_v37  ;;  %v5941_v40 = vpop.f32.mrb[36].mxu1 }
 0x5ef   :  { %v1414_v41 = vpop.f32.mrb[53].mxu0  ;;  %v1575_v42 = vpop.f32.mrb[37].mxu1 }
 0x5f0   :  { %v1600_v43 = vpack.c.bf16 %v5885_v39, %v1414_v41  ;;  %v1871_v44 = vpack.c.bf16 %v5941_v40, %v1575_v42 }
 0x5f2   :  { %v5888_v45 = vpop.f32.mrb[54].mxu0  ;;  %5981 = vmatprep.mubr.msk.bf16.mxu0 %vm132_vm1, %v1600_v43  ;;  %v5944_v46 = vpop.f32.mrb[38].mxu1 }
 0x5f3   :  { %v1424_v47 = vpop.f32.mrb[55].mxu0  ;;  %v1585_v48 = vpop.f32.mrb[39].mxu1 }
 0x5f4   :  { %v1601_v49 = vpack.c.bf16 %v5888_v45, %v1424_v47  ;;  %v1872_v50 = vpack.c.bf16 %v5944_v46, %v1585_v48 }
 0x5f6   :  { %5982 = vmatmul.mubr.msk.bf16.gmra.mrb[68].mxu0 %vm132_vm1, %v1601_v49 }
 0x5f7   :  { %5989 = vmatprep.mubr.msk.bf16.mxu0 %vm132_vm1, %v1865_v5 }
 0x5fe   :  { %5990 = vmatmul.mubr.msk.bf16.vlgmr.msra.gmra.mrb[56].mxu0 %vm132_vm1, %v1866_v13 }
 0x5ff   :  { %5993 = vmatprep.mubr.msk.bf16.mxu0 %vm132_vm1, %v1867_v20 }
 0x606   :  { %5994 = vmatmul.mubr.msk.bf16.gmra.mrb[60].mxu0 %vm132_vm1, %v1868_v26 }
 0x607   :  { %5997 = vmatprep.mubr.msk.bf16.mxu0 %vm132_vm1, %v1869_v32 }
 0x60e   :  { %5998 = vmatmul.mubr.msk.bf16.gmra.mrb[64].mxu0 %vm132_vm1, %v1870_v38 }
 0x60f   :  { %6001 = vmatprep.mubr.msk.bf16.mxu0 %vm132_vm1, %v1871_v44 }
 0x616   :  { %6002 = vmatmul.mubr.msk.bf16.gmra.mrb[68].mxu0 %vm132_vm1, %v1872_v50 }
 0x6d1   :  { %v5991_v53 = vpop.f32.mrb[56].mxu0 }
 0x6d2   :  { %v2026_v54 = vadd.f32 %v5991_v53, %v7716_v52  ;;  %v1938_v55 = vpop.f32.mrb[57].mxu0 }
 0x6d3   :  { %v2024_v56 = vadd.f32 %v7716_v52, %v1938_v55  ;;  %v5992_v57 = vpop.f32.mrb[58].mxu0 }
 0x6d4   :  { %v2058_v58 = vmul.f32 0.2, %v2026_v54  ;;  %v2027_v59 = vadd.f32 %v5992_v57, %v7716_v52  ;;  %v1941_v60 = vpop.f32.mrb[59].mxu0  ;;  %vm2042_vm11 = vcmp.gt.f32.partialorder %v2026_v54, 0.0 }
 0x6d5   :  { %v2056_v61 = vmul.f32 0.2, %v2024_v56  ;;  %v2025_v62 = vadd.f32 %v7716_v52, %v1941_v60  ;;  %vm2040_vm12 = vcmp.gt.f32.partialorder %v2024_v56, 0.0 }
 0x6d6   :  { %vm2043_vm13 = vcmp.gt.f32.partialorder %v2027_v59, 0.0  ;;  %v2059_v63 = vmul.f32 0.2, %v2027_v59  ;;  %v2074_v1 = vsel %vm2042_vm11, %v2026_v54, %v2058_v58 }
 0x6d7   :  { %vm2041_vm14 = vcmp.gt.f32.partialorder %v2025_v62, 0.0  ;;  %v2057_v0 = vmul.f32 0.2, %v2025_v62  ;;  %v2072_v4 = vsel %vm2040_vm12, %v2024_v56, %v2056_v61 }
 0x6d8   :  { %v2075_v2 = vsel %vm2043_vm13, %v2027_v59, %v2059_v63  ;;  %v2091_v63 = vld [vmem:[%s9339_s13 + $0x18] sm:$0xff] }
 0x6d9   :  { %v5995_v3 = vpop.f32.mrb[60].mxu0  ;;  %v2073_v5 = vsel %vm2041_vm14, %v2025_v62, %v2057_v0  ;;  %v6425_v6 = vpack.c.bf16 %v2075_v2, %v2074_v1  ;;  %v2090_v62 = vld [vmem:[%s9339_s13 + $0x10] sm:$0xff]  ;;  %v2092_v0 = vld [vmem:[%s9339_s13 + $0x20] sm:$0xff]  ;;  %v2093_v1 = vld [vmem:[%s9339_s13 + $0x28] sm:$0xff] }
 0x6da   :  { %v2030_v7 = vadd.f32 %v5995_v3, %v7716_v52  ;;  %v1954_v8 = vpop.f32.mrb[61].mxu0  ;;  %v6421_v9 = vpack.c.bf16 %v2073_v5, %v2072_v4  ;;  %v2094_v2 = vld [vmem:[%s9339_s13 + $0x30] sm:$0xff]  ;;  %v2095_v3 = vld [vmem:[%s9339_s13 + $0x38] sm:$0xff]  ;;  %v2096_v4 = vld [vmem:[%s9339_s13 + $0x40] sm:$0xff] }
 0x6db   :  { %v2028_v10 = vadd.f32 %v7716_v52, %v1954_v8  ;;  %v5996_v11 = vpop.f32.mrb[62].mxu0  ;;  %v2097_v5 = vld [vmem:[%s9339_s13 + $0x48] sm:$0xff]  ;;  %v2100_v8 = vld [vmem:[%s9339_s13 + $0x60] sm:$0xff] }
 0x6dc   :  { %v2062_v12 = vmul.f32 0.2, %v2030_v7  ;;  %v2031_v13 = vadd.f32 %v5996_v11, %v7716_v52  ;;  %v1957_v14 = vpop.f32.mrb[63].mxu0  ;;  %6422 = vmatprep.subr.bf16.mxu1 %v6421_v9  ;;  %vm2046_vm15 = vcmp.gt.f32.partialorder %v2030_v7, 0.0  ;;  %v2103_v11 = vld [vmem:[%s9339_s13 + $0x78] sm:$0xff] }
 0x6dd   :  { %v2060_v15 = vmul.f32 0.2, %v2028_v10  ;;  %v2029_v16 = vadd.f32 %v7716_v52, %v1957_v14  ;;  %6424 = vmatpush3.bf16.msra.mxu1 %v6421_v9  ;;  %vm2044_vm0 = vcmp.gt.f32.partialorder %v2028_v10, 0.0  ;;  %v2101_v9 = vld [vmem:[%s9339_s13 + $0x68] sm:$0xff]  ;;  %v2106_v14 = vld [vmem:[%s9339_s13 + $0x90] sm:$0xff] }
 0x6de   :  { %vm2047_vm2 = vcmp.gt.f32.partialorder %v2031_v13, 0.0  ;;  %v2063_v17 = vmul.f32 0.2, %v2031_v13  ;;  %6426 = vmatprep.subr.bf16.mxu1 %v6425_v6  ;;  %v2078_v19 = vsel %vm2046_vm15, %v2030_v7, %v2062_v12  ;;  %v2099_v7 = vld [vmem:[%s9339_s13 + $0x58] sm:$0xff]  ;;  %v2104_v12 = vld [vmem:[%s9339_s13 + $0x80] sm:$0xff] }
 0x6df   :  { %vm2045_vm3 = vcmp.gt.f32.partialorder %v2029_v16, 0.0  ;;  %v2061_v18 = vmul.f32 0.2, %v2029_v16  ;;  %v2076_v22 = vsel %vm2044_vm0, %v2028_v10, %v2060_v15  ;;  %v2102_v10 = vld [vmem:[%s9339_s13 + $0x70] sm:$0xff]  ;;  %v2107_v15 = vld [vmem:[%s9339_s13 + $0x98] sm:$0xff] }
 0x6e0   :  { %v2079_v20 = vsel %vm2047_vm2, %v2031_v13, %v2063_v17  ;;  %v2105_v13 = vld [vmem:[%s9339_s13 + $0x88] sm:$0xff] }
 0x6e1   :  { %v5999_v21 = vpop.f32.mrb[64].mxu0  ;;  %6428 = vmatpush3.bf16.msra.mxu1 %v6425_v6  ;;  %v2077_v23 = vsel %vm2045_vm3, %v2029_v16, %v2061_v18  ;;  %v6433_v24 = vpack.c.bf16 %v2079_v20, %v2078_v19  ;;  %v2098_v6 = vld [vmem:[%s9339_s13 + $0x50] sm:$0xff]  ;;  %v2108_v16 = vld [vmem:[%s9339_s13 + $0xa0] sm:$0xff]  ;;  %v2109_v17 = vld [vmem:[%s9339_s13 + $0xa8] sm:$0xff] }
 0x6e2   :  { %v2034_v25 = vadd.f32 %v5999_v21, %v7716_v52  ;;  %v1970_v26 = vpop.f32.mrb[65].mxu0  ;;  %v6429_v27 = vpack.c.bf16 %v2077_v23, %v2076_v22  ;;  %v2110_v18 = vld [vmem:[%s9339_s13 + $0xb0] sm:$0xff]  ;;  %v2111_v19 = vld [vmem:[%s9339_s13 + $0xb8] sm:$0xff]  ;;  %v2112_v20 = vld [vmem:[%s9339_s13 + $0xc0] sm:$0xff] }
 0x6e3   :  { %v2032_v28 = vadd.f32 %v7716_v52, %v1970_v26  ;;  %v6000_v29 = vpop.f32.mrb[66].mxu0  ;;  %v2113_v21 = vld [vmem:[%s9339_s13 + $0xc8] sm:$0xff]  ;;  %v2114_v22 = vld [vmem:[%s9339_s13 + $0xd0] sm:$0xff]  ;;  %v2115_v23 = vld [vmem:[%s9339_s13 + $0xd8] sm:$0xff] }
 0x6e4   :  { %v2066_v30 = vmul.f32 0.2, %v2034_v25  ;;  %v2035_v31 = vadd.f32 %v6000_v29, %v7716_v52  ;;  %v1973_v32 = vpop.f32.mrb[67].mxu0  ;;  %6430 = vmatprep.subr.bf16.mxu1 %v6429_v27  ;;  %vm2050_vm4 = vcmp.gt.f32.partialorder %v2034_v25, 0.0  ;;  %v2118_v26 = vld [vmem:[%s9339_s13 + $0xf0] sm:$0xff]  ;;  %v7832_v29 = vld [vmem:[%s9340_s14 + $0x8] sm:$0xff] }
 0x6e5   :  { %v2064_v33 = vmul.f32 0.2, %v2032_v28  ;;  %v2033_v34 = vadd.f32 %v7716_v52, %v1973_v32  ;;  %6432 = vmatpush3.bf16.msra.mxu1 %v6429_v27  ;;  %vm2048_vm5 = vcmp.gt.f32.partialorder %v2032_v28, 0.0  ;;  %v2119_v27 = vld [vmem:[%s9339_s13 + $0xf8] sm:$0xff] }
 0x6e6   :  { %vm2051_vm6 = vcmp.gt.f32.partialorder %v2035_v31, 0.0  ;;  %v2067_v35 = vmul.f32 0.2, %v2035_v31  ;;  %6434 = vmatprep.subr.bf16.mxu1 %v6433_v24  ;;  %v2082_v37 = vsel %vm2050_vm4, %v2034_v25, %v2066_v30  ;;  %v2117_v25 = vld [vmem:[%s9339_s13 + $0xe8] sm:$0xff] }
 0x6e7   :  { %vm2049_vm7 = vcmp.gt.f32.partialorder %v2033_v34, 0.0  ;;  %v2065_v36 = vmul.f32 0.2, %v2033_v34  ;;  %v2080_v40 = vsel %vm2048_vm5, %v2032_v28, %v2064_v33  ;;  %v7063_v28 = vmov 0.0|0.0   ;;  %v2635_v30 = vld [vmem:[%s9341_s15 + $0x8] sm:$0xff] }
 0x6e8   :  { %v2083_v38 = vsel %vm2051_vm6, %v2035_v31, %v2067_v35  ;;  %6501 = vmatprep.subr.bf16.mxu0 %v7063_v28  ;;  %2762 = vmatprep.mubr.f32.mxu0 %v2635_v30  ;;  %v2639_v30 = vld [vmem:[%s9341_s15 + $0x28] sm:$0xff] }
 0x6e9   :  { %v6003_v39 = vpop.f32.mrb[68].mxu0  ;;  %6436 = vmatpush3.bf16.msra.mxu1 %v6433_v24  ;;  %v2081_v41 = vsel %vm2049_vm7, %v2033_v34, %v2065_v36  ;;  %v6441_v42 = vpack.c.bf16 %v2083_v38, %v2082_v37  ;;  %v2116_v24 = vld [vmem:[%s9339_s13 + $0xe0] sm:$0xff] }
 0x6ea   :  { %v2038_v43 = vadd.f32 %v6003_v39, %v7716_v52  ;;  %v1986_v44 = vpop.f32.mrb[69].mxu0  ;;  %v6437_v45 = vpack.c.bf16 %v2081_v41, %v2080_v40 }
 0x6eb   :  { %v2036_v46 = vadd.f32 %v7716_v52, %v1986_v44  ;;  %v6004_v47 = vpop.f32.mrb[70].mxu0 }
 0x6ec   :  { %v2070_v48 = vmul.f32 0.2, %v2038_v43  ;;  %v2039_v49 = vadd.f32 %v6004_v47, %v7716_v52  ;;  %v1989_v50 = vpop.f32.mrb[71].mxu0  ;;  %6438 = vmatprep.subr.bf16.mxu1 %v6437_v45  ;;  %vm2054_vm8 = vcmp.gt.f32.partialorder %v2038_v43, 0.0 }
 0x6ed   :  { %v2068_v51 = vmul.f32 0.2, %v2036_v46  ;;  %v2037_v53 = vadd.f32 %v7716_v52, %v1989_v50  ;;  %6440 = vmatpush3.bf16.msra.mxu1 %v6437_v45  ;;  %vm2052_vm9 = vcmp.gt.f32.partialorder %v2036_v46, 0.0  ;;  %v2089_v52 = vld [vmem:[%s9339_s13 + $0x8] sm:$0xff] }
 0x6ee   :  { %vm2055_vm10 = vcmp.gt.f32.partialorder %v2039_v49, 0.0  ;;  %v2071_v54 = vmul.f32 0.2, %v2039_v49  ;;  %6442 = vmatprep.subr.bf16.mxu1 %v6441_v42  ;;  %v2086_v56 = vsel %vm2054_vm8, %v2038_v43, %v2070_v48 }
 0x6ef   :  { %vm2053_vm11 = vcmp.gt.f32.partialorder %v2037_v53, 0.0  ;;  %v2069_v55 = vmul.f32 0.2, %v2037_v53  ;;  %v2084_v58 = vsel %vm2052_vm9, %v2036_v46, %v2068_v51 }
 0x6f0   :  { %v2087_v57 = vsel %vm2055_vm10, %v2039_v49, %v2071_v54 }
 0x6f1   :  { %6444 = vmatpush3.bf16.msra.mxu1 %v6441_v42  ;;  %v2085_v59 = vsel %vm2053_vm11, %v2037_v53, %v2069_v55  ;;  %v6449_v60 = vpack.c.bf16 %v2087_v57, %v2086_v56 }
 0x6f2   :  { %v6445_v61 = vpack.c.bf16 %v2085_v59, %v2084_v58 }
 0x6f4   :  { %6446 = vmatprep.subr.bf16.mxu1 %v6445_v61 }
 0x6f5   :  { %6448 = vmatpush3.bf16.msra.mxu1 %v6445_v61 }
 0x6f6   :  { %6450 = vmatprep.subr.bf16.mxu1 %v6449_v60 }
 0x6f9   :  { %6452 = vmatpush3.bf16.msra.mxu1 %v6449_v60 }
 0x6fa   :  { %6453 = vmatprep.subr.bf16.mxu1 %v7063_v28 }
 0x6fc   :  { %6038 = vmatmul.mubr.f32.vlgmr.msra.gmra.mrb[40].mxu1 %v2089_v52 }
 0x6fd   :  { %6040 = vmatprep.mubr.f32.mxu1 %v2090_v62 }
 0x700   :  { %6041 = vmatmul.mubr.f32.gmra.mrb[42].mxu1 %v2091_v63 }
 0x701   :  { %6043 = vmatprep.mubr.f32.mxu1 %v2092_v0 }
 0x704   :  { %6044 = vmatmul.mubr.f32.gmra.mrb[44].mxu1 %v2093_v1 }
 0x705   :  { %6046 = vmatprep.mubr.f32.mxu1 %v2094_v2 }
 0x708   :  { %6047 = vmatmul.mubr.f32.gmra.mrb[46].mxu1 %v2095_v3 }
 0x709   :  { %6049 = vmatprep.mubr.f32.mxu1 %v2096_v4 }
 0x70c   :  { %6050 = vmatmul.mubr.f32.gmra.mrb[48].mxu1 %v2097_v5 }
 0x70d   :  { %6052 = vmatprep.mubr.f32.mxu1 %v2098_v6 }
 0x710   :  { %6053 = vmatmul.mubr.f32.gmra.mrb[50].mxu1 %v2099_v7 }
 0x711   :  { %6055 = vmatprep.mubr.f32.mxu1 %v2100_v8 }
 0x714   :  { %6056 = vmatmul.mubr.f32.gmra.mrb[52].mxu1 %v2101_v9 }
 0x715   :  { %6058 = vmatprep.mubr.f32.mxu1 %v2102_v10 }
 0x718   :  { %6059 = vmatmul.mubr.f32.gmra.mrb[54].mxu1 %v2103_v11 }
 0x719   :  { %6061 = vmatprep.mubr.f32.mxu1 %v2104_v12  ;;  %v5187_v12 = vld [vmem:[%s9342_s16 + $0x20] sm:$0xff] }
 0x71c   :  { %6062 = vmatmul.mubr.f32.gmra.mrb[56].mxu1 %v2105_v13  ;;  %v5188_v13 = vld [vmem:[%s9342_s16 + $0x28] sm:$0xff] }
 0x71d   :  { %6064 = vmatprep.mubr.f32.mxu1 %v2106_v14 }
 0x720   :  { %6065 = vmatmul.mubr.f32.gmra.mrb[58].mxu1 %v2107_v15 }
 0x721   :  { %6067 = vmatprep.mubr.f32.mxu1 %v2108_v16  ;;  %v2966_v16 = vpack.c.bf16 %v5188_v13, %v5187_v12  ;;  %v2366_v12 = vld [vmem:[%s9340_s14 + $0xa8] sm:$0xff] }
 0x722   :  { %v2655_v13 = vld [vmem:[%s9341_s15 + $0xa8] sm:$0xff] }
 0x724   :  { %6068 = vmatmul.mubr.f32.gmra.mrb[60].mxu1 %v2109_v17 }
 0x725   :  { %6070 = vmatprep.mubr.f32.mxu1 %v2110_v18  ;;  %v5189_v18 = vld [vmem:[%s9342_s16 + $0x30] sm:$0xff] }
 0x728   :  { %6071 = vmatmul.mubr.f32.gmra.mrb[62].mxu1 %v2111_v19  ;;  %v5190_v19 = vld [vmem:[%s9342_s16 + $0x38] sm:$0xff] }
 0x729   :  { %6073 = vmatprep.mubr.f32.mxu1 %v2112_v20  ;;  %v2345_v20 = vld [vmem:[%s9340_s14] sm:$0xff] }
 0x72c   :  { %6074 = vmatmul.mubr.f32.gmra.mrb[64].mxu1 %v2113_v21  ;;  %v2634_v21 = vld [vmem:[%s9341_s15] sm:$0xff] }
 0x72d   :  { %6076 = vmatprep.mubr.f32.mxu1 %v2114_v22  ;;  %v2348_v22 = vld [vmem:[%s9340_s14 + $0x18] sm:$0xff] }
 0x730   :  { %6077 = vmatmul.mubr.f32.gmra.mrb[66].mxu1 %v2115_v23  ;;  %v2637_v23 = vld [vmem:[%s9341_s15 + $0x18] sm:$0xff] }
 0x731   :  { %6079 = vmatprep.mubr.f32.mxu1 %v2116_v24  ;;  %v2967_v24 = vpack.c.bf16 %v5190_v19, %v5189_v18  ;;  %v2657_v18 = vld [vmem:[%s9341_s15 + $0xb8] sm:$0xff]  ;;  %v2367_v19 = vld [vmem:[%s9340_s14 + $0xb0] sm:$0xff] }
 0x734   :  { %6080 = vmatmul.mubr.f32.gmra.mrb[68].mxu1 %v2117_v25  ;;  %v2347_v25 = vld [vmem:[%s9340_s14 + $0x10] sm:$0xff] }
 0x735   :  { %6082 = vmatprep.mubr.f32.mxu1 %v2118_v26  ;;  %v2636_v26 = vld [vmem:[%s9341_s15 + $0x10] sm:$0xff] }
 0x738   :  { %6083 = vmatmul.mubr.f32.gmra.mrb[70].mxu1 %v2119_v27  ;;  %v2350_v27 = vld [vmem:[%s9340_s14 + $0x28] sm:$0xff] }
 0x739   :  { %2473 = vmatprep.mubr.f32.mxu1 %v7832_v29 }
 0x7cf   :  { %v6039_v31 = vpop.f32.mrb[40].mxu1 }
 0x7d0   :  { %v2186_v32 = vpop.f32.mrb[41].mxu1 }
 0x7d1   :  { %v7838_v33 = vpack.c.bf16 %v6039_v31, %v2186_v32  ;;  %v2349_v31 = vld [vmem:[%s9340_s14 + $0x20] sm:$0xff] }
 0x7d2   :  { %v2638_v32 = vld [vmem:[%s9341_s15 + $0x20] sm:$0xff] }
 0x7d3   :  { %v6042_v34 = vpop.f32.mrb[42].mxu1  ;;  %6455 = vmatpush1.bf16.msra.mxu1 %v7838_v33  ;;  %6503 = vmatpush1.bf16.msra.mxu0 %v7838_v33 }
 0x7d4   :  { %v2196_v35 = vpop.f32.mrb[43].mxu1  ;;  %6456 = vmatprep.subr.bf16.mxu1 %v7063_v28  ;;  %6504 = vmatprep.subr.bf16.mxu0 %v7063_v28 }
 0x7d5   :  { %v7844_v36 = vpack.c.bf16 %v6042_v34, %v2196_v35  ;;  %v2352_v34 = vld [vmem:[%s9340_s14 + $0x38] sm:$0xff] }
 0x7d6   :  { %v2641_v35 = vld [vmem:[%s9341_s15 + $0x38] sm:$0xff] }
 0x7d7   :  { %v6045_v37 = vpop.f32.mrb[44].mxu1  ;;  %6458 = vmatpush1.bf16.msra.mxu1 %v7844_v36  ;;  %6506 = vmatpush1.bf16.msra.mxu0 %v7844_v36 }
 0x7d8   :  { %v2206_v38 = vpop.f32.mrb[45].mxu1  ;;  %6459 = vmatprep.subr.bf16.mxu1 %v7063_v28  ;;  %6507 = vmatprep.subr.bf16.mxu0 %v7063_v28 }
 0x7d9   :  { %v7850_v39 = vpack.c.bf16 %v6045_v37, %v2206_v38  ;;  %v2351_v37 = vld [vmem:[%s9340_s14 + $0x30] sm:$0xff] }
 0x7da   :  { %v2640_v38 = vld [vmem:[%s9341_s15 + $0x30] sm:$0xff] }
 0x7db   :  { %v6048_v40 = vpop.f32.mrb[46].mxu1  ;;  %6461 = vmatpush1.bf16.msra.mxu1 %v7850_v39  ;;  %6509 = vmatpush1.bf16.msra.mxu0 %v7850_v39 }
 0x7dc   :  { %v2216_v41 = vpop.f32.mrb[47].mxu1  ;;  %6462 = vmatprep.subr.bf16.mxu1 %v7063_v28  ;;  %6510 = vmatprep.subr.bf16.mxu0 %v7063_v28 }
 0x7dd   :  { %v7856_v42 = vpack.c.bf16 %v6048_v40, %v2216_v41  ;;  %v2354_v40 = vld [vmem:[%s9340_s14 + $0x48] sm:$0xff] }
 0x7de   :  { %v2643_v41 = vld [vmem:[%s9341_s15 + $0x48] sm:$0xff] }
 0x7df   :  { %v6051_v43 = vpop.f32.mrb[48].mxu1  ;;  %6464 = vmatpush1.bf16.msra.mxu1 %v7856_v42  ;;  %6512 = vmatpush1.bf16.msra.mxu0 %v7856_v42 }
 0x7e0   :  { %v2226_v44 = vpop.f32.mrb[49].mxu1  ;;  %6465 = vmatprep.subr.bf16.mxu1 %v7063_v28  ;;  %6513 = vmatprep.subr.bf16.mxu0 %v7063_v28 }
 0x7e1   :  { %v7862_v45 = vpack.c.bf16 %v6051_v43, %v2226_v44  ;;  %v2353_v43 = vld [vmem:[%s9340_s14 + $0x40] sm:$0xff] }
 0x7e2   :  { %v2642_v44 = vld [vmem:[%s9341_s15 + $0x40] sm:$0xff] }
 0x7e3   :  { %v6054_v46 = vpop.f32.mrb[50].mxu1  ;;  %6467 = vmatpush1.bf16.msra.mxu1 %v7862_v45  ;;  %6515 = vmatpush1.bf16.msra.mxu0 %v7862_v45 }
 0x7e4   :  { %v2236_v47 = vpop.f32.mrb[51].mxu1  ;;  %6468 = vmatprep.subr.bf16.mxu1 %v7063_v28  ;;  %6516 = vmatprep.subr.bf16.mxu0 %v7063_v28 }
 0x7e5   :  { %v7868_v48 = vpack.c.bf16 %v6054_v46, %v2236_v47  ;;  %v2356_v46 = vld [vmem:[%s9340_s14 + $0x58] sm:$0xff] }
 0x7e6   :  { %v2645_v47 = vld [vmem:[%s9341_s15 + $0x58] sm:$0xff] }
 0x7e7   :  { %v6057_v49 = vpop.f32.mrb[52].mxu1  ;;  %6470 = vmatpush1.bf16.msra.mxu1 %v7868_v48  ;;  %6518 = vmatpush1.bf16.msra.mxu0 %v7868_v48 }
 0x7e8   :  { %v2246_v50 = vpop.f32.mrb[53].mxu1  ;;  %6471 = vmatprep.subr.bf16.mxu1 %v7063_v28  ;;  %6519 = vmatprep.subr.bf16.mxu0 %v7063_v28 }
 0x7e9   :  { %v7874_v51 = vpack.c.bf16 %v6057_v49, %v2246_v50  ;;  %v2355_v49 = vld [vmem:[%s9340_s14 + $0x50] sm:$0xff] }
 0x7ea   :  { %v2644_v50 = vld [vmem:[%s9341_s15 + $0x50] sm:$0xff] }
 0x7eb   :  { %v6060_v53 = vpop.f32.mrb[54].mxu1  ;;  %6473 = vmatpush1.bf16.msra.mxu1 %v7874_v51  ;;  %6521 = vmatpush1.bf16.msra.mxu0 %v7874_v51 }
 0x7ec   :  { %v2256_v54 = vpop.f32.mrb[55].mxu1  ;;  %6474 = vmatprep.subr.bf16.mxu1 %v7063_v28  ;;  %6522 = vmatprep.subr.bf16.mxu0 %v7063_v28 }
 0x7ed   :  { %v7880_v55 = vpack.c.bf16 %v6060_v53, %v2256_v54  ;;  %v2358_v53 = vld [vmem:[%s9340_s14 + $0x68] sm:$0xff] }
 0x7ee   :  { %v2647_v54 = vld [vmem:[%s9341_s15 + $0x68] sm:$0xff] }
 0x7ef   :  { %v6063_v56 = vpop.f32.mrb[56].mxu1  ;;  %6476 = vmatpush1.bf16.msra.mxu1 %v7880_v55  ;;  %6524 = vmatpush1.bf16.msra.mxu0 %v7880_v55 }
 0x7f0   :  { %v2266_v57 = vpop.f32.mrb[57].mxu1  ;;  %6477 = vmatprep.subr.bf16.mxu1 %v7063_v28  ;;  %6525 = vmatprep.subr.bf16.mxu0 %v7063_v28 }
 0x7f1   :  { %v7886_v58 = vpack.c.bf16 %v6063_v56, %v2266_v57  ;;  %v2357_v56 = vld [vmem:[%s9340_s14 + $0x60] sm:$0xff] }
 0x7f2   :  { %v2646_v57 = vld [vmem:[%s9341_s15 + $0x60] sm:$0xff] }
 0x7f3   :  { %v6066_v59 = vpop.f32.mrb[58].mxu1  ;;  %6479 = vmatpush1.bf16.msra.mxu1 %v7886_v58  ;;  %6527 = vmatpush1.bf16.msra.mxu0 %v7886_v58 }
 0x7f4   :  { %v2276_v60 = vpop.f32.mrb[59].mxu1  ;;  %6480 = vmatprep.subr.bf16.mxu1 %v7063_v28  ;;  %6528 = vmatprep.subr.bf16.mxu0 %v7063_v28 }
 0x7f5   :  { %v7892_v61 = vpack.c.bf16 %v6066_v59, %v2276_v60  ;;  %v2360_v59 = vld [vmem:[%s9340_s14 + $0x78] sm:$0xff] }
 0x7f6   :  { %v2649_v60 = vld [vmem:[%s9341_s15 + $0x78] sm:$0xff] }
 0x7f7   :  { %v6069_v52 = vpop.f32.mrb[60].mxu1  ;;  %6482 = vmatpush1.bf16.msra.mxu1 %v7892_v61  ;;  %6530 = vmatpush1.bf16.msra.mxu0 %v7892_v61 }
 0x7f8   :  { %v2286_v62 = vpop.f32.mrb[61].mxu1  ;;  %6483 = vmatprep.subr.bf16.mxu1 %v7063_v28  ;;  %6531 = vmatprep.subr.bf16.mxu0 %v7063_v28 }
 0x7f9   :  { %v7898_v63 = vpack.c.bf16 %v6069_v52, %v2286_v62  ;;  %v2359_v52 = vld [vmem:[%s9340_s14 + $0x70] sm:$0xff] }
 0x7fa   :  { %v2648_v62 = vld [vmem:[%s9341_s15 + $0x70] sm:$0xff] }
 0x7fb   :  { %v6072_v0 = vpop.f32.mrb[62].mxu1  ;;  %6485 = vmatpush1.bf16.msra.mxu1 %v7898_v63  ;;  %6533 = vmatpush1.bf16.msra.mxu0 %v7898_v63 }
 0x7fc   :  { %v2296_v1 = vpop.f32.mrb[63].mxu1  ;;  %6486 = vmatprep.subr.bf16.mxu1 %v7063_v28  ;;  %6534 = vmatprep.subr.bf16.mxu0 %v7063_v28 }
 0x7fd   :  { %v7904_v2 = vpack.c.bf16 %v6072_v0, %v2296_v1  ;;  %v2362_v0 = vld [vmem:[%s9340_s14 + $0x88] sm:$0xff] }
 0x7fe   :  { %v2651_v1 = vld [vmem:[%s9341_s15 + $0x88] sm:$0xff] }
 0x7ff   :  { %v6075_v3 = vpop.f32.mrb[64].mxu1  ;;  %6488 = vmatpush1.bf16.msra.mxu1 %v7904_v2  ;;  %6536 = vmatpush1.bf16.msra.mxu0 %v7904_v2 }
 0x800   :  { %v2306_v4 = vpop.f32.mrb[65].mxu1  ;;  %6489 = vmatprep.subr.bf16.mxu1 %v7063_v28  ;;  %6537 = vmatprep.subr.bf16.mxu0 %v7063_v28 }
 0x801   :  { %v7910_v5 = vpack.c.bf16 %v6075_v3, %v2306_v4  ;;  %v2361_v3 = vld [vmem:[%s9340_s14 + $0x80] sm:$0xff] }
 0x802   :  { %v2650_v4 = vld [vmem:[%s9341_s15 + $0x80] sm:$0xff] }
 0x803   :  { %v6078_v6 = vpop.f32.mrb[66].mxu1  ;;  %6491 = vmatpush1.bf16.msra.mxu1 %v7910_v5  ;;  %6539 = vmatpush1.bf16.msra.mxu0 %v7910_v5 }
 0x804   :  { %v2316_v7 = vpop.f32.mrb[67].mxu1  ;;  %6492 = vmatprep.subr.bf16.mxu1 %v7063_v28  ;;  %6540 = vmatprep.subr.bf16.mxu0 %v7063_v28 }
 0x805   :  { %v7916_v8 = vpack.c.bf16 %v6078_v6, %v2316_v7  ;;  %v2364_v6 = vld [vmem:[%s9340_s14 + $0x98] sm:$0xff] }
 0x806   :  { %v2653_v7 = vld [vmem:[%s9341_s15 + $0x98] sm:$0xff] }
 0x807   :  { %v6081_v9 = vpop.f32.mrb[68].mxu1  ;;  %6494 = vmatpush1.bf16.msra.mxu1 %v7916_v8  ;;  %6542 = vmatpush1.bf16.msra.mxu0 %v7916_v8 }
 0x808   :  { %v2326_v10 = vpop.f32.mrb[69].mxu1  ;;  %6495 = vmatprep.subr.bf16.mxu1 %v7063_v28  ;;  %6543 = vmatprep.subr.bf16.mxu0 %v7063_v28 }
 0x809   :  { %v7922_v11 = vpack.c.bf16 %v6081_v9, %v2326_v10  ;;  %v2363_v9 = vld [vmem:[%s9340_s14 + $0x90] sm:$0xff] }
 0x80a   :  { %v2652_v10 = vld [vmem:[%s9341_s15 + $0x90] sm:$0xff] }
 0x80b   :  { %v6084_v14 = vpop.f32.mrb[70].mxu1  ;;  %6497 = vmatpush1.bf16.msra.mxu1 %v7922_v11  ;;  %6545 = vmatpush1.bf16.msra.mxu0 %v7922_v11 }
 0x80c   :  { %v2336_v15 = vpop.f32.mrb[71].mxu1  ;;  %6498 = vmatprep.subr.bf16.mxu1 %v7063_v28  ;;  %6546 = vmatprep.subr.bf16.mxu0 %v7063_v28 }
 0x80d   :  { %v7934_v17 = vpack.c.bf16 %v6084_v14, %v2336_v15  ;;  %v2365_v14 = vld [vmem:[%s9340_s14 + $0xa0] sm:$0xff] }
 0x80e   :  { %v2654_v15 = vld [vmem:[%s9341_s15 + $0xa0] sm:$0xff] }
 0x80f   :  { %6500 = vmatpush1.bf16.msra.mxu1 %v7934_v17  ;;  %6548 = vmatpush1.bf16.msra.mxu0 %v7934_v17 }
 0x810   :  { %6085 = vmatprep.subr.bf16.mxu1 %v2966_v16  ;;  %6549 = vmatprep.subr.bf16.mxu0 %v7063_v28 }
 0x812   :  { %2474 = vmatmul.mubr.f32.vlgmr.msra.gmra.mrb[72].mxu1 %v2345_v20  ;;  %2763 = vmatmul.mubr.f32.vlgmr.msra.gmra.mrb[72].mxu0 %v2634_v21  ;;  %v2656_v20 = vld [vmem:[%s9341_s15 + $0xb0] sm:$0xff]  ;;  %v2370_v21 = vld [vmem:[%s9340_s14 + $0xc8] sm:$0xff] }
 0x813   :  { %2478 = vmatprep.mubr.f32.mxu1 %v2348_v22  ;;  %2767 = vmatprep.mubr.f32.mxu0 %v2637_v23  ;;  %v2659_v22 = vld [vmem:[%s9341_s15 + $0xc8] sm:$0xff]  ;;  %v2369_v23 = vld [vmem:[%s9340_s14 + $0xc0] sm:$0xff] }
 0x814   :  { %6086 = vmatpush3.bf16.msra.mxu1 %v2966_v16  ;;  %v2368_v16 = vld [vmem:[%s9340_s14 + $0xb8] sm:$0xff] }
 0x815   :  { %6087 = vmatprep.subr.bf16.mxu1 %v2967_v24 }
 0x816   :  { %2479 = vmatmul.mubr.f32.gmra.mrb[74].mxu1 %v2347_v25  ;;  %2768 = vmatmul.mubr.f32.gmra.mrb[74].mxu0 %v2636_v26  ;;  %v2372_v25 = vld [vmem:[%s9340_s14 + $0xd8] sm:$0xff] }
 0x817   :  { %2483 = vmatprep.mubr.f32.mxu1 %v2350_v27  ;;  %2772 = vmatprep.mubr.f32.mxu0 %v2639_v30  ;;  %v2661_v26 = vld [vmem:[%s9341_s15 + $0xd8] sm:$0xff]  ;;  %v2371_v27 = vld [vmem:[%s9340_s14 + $0xd0] sm:$0xff] }
 0x818   :  { %6088 = vmatpush3.bf16.msra.mxu1 %v2967_v24  ;;  %v2658_v24 = vld [vmem:[%s9341_s15 + $0xc0] sm:$0xff]  ;;  %v2660_v30 = vld [vmem:[%s9341_s15 + $0xd0] sm:$0xff] }
 0x81a   :  { %2484 = vmatmul.mubr.f32.gmra.mrb[76].mxu1 %v2349_v31  ;;  %2773 = vmatmul.mubr.f32.gmra.mrb[76].mxu0 %v2638_v32  ;;  %v2374_v31 = vld [vmem:[%s9340_s14 + $0xe8] sm:$0xff] }
 0x81b   :  { %2488 = vmatprep.mubr.f32.mxu1 %v2352_v34  ;;  %2777 = vmatprep.mubr.f32.mxu0 %v2641_v35  ;;  %v2663_v32 = vld [vmem:[%s9341_s15 + $0xe8] sm:$0xff]  ;;  %v2373_v34 = vld [vmem:[%s9340_s14 + $0xe0] sm:$0xff] }
 0x81c   :  { %v2662_v35 = vld [vmem:[%s9341_s15 + $0xe0] sm:$0xff] }
 0x81e   :  { %2489 = vmatmul.mubr.f32.gmra.mrb[78].mxu1 %v2351_v37  ;;  %2778 = vmatmul.mubr.f32.gmra.mrb[78].mxu0 %v2640_v38  ;;  %v2376_v37 = vld [vmem:[%s9340_s14 + $0xf8] sm:$0xff] }
 0x81f   :  { %2493 = vmatprep.mubr.f32.mxu1 %v2354_v40  ;;  %2782 = vmatprep.mubr.f32.mxu0 %v2643_v41  ;;  %v2665_v38 = vld [vmem:[%s9341_s15 + $0xf8] sm:$0xff]  ;;  %v2375_v40 = vld [vmem:[%s9340_s14 + $0xf0] sm:$0xff] }
 0x820   :  { %v2664_v41 = vld [vmem:[%s9341_s15 + $0xf0] sm:$0xff] }
 0x822   :  { %2494 = vmatmul.mubr.f32.gmra.mrb[80].mxu1 %v2353_v43  ;;  %2783 = vmatmul.mubr.f32.gmra.mrb[80].mxu0 %v2642_v44  ;;  %v2378_v43 = vld [vmem:[%s9340_s14 + $0x108] sm:$0xff] }
 0x823   :  { %2498 = vmatprep.mubr.f32.mxu1 %v2356_v46  ;;  %2787 = vmatprep.mubr.f32.mxu0 %v2645_v47  ;;  %v2667_v44 = vld [vmem:[%s9341_s15 + $0x108] sm:$0xff]  ;;  %v2377_v46 = vld [vmem:[%s9340_s14 + $0x100] sm:$0xff] }
 0x824   :  { %v2666_v47 = vld [vmem:[%s9341_s15 + $0x100] sm:$0xff] }
 0x826   :  { %2499 = vmatmul.mubr.f32.gmra.mrb[82].mxu1 %v2355_v49  ;;  %2788 = vmatmul.mubr.f32.gmra.mrb[82].mxu0 %v2644_v50  ;;  %v2380_v49 = vld [vmem:[%s9340_s14 + $0x118] sm:$0xff] }
 0x827   :  { %2503 = vmatprep.mubr.f32.mxu1 %v2358_v53  ;;  %2792 = vmatprep.mubr.f32.mxu0 %v2647_v54  ;;  %v2669_v50 = vld [vmem:[%s9341_s15 + $0x118] sm:$0xff]  ;;  %v2379_v53 = vld [vmem:[%s9340_s14 + $0x110] sm:$0xff] }
 0x828   :  { %v2668_v54 = vld [vmem:[%s9341_s15 + $0x110] sm:$0xff] }
 0x82a   :  { %2504 = vmatmul.mubr.f32.gmra.mrb[84].mxu1 %v2357_v56  ;;  %2793 = vmatmul.mubr.f32.gmra.mrb[84].mxu0 %v2646_v57  ;;  %v2382_v56 = vld [vmem:[%s9340_s14 + $0x128] sm:$0xff] }
 0x82b   :  { %2508 = vmatprep.mubr.f32.mxu1 %v2360_v59  ;;  %2797 = vmatprep.mubr.f32.mxu0 %v2649_v60  ;;  %v2671_v57 = vld [vmem:[%s9341_s15 + $0x128] sm:$0xff]  ;;  %v2381_v59 = vld [vmem:[%s9340_s14 + $0x120] sm:$0xff] }
 0x82c   :  { %v2670_v60 = vld [vmem:[%s9341_s15 + $0x120] sm:$0xff] }
 0x82e   :  { %2509 = vmatmul.mubr.f32.gmra.mrb[86].mxu1 %v2359_v52  ;;  %2798 = vmatmul.mubr.f32.gmra.mrb[86].mxu0 %v2648_v62  ;;  %v2384_v52 = vld [vmem:[%s9340_s14 + $0x138] sm:$0xff] }
 0x82f   :  { %2513 = vmatprep.mubr.f32.mxu1 %v2362_v0  ;;  %2802 = vmatprep.mubr.f32.mxu0 %v2651_v1  ;;  %v2673_v62 = vld [vmem:[%s9341_s15 + $0x138] sm:$0xff]  ;;  %v2383_v0 = vld [vmem:[%s9340_s14 + $0x130] sm:$0xff] }
 0x830   :  { %v2672_v1 = vld [vmem:[%s9341_s15 + $0x130] sm:$0xff] }
 0x832   :  { %2514 = vmatmul.mubr.f32.gmra.mrb[88].mxu1 %v2361_v3  ;;  %2803 = vmatmul.mubr.f32.gmra.mrb[88].mxu0 %v2650_v4  ;;  %v2386_v3 = vld [vmem:[%s9340_s14 + $0x148] sm:$0xff] }
 0x833   :  { %2518 = vmatprep.mubr.f32.mxu1 %v2364_v6  ;;  %2807 = vmatprep.mubr.f32.mxu0 %v2653_v7  ;;  %v2675_v4 = vld [vmem:[%s9341_s15 + $0x148] sm:$0xff]  ;;  %v2385_v6 = vld [vmem:[%s9340_s14 + $0x140] sm:$0xff] }
 0x834   :  { %v2674_v7 = vld [vmem:[%s9341_s15 + $0x140] sm:$0xff] }
 0x836   :  { %2519 = vmatmul.mubr.f32.gmra.mrb[90].mxu1 %v2363_v9  ;;  %2808 = vmatmul.mubr.f32.gmra.mrb[90].mxu0 %v2652_v10  ;;  %v2388_v9 = vld [vmem:[%s9340_s14 + $0x158] sm:$0xff] }
 0x837   :  { %2523 = vmatprep.mubr.f32.mxu1 %v2366_v12  ;;  %2812 = vmatprep.mubr.f32.mxu0 %v2655_v13  ;;  %v2677_v10 = vld [vmem:[%s9341_s15 + $0x158] sm:$0xff]  ;;  %v2387_v12 = vld [vmem:[%s9340_s14 + $0x150] sm:$0xff] }
 0x838   :  { %v2676_v13 = vld [vmem:[%s9341_s15 + $0x150] sm:$0xff] }
 0x83a   :  { %2524 = vmatmul.mubr.f32.gmra.mrb[92].mxu1 %v2365_v14  ;;  %2813 = vmatmul.mubr.f32.gmra.mrb[92].mxu0 %v2654_v15  ;;  %v2390_v14 = vld [vmem:[%s9340_s14 + $0x168] sm:$0xff] }
 0x83b   :  { %2528 = vmatprep.mubr.f32.mxu1 %v2368_v16  ;;  %2817 = vmatprep.mubr.f32.mxu0 %v2657_v18  ;;  %v2679_v15 = vld [vmem:[%s9341_s15 + $0x168] sm:$0xff]  ;;  %v2389_v16 = vld [vmem:[%s9340_s14 + $0x160] sm:$0xff] }
 0x83c   :  { %v2678_v18 = vld [vmem:[%s9341_s15 + $0x160] sm:$0xff] }
 0x83e   :  { %2529 = vmatmul.mubr.f32.gmra.mrb[94].mxu1 %v2367_v19  ;;  %2818 = vmatmul.mubr.f32.gmra.mrb[94].mxu0 %v2656_v20  ;;  %v2392_v19 = vld [vmem:[%s9340_s14 + $0x178] sm:$0xff] }
 0x83f   :  { %2533 = vmatprep.mubr.f32.mxu1 %v2370_v21  ;;  %2822 = vmatprep.mubr.f32.mxu0 %v2659_v22  ;;  %v2681_v20 = vld [vmem:[%s9341_s15 + $0x178] sm:$0xff]  ;;  %v2939_v21 = vld [vmem:[%s9342_s16] sm:$0xff]  ;;  %v2940_v22 = vld [vmem:[%s9342_s16 + $0x8] sm:$0xff] }
 0x842   :  { %2534 = vmatmul.mubr.f32.gmra.mrb[96].mxu1 %v2369_v23  ;;  %2823 = vmatmul.mubr.f32.gmra.mrb[96].mxu0 %v2658_v24  ;;  %v8227_v23 = vpack.c.bf16 %v2940_v22, %v2939_v21  ;;  %v2391_v24 = vld [vmem:[%s9340_s14 + $0x170] sm:$0xff] }
 0x843   :  { %2538 = vmatprep.mubr.f32.mxu1 %v2372_v25  ;;  %2827 = vmatprep.mubr.f32.mxu0 %v2661_v26  ;;  %v2680_v25 = vld [vmem:[%s9341_s15 + $0x170] sm:$0xff]  ;;  %v2394_v26 = vld [vmem:[%s9340_s14 + $0x188] sm:$0xff] }
 0x844   :  { %6121 = vmatprep.subr.bf16.mxu1 %v8227_v23 }
 0x846   :  { %2539 = vmatmul.mubr.f32.gmra.mrb[98].mxu1 %v2371_v27  ;;  %2828 = vmatmul.mubr.f32.gmra.mrb[98].mxu0 %v2660_v30  ;;  %v2683_v27 = vld [vmem:[%s9341_s15 + $0x188] sm:$0xff]  ;;  %v2393_v30 = vld [vmem:[%s9340_s14 + $0x180] sm:$0xff] }
 0x847   :  { %2543 = vmatprep.mubr.f32.mxu1 %v2374_v31  ;;  %2832 = vmatprep.mubr.f32.mxu0 %v2663_v32  ;;  %v2682_v31 = vld [vmem:[%s9341_s15 + $0x180] sm:$0xff]  ;;  %v2396_v32 = vld [vmem:[%s9340_s14 + $0x198] sm:$0xff] }
 0x84a   :  { %2544 = vmatmul.mubr.f32.gmra.mrb[100].mxu1 %v2373_v34  ;;  %2833 = vmatmul.mubr.f32.gmra.mrb[100].mxu0 %v2662_v35  ;;  %v2685_v34 = vld [vmem:[%s9341_s15 + $0x198] sm:$0xff]  ;;  %v2395_v35 = vld [vmem:[%s9340_s14 + $0x190] sm:$0xff] }
 0x84b   :  { %2548 = vmatprep.mubr.f32.mxu1 %v2376_v37  ;;  %2837 = vmatprep.mubr.f32.mxu0 %v2665_v38  ;;  %v2684_v37 = vld [vmem:[%s9341_s15 + $0x190] sm:$0xff]  ;;  %v2398_v38 = vld [vmem:[%s9340_s14 + $0x1a8] sm:$0xff] }
 0x84e   :  { %2549 = vmatmul.mubr.f32.gmra.mrb[102].mxu1 %v2375_v40  ;;  %2838 = vmatmul.mubr.f32.gmra.mrb[102].mxu0 %v2664_v41  ;;  %v2687_v40 = vld [vmem:[%s9341_s15 + $0x1a8] sm:$0xff]  ;;  %v2397_v41 = vld [vmem:[%s9340_s14 + $0x1a0] sm:$0xff] }
 0x84f   :  { %2553 = vmatprep.mubr.f32.mxu1 %v2378_v43  ;;  %2842 = vmatprep.mubr.f32.mxu0 %v2667_v44  ;;  %v2686_v43 = vld [vmem:[%s9341_s15 + $0x1a0] sm:$0xff]  ;;  %v2400_v44 = vld [vmem:[%s9340_s14 + $0x1b8] sm:$0xff] }
 0x852   :  { %2554 = vmatmul.mubr.f32.gmra.mrb[104].mxu1 %v2377_v46  ;;  %2843 = vmatmul.mubr.f32.gmra.mrb[104].mxu0 %v2666_v47  ;;  %v2689_v46 = vld [vmem:[%s9341_s15 + $0x1b8] sm:$0xff]  ;;  %v2399_v47 = vld [vmem:[%s9340_s14 + $0x1b0] sm:$0xff] }
 0x853   :  { %2558 = vmatprep.mubr.f32.mxu1 %v2380_v49  ;;  %2847 = vmatprep.mubr.f32.mxu0 %v2669_v50  ;;  %v2688_v49 = vld [vmem:[%s9341_s15 + $0x1b0] sm:$0xff]  ;;  %v2402_v50 = vld [vmem:[%s9340_s14 + $0x1c8] sm:$0xff] }
 0x856   :  { %2559 = vmatmul.mubr.f32.gmra.mrb[106].mxu1 %v2379_v53  ;;  %2848 = vmatmul.mubr.f32.gmra.mrb[106].mxu0 %v2668_v54  ;;  %v2691_v53 = vld [vmem:[%s9341_s15 + $0x1c8] sm:$0xff]  ;;  %v2401_v54 = vld [vmem:[%s9340_s14 + $0x1c0] sm:$0xff] }
 0x857   :  { %2563 = vmatprep.mubr.f32.mxu1 %v2382_v56  ;;  %2852 = vmatprep.mubr.f32.mxu0 %v2671_v57  ;;  %v2690_v56 = vld [vmem:[%s9341_s15 + $0x1c0] sm:$0xff]  ;;  %v2404_v57 = vld [vmem:[%s9340_s14 + $0x1d8] sm:$0xff] }
 0x85a   :  { %2564 = vmatmul.mubr.f32.gmra.mrb[108].mxu1 %v2381_v59  ;;  %2853 = vmatmul.mubr.f32.gmra.mrb[108].mxu0 %v2670_v60  ;;  %v2693_v59 = vld [vmem:[%s9341_s15 + $0x1d8] sm:$0xff]  ;;  %v2403_v60 = vld [vmem:[%s9340_s14 + $0x1d0] sm:$0xff] }
 0x85b   :  { %2568 = vmatprep.mubr.f32.mxu1 %v2384_v52  ;;  %2857 = vmatprep.mubr.f32.mxu0 %v2673_v62  ;;  %v2692_v52 = vld [vmem:[%s9341_s15 + $0x1d0] sm:$0xff]  ;;  %v2406_v62 = vld [vmem:[%s9340_s14 + $0x1e8] sm:$0xff] }
 0x85e   :  { %2569 = vmatmul.mubr.f32.gmra.mrb[110].mxu1 %v2383_v0  ;;  %2858 = vmatmul.mubr.f32.gmra.mrb[110].mxu0 %v2672_v1  ;;  %v2695_v0 = vld [vmem:[%s9341_s15 + $0x1e8] sm:$0xff]  ;;  %v2405_v1 = vld [vmem:[%s9340_s14 + $0x1e0] sm:$0xff] }
 0x85f   :  { %2573 = vmatprep.mubr.f32.mxu1 %v2386_v3  ;;  %2862 = vmatprep.mubr.f32.mxu0 %v2675_v4  ;;  %v2694_v3 = vld [vmem:[%s9341_s15 + $0x1e0] sm:$0xff]  ;;  %v2408_v4 = vld [vmem:[%s9340_s14 + $0x1f8] sm:$0xff] }
 0x862   :  { %2574 = vmatmul.mubr.f32.gmra.mrb[112].mxu1 %v2385_v6  ;;  %2863 = vmatmul.mubr.f32.gmra.mrb[112].mxu0 %v2674_v7  ;;  %v2697_v6 = vld [vmem:[%s9341_s15 + $0x1f8] sm:$0xff]  ;;  %v2407_v7 = vld [vmem:[%s9340_s14 + $0x1f0] sm:$0xff] }
 0x863   :  { %2578 = vmatprep.mubr.f32.mxu1 %v2388_v9  ;;  %2867 = vmatprep.mubr.f32.mxu0 %v2677_v10  ;;  %v2696_v9 = vld [vmem:[%s9341_s15 + $0x1f0] sm:$0xff] }
 0x864   :  { %v2941_v10 = vld [vmem:[%s9342_s16 + $0x10] sm:$0xff] }
 0x866   :  { %2579 = vmatmul.mubr.f32.gmra.mrb[114].mxu1 %v2387_v12  ;;  %2868 = vmatmul.mubr.f32.gmra.mrb[114].mxu0 %v2676_v13  ;;  %v2942_v12 = vld [vmem:[%s9342_s16 + $0x18] sm:$0xff] }
 0x867   :  { %2583 = vmatprep.mubr.f32.mxu1 %v2390_v14  ;;  %2872 = vmatprep.mubr.f32.mxu0 %v2679_v15  ;;  %v2944_v13 = vpack.c.bf16 %v2942_v12, %v2941_v10  ;;  %v5225_v14 = vld [vmem:[%s9342_s16 + $0x50] sm:$0xff]  ;;  %v5226_v15 = vld [vmem:[%s9342_s16 + $0x58] sm:$0xff] }
 0x868   :  { %v3408_v22 = vpack.c.bf16 %v5226_v15, %v5225_v14 }
 0x86a   :  { %2584 = vmatmul.mubr.f32.gmra.mrb[116].mxu1 %v2389_v16  ;;  %2873 = vmatmul.mubr.f32.gmra.mrb[116].mxu0 %v2678_v18 }
 0x86b   :  { %2588 = vmatprep.mubr.f32.mxu1 %v2392_v19  ;;  %2877 = vmatprep.mubr.f32.mxu0 %v2681_v20 }
 0x86e   :  { %2589 = vmatmul.mubr.f32.gmra.mrb[118].mxu1 %v2391_v24  ;;  %2878 = vmatmul.mubr.f32.gmra.mrb[118].mxu0 %v2680_v25 }
 0x86f   :  { %2593 = vmatprep.mubr.f32.mxu1 %v2394_v26  ;;  %2882 = vmatprep.mubr.f32.mxu0 %v2683_v27 }
 0x872   :  { %2594 = vmatmul.mubr.f32.gmra.mrb[120].mxu1 %v2393_v30  ;;  %2883 = vmatmul.mubr.f32.gmra.mrb[120].mxu0 %v2682_v31 }
 0x873   :  { %2598 = vmatprep.mubr.f32.mxu1 %v2396_v32  ;;  %2887 = vmatprep.mubr.f32.mxu0 %v2685_v34 }
 0x876   :  { %2599 = vmatmul.mubr.f32.gmra.mrb[122].mxu1 %v2395_v35  ;;  %2888 = vmatmul.mubr.f32.gmra.mrb[122].mxu0 %v2684_v37 }
 0x877   :  { %2603 = vmatprep.mubr.f32.mxu1 %v2398_v38  ;;  %2892 = vmatprep.mubr.f32.mxu0 %v2687_v40 }
 0x87a   :  { %2604 = vmatmul.mubr.f32.gmra.mrb[124].mxu1 %v2397_v41  ;;  %2893 = vmatmul.mubr.f32.gmra.mrb[124].mxu0 %v2686_v43 }
 0x87b   :  { %2608 = vmatprep.mubr.f32.mxu1 %v2400_v44  ;;  %2897 = vmatprep.mubr.f32.mxu0 %v2689_v46 }
 0x87e   :  { %2609 = vmatmul.mubr.f32.gmra.mrb[126].mxu1 %v2399_v47  ;;  %2898 = vmatmul.mubr.f32.gmra.mrb[126].mxu0 %v2688_v49 }
 0x87f   :  { %2613 = vmatprep.mubr.f32.mxu1 %v2402_v50  ;;  %2902 = vmatprep.mubr.f32.mxu0 %v2691_v53 }
 0x882   :  { %2614 = vmatmul.mubr.f32.gmra.mrb[128].mxu1 %v2401_v54  ;;  %2903 = vmatmul.mubr.f32.gmra.mrb[128].mxu0 %v2690_v56 }
 0x883   :  { %2618 = vmatprep.mubr.f32.mxu1 %v2404_v57  ;;  %2907 = vmatprep.mubr.f32.mxu0 %v2693_v59 }
 0x886   :  { %2619 = vmatmul.mubr.f32.gmra.mrb[130].mxu1 %v2403_v60  ;;  %2908 = vmatmul.mubr.f32.gmra.mrb[130].mxu0 %v2692_v52 }
 0x887   :  { %2623 = vmatprep.mubr.f32.mxu1 %v2406_v62  ;;  %2912 = vmatprep.mubr.f32.mxu0 %v2695_v0 }
 0x88a   :  { %2624 = vmatmul.mubr.f32.gmra.mrb[132].mxu1 %v2405_v1  ;;  %2913 = vmatmul.mubr.f32.gmra.mrb[132].mxu0 %v2694_v3 }
 0x88b   :  { %2628 = vmatprep.mubr.f32.mxu1 %v2408_v4  ;;  %2917 = vmatprep.mubr.f32.mxu0 %v2697_v6 }
 0x88e   :  { %2629 = vmatmul.mubr.f32.gmra.mrb[134].mxu1 %v2407_v7  ;;  %2918 = vmatmul.mubr.f32.gmra.mrb[134].mxu0 %v2696_v9 }
 0x88f   :  { %6089 = vmatprep.mubr.msk.bf16.mxu1 %vm132_vm1, %v7838_v33  ;;  %3849 = vmatprep.mubr.f32.mxu0 %v7832_v29  ;;  %v5223_v29 = vld [vmem:[%s9342_s16 + $0x40] sm:$0xff]  ;;  %v5224_v33 = vld [vmem:[%s9342_s16 + $0x48] sm:$0xff] }
 0x892   :  { %6090 = vmatmul.mubr.msk.bf16.vlgmr.msra.gmra.mrb[136].mxu1 %vm132_vm1, %v7844_v36  ;;  %v3407_v36 = vpack.c.bf16 %v5224_v33, %v5223_v29 }
 0x893   :  { %6093 = vmatprep.mubr.msk.bf16.mxu1 %vm132_vm1, %v7850_v39  ;;  %6122 = vmatpush3.bf16.msra.mxu1 %v8227_v23 }
 0x894   :  { %6123 = vmatprep.subr.bf16.mxu1 %v2944_v13 }
 0x897   :  { %6124 = vmatpush3.bf16.msra.mxu1 %v2944_v13 }
 0x898   :  { %6157 = vmatprep.subr.bf16.mxu1 %v3407_v36 }
 0x89a   :  { %6094 = vmatmul.mubr.msk.bf16.gmra.mrb[140].mxu1 %vm132_vm1, %v7856_v42 }
 0x89b   :  { %6097 = vmatprep.mubr.msk.bf16.mxu1 %vm132_vm1, %v7862_v45 }
 0x8a2   :  { %6098 = vmatmul.mubr.msk.bf16.gmra.mrb[144].mxu1 %vm132_vm1, %v7868_v48 }
 0x8a3   :  { %6101 = vmatprep.mubr.msk.bf16.mxu1 %vm132_vm1, %v7874_v51 }
 0x8aa   :  { %6102 = vmatmul.mubr.msk.bf16.gmra.mrb[148].mxu1 %vm132_vm1, %v7880_v55 }
 0x8ab   :  { %6105 = vmatprep.mubr.msk.bf16.mxu1 %vm132_vm1, %v7886_v58 }
 0x8b2   :  { %6106 = vmatmul.mubr.msk.bf16.gmra.mrb[152].mxu1 %vm132_vm1, %v7892_v61 }
 0x8b3   :  { %6109 = vmatprep.mubr.msk.bf16.mxu1 %vm132_vm1, %v7898_v63 }
 0x8ba   :  { %6110 = vmatmul.mubr.msk.bf16.gmra.mrb[156].mxu1 %vm132_vm1, %v7904_v2 }
 0x8bb   :  { %6113 = vmatprep.mubr.msk.bf16.mxu1 %vm132_vm1, %v7910_v5 }
 0x8c2   :  { %6114 = vmatmul.mubr.msk.bf16.gmra.mrb[160].mxu1 %vm132_vm1, %v7916_v8 }
 0x8c3   :  { %6117 = vmatprep.mubr.msk.bf16.mxu1 %vm132_vm1, %v7922_v11 }
 0x8ca   :  { %6118 = vmatmul.mubr.msk.bf16.gmra.mrb[164].mxu1 %vm132_vm1, %v7934_v17 }
 0x8e5   :  { %v2475_v39 = vpop.f32.mrb[72].mxu1  ;;  %v8378_v42 = vpop.f32.mrb[72].mxu0 }
 0x8e6   :  { %v2477_v45 = vpop.f32.mrb[73].mxu1  ;;  %v2766_v48 = vpop.f32.mrb[73].mxu0 }
 0x8e9   :  { %v2480_v51 = vpop.f32.mrb[74].mxu1  ;;  %v8380_v55 = vpop.f32.mrb[74].mxu0 }
 0x8ea   :  { %v2923_v58 = vpack.c.bf16 %v2480_v51, %v2475_v39  ;;  %v2482_v61 = vpop.f32.mrb[75].mxu1  ;;  %v3386_v63 = vpack.c.bf16 %v8380_v55, %v8378_v42  ;;  %v2771_v2 = vpop.f32.mrb[75].mxu0  ;;  %v5244_v42 = vld [vmem:[%s9344_s18 + $0x20] sm:$0xff]  ;;  %v5245_v55 = vld [vmem:[%s9344_s18 + $0x28] sm:$0xff] }
 0x8ec   :  { %6125 = vmatprep.mubr.msk.bf16.mxu1 %vm132_vm1, %v2923_v58 }
 0x8ed   :  { %v2485_v5 = vpop.f32.mrb[76].mxu1  ;;  %v8385_v8 = vpop.f32.mrb[76].mxu0 }
 0x8ee   :  { %v2487_v11 = vpop.f32.mrb[77].mxu1  ;;  %v2776_v17 = vpop.f32.mrb[77].mxu0 }
 0x8f1   :  { %v2490_v16 = vpop.f32.mrb[78].mxu1  ;;  %v8393_v18 = vpop.f32.mrb[78].mxu0 }
 0x8f2   :  { %v2924_v19 = vpack.c.bf16 %v2490_v16, %v2485_v5  ;;  %v2492_v20 = vpop.f32.mrb[79].mxu1  ;;  %v3387_v21 = vpack.c.bf16 %v8393_v18, %v8385_v8  ;;  %v2781_v23 = vpop.f32.mrb[79].mxu0  ;;  %v5246_v8 = vld [vmem:[%s9344_s18 + $0x30] sm:$0xff]  ;;  %v5247_v18 = vld [vmem:[%s9344_s18 + $0x38] sm:$0xff] }
 0x8f4   :  { %6126 = vmatmul.mubr.msk.bf16.vlgmr.msra.gmra.mrb[136].mxu1 %vm132_vm1, %v2924_v19 }
 0x8f5   :  { %v2495_v24 = vpop.f32.mrb[80].mxu1  ;;  %6158 = vmatpush3.bf16.msra.mxu1 %v3407_v36  ;;  %v8398_v25 = vpop.f32.mrb[80].mxu0 }
 0x8f6   :  { %v2497_v26 = vpop.f32.mrb[81].mxu1  ;;  %6159 = vmatprep.subr.bf16.mxu1 %v3408_v22  ;;  %v2786_v27 = vpop.f32.mrb[81].mxu0 }
 0x8f9   :  { %v2500_v30 = vpop.f32.mrb[82].mxu1  ;;  %6160 = vmatpush3.bf16.msra.mxu1 %v3408_v22  ;;  %v8400_v31 = vpop.f32.mrb[82].mxu0 }
 0x8fa   :  { %v2925_v32 = vpack.c.bf16 %v2500_v30, %v2495_v24  ;;  %v2502_v34 = vpop.f32.mrb[83].mxu1  ;;  %v3388_v35 = vpack.c.bf16 %v8400_v31, %v8398_v25  ;;  %v2791_v37 = vpop.f32.mrb[83].mxu0  ;;  %v8538_v25 = vld [vmem:[#allocation8] ss:$0 sm:$0xff] }
 0x8fc   :  { %6129 = vmatprep.mubr.msk.bf16.mxu1 %vm132_vm1, %v2925_v32 }
 0x8fd   :  { %v2505_v38 = vpop.f32.mrb[84].mxu1  ;;  %v8405_v40 = vpop.f32.mrb[84].mxu0 }
 0x8fe   :  { %v2507_v41 = vpop.f32.mrb[85].mxu1  ;;  %v2796_v43 = vpop.f32.mrb[85].mxu0 }
 0x901   :  { %v2510_v44 = vpop.f32.mrb[86].mxu1  ;;  %v8407_v46 = vpop.f32.mrb[86].mxu0 }
 0x902   :  { %v2926_v47 = vpack.c.bf16 %v2510_v44, %v2505_v38  ;;  %v2512_v49 = vpop.f32.mrb[87].mxu1  ;;  %v3389_v50 = vpack.c.bf16 %v8407_v46, %v8405_v40  ;;  %v2801_v53 = vpop.f32.mrb[87].mxu0 }
 0x904   :  { %6130 = vmatmul.mubr.msk.bf16.gmra.mrb[140].mxu1 %vm132_vm1, %v2926_v47 }
 0x905   :  { %v2515_v54 = vpop.f32.mrb[88].mxu1  ;;  %v8412_v56 = vpop.f32.mrb[88].mxu0 }
 0x906   :  { %v2517_v57 = vpop.f32.mrb[89].mxu1  ;;  %v2806_v59 = vpop.f32.mrb[89].mxu0 }
 0x909   :  { %v2520_v60 = vpop.f32.mrb[90].mxu1  ;;  %v8414_v52 = vpop.f32.mrb[90].mxu0 }
 0x90a   :  { %v2927_v62 = vpack.c.bf16 %v2520_v60, %v2515_v54  ;;  %v2522_v0 = vpop.f32.mrb[91].mxu1  ;;  %v3390_v1 = vpack.c.bf16 %v8414_v52, %v8412_v56  ;;  %v2811_v3 = vpop.f32.mrb[91].mxu0 }
 0x90c   :  { %6133 = vmatprep.mubr.msk.bf16.mxu1 %vm132_vm1, %v2927_v62 }
 0x90d   :  { %v2525_v4 = vpop.f32.mrb[92].mxu1  ;;  %v8419_v6 = vpop.f32.mrb[92].mxu0 }
 0x90e   :  { %v2527_v7 = vpop.f32.mrb[93].mxu1  ;;  %v2816_v9 = vpop.f32.mrb[93].mxu0 }
 0x911   :  { %v2530_v10 = vpop.f32.mrb[94].mxu1  ;;  %v8421_v12 = vpop.f32.mrb[94].mxu0 }
 0x912   :  { %v2928_v13 = vpack.c.bf16 %v2530_v10, %v2525_v4  ;;  %v2532_v29 = vpop.f32.mrb[95].mxu1  ;;  %v3391_v33 = vpack.c.bf16 %v8421_v12, %v8419_v6  ;;  %v2821_v36 = vpop.f32.mrb[95].mxu0 }
 0x914   :  { %6134 = vmatmul.mubr.msk.bf16.gmra.mrb[144].mxu1 %vm132_vm1, %v2928_v13 }
 0x915   :  { %v2535_v39 = vpop.f32.mrb[96].mxu1  ;;  %v8426_v45 = vpop.f32.mrb[96].mxu0 }
 0x916   :  { %v2537_v48 = vpop.f32.mrb[97].mxu1  ;;  %v2826_v51 = vpop.f32.mrb[97].mxu0 }
 0x919   :  { %v2540_v58 = vpop.f32.mrb[98].mxu1  ;;  %v8428_v61 = vpop.f32.mrb[98].mxu0 }
 0x91a   :  { %v2929_v2 = vpack.c.bf16 %v2540_v58, %v2535_v39  ;;  %v2542_v5 = vpop.f32.mrb[99].mxu1  ;;  %v3392_v11 = vpack.c.bf16 %v8428_v61, %v8426_v45  ;;  %v2831_v17 = vpop.f32.mrb[99].mxu0 }
 0x91c   :  { %6137 = vmatprep.mubr.msk.bf16.mxu1 %vm132_vm1, %v2929_v2 }
 0x91d   :  { %v2545_v14 = vpop.f32.mrb[100].mxu1  ;;  %v8433_v15 = vpop.f32.mrb[100].mxu0 }
 0x91e   :  { %v2547_v16 = vpop.f32.mrb[101].mxu1  ;;  %v2836_v19 = vpop.f32.mrb[101].mxu0 }
 0x921   :  { %v2550_v20 = vpop.f32.mrb[102].mxu1  ;;  %v8435_v22 = vpop.f32.mrb[102].mxu0 }
 0x922   :  { %v2930_v23 = vpack.c.bf16 %v2550_v20, %v2545_v14  ;;  %v2552_v24 = vpop.f32.mrb[103].mxu1  ;;  %v3393_v26 = vpack.c.bf16 %v8435_v22, %v8433_v15  ;;  %v2841_v27 = vpop.f32.mrb[103].mxu0 }
 0x924   :  { %6138 = vmatmul.mubr.msk.bf16.gmra.mrb[148].mxu1 %vm132_vm1, %v2930_v23 }
 0x925   :  { %v2555_v30 = vpop.f32.mrb[104].mxu1  ;;  %v8440_v32 = vpop.f32.mrb[104].mxu0 }
 0x926   :  { %v2557_v34 = vpop.f32.mrb[105].mxu1  ;;  %v2846_v37 = vpop.f32.mrb[105].mxu0 }
 0x929   :  { %v2560_v38 = vpop.f32.mrb[106].mxu1  ;;  %v8442_v41 = vpop.f32.mrb[106].mxu0 }
 0x92a   :  { %v2931_v43 = vpack.c.bf16 %v2560_v38, %v2555_v30  ;;  %v2562_v44 = vpop.f32.mrb[107].mxu1  ;;  %v3394_v47 = vpack.c.bf16 %v8442_v41, %v8440_v32  ;;  %v2851_v49 = vpop.f32.mrb[107].mxu0 }
 0x92c   :  { %6141 = vmatprep.mubr.msk.bf16.mxu1 %vm132_vm1, %v2931_v43 }
 0x92d   :  { %v2565_v53 = vpop.f32.mrb[108].mxu1  ;;  %v8447_v54 = vpop.f32.mrb[108].mxu0 }
 0x92e   :  { %v2567_v57 = vpop.f32.mrb[109].mxu1  ;;  %v2856_v59 = vpop.f32.mrb[109].mxu0 }
 0x931   :  { %v2570_v60 = vpop.f32.mrb[110].mxu1  ;;  %v8449_v62 = vpop.f32.mrb[110].mxu0 }
 0x932   :  { %v2932_v0 = vpack.c.bf16 %v2570_v60, %v2565_v53  ;;  %v2572_v3 = vpop.f32.mrb[111].mxu1  ;;  %v3395_v4 = vpack.c.bf16 %v8449_v62, %v8447_v54  ;;  %v2861_v7 = vpop.f32.mrb[111].mxu0 }
 0x934   :  { %6142 = vmatmul.mubr.msk.bf16.gmra.mrb[152].mxu1 %vm132_vm1, %v2932_v0 }
 0x935   :  { %v2575_v9 = vpop.f32.mrb[112].mxu1  ;;  %v8454_v10 = vpop.f32.mrb[112].mxu0 }
 0x936   :  { %v2577_v13 = vpop.f32.mrb[113].mxu1  ;;  %v2866_v29 = vpop.f32.mrb[113].mxu0 }
 0x939   :  { %v2580_v36 = vpop.f32.mrb[114].mxu1  ;;  %v8456_v39 = vpop.f32.mrb[114].mxu0 }
 0x93a   :  { %v2933_v48 = vpack.c.bf16 %v2580_v36, %v2575_v9  ;;  %v2582_v51 = vpop.f32.mrb[115].mxu1  ;;  %v3396_v58 = vpack.c.bf16 %v8456_v39, %v8454_v10  ;;  %v2871_v2 = vpop.f32.mrb[115].mxu0 }
 0x93c   :  { %6145 = vmatprep.mubr.msk.bf16.mxu1 %vm132_vm1, %v2933_v48 }
 0x93d   :  { %v2585_v5 = vpop.f32.mrb[116].mxu1  ;;  %v8461_v17 = vpop.f32.mrb[116].mxu0 }
 0x93e   :  { %v2587_v14 = vpop.f32.mrb[117].mxu1  ;;  %v2876_v16 = vpop.f32.mrb[117].mxu0 }
 0x941   :  { %v2590_v19 = vpop.f32.mrb[118].mxu1  ;;  %v2879_v20 = vpop.f32.mrb[118].mxu0 }
 0x942   :  { %v2934_v23 = vpack.c.bf16 %v2590_v19, %v2585_v5  ;;  %v2592_v24 = vpop.f32.mrb[119].mxu1  ;;  %v3397_v27 = vpack.c.bf16 %v2879_v20, %v8461_v17  ;;  %v2881_v30 = vpop.f32.mrb[119].mxu0 }
 0x944   :  { %6146 = vmatmul.mubr.msk.bf16.gmra.mrb[156].mxu1 %vm132_vm1, %v2934_v23 }
 0x945   :  { %v2595_v34 = vpop.f32.mrb[120].mxu1  ;;  %v2884_v37 = vpop.f32.mrb[120].mxu0 }
 0x946   :  { %v2597_v38 = vpop.f32.mrb[121].mxu1  ;;  %v2886_v43 = vpop.f32.mrb[121].mxu0 }
 0x949   :  { %v2600_v44 = vpop.f32.mrb[122].mxu1  ;;  %v2889_v49 = vpop.f32.mrb[122].mxu0 }
 0x94a   :  { %v2935_v53 = vpack.c.bf16 %v2600_v44, %v2595_v34  ;;  %v2602_v57 = vpop.f32.mrb[123].mxu1  ;;  %v3398_v59 = vpack.c.bf16 %v2889_v49, %v2884_v37  ;;  %v2891_v60 = vpop.f32.mrb[123].mxu0 }
 0x94c   :  { %6149 = vmatprep.mubr.msk.bf16.mxu1 %vm132_vm1, %v2935_v53 }
 0x94d   :  { %v2605_v0 = vpop.f32.mrb[124].mxu1  ;;  %v2894_v3 = vpop.f32.mrb[124].mxu0 }
 0x94e   :  { %v2607_v7 = vpop.f32.mrb[125].mxu1  ;;  %v2896_v9 = vpop.f32.mrb[125].mxu0 }
 0x951   :  { %v2610_v13 = vpop.f32.mrb[126].mxu1  ;;  %v2899_v29 = vpop.f32.mrb[126].mxu0 }
 0x952   :  { %v2936_v36 = vpack.c.bf16 %v2610_v13, %v2605_v0  ;;  %v2612_v48 = vpop.f32.mrb[127].mxu1  ;;  %v3399_v51 = vpack.c.bf16 %v2899_v29, %v2894_v3  ;;  %v2901_v2 = vpop.f32.mrb[127].mxu0 }
 0x954   :  { %6150 = vmatmul.mubr.msk.bf16.gmra.mrb[160].mxu1 %vm132_vm1, %v2936_v36 }
 0x955   :  { %v2615_v5 = vpop.f32.mrb[128].mxu1  ;;  %v2904_v17 = vpop.f32.mrb[128].mxu0 }
 0x956   :  { %v2617_v14 = vpop.f32.mrb[129].mxu1  ;;  %v2906_v16 = vpop.f32.mrb[129].mxu0 }
 0x959   :  { %v2620_v19 = vpop.f32.mrb[130].mxu1  ;;  %v2909_v20 = vpop.f32.mrb[130].mxu0 }
 0x95a   :  { %v2937_v23 = vpack.c.bf16 %v2620_v19, %v2615_v5  ;;  %v2622_v24 = vpop.f32.mrb[131].mxu1  ;;  %v3400_v30 = vpack.c.bf16 %v2909_v20, %v2904_v17  ;;  %v2911_v34 = vpop.f32.mrb[131].mxu0 }
 0x95c   :  { %6153 = vmatprep.mubr.msk.bf16.mxu1 %vm132_vm1, %v2937_v23 }
 0x95d   :  { %v2625_v37 = vpop.f32.mrb[132].mxu1  ;;  %v2914_v38 = vpop.f32.mrb[132].mxu0 }
 0x95e   :  { %v2627_v43 = vpop.f32.mrb[133].mxu1  ;;  %v2916_v44 = vpop.f32.mrb[133].mxu0 }
 0x961   :  { %v2630_v49 = vpop.f32.mrb[134].mxu1  ;;  %v2919_v53 = vpop.f32.mrb[134].mxu0 }
 0x962   :  { %v2938_v57 = vpack.c.bf16 %v2630_v49, %v2625_v37  ;;  %v2632_v60 = vpop.f32.mrb[135].mxu1  ;;  %v3401_v0 = vpack.c.bf16 %v2919_v53, %v2914_v38  ;;  %v2921_v3 = vpop.f32.mrb[135].mxu0 }
 0x964   :  { %6154 = vmatmul.mubr.msk.bf16.gmra.mrb[164].mxu1 %vm132_vm1, %v2938_v57 }
 0x965   :  { %6161 = vmatprep.mubr.msk.bf16.mxu1 %vm132_vm1, %v3386_v63  ;;  %v8524_v63 = vpack.c.bf16 %v5245_v55, %v5244_v42 }
 0x967   :  { %6645 = vmatprep.subr.bf16.mxu1 %v8524_v63 }
 0x96c   :  { %6162 = vmatmul.mubr.msk.bf16.vlgmr.msra.gmra.mrb[136].mxu1 %vm132_vm1, %v3387_v21  ;;  %v8534_v21 = vpack.c.bf16 %v5247_v18, %v5246_v8 }
 0x96d   :  { %6165 = vmatprep.mubr.msk.bf16.mxu1 %vm132_vm1, %v3388_v35  ;;  %6647 = vmatpush3.bf16.msra.mxu1 %v8524_v63 }
 0x96e   :  { %6646 = vmatprep.subr.bf16.mxu1 %v8534_v21 }
 0x971   :  { %6648 = vmatpush3.bf16.msra.mxu1 %v8534_v21 }
 0x974   :  { %6166 = vmatmul.mubr.msk.bf16.gmra.mrb[140].mxu1 %vm132_vm1, %v3389_v50 }
 0x975   :  { %6169 = vmatprep.mubr.msk.bf16.mxu1 %vm132_vm1, %v3390_v1 }
 0x97c   :  { %6170 = vmatmul.mubr.msk.bf16.gmra.mrb[144].mxu1 %vm132_vm1, %v3391_v33 }
 0x97d   :  { %6173 = vmatprep.mubr.msk.bf16.mxu1 %vm132_vm1, %v3392_v11 }
 0x984   :  { %6174 = vmatmul.mubr.msk.bf16.gmra.mrb[148].mxu1 %vm132_vm1, %v3393_v26 }
 0x985   :  { %6177 = vmatprep.mubr.msk.bf16.mxu1 %vm132_vm1, %v3394_v47 }
 0x98c   :  { %6178 = vmatmul.mubr.msk.bf16.gmra.mrb[152].mxu1 %vm132_vm1, %v3395_v4 }
 0x98d   :  { %6181 = vmatprep.mubr.msk.bf16.mxu1 %vm132_vm1, %v3396_v58 }
 0x994   :  { %6182 = vmatmul.mubr.msk.bf16.gmra.mrb[156].mxu1 %vm132_vm1, %v3397_v27 }
 0x995   :  { %6185 = vmatprep.mubr.msk.bf16.mxu1 %vm132_vm1, %v3398_v59 }
 0x99c   :  { %6186 = vmatmul.mubr.msk.bf16.gmra.mrb[160].mxu1 %vm132_vm1, %v3399_v51 }
 0x99d   :  { %6189 = vmatprep.mubr.msk.bf16.mxu1 %vm132_vm1, %v3400_v30 }
 0x9a4   :  { %6190 = vmatmul.mubr.msk.bf16.gmra.mrb[164].mxu1 %vm132_vm1, %v3401_v0 }
 0xa3f   :  { %v6163_v31 = vpop.f32.mrb[136].mxu1 }
 0xa40   :  { %v3659_v35 = vadd.f32 %v6163_v31, %v8538_v25  ;;  %v3491_v40 = vpop.f32.mrb[137].mxu1 }
 0xa41   :  { %v3657_v46 = vadd.f32 %v8538_v25, %v3491_v40  ;;  %v6164_v50 = vpop.f32.mrb[138].mxu1 }
 0xa42   :  { %v3723_v56 = vmul.f32 0.2, %v3659_v35  ;;  %v3660_v52 = vadd.f32 %v6164_v50, %v8538_v25  ;;  %v3494_v1 = vpop.f32.mrb[139].mxu1  ;;  %vm3691_vm12 = vcmp.gt.f32.partialorder %v3659_v35, 0.0 }
 0xa43   :  { %v3721_v6 = vmul.f32 0.2, %v3657_v46  ;;  %v3658_v12 = vadd.f32 %v8538_v25, %v3494_v1  ;;  %vm3689_vm13 = vcmp.gt.f32.partialorder %v3657_v46, 0.0 }
 0xa44   :  { %vm3692_vm14 = vcmp.gt.f32.partialorder %v3660_v52, 0.0  ;;  %v3724_v33 = vmul.f32 0.2, %v3660_v52  ;;  %v3755_v61 = vsel %vm3691_vm12, %v3659_v35, %v3723_v56 }
 0xa45   :  { %vm3690_vm15 = vcmp.gt.f32.partialorder %v3658_v12, 0.0  ;;  %v3722_v45 = vmul.f32 0.2, %v3658_v12  ;;  %v3753_v15 = vsel %vm3689_vm13, %v3657_v46, %v3721_v6 }
 0xa46   :  { %v3756_v11 = vsel %vm3692_vm14, %v3660_v52, %v3724_v33 }
 0xa47   :  { %v8544_v22 = vpack.c.bf16 %v3756_v11, %v3755_v61  ;;  %v3754_v26 = vsel %vm3690_vm15, %v3658_v12, %v3722_v45  ;;  %v6167_v32 = vpop.f32.mrb[140].mxu1 }
 0xa48   :  { %v8546_v41 = vpack.c.bf16 %v3754_v26, %v3753_v15  ;;  %v3663_v47 = vadd.f32 %v6167_v32, %v8538_v25  ;;  %v3507_v54 = vpop.f32.mrb[141].mxu1 }
 0xa49   :  { %v3661_v62 = vadd.f32 %v8538_v25, %v3507_v54  ;;  %v6168_v4 = vpop.f32.mrb[142].mxu1 }
 0xa4a   :  { %v3727_v10 = vmul.f32 0.2, %v3663_v47  ;;  %v3664_v39 = vadd.f32 %v6168_v4, %v8538_v25  ;;  %v3510_v58 = vpop.f32.mrb[143].mxu1  ;;  %6551 = vmatpush1.bf16.msra.mxu0 %v8546_v41  ;;  %vm3695_vm0 = vcmp.gt.f32.partialorder %v3663_v47, 0.0 }
 0xa4b   :  { %v3725_v27 = vmul.f32 0.2, %v3661_v62  ;;  %v3662_v59 = vadd.f32 %v8538_v25, %v3510_v58  ;;  %6552 = vmatprep.subr.bf16.mxu0 %v7063_v28  ;;  %vm3693_vm2 = vcmp.gt.f32.partialorder %v3661_v62, 0.0 }
 0xa4c   :  { %vm3696_vm3 = vcmp.gt.f32.partialorder %v3664_v39, 0.0  ;;  %v3728_v7 = vmul.f32 0.2, %v3664_v39  ;;  %v3759_v13 = vsel %vm3695_vm0, %v3663_v47, %v3727_v10 }
 0xa4d   :  { %vm3694_vm4 = vcmp.gt.f32.partialorder %v3662_v59, 0.0  ;;  %v3726_v9 = vmul.f32 0.2, %v3662_v59  ;;  %v3757_v36 = vsel %vm3693_vm2, %v3661_v62, %v3725_v27 }
 0xa4e   :  { %v3760_v29 = vsel %vm3696_vm3, %v3664_v39, %v3728_v7  ;;  %6554 = vmatpush1.bf16.msra.mxu0 %v8544_v22 }
 0xa4f   :  { %v8555_v48 = vpack.c.bf16 %v3760_v29, %v3759_v13  ;;  %v3758_v51 = vsel %vm3694_vm4, %v3662_v59, %v3726_v9  ;;  %v6171_v2 = vpop.f32.mrb[144].mxu1  ;;  %6555 = vmatprep.subr.bf16.mxu0 %v7063_v28 }
 0xa50   :  { %v8558_v5 = vpack.c.bf16 %v3758_v51, %v3757_v36  ;;  %v3667_v17 = vadd.f32 %v6171_v2, %v8538_v25  ;;  %v3523_v14 = vpop.f32.mrb[145].mxu1 }
 0xa51   :  { %v3665_v16 = vadd.f32 %v8538_v25, %v3523_v14  ;;  %v6172_v19 = vpop.f32.mrb[146].mxu1 }
 0xa52   :  { %v3731_v20 = vmul.f32 0.2, %v3667_v17  ;;  %v3668_v23 = vadd.f32 %v6172_v19, %v8538_v25  ;;  %v3526_v24 = vpop.f32.mrb[147].mxu1  ;;  %6557 = vmatpush1.bf16.msra.mxu0 %v8558_v5  ;;  %vm3699_vm5 = vcmp.gt.f32.partialorder %v3667_v17, 0.0 }
 0xa53   :  { %v3729_v30 = vmul.f32 0.2, %v3665_v16  ;;  %v3666_v34 = vadd.f32 %v8538_v25, %v3526_v24  ;;  %6558 = vmatprep.subr.bf16.mxu0 %v7063_v28  ;;  %vm3697_vm6 = vcmp.gt.f32.partialorder %v3665_v16, 0.0 }
 0xa54   :  { %vm3700_vm7 = vcmp.gt.f32.partialorder %v3668_v23, 0.0  ;;  %v3732_v37 = vmul.f32 0.2, %v3668_v23  ;;  %v3763_v43 = vsel %vm3699_vm5, %v3667_v17, %v3731_v20 }
 0xa55   :  { %vm3698_vm8 = vcmp.gt.f32.partialorder %v3666_v34, 0.0  ;;  %v3730_v38 = vmul.f32 0.2, %v3666_v34  ;;  %v3761_v49 = vsel %vm3697_vm6, %v3665_v16, %v3729_v30 }
 0xa56   :  { %v3764_v44 = vsel %vm3700_vm7, %v3668_v23, %v3732_v37  ;;  %6560 = vmatpush1.bf16.msra.mxu0 %v8555_v48 }
 0xa57   :  { %v8567_v53 = vpack.c.bf16 %v3764_v44, %v3763_v43  ;;  %v3762_v57 = vsel %vm3698_vm8, %v3666_v34, %v3730_v38  ;;  %v6175_v60 = vpop.f32.mrb[148].mxu1  ;;  %6561 = vmatprep.subr.bf16.mxu0 %v7063_v28 }
 0xa58   :  { %v8570_v0 = vpack.c.bf16 %v3762_v57, %v3761_v49  ;;  %v3671_v3 = vadd.f32 %v6175_v60, %v8538_v25  ;;  %v3539_v42 = vpop.f32.mrb[149].mxu1 }
 0xa59   :  { %v3669_v55 = vadd.f32 %v8538_v25, %v3539_v42  ;;  %v6176_v8 = vpop.f32.mrb[150].mxu1 }
 0xa5a   :  { %v3735_v18 = vmul.f32 0.2, %v3671_v3  ;;  %v3672_v31 = vadd.f32 %v6176_v8, %v8538_v25  ;;  %v3542_v35 = vpop.f32.mrb[151].mxu1  ;;  %6563 = vmatpush1.bf16.msra.mxu0 %v8570_v0  ;;  %vm3703_vm9 = vcmp.gt.f32.partialorder %v3671_v3, 0.0 }
 0xa5b   :  { %v3733_v40 = vmul.f32 0.2, %v3669_v55  ;;  %v3670_v46 = vadd.f32 %v8538_v25, %v3542_v35  ;;  %6564 = vmatprep.subr.bf16.mxu0 %v7063_v28  ;;  %vm3701_vm10 = vcmp.gt.f32.partialorder %v3669_v55, 0.0 }
 0xa5c   :  { %vm3704_vm11 = vcmp.gt.f32.partialorder %v3672_v31, 0.0  ;;  %v3736_v50 = vmul.f32 0.2, %v3672_v31  ;;  %v3767_v52 = vsel %vm3703_vm9, %v3671_v3, %v3735_v18 }
 0xa5d   :  { %vm3702_vm12 = vcmp.gt.f32.partialorder %v3670_v46, 0.0  ;;  %v3734_v56 = vmul.f32 0.2, %v3670_v46  ;;  %v3765_v6 = vsel %vm3701_vm10, %v3669_v55, %v3733_v40 }
 0xa5e   :  { %v3768_v1 = vsel %vm3704_vm11, %v3672_v31, %v3736_v50  ;;  %6566 = vmatpush1.bf16.msra.mxu0 %v8567_v53 }
 0xa5f   :  { %v8579_v12 = vpack.c.bf16 %v3768_v1, %v3767_v52  ;;  %v3766_v33 = vsel %vm3702_vm12, %v3670_v46, %v3734_v56  ;;  %v6179_v45 = vpop.f32.mrb[152].mxu1  ;;  %6567 = vmatprep.subr.bf16.mxu0 %v7063_v28 }
 0xa60   :  { %v8582_v61 = vpack.c.bf16 %v3766_v33, %v3765_v6  ;;  %v3675_v11 = vadd.f32 %v6179_v45, %v8538_v25  ;;  %v3555_v15 = vpop.f32.mrb[153].mxu1 }
 0xa61   :  { %v3673_v26 = vadd.f32 %v8538_v25, %v3555_v15  ;;  %v6180_v32 = vpop.f32.mrb[154].mxu1 }
 0xa62   :  { %v3739_v47 = vmul.f32 0.2, %v3675_v11  ;;  %v3676_v54 = vadd.f32 %v6180_v32, %v8538_v25  ;;  %v3558_v62 = vpop.f32.mrb[155].mxu1  ;;  %6569 = vmatpush1.bf16.msra.mxu0 %v8582_v61  ;;  %vm3707_vm13 = vcmp.gt.f32.partialorder %v3675_v11, 0.0 }
 0xa63   :  { %v3737_v4 = vmul.f32 0.2, %v3673_v26  ;;  %v3674_v10 = vadd.f32 %v8538_v25, %v3558_v62  ;;  %6570 = vmatprep.subr.bf16.mxu0 %v7063_v28  ;;  %vm3705_vm14 = vcmp.gt.f32.partialorder %v3673_v26, 0.0 }
 0xa64   :  { %vm3708_vm15 = vcmp.gt.f32.partialorder %v3676_v54, 0.0  ;;  %v3740_v39 = vmul.f32 0.2, %v3676_v54  ;;  %v3771_v27 = vsel %vm3707_vm13, %v3675_v11, %v3739_v47 }
 0xa65   :  { %vm3706_vm0 = vcmp.gt.f32.partialorder %v3674_v10, 0.0  ;;  %v3738_v58 = vmul.f32 0.2, %v3674_v10  ;;  %v3769_v7 = vsel %vm3705_vm14, %v3673_v26, %v3737_v4 }
 0xa66   :  { %v3772_v59 = vsel %vm3708_vm15, %v3676_v54, %v3740_v39  ;;  %6572 = vmatpush1.bf16.msra.mxu0 %v8579_v12 }
 0xa67   :  { %v8591_v9 = vpack.c.bf16 %v3772_v59, %v3771_v27  ;;  %v3770_v13 = vsel %vm3706_vm0, %v3674_v10, %v3738_v58  ;;  %v6183_v29 = vpop.f32.mrb[156].mxu1  ;;  %6573 = vmatprep.subr.bf16.mxu0 %v7063_v28 }
 0xa68   :  { %v8594_v36 = vpack.c.bf16 %v3770_v13, %v3769_v7  ;;  %v3679_v51 = vadd.f32 %v6183_v29, %v8538_v25  ;;  %v3571_v2 = vpop.f32.mrb[157].mxu1 }
 0xa69   :  { %v3677_v17 = vadd.f32 %v8538_v25, %v3571_v2  ;;  %v6184_v14 = vpop.f32.mrb[158].mxu1 }
 0xa6a   :  { %v3743_v16 = vmul.f32 0.2, %v3679_v51  ;;  %v3680_v19 = vadd.f32 %v6184_v14, %v8538_v25  ;;  %v3574_v20 = vpop.f32.mrb[159].mxu1  ;;  %6575 = vmatpush1.bf16.msra.mxu0 %v8594_v36  ;;  %vm3711_vm2 = vcmp.gt.f32.partialorder %v3679_v51, 0.0  ;;  %v6835_v14 = vld [vmem:[%s9340_s14 + $0x18] sm:$0xff] }
 0xa6b   :  { %v3741_v23 = vmul.f32 0.2, %v3677_v17  ;;  %v3678_v24 = vadd.f32 %v8538_v25, %v3574_v20  ;;  %6576 = vmatprep.subr.bf16.mxu0 %v7063_v28  ;;  %vm3709_vm3 = vcmp.gt.f32.partialorder %v3677_v17, 0.0  ;;  %v6838_v20 = vld [vmem:[%s9340_s14 + $0x20] sm:$0xff] }
 0xa6c   :  { %vm3712_vm4 = vcmp.gt.f32.partialorder %v3680_v19, 0.0  ;;  %v3744_v30 = vmul.f32 0.2, %v3680_v19  ;;  %v3775_v37 = vsel %vm3711_vm2, %v3679_v51, %v3743_v16  ;;  %v6836_v16 = vld [vmem:[%s9340_s14 + $0x10] sm:$0xff] }
 0xa6d   :  { %vm3710_vm5 = vcmp.gt.f32.partialorder %v3678_v24, 0.0  ;;  %v3742_v34 = vmul.f32 0.2, %v3678_v24  ;;  %v3773_v43 = vsel %vm3709_vm3, %v3677_v17, %v3741_v23  ;;  %v6834_v17 = vld [vmem:[%s9340_s14] sm:$0xff]  ;;  %v6839_v23 = vld [vmem:[%s9340_s14 + $0x38] sm:$0xff] }
 0xa6e   :  { %v3776_v38 = vsel %vm3712_vm4, %v3680_v19, %v3744_v30  ;;  %6578 = vmatpush1.bf16.msra.mxu0 %v8591_v9  ;;  %v6837_v19 = vld [vmem:[%s9340_s14 + $0x28] sm:$0xff] }
 0xa6f   :  { %v8603_v44 = vpack.c.bf16 %v3776_v38, %v3775_v37  ;;  %v3774_v49 = vsel %vm3710_vm5, %v3678_v24, %v3742_v34  ;;  %v6187_v57 = vpop.f32.mrb[160].mxu1  ;;  %6579 = vmatprep.subr.bf16.mxu0 %v7063_v28  ;;  %v6840_v24 = vld [vmem:[%s9340_s14 + $0x30] sm:$0xff]  ;;  %v6841_v30 = vld [vmem:[%s9340_s14 + $0x48] sm:$0xff]  ;;  %v6842_v34 = vld [vmem:[%s9340_s14 + $0x40] sm:$0xff] }
 0xa70   :  { %v8606_v60 = vpack.c.bf16 %v3774_v49, %v3773_v43  ;;  %v3683_v3 = vadd.f32 %v6187_v57, %v8538_v25  ;;  %v3587_v42 = vpop.f32.mrb[161].mxu1  ;;  %v6843_v37 = vld [vmem:[%s9340_s14 + $0x58] sm:$0xff]  ;;  %v6844_v38 = vld [vmem:[%s9340_s14 + $0x50] sm:$0xff]  ;;  %v6845_v43 = vld [vmem:[%s9340_s14 + $0x68] sm:$0xff] }
 0xa71   :  { %v3681_v55 = vadd.f32 %v8538_v25, %v3587_v42  ;;  %v6188_v8 = vpop.f32.mrb[162].mxu1  ;;  %v6846_v49 = vld [vmem:[%s9340_s14 + $0x60] sm:$0xff]  ;;  %v6847_v57 = vld [vmem:[%s9340_s14 + $0x78] sm:$0xff]  ;;  %v6849_v42 = vld [vmem:[%s9340_s14 + $0x88] sm:$0xff] }
 0xa72   :  { %v3747_v18 = vmul.f32 0.2, %v3683_v3  ;;  %v3684_v31 = vadd.f32 %v6188_v8, %v8538_v25  ;;  %v3590_v35 = vpop.f32.mrb[163].mxu1  ;;  %6581 = vmatpush1.bf16.msra.mxu0 %v8606_v60  ;;  %6217 = vmatprep.mubr.msk.bf16.mxu1 %vm132_vm1, %v8606_v60  ;;  %vm3715_vm6 = vcmp.gt.f32.partialorder %v3683_v3, 0.0  ;;  %v6851_v8 = vld [vmem:[%s9340_s14 + $0x98] sm:$0xff] }
 0xa73   :  { %v3745_v40 = vmul.f32 0.2, %v3681_v55  ;;  %v3682_v46 = vadd.f32 %v8538_v25, %v3590_v35  ;;  %6218 = vmatmul.mubr.msk.bf16.vlgmr.msra.gmra.mrb[168].mxu1 %vm132_vm1, %v8603_v44  ;;  %6582 = vmatprep.subr.bf16.mxu0 %v7063_v28  ;;  %vm3713_vm7 = vcmp.gt.f32.partialorder %v3681_v55, 0.0  ;;  %v6854_v35 = vld [vmem:[%s9340_s14 + $0xa0] sm:$0xff] }
 0xa74   :  { %vm3716_vm8 = vcmp.gt.f32.partialorder %v3684_v31, 0.0  ;;  %v3748_v50 = vmul.f32 0.2, %v3684_v31  ;;  %v3779_v52 = vsel %vm3715_vm6, %v3683_v3, %v3747_v18  ;;  %v6848_v3 = vld [vmem:[%s9340_s14 + $0x70] sm:$0xff] }
 0xa75   :  { %vm3714_vm9 = vcmp.gt.f32.partialorder %v3682_v46, 0.0  ;;  %v3746_v56 = vmul.f32 0.2, %v3682_v46  ;;  %v3777_v6 = vsel %vm3713_vm7, %v3681_v55, %v3745_v40  ;;  %v6850_v55 = vld [vmem:[%s9340_s14 + $0x80] sm:$0xff]  ;;  %v6852_v18 = vld [vmem:[%s9340_s14 + $0x90] sm:$0xff]  ;;  %v6855_v40 = vld [vmem:[%s9340_s14 + $0xb8] sm:$0xff] }
 0xa76   :  { %v3780_v1 = vsel %vm3716_vm8, %v3684_v31, %v3748_v50  ;;  %6584 = vmatpush1.bf16.msra.mxu0 %v8603_v44  ;;  %v6853_v31 = vld [vmem:[%s9340_s14 + $0xa8] sm:$0xff] }
 0xa77   :  { %v8619_v33 = vpack.c.bf16 %v3780_v1, %v3779_v52  ;;  %v3778_v45 = vsel %vm3714_vm9, %v3682_v46, %v3746_v56  ;;  %v6191_v11 = vpop.f32.mrb[164].mxu1  ;;  %6585 = vmatprep.subr.bf16.mxu0 %v7063_v28  ;;  %v6856_v46 = vld [vmem:[%s9340_s14 + $0xb0] sm:$0xff]  ;;  %v6857_v50 = vld [vmem:[%s9340_s14 + $0xc8] sm:$0xff]  ;;  %v6859_v56 = vld [vmem:[%s9340_s14 + $0xd8] sm:$0xff] }
 0xa78   :  { %v8622_v15 = vpack.c.bf16 %v3778_v45, %v3777_v6  ;;  %v3687_v26 = vadd.f32 %v6191_v11, %v8538_v25  ;;  %v3603_v32 = vpop.f32.mrb[165].mxu1  ;;  %v6861_v52 = vld [vmem:[%s9340_s14 + $0xe8] sm:$0xff]  ;;  %v6862_v1 = vld [vmem:[%s9340_s14 + $0xe0] sm:$0xff]  ;;  %v6863_v6 = vld [vmem:[%s9340_s14 + $0xf8] sm:$0xff] }
 0xa79   :  { %v3685_v47 = vadd.f32 %v8538_v25, %v3603_v32  ;;  %v6192_v54 = vpop.f32.mrb[166].mxu1  ;;  %v6865_v45 = vld [vmem:[%s9340_s14 + $0x108] sm:$0xff]  ;;  %v6866_v11 = vld [vmem:[%s9340_s14 + $0x100] sm:$0xff] }
 0xa7a   :  { %v3751_v62 = vmul.f32 0.2, %v3687_v26  ;;  %v3688_v4 = vadd.f32 %v6192_v54, %v8538_v25  ;;  %v3606_v10 = vpop.f32.mrb[167].mxu1  ;;  %6587 = vmatpush1.bf16.msra.mxu0 %v8622_v15  ;;  %6221 = vmatprep.mubr.msk.bf16.mxu1 %vm132_vm1, %v8622_v15  ;;  %vm3719_vm10 = vcmp.gt.f32.partialorder %v3687_v26, 0.0  ;;  %v6870_v32 = vld [vmem:[%s9340_s14 + $0x120] sm:$0xff]  ;;  %v6872_v54 = vld [vmem:[%s9340_s14 + $0x130] sm:$0xff] }
 0xa7b   :  { %v3749_v39 = vmul.f32 0.2, %v3685_v47  ;;  %v3686_v58 = vadd.f32 %v8538_v25, %v3606_v10  ;;  %6222 = vmatmul.mubr.msk.bf16.gmra.mrb[172].mxu1 %vm132_vm1, %v8619_v33  ;;  %6588 = vmatprep.subr.bf16.mxu0 %v7063_v28  ;;  %vm3717_vm11 = vcmp.gt.f32.partialorder %v3685_v47, 0.0  ;;  %v6875_v10 = vld [vmem:[%s9340_s14 + $0x158] sm:$0xff] }
 0xa7c   :  { %vm3720_vm12 = vcmp.gt.f32.partialorder %v3688_v4, 0.0  ;;  %v3752_v27 = vmul.f32 0.2, %v3688_v4  ;;  %v3783_v7 = vsel %vm3719_vm10, %v3687_v26, %v3751_v62  ;;  %v6869_v26 = vld [vmem:[%s9340_s14 + $0x128] sm:$0xff] }
 0xa7d   :  { %vm3718_vm13 = vcmp.gt.f32.partialorder %v3686_v58, 0.0  ;;  %v3750_v59 = vmul.f32 0.2, %v3686_v58  ;;  %v3781_v29 = vsel %vm3717_vm11, %v3685_v47, %v3749_v39  ;;  %v6871_v47 = vld [vmem:[%s9340_s14 + $0x138] sm:$0xff]  ;;  %v6873_v62 = vld [vmem:[%s9340_s14 + $0x148] sm:$0xff]  ;;  %v6876_v39 = vld [vmem:[%s9340_s14 + $0x150] sm:$0xff] }
 0xa7e   :  { %v3784_v13 = vsel %vm3720_vm12, %v3688_v4, %v3752_v27  ;;  %6590 = vmatpush1.bf16.msra.mxu0 %v8619_v33  ;;  %v6874_v4 = vld [vmem:[%s9340_s14 + $0x140] sm:$0xff] }
 0xa7f   :  { %v8635_v51 = vpack.c.bf16 %v3784_v13, %v3783_v7  ;;  %v3782_v2 = vsel %vm3718_vm13, %v3686_v58, %v3750_v59  ;;  %6591 = vmatprep.subr.bf16.mxu0 %v7063_v28  ;;  %v6877_v58 = vld [vmem:[%s9340_s14 + $0x168] sm:$0xff]  ;;  %v4251_v27 = vld [vmem:[%s9344_s18] sm:$0xff] }
 0xa80   :  { %v8638_v25 = vpack.c.bf16 %v3782_v2, %v3781_v29  ;;  %v4252_v59 = vld [vmem:[%s9344_s18 + $0x8] sm:$0xff]  ;;  %v6878_v7 = vld [vmem:[%s9340_s14 + $0x160] sm:$0xff]  ;;  %v6879_v29 = vld [vmem:[%s9340_s14 + $0x178] sm:$0xff] }
 0xa81   :  { %v4255_v13 = vpack.c.bf16 %v4252_v59, %v4251_v27  ;;  %v4254_v2 = vld [vmem:[%s9344_s18 + $0x18] sm:$0xff]  ;;  %v6926_v27 = vld [vmem:[%s9341_s15 + $0xe0] sm:$0xff] }
 0xa82   :  { %6593 = vmatpush1.bf16.msra.mxu0 %v8638_v25  ;;  %6225 = vmatprep.mubr.msk.bf16.mxu1 %vm132_vm1, %v8638_v25  ;;  %v6927_v59 = vld [vmem:[%s9341_s15 + $0xf8] sm:$0xff] }
 0xa83   :  { %6226 = vmatmul.mubr.msk.bf16.gmra.mrb[176].mxu1 %vm132_vm1, %v8635_v51  ;;  %6594 = vmatprep.subr.bf16.mxu0 %v7063_v28 }
 0xa84   :  { %6229 = vmatprep.subr.bf16.mxu1 %v4255_v13 }
 0xa85   :  { %6230 = vmatpush3.bf16.msra.mxu1 %v4255_v13  ;;  %v6929_v13 = vld [vmem:[%s9341_s15 + $0x108] sm:$0xff] }
 0xa86   :  { %6596 = vmatpush1.bf16.msra.mxu0 %v8635_v51 }
 0xa87   :  { %6597 = vmatprep.subr.bf16.mxu0 %v7063_v28 }
 0xa89   :  { %3850 = vmatmul.mubr.f32.vlgmr.msra.gmra.mrb[136].mxu0 %v6834_v17 }
 0xa8a   :  { %6599 = vmatpush1.bf16.msra.mxu0 %v8546_v41  ;;  %3854 = vmatprep.mubr.f32.mxu0 %v6835_v14  ;;  %v6881_v14 = vld [vmem:[%s9340_s14 + $0x188] sm:$0xff] }
 0xa8b   :  { %6600 = vmatprep.subr.bf16.mxu0 %v7063_v28 }
 0xa8d   :  { %3855 = vmatmul.mubr.f32.gmra.mrb[138].mxu0 %v6836_v16  ;;  %v6882_v16 = vld [vmem:[%s9340_s14 + $0x180] sm:$0xff] }
 0xa8e   :  { %6602 = vmatpush1.bf16.msra.mxu0 %v8544_v22  ;;  %3859 = vmatprep.mubr.f32.mxu0 %v6837_v19  ;;  %v6883_v19 = vld [vmem:[%s9340_s14 + $0x198] sm:$0xff] }
 0xa8f   :  { %6603 = vmatprep.subr.bf16.mxu0 %v7063_v28 }
 0xa91   :  { %3860 = vmatmul.mubr.f32.gmra.mrb[140].mxu0 %v6838_v20  ;;  %v6884_v20 = vld [vmem:[%s9340_s14 + $0x190] sm:$0xff] }
 0xa92   :  { %6605 = vmatpush1.bf16.msra.mxu0 %v8558_v5  ;;  %3864 = vmatprep.mubr.f32.mxu0 %v6839_v23  ;;  %v6885_v23 = vld [vmem:[%s9340_s14 + $0x1a8] sm:$0xff] }
 0xa93   :  { %6606 = vmatprep.subr.bf16.mxu0 %v7063_v28 }
 0xa95   :  { %3865 = vmatmul.mubr.f32.gmra.mrb[142].mxu0 %v6840_v24  ;;  %v6886_v24 = vld [vmem:[%s9340_s14 + $0x1a0] sm:$0xff] }
 0xa96   :  { %6608 = vmatpush1.bf16.msra.mxu0 %v8555_v48  ;;  %3869 = vmatprep.mubr.f32.mxu0 %v6841_v30  ;;  %v6887_v30 = vld [vmem:[%s9340_s14 + $0x1b8] sm:$0xff] }
 0xa97   :  { %6609 = vmatprep.subr.bf16.mxu0 %v7063_v28 }
 0xa99   :  { %3870 = vmatmul.mubr.f32.gmra.mrb[144].mxu0 %v6842_v34  ;;  %v6888_v34 = vld [vmem:[%s9340_s14 + $0x1b0] sm:$0xff] }
 0xa9a   :  { %6611 = vmatpush1.bf16.msra.mxu0 %v8570_v0  ;;  %3874 = vmatprep.mubr.f32.mxu0 %v6843_v37  ;;  %v6889_v37 = vld [vmem:[%s9340_s14 + $0x1c8] sm:$0xff] }
 0xa9b   :  { %6612 = vmatprep.subr.bf16.mxu0 %v7063_v28 }
 0xa9d   :  { %3875 = vmatmul.mubr.f32.gmra.mrb[146].mxu0 %v6844_v38  ;;  %v6890_v38 = vld [vmem:[%s9340_s14 + $0x1c0] sm:$0xff] }
 0xa9e   :  { %6614 = vmatpush1.bf16.msra.mxu0 %v8567_v53  ;;  %3879 = vmatprep.mubr.f32.mxu0 %v6845_v43  ;;  %v6891_v43 = vld [vmem:[%s9340_s14 + $0x1d8] sm:$0xff] }
 0xa9f   :  { %6615 = vmatprep.subr.bf16.mxu0 %v7063_v28 }
 0xaa1   :  { %3880 = vmatmul.mubr.f32.gmra.mrb[148].mxu0 %v6846_v49  ;;  %v6892_v49 = vld [vmem:[%s9340_s14 + $0x1d0] sm:$0xff] }
 0xaa2   :  { %6617 = vmatpush1.bf16.msra.mxu0 %v8582_v61  ;;  %3884 = vmatprep.mubr.f32.mxu0 %v6847_v57  ;;  %v6893_v57 = vld [vmem:[%s9340_s14 + $0x1e8] sm:$0xff] }
 0xaa3   :  { %6618 = vmatprep.subr.bf16.mxu0 %v7063_v28 }
 0xaa5   :  { %3885 = vmatmul.mubr.f32.gmra.mrb[150].mxu0 %v6848_v3  ;;  %v6894_v3 = vld [vmem:[%s9340_s14 + $0x1e0] sm:$0xff] }
 0xaa6   :  { %6620 = vmatpush1.bf16.msra.mxu0 %v8579_v12  ;;  %3889 = vmatprep.mubr.f32.mxu0 %v6849_v42  ;;  %v6895_v42 = vld [vmem:[%s9340_s14 + $0x1f8] sm:$0xff] }
 0xaa7   :  { %6621 = vmatprep.subr.bf16.mxu0 %v7063_v28 }
 0xaa9   :  { %3890 = vmatmul.mubr.f32.gmra.mrb[152].mxu0 %v6850_v55  ;;  %v6896_v55 = vld [vmem:[%s9340_s14 + $0x1f0] sm:$0xff] }
 0xaaa   :  { %6623 = vmatpush1.bf16.msra.mxu0 %v8594_v36  ;;  %3894 = vmatprep.mubr.f32.mxu0 %v6851_v8  ;;  %v6897_v8 = vld [vmem:[%s9341_s15 + $0x8] sm:$0xff] }
 0xaab   :  { %6624 = vmatprep.subr.bf16.mxu0 %v7063_v28 }
 0xaad   :  { %3895 = vmatmul.mubr.f32.gmra.mrb[154].mxu0 %v6852_v18  ;;  %v6898_v18 = vld [vmem:[%s9341_s15] sm:$0xff] }
 0xaae   :  { %6626 = vmatpush1.bf16.msra.mxu0 %v8591_v9  ;;  %3899 = vmatprep.mubr.f32.mxu0 %v6853_v31  ;;  %v6899_v31 = vld [vmem:[%s9341_s15 + $0x18] sm:$0xff] }
 0xaaf   :  { %6627 = vmatprep.subr.bf16.mxu0 %v7063_v28 }
 0xab1   :  { %3900 = vmatmul.mubr.f32.gmra.mrb[156].mxu0 %v6854_v35  ;;  %v6900_v35 = vld [vmem:[%s9341_s15 + $0x10] sm:$0xff] }
 0xab2   :  { %6629 = vmatpush1.bf16.msra.mxu0 %v8606_v60  ;;  %3904 = vmatprep.mubr.f32.mxu0 %v6855_v40  ;;  %v6858_v60 = vld [vmem:[%s9340_s14 + $0xc0] sm:$0xff]  ;;  %v6901_v40 = vld [vmem:[%s9341_s15 + $0x28] sm:$0xff] }
 0xab3   :  { %6630 = vmatprep.subr.bf16.mxu0 %v7063_v28 }
 0xab5   :  { %3905 = vmatmul.mubr.f32.gmra.mrb[158].mxu0 %v6856_v46  ;;  %v6902_v46 = vld [vmem:[%s9341_s15 + $0x20] sm:$0xff] }
 0xab6   :  { %6632 = vmatpush1.bf16.msra.mxu0 %v8603_v44  ;;  %3909 = vmatprep.mubr.f32.mxu0 %v6857_v50  ;;  %v6860_v44 = vld [vmem:[%s9340_s14 + $0xd0] sm:$0xff] }
 0xab7   :  { %6633 = vmatprep.subr.bf16.mxu0 %v7063_v28  ;;  %v6904_v50 = vld [vmem:[%s9341_s15 + $0x30] sm:$0xff] }
 0xab9   :  { %3910 = vmatmul.mubr.f32.gmra.mrb[160].mxu0 %v6858_v60  ;;  %v6905_v60 = vld [vmem:[%s9341_s15 + $0x48] sm:$0xff] }
 0xaba   :  { %6635 = vmatpush1.bf16.msra.mxu0 %v8622_v15  ;;  %3914 = vmatprep.mubr.f32.mxu0 %v6859_v56  ;;  %v6868_v15 = vld [vmem:[%s9340_s14 + $0x110] sm:$0xff]  ;;  %v6907_v56 = vld [vmem:[%s9341_s15 + $0x58] sm:$0xff] }
 0xabb   :  { %6636 = vmatprep.subr.bf16.mxu0 %v7063_v28 }
 0xabd   :  { %3915 = vmatmul.mubr.f32.gmra.mrb[162].mxu0 %v6860_v44  ;;  %v6908_v44 = vld [vmem:[%s9341_s15 + $0x50] sm:$0xff] }
 0xabe   :  { %6638 = vmatpush1.bf16.msra.mxu0 %v8619_v33  ;;  %3919 = vmatprep.mubr.f32.mxu0 %v6861_v52  ;;  %v6864_v33 = vld [vmem:[%s9340_s14 + $0xf0] sm:$0xff]  ;;  %v6909_v52 = vld [vmem:[%s9341_s15 + $0x68] sm:$0xff] }
 0xabf   :  { %6639 = vmatprep.subr.bf16.mxu0 %v7063_v28 }
 0xac1   :  { %3920 = vmatmul.mubr.f32.gmra.mrb[164].mxu0 %v6862_v1  ;;  %v6910_v1 = vld [vmem:[%s9341_s15 + $0x60] sm:$0xff] }
 0xac2   :  { %6641 = vmatpush1.bf16.msra.mxu0 %v8638_v25  ;;  %3924 = vmatprep.mubr.f32.mxu0 %v6863_v6  ;;  %v6880_v25 = vld [vmem:[%s9340_s14 + $0x170] sm:$0xff]  ;;  %v6911_v6 = vld [vmem:[%s9341_s15 + $0x78] sm:$0xff] }
 0xac3   :  { %6642 = vmatprep.subr.bf16.mxu0 %v7063_v28  ;;  %v6867_v28 = vld [vmem:[%s9340_s14 + $0x118] sm:$0xff] }
 0xac5   :  { %3925 = vmatmul.mubr.f32.gmra.mrb[166].mxu0 %v6864_v33  ;;  %v6912_v33 = vld [vmem:[%s9341_s15 + $0x70] sm:$0xff] }
 0xac6   :  { %6644 = vmatpush1.bf16.msra.mxu0 %v8635_v51  ;;  %3929 = vmatprep.mubr.f32.mxu0 %v6865_v45  ;;  %v4253_v51 = vld [vmem:[%s9344_s18 + $0x10] sm:$0xff]  ;;  %v6913_v45 = vld [vmem:[%s9341_s15 + $0x88] sm:$0xff] }
 0xac7   :  { %6193 = vmatprep.subr.bf16.mxu0 %v8524_v63  ;;  %v4256_v17 = vpack.c.bf16 %v4254_v2, %v4253_v51  ;;  %v6931_v51 = vld [vmem:[%s9341_s15 + $0x118] sm:$0xff]  ;;  %v6932_v2 = vld [vmem:[%s9341_s15 + $0x110] sm:$0xff] }
 0xac9   :  { %3930 = vmatmul.mubr.f32.gmra.mrb[168].mxu0 %v6866_v11  ;;  %6231 = vmatprep.subr.bf16.mxu1 %v4256_v17  ;;  %v6914_v11 = vld [vmem:[%s9341_s15 + $0x80] sm:$0xff] }
 0xaca   :  { %3934 = vmatprep.mubr.f32.mxu0 %v6867_v28  ;;  %6232 = vmatpush3.bf16.msra.mxu1 %v4256_v17  ;;  %v6915_v28 = vld [vmem:[%s9341_s15 + $0x98] sm:$0xff]  ;;  %v6934_v17 = vld [vmem:[%s9341_s15 + $0x120] sm:$0xff] }
 0xacd   :  { %3935 = vmatmul.mubr.f32.gmra.mrb[170].mxu0 %v6868_v15  ;;  %v6916_v15 = vld [vmem:[%s9341_s15 + $0x90] sm:$0xff] }
 0xace   :  { %3939 = vmatprep.mubr.f32.mxu0 %v6869_v26  ;;  %v6917_v26 = vld [vmem:[%s9341_s15 + $0xa8] sm:$0xff] }
 0xad1   :  { %3940 = vmatmul.mubr.f32.gmra.mrb[172].mxu0 %v6870_v32  ;;  %v6918_v32 = vld [vmem:[%s9341_s15 + $0xa0] sm:$0xff] }
 0xad2   :  { %3944 = vmatprep.mubr.f32.mxu0 %v6871_v47  ;;  %v6919_v47 = vld [vmem:[%s9341_s15 + $0xb8] sm:$0xff] }
 0xad5   :  { %3945 = vmatmul.mubr.f32.gmra.mrb[174].mxu0 %v6872_v54  ;;  %v6920_v54 = vld [vmem:[%s9341_s15 + $0xb0] sm:$0xff] }
 0xad6   :  { %3949 = vmatprep.mubr.f32.mxu0 %v6873_v62  ;;  %v6921_v62 = vld [vmem:[%s9341_s15 + $0xc8] sm:$0xff] }
 0xad9   :  { %3950 = vmatmul.mubr.f32.gmra.mrb[176].mxu0 %v6874_v4  ;;  %v6922_v4 = vld [vmem:[%s9341_s15 + $0xc0] sm:$0xff] }
 0xada   :  { %3954 = vmatprep.mubr.f32.mxu0 %v6875_v10  ;;  %v6923_v10 = vld [vmem:[%s9341_s15 + $0xd8] sm:$0xff] }
 0xadd   :  { %3955 = vmatmul.mubr.f32.gmra.mrb[178].mxu0 %v6876_v39  ;;  %v6924_v39 = vld [vmem:[%s9341_s15 + $0xd0] sm:$0xff] }
 0xade   :  { %3959 = vmatprep.mubr.f32.mxu0 %v6877_v58  ;;  %v6925_v58 = vld [vmem:[%s9341_s15 + $0xe8] sm:$0xff] }
 0xae1   :  { %3960 = vmatmul.mubr.f32.gmra.mrb[180].mxu0 %v6878_v7  ;;  %v6928_v7 = vld [vmem:[%s9341_s15 + $0xf0] sm:$0xff] }
 0xae2   :  { %3964 = vmatprep.mubr.f32.mxu0 %v6879_v29  ;;  %v6930_v29 = vld [vmem:[%s9341_s15 + $0x100] sm:$0xff] }
 0xae5   :  { %3965 = vmatmul.mubr.f32.gmra.mrb[182].mxu0 %v6880_v25  ;;  %v6933_v25 = vld [vmem:[%s9341_s15 + $0x128] sm:$0xff] }
 0xae6   :  { %3969 = vmatprep.mubr.f32.mxu0 %v6881_v14  ;;  %v6935_v14 = vld [vmem:[%s9341_s15 + $0x138] sm:$0xff] }
 0xae9   :  { %3970 = vmatmul.mubr.f32.gmra.mrb[184].mxu0 %v6882_v16  ;;  %v6936_v16 = vld [vmem:[%s9341_s15 + $0x130] sm:$0xff] }
 0xaea   :  { %3974 = vmatprep.mubr.f32.mxu0 %v6883_v19  ;;  %v6937_v19 = vld [vmem:[%s9341_s15 + $0x148] sm:$0xff] }
 0xaed   :  { %3975 = vmatmul.mubr.f32.gmra.mrb[186].mxu0 %v6884_v20  ;;  %v6938_v20 = vld [vmem:[%s9341_s15 + $0x140] sm:$0xff] }
 0xaee   :  { %3979 = vmatprep.mubr.f32.mxu0 %v6885_v23  ;;  %v6939_v23 = vld [vmem:[%s9341_s15 + $0x158] sm:$0xff] }
 0xaf1   :  { %3980 = vmatmul.mubr.f32.gmra.mrb[188].mxu0 %v6886_v24 }
 0xaf2   :  { %3984 = vmatprep.mubr.f32.mxu0 %v6887_v30  ;;  %v6940_v30 = vld [vmem:[%s9341_s15 + $0x150] sm:$0xff] }
 0xaf5   :  { %3985 = vmatmul.mubr.f32.gmra.mrb[190].mxu0 %v6888_v34 }
 0xaf6   :  { %3989 = vmatprep.mubr.f32.mxu0 %v6889_v37  ;;  %v5280_v37 = vld [vmem:[%s9344_s18 + $0x40] sm:$0xff] }
 0xaf9   :  { %3990 = vmatmul.mubr.f32.gmra.mrb[192].mxu0 %v6890_v38  ;;  %v5281_v38 = vld [vmem:[%s9344_s18 + $0x48] sm:$0xff] }
 0xafa   :  { %3994 = vmatprep.mubr.f32.mxu0 %v6891_v43  ;;  %v6941_v43 = vld [vmem:[%s9341_s15 + $0x168] sm:$0xff] }
 0xafd   :  { %3995 = vmatmul.mubr.f32.gmra.mrb[194].mxu0 %v6892_v49  ;;  %v4719_v49 = vpack.c.bf16 %v5281_v38, %v5280_v37 }
 0xafe   :  { %3999 = vmatprep.mubr.f32.mxu0 %v6893_v57 }
 0xaff   :  { %6265 = vmatprep.subr.bf16.mxu1 %v4719_v49 }
 0xb01   :  { %4000 = vmatmul.mubr.f32.gmra.mrb[196].mxu0 %v6894_v3  ;;  %v6942_v3 = vld [vmem:[%s9341_s15 + $0x160] sm:$0xff] }
 0xb02   :  { %4004 = vmatprep.mubr.f32.mxu0 %v6895_v42 }
 0xb05   :  { %4005 = vmatmul.mubr.f32.gmra.mrb[198].mxu0 %v6896_v55 }
 0xb06   :  { %4074 = vmatprep.mubr.f32.mxu0 %v6897_v8  ;;  %v6943_v8 = vld [vmem:[%s9341_s15 + $0x178] sm:$0xff] }
 0xb09   :  { %4075 = vmatmul.mubr.f32.vlgmr.msra.gmra.mrb[200].mxu0 %v6898_v18 }
 0xb0a   :  { %4079 = vmatprep.mubr.f32.mxu0 %v6899_v31  ;;  %6194 = vmatpush3.bf16.msra.mxu0 %v8524_v63  ;;  %v6903_v63 = vld [vmem:[%s9341_s15 + $0x38] sm:$0xff]  ;;  %v6944_v31 = vld [vmem:[%s9341_s15 + $0x170] sm:$0xff] }
 0xb0b   :  { %6195 = vmatprep.subr.bf16.mxu0 %v8534_v21 }
 0xb0d   :  { %4080 = vmatmul.mubr.f32.gmra.mrb[202].mxu0 %v6900_v35 }
 0xb0e   :  { %4084 = vmatprep.mubr.f32.mxu0 %v6901_v40  ;;  %6196 = vmatpush3.bf16.msra.mxu0 %v8534_v21  ;;  %v6906_v21 = vld [vmem:[%s9341_s15 + $0x40] sm:$0xff]  ;;  %v6945_v40 = vld [vmem:[%s9341_s15 + $0x188] sm:$0xff] }
 0xb11   :  { %4085 = vmatmul.mubr.f32.gmra.mrb[204].mxu0 %v6902_v46  ;;  %v5282_v46 = vld [vmem:[%s9344_s18 + $0x50] sm:$0xff] }
 0xb12   :  { %4089 = vmatprep.mubr.f32.mxu0 %v6903_v63  ;;  %v5283_v63 = vld [vmem:[%s9344_s18 + $0x58] sm:$0xff] }
 0xb15   :  { %4090 = vmatmul.mubr.f32.gmra.mrb[206].mxu0 %v6904_v50 }
 0xb16   :  { %4094 = vmatprep.mubr.f32.mxu0 %v6905_v60  ;;  %v6946_v60 = vld [vmem:[%s9341_s15 + $0x180] sm:$0xff] }
 0xb19   :  { %4095 = vmatmul.mubr.f32.gmra.mrb[208].mxu0 %v6906_v21 }
 0xb1a   :  { %4099 = vmatprep.mubr.f32.mxu0 %v6907_v56 }
 0xb1d   :  { %4100 = vmatmul.mubr.f32.gmra.mrb[210].mxu0 %v6908_v44  ;;  %v4720_v44 = vpack.c.bf16 %v5283_v63, %v5282_v46 }
 0xb1e   :  { %4104 = vmatprep.mubr.f32.mxu0 %v6909_v52  ;;  %v6947_v52 = vld [vmem:[%s9341_s15 + $0x198] sm:$0xff] }
 0xb21   :  { %4105 = vmatmul.mubr.f32.gmra.mrb[212].mxu0 %v6910_v1 }
 0xb22   :  { %4109 = vmatprep.mubr.f32.mxu0 %v6911_v6  ;;  %v6948_v6 = vld [vmem:[%s9341_s15 + $0x190] sm:$0xff] }
 0xb25   :  { %4110 = vmatmul.mubr.f32.gmra.mrb[214].mxu0 %v6912_v33 }
 0xb26   :  { %4114 = vmatprep.mubr.f32.mxu0 %v6913_v45  ;;  %v6949_v45 = vld [vmem:[%s9341_s15 + $0x1a8] sm:$0xff] }
 0xb29   :  { %4115 = vmatmul.mubr.f32.gmra.mrb[216].mxu0 %v6914_v11 }
 0xb2a   :  { %4119 = vmatprep.mubr.f32.mxu0 %v6915_v28  ;;  %v6950_v28 = vld [vmem:[%s9341_s15 + $0x1a0] sm:$0xff] }
 0xb2d   :  { %4120 = vmatmul.mubr.f32.gmra.mrb[218].mxu0 %v6916_v15 }
 0xb2e   :  { %4124 = vmatprep.mubr.f32.mxu0 %v6917_v26 }
 0xb31   :  { %4125 = vmatmul.mubr.f32.gmra.mrb[220].mxu0 %v6918_v32  ;;  %v6951_v32 = vld [vmem:[%s9341_s15 + $0x1b8] sm:$0xff] }
 0xb32   :  { %4129 = vmatprep.mubr.f32.mxu0 %v6919_v47 }
 0xb35   :  { %4130 = vmatmul.mubr.f32.gmra.mrb[222].mxu0 %v6920_v54  ;;  %v6952_v54 = vld [vmem:[%s9341_s15 + $0x1b0] sm:$0xff] }
 0xb36   :  { %4134 = vmatprep.mubr.f32.mxu0 %v6921_v62 }
 0xb39   :  { %4135 = vmatmul.mubr.f32.gmra.mrb[224].mxu0 %v6922_v4  ;;  %v6953_v4 = vld [vmem:[%s9341_s15 + $0x1c8] sm:$0xff] }
 0xb3a   :  { %4139 = vmatprep.mubr.f32.mxu0 %v6923_v10 }
 0xb3d   :  { %4140 = vmatmul.mubr.f32.gmra.mrb[226].mxu0 %v6924_v39  ;;  %v6954_v39 = vld [vmem:[%s9341_s15 + $0x1c0] sm:$0xff] }
 0xb3e   :  { %4144 = vmatprep.mubr.f32.mxu0 %v6925_v58 }
 0xb41   :  { %4145 = vmatmul.mubr.f32.gmra.mrb[228].mxu0 %v6926_v27 }
 0xb42   :  { %4149 = vmatprep.mubr.f32.mxu0 %v6927_v59  ;;  %v6955_v59 = vld [vmem:[%s9341_s15 + $0x1d8] sm:$0xff] }
 0xb45   :  { %4150 = vmatmul.mubr.f32.gmra.mrb[230].mxu0 %v6928_v7 }
 0xb46   :  { %4154 = vmatprep.mubr.f32.mxu0 %v6929_v13  ;;  %v6956_v13 = vld [vmem:[%s9341_s15 + $0x1d0] sm:$0xff] }
 0xb49   :  { %4155 = vmatmul.mubr.f32.gmra.mrb[232].mxu0 %v6930_v29 }
 0xb4a   :  { %4159 = vmatprep.mubr.f32.mxu0 %v6931_v51  ;;  %v6957_v51 = vld [vmem:[%s9341_s15 + $0x1e8] sm:$0xff] }
 0xb4d   :  { %4160 = vmatmul.mubr.f32.gmra.mrb[234].mxu0 %v6932_v2 }
 0xb4e   :  { %4164 = vmatprep.mubr.f32.mxu0 %v6933_v25  ;;  %v6958_v25 = vld [vmem:[%s9341_s15 + $0x1e0] sm:$0xff] }
 0xb51   :  { %4165 = vmatmul.mubr.f32.gmra.mrb[236].mxu0 %v6934_v17 }
 0xb52   :  { %4169 = vmatprep.mubr.f32.mxu0 %v6935_v14 }
 0xb55   :  { %4170 = vmatmul.mubr.f32.gmra.mrb[238].mxu0 %v6936_v16  ;;  %v6959_v16 = vld [vmem:[%s9341_s15 + $0x1f8] sm:$0xff] }
 0xb56   :  { %4174 = vmatprep.mubr.f32.mxu0 %v6937_v19 }
 0xb59   :  { %4175 = vmatmul.mubr.f32.gmra.mrb[240].mxu0 %v6938_v20  ;;  %v6960_v20 = vld [vmem:[%s9341_s15 + $0x1f0] sm:$0xff] }
 0xb5a   :  { %4179 = vmatprep.mubr.f32.mxu0 %v6939_v23 }
 0xb5c   :  { %v3851_v24 = vpop.f32.mrb[136].mxu0 }
 0xb5d   :  { %4180 = vmatmul.mubr.f32.gmra.mrb[242].mxu0 %v6940_v30  ;;  %v3853_v34 = vpop.f32.mrb[137].mxu0 }
 0xb5e   :  { %4184 = vmatprep.mubr.f32.mxu0 %v6941_v43 }
 0xb60   :  { %v3856_v57 = vpop.f32.mrb[138].mxu0 }
 0xb61   :  { %4185 = vmatmul.mubr.f32.gmra.mrb[244].mxu0 %v6942_v3  ;;  %v4235_v42 = vpack.c.bf16 %v3856_v57, %v3851_v24  ;;  %v3858_v55 = vpop.f32.mrb[139].mxu0 }
 0xb62   :  { %4189 = vmatprep.mubr.f32.mxu0 %v6943_v8 }
 0xb63   :  { %6233 = vmatprep.mubr.msk.bf16.mxu1 %vm132_vm1, %v4235_v42 }
 0xb64   :  { %v3861_v18 = vpop.f32.mrb[140].mxu0 }
 0xb65   :  { %4190 = vmatmul.mubr.f32.gmra.mrb[246].mxu0 %v6944_v31  ;;  %v3863_v35 = vpop.f32.mrb[141].mxu0 }
 0xb66   :  { %4194 = vmatprep.mubr.f32.mxu0 %v6945_v40 }
 0xb68   :  { %v3866_v50 = vpop.f32.mrb[142].mxu0 }
 0xb69   :  { %4195 = vmatmul.mubr.f32.gmra.mrb[248].mxu0 %v6946_v60  ;;  %v4236_v21 = vpack.c.bf16 %v3866_v50, %v3861_v18  ;;  %v3868_v56 = vpop.f32.mrb[143].mxu0 }
 0xb6a   :  { %4199 = vmatprep.mubr.f32.mxu0 %v6947_v52 }
 0xb6b   :  { %6234 = vmatmul.mubr.msk.bf16.vlgmr.msra.gmra.mrb[180].mxu1 %vm132_vm1, %v4236_v21 }
 0xb6c   :  { %v3871_v1 = vpop.f32.mrb[144].mxu0  ;;  %6266 = vmatpush3.bf16.msra.mxu1 %v4719_v49 }
 0xb6d   :  { %4200 = vmatmul.mubr.f32.gmra.mrb[250].mxu0 %v6948_v6  ;;  %v3873_v33 = vpop.f32.mrb[145].mxu0  ;;  %6267 = vmatprep.subr.bf16.mxu1 %v4720_v44 }
 0xb6e   :  { %4204 = vmatprep.mubr.f32.mxu0 %v6949_v45 }
 0xb70   :  { %v3876_v11 = vpop.f32.mrb[146].mxu0  ;;  %6268 = vmatpush3.bf16.msra.mxu1 %v4720_v44 }
 0xb71   :  { %4205 = vmatmul.mubr.f32.gmra.mrb[252].mxu0 %v6950_v28  ;;  %v4237_v15 = vpack.c.bf16 %v3876_v11, %v3871_v1  ;;  %v3878_v26 = vpop.f32.mrb[147].mxu0 }
 0xb72   :  { %4209 = vmatprep.mubr.f32.mxu0 %v6951_v32 }
 0xb73   :  { %6237 = vmatprep.mubr.msk.bf16.mxu1 %vm132_vm1, %v4237_v15 }
 0xb74   :  { %v3881_v47 = vpop.f32.mrb[148].mxu0 }
 0xb75   :  { %4210 = vmatmul.mubr.f32.gmra.mrb[254].mxu0 %v6952_v54  ;;  %v3883_v62 = vpop.f32.mrb[149].mxu0 }
 0xb76   :  { %4214 = vmatprep.mubr.f32.mxu0 %v6953_v4 }
 0xb78   :  { %v3886_v10 = vpop.f32.mrb[150].mxu0 }
 0xb79   :  { %4215 = vmatmul.mubr.f32.gmra.mrb[0].mxu0 %v6954_v39  ;;  %v4238_v58 = vpack.c.bf16 %v3886_v10, %v3881_v47  ;;  %v3888_v27 = vpop.f32.mrb[151].mxu0 }
 0xb7a   :  { %4219 = vmatprep.mubr.f32.mxu0 %v6955_v59 }
 0xb7b   :  { %6238 = vmatmul.mubr.msk.bf16.gmra.mrb[184].mxu1 %vm132_vm1, %v4238_v58 }
 0xb7c   :  { %v3891_v7 = vpop.f32.mrb[152].mxu0 }
 0xb7d   :  { %4220 = vmatmul.mubr.f32.gmra.mrb[2].mxu0 %v6956_v13  ;;  %v3893_v29 = vpop.f32.mrb[153].mxu0 }
 0xb7e   :  { %4224 = vmatprep.mubr.f32.mxu0 %v6957_v51 }
 0xb80   :  { %v3896_v2 = vpop.f32.mrb[154].mxu0 }
 0xb81   :  { %4225 = vmatmul.mubr.f32.gmra.mrb[4].mxu0 %v6958_v25  ;;  %v4239_v17 = vpack.c.bf16 %v3896_v2, %v3891_v7  ;;  %v3898_v14 = vpop.f32.mrb[155].mxu0 }
 0xb82   :  { %4229 = vmatprep.mubr.f32.mxu0 %v6959_v16 }
 0xb83   :  { %6241 = vmatprep.mubr.msk.bf16.mxu1 %vm132_vm1, %v4239_v17 }
 0xb84   :  { %v3901_v19 = vpop.f32.mrb[156].mxu0 }
 0xb85   :  { %4230 = vmatmul.mubr.f32.gmra.mrb[6].mxu0 %v6960_v20  ;;  %v3903_v23 = vpop.f32.mrb[157].mxu0 }
 0xb86   :  { %6197 = vmatprep.mubr.msk.bf16.mxu0 %vm132_vm1, %v8546_v41 }
 0xb88   :  { %v3906_v24 = vpop.f32.mrb[158].mxu0 }
 0xb89   :  { %6198 = vmatmul.mubr.msk.bf16.vlgmr.msra.gmra.mrb[8].mxu0 %vm132_vm1, %v8544_v22  ;;  %v4240_v30 = vpack.c.bf16 %v3906_v24, %v3901_v19  ;;  %v3908_v34 = vpop.f32.mrb[159].mxu0 }
 0xb8a   :  { %6201 = vmatprep.mubr.msk.bf16.mxu0 %vm132_vm1, %v8558_v5 }
 0xb8b   :  { %6242 = vmatmul.mubr.msk.bf16.gmra.mrb[188].mxu1 %vm132_vm1, %v4240_v30 }
 0xb8c   :  { %v3911_v37 = vpop.f32.mrb[160].mxu0 }
 0xb8d   :  { %v3913_v38 = vpop.f32.mrb[161].mxu0 }
 0xb90   :  { %v3916_v43 = vpop.f32.mrb[162].mxu0 }
 0xb91   :  { %6202 = vmatmul.mubr.msk.bf16.gmra.mrb[12].mxu0 %vm132_vm1, %v8555_v48  ;;  %v4241_v49 = vpack.c.bf16 %v3916_v43, %v3911_v37  ;;  %v3918_v57 = vpop.f32.mrb[163].mxu0 }
 0xb92   :  { %6205 = vmatprep.mubr.msk.bf16.mxu0 %vm132_vm1, %v8570_v0 }
 0xb93   :  { %6245 = vmatprep.mubr.msk.bf16.mxu1 %vm132_vm1, %v4241_v49 }
 0xb94   :  { %v3921_v22 = vpop.f32.mrb[164].mxu0 }
 0xb95   :  { %v3923_v41 = vpop.f32.mrb[165].mxu0 }
 0xb98   :  { %v3926_v3 = vpop.f32.mrb[166].mxu0 }
 0xb99   :  { %6206 = vmatmul.mubr.msk.bf16.gmra.mrb[16].mxu0 %vm132_vm1, %v8567_v53  ;;  %v4242_v5 = vpack.c.bf16 %v3926_v3, %v3921_v22  ;;  %v3928_v42 = vpop.f32.mrb[167].mxu0 }
 0xb9a   :  { %6209 = vmatprep.mubr.msk.bf16.mxu0 %vm132_vm1, %v8582_v61 }
 0xb9b   :  { %6246 = vmatmul.mubr.msk.bf16.gmra.mrb[192].mxu1 %vm132_vm1, %v4242_v5 }
 0xb9c   :  { %v3931_v48 = vpop.f32.mrb[168].mxu0 }
 0xb9d   :  { %v3933_v55 = vpop.f32.mrb[169].mxu0 }
 0xba0   :  { %v3936_v8 = vpop.f32.mrb[170].mxu0 }
 0xba1   :  { %6210 = vmatmul.mubr.msk.bf16.gmra.mrb[20].mxu0 %vm132_vm1, %v8579_v12  ;;  %v4243_v0 = vpack.c.bf16 %v3936_v8, %v3931_v48  ;;  %v3938_v18 = vpop.f32.mrb[171].mxu0 }
 0xba2   :  { %6213 = vmatprep.mubr.msk.bf16.mxu0 %vm132_vm1, %v8594_v36 }
 0xba3   :  { %6249 = vmatprep.mubr.msk.bf16.mxu1 %vm132_vm1, %v4243_v0 }
 0xba4   :  { %v3941_v53 = vpop.f32.mrb[172].mxu0 }
 0xba5   :  { %v3943_v31 = vpop.f32.mrb[173].mxu0 }
 0xba8   :  { %v3946_v35 = vpop.f32.mrb[174].mxu0 }
 0xba9   :  { %6214 = vmatmul.mubr.msk.bf16.gmra.mrb[24].mxu0 %vm132_vm1, %v8591_v9  ;;  %v4244_v61 = vpack.c.bf16 %v3946_v35, %v3941_v53  ;;  %v3948_v40 = vpop.f32.mrb[175].mxu0 }
 0xbab   :  { %6250 = vmatmul.mubr.msk.bf16.gmra.mrb[196].mxu1 %vm132_vm1, %v4244_v61 }
 0xbac   :  { %v3951_v46 = vpop.f32.mrb[176].mxu0 }
 0xbad   :  { %v3953_v63 = vpop.f32.mrb[177].mxu0 }
 0xbb0   :  { %v3956_v12 = vpop.f32.mrb[178].mxu0 }
 0xbb1   :  { %v4245_v50 = vpack.c.bf16 %v3956_v12, %v3951_v46  ;;  %v3958_v60 = vpop.f32.mrb[179].mxu0 }
 0xbb3   :  { %6253 = vmatprep.mubr.msk.bf16.mxu1 %vm132_vm1, %v4245_v50 }
 0xbb4   :  { %v3961_v36 = vpop.f32.mrb[180].mxu0 }
 0xbb5   :  { %v3963_v21 = vpop.f32.mrb[181].mxu0 }
 0xbb8   :  { %v3966_v56 = vpop.f32.mrb[182].mxu0 }
 0xbb9   :  { %v4246_v44 = vpack.c.bf16 %v3966_v56, %v3961_v36  ;;  %v3968_v52 = vpop.f32.mrb[183].mxu0 }
 0xbbb   :  { %6254 = vmatmul.mubr.msk.bf16.gmra.mrb[168].mxu1 %vm132_vm1, %v4246_v44 }
 0xbbc   :  { %v3971_v1 = vpop.f32.mrb[184].mxu0 }
 0xbbd   :  { %v3973_v9 = vpop.f32.mrb[185].mxu0 }
 0xbc0   :  { %v3976_v6 = vpop.f32.mrb[186].mxu0 }
 0xbc1   :  { %v4247_v33 = vpack.c.bf16 %v3976_v6, %v3971_v1  ;;  %v3978_v45 = vpop.f32.mrb[187].mxu0 }
 0xbc3   :  { %6257 = vmatprep.mubr.msk.bf16.mxu1 %vm132_vm1, %v4247_v33 }
 0xbc4   :  { %v3981_v11 = vpop.f32.mrb[188].mxu0 }
 0xbc5   :  { %v3983_v28 = vpop.f32.mrb[189].mxu0 }
 0xbc8   :  { %v3986_v15 = vpop.f32.mrb[190].mxu0 }
 0xbc9   :  { %v4248_v26 = vpack.c.bf16 %v3986_v15, %v3981_v11  ;;  %v3988_v32 = vpop.f32.mrb[191].mxu0 }
 0xbcb   :  { %6258 = vmatmul.mubr.msk.bf16.gmra.mrb[172].mxu1 %vm132_vm1, %v4248_v26 }
 0xbcc   :  { %v3991_v47 = vpop.f32.mrb[192].mxu0 }
 0xbcd   :  { %v3993_v54 = vpop.f32.mrb[193].mxu0 }
 0xbd0   :  { %v3996_v62 = vpop.f32.mrb[194].mxu0 }
 0xbd1   :  { %v4249_v4 = vpack.c.bf16 %v3996_v62, %v3991_v47  ;;  %v3998_v10 = vpop.f32.mrb[195].mxu0 }
 0xbd3   :  { %6261 = vmatprep.mubr.msk.bf16.mxu1 %vm132_vm1, %v4249_v4 }
 0xbd4   :  { %v4001_v39 = vpop.f32.mrb[196].mxu0 }
 0xbd5   :  { %v4003_v58 = vpop.f32.mrb[197].mxu0 }
 0xbd8   :  { %v4006_v27 = vpop.f32.mrb[198].mxu0 }
 0xbd9   :  { %v4250_v59 = vpack.c.bf16 %v4006_v27, %v4001_v39  ;;  %v4008_v7 = vpop.f32.mrb[199].mxu0 }
 0xbdb   :  { %6262 = vmatmul.mubr.msk.bf16.gmra.mrb[176].mxu1 %vm132_vm1, %v4250_v59 }
 0xbdc   :  { %v4076_v13 = vpop.f32.mrb[200].mxu0 }
 0xbdd   :  { %v4078_v29 = vpop.f32.mrb[201].mxu0 }
 0xbe0   :  { %v4081_v51 = vpop.f32.mrb[202].mxu0 }
 0xbe1   :  { %v4698_v2 = vpack.c.bf16 %v4081_v51, %v4076_v13  ;;  %v4083_v25 = vpop.f32.mrb[203].mxu0 }
 0xbe3   :  { %6269 = vmatprep.mubr.msk.bf16.mxu1 %vm132_vm1, %v4698_v2 }
 0xbe4   :  { %v4086_v17 = vpop.f32.mrb[204].mxu0 }
 0xbe5   :  { %v4088_v14 = vpop.f32.mrb[205].mxu0 }
 0xbe8   :  { %v4091_v16 = vpop.f32.mrb[206].mxu0 }
 0xbe9   :  { %v4699_v19 = vpack.c.bf16 %v4091_v16, %v4086_v17  ;;  %v4093_v20 = vpop.f32.mrb[207].mxu0 }
 0xbeb   :  { %6270 = vmatmul.mubr.msk.bf16.vlgmr.msra.gmra.mrb[180].mxu1 %vm132_vm1, %v4699_v19 }
 0xbec   :  { %v4096_v23 = vpop.f32.mrb[208].mxu0 }
 0xbed   :  { %v4098_v24 = vpop.f32.mrb[209].mxu0 }
 0xbf0   :  { %v4101_v30 = vpop.f32.mrb[210].mxu0 }
 0xbf1   :  { %v4700_v34 = vpack.c.bf16 %v4101_v30, %v4096_v23  ;;  %v4103_v37 = vpop.f32.mrb[211].mxu0 }
 0xbf3   :  { %6273 = vmatprep.mubr.msk.bf16.mxu1 %vm132_vm1, %v4700_v34 }
 0xbf4   :  { %v4106_v38 = vpop.f32.mrb[212].mxu0 }
 0xbf5   :  { %v4108_v43 = vpop.f32.mrb[213].mxu0 }
 0xbf8   :  { %v4111_v49 = vpop.f32.mrb[214].mxu0 }
 0xbf9   :  { %v4701_v57 = vpack.c.bf16 %v4111_v49, %v4106_v38  ;;  %v4113_v22 = vpop.f32.mrb[215].mxu0 }
 0xbfb   :  { %6274 = vmatmul.mubr.msk.bf16.gmra.mrb[184].mxu1 %vm132_vm1, %v4701_v57 }
 0xbfc   :  { %v4116_v41 = vpop.f32.mrb[216].mxu0 }
 0xbfd   :  { %v4118_v3 = vpop.f32.mrb[217].mxu0 }
 0xc00   :  { %v4121_v5 = vpop.f32.mrb[218].mxu0 }
 0xc01   :  { %v4702_v42 = vpack.c.bf16 %v4121_v5, %v4116_v41  ;;  %v4123_v48 = vpop.f32.mrb[219].mxu0 }
 0xc03   :  { %6277 = vmatprep.mubr.msk.bf16.mxu1 %vm132_vm1, %v4702_v42 }
 0xc04   :  { %v4126_v55 = vpop.f32.mrb[220].mxu0 }
 0xc05   :  { %v4128_v8 = vpop.f32.mrb[221].mxu0 }
 0xc08   :  { %v4131_v0 = vpop.f32.mrb[222].mxu0 }
 0xc09   :  { %v4703_v18 = vpack.c.bf16 %v4131_v0, %v4126_v55  ;;  %v4133_v53 = vpop.f32.mrb[223].mxu0 }
 0xc0b   :  { %6278 = vmatmul.mubr.msk.bf16.gmra.mrb[188].mxu1 %vm132_vm1, %v4703_v18 }
 0xc0c   :  { %v4136_v31 = vpop.f32.mrb[224].mxu0 }
 0xc0d   :  { %v4138_v35 = vpop.f32.mrb[225].mxu0 }
 0xc10   :  { %v4141_v61 = vpop.f32.mrb[226].mxu0 }
 0xc11   :  { %v4704_v40 = vpack.c.bf16 %v4141_v61, %v4136_v31  ;;  %v4143_v46 = vpop.f32.mrb[227].mxu0 }
 0xc13   :  { %6281 = vmatprep.mubr.msk.bf16.mxu1 %vm132_vm1, %v4704_v40 }
 0xc14   :  { %v4146_v63 = vpop.f32.mrb[228].mxu0 }
 0xc15   :  { %v4148_v12 = vpop.f32.mrb[229].mxu0 }
 0xc18   :  { %v4151_v50 = vpop.f32.mrb[230].mxu0 }
 0xc19   :  { %v4705_v60 = vpack.c.bf16 %v4151_v50, %v4146_v63  ;;  %v4153_v36 = vpop.f32.mrb[231].mxu0  ;;  %v9156_v50 = vld [vmem:[#allocation2] ss:$0 sm:$0xff] }
 0xc1b   :  { %6282 = vmatmul.mubr.msk.bf16.gmra.mrb[192].mxu1 %vm132_vm1, %v4705_v60 }
 0xc1c   :  { %v4156_v21 = vpop.f32.mrb[232].mxu0 }
 0xc1d   :  { %v4158_v56 = vpop.f32.mrb[233].mxu0 }
 0xc20   :  { %v4161_v44 = vpop.f32.mrb[234].mxu0 }
 0xc21   :  { %v4706_v52 = vpack.c.bf16 %v4161_v44, %v4156_v21  ;;  %v4163_v1 = vpop.f32.mrb[235].mxu0 }
 0xc23   :  { %6285 = vmatprep.mubr.msk.bf16.mxu1 %vm132_vm1, %v4706_v52 }
 0xc24   :  { %v4166_v9 = vpop.f32.mrb[236].mxu0 }
 0xc25   :  { %v4168_v6 = vpop.f32.mrb[237].mxu0 }
 0xc28   :  { %v4171_v33 = vpop.f32.mrb[238].mxu0 }
 0xc29   :  { %v4707_v45 = vpack.c.bf16 %v4171_v33, %v4166_v9  ;;  %v4173_v11 = vpop.f32.mrb[239].mxu0 }
 0xc2b   :  { %6286 = vmatmul.mubr.msk.bf16.gmra.mrb[196].mxu1 %vm132_vm1, %v4707_v45 }
 0xc2c   :  { %v4176_v28 = vpop.f32.mrb[240].mxu0 }
 0xc2d   :  { %v4178_v15 = vpop.f32.mrb[241].mxu0 }
 0xc30   :  { %v4181_v26 = vpop.f32.mrb[242].mxu0 }
 0xc31   :  { %v4708_v32 = vpack.c.bf16 %v4181_v26, %v4176_v28  ;;  %v4183_v47 = vpop.f32.mrb[243].mxu0 }
 0xc33   :  { %6289 = vmatprep.mubr.msk.bf16.mxu1 %vm132_vm1, %v4708_v32 }
 0xc34   :  { %v4186_v54 = vpop.f32.mrb[244].mxu0 }
 0xc35   :  { %v4188_v62 = vpop.f32.mrb[245].mxu0 }
 0xc38   :  { %v4191_v4 = vpop.f32.mrb[246].mxu0 }
 0xc39   :  { %v4709_v10 = vpack.c.bf16 %v4191_v4, %v4186_v54  ;;  %v4193_v39 = vpop.f32.mrb[247].mxu0 }
 0xc3b   :  { %6290 = vmatmul.mubr.msk.bf16.gmra.mrb[168].mxu1 %vm132_vm1, %v4709_v10 }
 0xc3c   :  { %v4196_v58 = vpop.f32.mrb[248].mxu0 }
 0xc3d   :  { %v4198_v27 = vpop.f32.mrb[249].mxu0 }
 0xc40   :  { %v4201_v59 = vpop.f32.mrb[250].mxu0 }
 0xc41   :  { %v4710_v7 = vpack.c.bf16 %v4201_v59, %v4196_v58  ;;  %v4203_v13 = vpop.f32.mrb[251].mxu0 }
 0xc43   :  { %6293 = vmatprep.mubr.msk.bf16.mxu1 %vm132_vm1, %v4710_v7 }
 0xc44   :  { %v4206_v29 = vpop.f32.mrb[252].mxu0 }
 0xc45   :  { %v4208_v51 = vpop.f32.mrb[253].mxu0 }
 0xc48   :  { %v4211_v2 = vpop.f32.mrb[254].mxu0 }
 0xc49   :  { %v4711_v25 = vpack.c.bf16 %v4211_v2, %v4206_v29  ;;  %v4213_v17 = vpop.f32.mrb[255].mxu0 }
 0xc4b   :  { %6294 = vmatmul.mubr.msk.bf16.gmra.mrb[172].mxu1 %vm132_vm1, %v4711_v25 }
 0xc4c   :  { %v4216_v14 = vpop.f32.mrb[0].mxu0 }
 0xc4d   :  { %v4218_v16 = vpop.f32.mrb[1].mxu0 }
 0xc50   :  { %v4221_v19 = vpop.f32.mrb[2].mxu0 }
 0xc51   :  { %v4712_v20 = vpack.c.bf16 %v4221_v19, %v4216_v14  ;;  %v4223_v23 = vpop.f32.mrb[3].mxu0 }
 0xc53   :  { %6297 = vmatprep.mubr.msk.bf16.mxu1 %vm132_vm1, %v4712_v20 }
 0xc54   :  { %v4226_v24 = vpop.f32.mrb[4].mxu0 }
 0xc55   :  { %v4228_v30 = vpop.f32.mrb[5].mxu0 }
 0xc58   :  { %v4231_v34 = vpop.f32.mrb[6].mxu0 }
 0xc59   :  { %v4713_v37 = vpack.c.bf16 %v4231_v34, %v4226_v24  ;;  %v4233_v38 = vpop.f32.mrb[7].mxu0 }
 0xc5b   :  { %6298 = vmatmul.mubr.msk.bf16.gmra.mrb[176].mxu1 %vm132_vm1, %v4713_v37  ;;  %vm5033_vm1 = vcmask 7168  }
 0xc5c   :  { %v6199_v43 = vpop.f32.mrb[8].mxu0 }
 0xc5d   :  { %v4362_v49 = vpop.f32.mrb[9].mxu0 }
 0xc5e   :  { %v6200_v57 = vpop.f32.mrb[10].mxu0 }
 0xc5f   :  { %v4365_v22 = vpop.f32.mrb[11].mxu0 }
 0xc64   :  { %v6203_v41 = vpop.f32.mrb[12].mxu0 }
 0xc65   :  { %v4378_v3 = vpop.f32.mrb[13].mxu0 }
 0xc66   :  { %v6204_v5 = vpop.f32.mrb[14].mxu0 }
 0xc67   :  { %v4381_v42 = vpop.f32.mrb[15].mxu0 }
 0xc6c   :  { %v6207_v48 = vpop.f32.mrb[16].mxu0 }
 0xc6d   :  { %v4394_v55 = vpop.f32.mrb[17].mxu0 }
 0xc6e   :  { %v6208_v8 = vpop.f32.mrb[18].mxu0 }
 0xc6f   :  { %v4397_v0 = vpop.f32.mrb[19].mxu0 }
 0xc74   :  { %v9140_v18 = vpop.f32.mrb[20].mxu0 }
 0xc75   :  { %v9142_v53 = vpop.f32.mrb[21].mxu0 }
 0xc76   :  { %v9144_v31 = vpop.f32.mrb[22].mxu0 }
 0xc77   :  { %v9146_v35 = vpop.f32.mrb[23].mxu0 }
 0xc7c   :  { %v9148_v61 = vpop.f32.mrb[24].mxu0 }
 0xc7d   :  { %v9150_v40 = vpop.f32.mrb[25].mxu0 }
 0xc7e   :  { %v9152_v46 = vpop.f32.mrb[26].mxu0 }
 0xc7f   :  { %v9154_v63 = vpop.f32.mrb[27].mxu0 }
 0xcbe   :  { %v6271_v12 = vpop.f32.mrb[180].mxu1 }
 0xcbf   :  { %v6649_v60 = vadd.f32 %v6271_v12, %v6199_v43  ;;  %v4803_v36 = vpop.f32.mrb[181].mxu1 }
 0xcc0   :  { %v6650_v21 = vadd.f32 %v4803_v36, %v4362_v49  ;;  %v6272_v56 = vpop.f32.mrb[182].mxu1 }
 0xcc1   :  { %v4971_v44 = vadd.f32 %v6649_v60, %v9156_v50  ;;  %v6651_v52 = vadd.f32 %v6272_v56, %v6200_v57  ;;  %v4806_v1 = vpop.f32.mrb[183].mxu1 }
 0xcc2   :  { %v4969_v9 = vadd.f32 %v6650_v21, %v9156_v50  ;;  %v6652_v6 = vadd.f32 %v4806_v1, %v4365_v22 }
 0xcc3   :  { %v5003_v33 = vmul.f32 %v4971_v44, %v4971_v44  ;;  %v4972_v45 = vadd.f32 %v6651_v52, %v9156_v50 }
 0xcc4   :  { %v5001_v11 = vmul.f32 %v4969_v9, %v4969_v9  ;;  %v4970_v28 = vadd.f32 %v6652_v6, %v9156_v50 }
 0xcc5   :  { %5036 = vst.msk [vmem:[%s9346_s20 + $0x10] sm:$0xff] %vm5033_vm1, %v5003_v33  ;;  %v5004_v15 = vmul.f32 %v4972_v45, %v4972_v45 }
 0xcc6   :  { %5034 = vst.msk [vmem:[%s9346_s20] sm:$0xff] %vm5033_vm1, %v5001_v11  ;;  %v5002_v26 = vmul.f32 %v4970_v28, %v4970_v28 }
 0xcc7   :  { %5037 = vst.msk [vmem:[%s9346_s20 + $0x18] sm:$0xff] %vm5033_vm1, %v5004_v15 }
 0xcc8   :  { %5035 = vst.msk [vmem:[%s9346_s20 + $0x8] sm:$0xff] %vm5033_vm1, %v5002_v26 }
 0xcce   :  { %v6275_v32 = vpop.f32.mrb[184].mxu1 }
 0xccf   :  { %v6653_v47 = vadd.f32 %v6275_v32, %v6203_v41  ;;  %v4819_v54 = vpop.f32.mrb[185].mxu1 }
 0xcd0   :  { %v6654_v62 = vadd.f32 %v4819_v54, %v4378_v3  ;;  %v6276_v4 = vpop.f32.mrb[186].mxu1 }
 0xcd1   :  { %v4975_v10 = vadd.f32 %v6653_v47, %v9156_v50  ;;  %v6655_v39 = vadd.f32 %v6276_v4, %v6204_v5  ;;  %v4822_v58 = vpop.f32.mrb[187].mxu1 }
 0xcd2   :  { %v4973_v27 = vadd.f32 %v6654_v62, %v9156_v50  ;;  %v6656_v59 = vadd.f32 %v4822_v58, %v4381_v42 }
 0xcd3   :  { %v5007_v7 = vmul.f32 %v4975_v10, %v4975_v10  ;;  %v4976_v13 = vadd.f32 %v6655_v39, %v9156_v50 }
 0xcd4   :  { %v5005_v29 = vmul.f32 %v4973_v27, %v4973_v27  ;;  %v4974_v51 = vadd.f32 %v6656_v59, %v9156_v50 }
 0xcd5   :  { %5040 = vst.msk [vmem:[%s9346_s20 + $0x30] sm:$0xff] %vm5033_vm1, %v5007_v7  ;;  %v5008_v2 = vmul.f32 %v4976_v13, %v4976_v13 }
 0xcd6   :  { %5038 = vst.msk [vmem:[%s9346_s20 + $0x20] sm:$0xff] %vm5033_vm1, %v5005_v29  ;;  %v5006_v25 = vmul.f32 %v4974_v51, %v4974_v51 }
 0xcd7   :  { %5041 = vst.msk [vmem:[%s9346_s20 + $0x38] sm:$0xff] %vm5033_vm1, %v5008_v2 }
 0xcd8   :  { %5039 = vst.msk [vmem:[%s9346_s20 + $0x28] sm:$0xff] %vm5033_vm1, %v5006_v25 }
 0xcde   :  { %v6279_v17 = vpop.f32.mrb[188].mxu1 }
 0xcdf   :  { %v6657_v14 = vadd.f32 %v6279_v17, %v6207_v48  ;;  %v4835_v16 = vpop.f32.mrb[189].mxu1 }
 0xce0   :  { %v6658_v19 = vadd.f32 %v4835_v16, %v4394_v55  ;;  %v6280_v20 = vpop.f32.mrb[190].mxu1 }
 0xce1   :  { %v4979_v23 = vadd.f32 %v6657_v14, %v9156_v50  ;;  %v6659_v24 = vadd.f32 %v6280_v20, %v6208_v8  ;;  %v4838_v30 = vpop.f32.mrb[191].mxu1 }
 0xce2   :  { %v4977_v34 = vadd.f32 %v6658_v19, %v9156_v50  ;;  %v6660_v37 = vadd.f32 %v4838_v30, %v4397_v0 }
 0xce3   :  { %v5011_v38 = vmul.f32 %v4979_v23, %v4979_v23  ;;  %v4980_v43 = vadd.f32 %v6659_v24, %v9156_v50 }
 0xce4   :  { %v5009_v49 = vmul.f32 %v4977_v34, %v4977_v34  ;;  %v4978_v57 = vadd.f32 %v6660_v37, %v9156_v50 }
 0xce5   :  { %5044 = vst.msk [vmem:[%s9346_s20 + $0x50] sm:$0xff] %vm5033_vm1, %v5011_v38  ;;  %v5012_v22 = vmul.f32 %v4980_v43, %v4980_v43 }
 0xce6   :  { %5042 = vst.msk [vmem:[%s9346_s20 + $0x40] sm:$0xff] %vm5033_vm1, %v5009_v49  ;;  %v5010_v41 = vmul.f32 %v4978_v57, %v4978_v57 }
 0xce7   :  { %5045 = vst.msk [vmem:[%s9346_s20 + $0x58] sm:$0xff] %vm5033_vm1, %v5012_v22 }
 0xce8   :  { %5043 = vst.msk [vmem:[%s9346_s20 + $0x48] sm:$0xff] %vm5033_vm1, %v5010_v41 }
 0xcee   :  { %v6283_v3 = vpop.f32.mrb[192].mxu1 }
 0xcef   :  { %v6661_v5 = vadd.f32 %v6283_v3, %v9140_v18  ;;  %v4851_v42 = vpop.f32.mrb[193].mxu1 }
 0xcf0   :  { %v6662_v48 = vadd.f32 %v4851_v42, %v9142_v53  ;;  %v6284_v55 = vpop.f32.mrb[194].mxu1 }
 0xcf1   :  { %v4983_v8 = vadd.f32 %v6661_v5, %v9156_v50  ;;  %v6663_v0 = vadd.f32 %v6284_v55, %v9144_v31  ;;  %v4854_v12 = vpop.f32.mrb[195].mxu1 }
 0xcf2   :  { %v4981_v60 = vadd.f32 %v6662_v48, %v9156_v50  ;;  %v6664_v36 = vadd.f32 %v4854_v12, %v9146_v35 }
 0xcf3   :  { %v5015_v21 = vmul.f32 %v4983_v8, %v4983_v8  ;;  %v4984_v56 = vadd.f32 %v6663_v0, %v9156_v50 }
 0xcf4   :  { %v5013_v44 = vmul.f32 %v4981_v60, %v4981_v60  ;;  %v4982_v52 = vadd.f32 %v6664_v36, %v9156_v50 }
 0xcf5   :  { %5048 = vst.msk [vmem:[%s9346_s20 + $0x70] sm:$0xff] %vm5033_vm1, %v5015_v21  ;;  %v5016_v18 = vmul.f32 %v4984_v56, %v4984_v56 }
 0xcf6   :  { %5046 = vst.msk [vmem:[%s9346_s20 + $0x60] sm:$0xff] %vm5033_vm1, %v5013_v44  ;;  %v5014_v53 = vmul.f32 %v4982_v52, %v4982_v52 }
 0xcf7   :  { %5049 = vst.msk [vmem:[%s9346_s20 + $0x78] sm:$0xff] %vm5033_vm1, %v5016_v18 }
 0xcf8   :  { %5047 = vst.msk [vmem:[%s9346_s20 + $0x68] sm:$0xff] %vm5033_vm1, %v5014_v53 }
 0xcfe   :  { %v6287_v31 = vpop.f32.mrb[196].mxu1 }
 0xcff   :  { %v6665_v35 = vadd.f32 %v6287_v31, %v9148_v61  ;;  %v4867_v1 = vpop.f32.mrb[197].mxu1 }
 0xd00   :  { %v6666_v9 = vadd.f32 %v4867_v1, %v9150_v40  ;;  %v6288_v6 = vpop.f32.mrb[198].mxu1 }
 0xd01   :  { %v4987_v33 = vadd.f32 %v6665_v35, %v9156_v50  ;;  %v6667_v45 = vadd.f32 %v6288_v6, %v9152_v46  ;;  %v4870_v11 = vpop.f32.mrb[199].mxu1 }
 0xd02   :  { %v4985_v28 = vadd.f32 %v6666_v9, %v9156_v50  ;;  %v6668_v15 = vadd.f32 %v4870_v11, %v9154_v63 }
 0xd03   :  { %v5019_v26 = vmul.f32 %v4987_v33, %v4987_v33  ;;  %v4988_v32 = vadd.f32 %v6667_v45, %v9156_v50 }
 0xd04   :  { %v5017_v47 = vmul.f32 %v4985_v28, %v4985_v28  ;;  %v4986_v54 = vadd.f32 %v6668_v15, %v9156_v50 }
 0xd05   :  { %5052 = vst.msk [vmem:[%s9346_s20 + $0x90] sm:$0xff] %vm5033_vm1, %v5019_v26  ;;  %v5020_v61 = vmul.f32 %v4988_v32, %v4988_v32 }
 0xd06   :  { %5050 = vst.msk [vmem:[%s9346_s20 + $0x80] sm:$0xff] %vm5033_vm1, %v5017_v47  ;;  %v5018_v40 = vmul.f32 %v4986_v54, %v4986_v54 }
 0xd07   :  { %5053 = vst.msk [vmem:[%s9346_s20 + $0x98] sm:$0xff] %vm5033_vm1, %v5020_v61 }
 0xd08   :  { %5051 = vst.msk [vmem:[%s9346_s20 + $0x88] sm:$0xff] %vm5033_vm1, %v5018_v40 }
 0xd0e   :  { %v6291_v46 = vpop.f32.mrb[168].mxu1 }
 0xd0f   :  { %v4991_v63 = vadd.f32 %v6291_v46, %v9156_v50  ;;  %v4883_v62 = vpop.f32.mrb[169].mxu1 }
 0xd10   :  { %v4989_v4 = vadd.f32 %v9156_v50, %v4883_v62  ;;  %v6292_v10 = vpop.f32.mrb[170].mxu1 }
 0xd11   :  { %v5023_v39 = vmul.f32 %v4991_v63, %v4991_v63  ;;  %v4992_v58 = vadd.f32 %v6292_v10, %v9156_v50  ;;  %v4886_v27 = vpop.f32.mrb[171].mxu1 }
 0xd12   :  { %v5021_v59 = vmul.f32 %v4989_v4, %v4989_v4  ;;  %v4990_v7 = vadd.f32 %v9156_v50, %v4886_v27 }
 0xd13   :  { %5056 = vst.msk [vmem:[%s9346_s20 + $0xb0] sm:$0xff] %vm5033_vm1, %v5023_v39  ;;  %v5024_v13 = vmul.f32 %v4992_v58, %v4992_v58 }
 0xd14   :  { %5054 = vst.msk [vmem:[%s9346_s20 + $0xa0] sm:$0xff] %vm5033_vm1, %v5021_v59  ;;  %v5022_v29 = vmul.f32 %v4990_v7, %v4990_v7 }
 0xd15   :  { %5057 = vst.msk [vmem:[%s9346_s20 + $0xb8] sm:$0xff] %vm5033_vm1, %v5024_v13 }
 0xd16   :  { %5055 = vst.msk [vmem:[%s9346_s20 + $0xa8] sm:$0xff] %vm5033_vm1, %v5022_v29 }
 0xd1e   :  { %v6295_v51 = vpop.f32.mrb[172].mxu1 }
 0xd1f   :  { %v4995_v2 = vadd.f32 %v6295_v51, %v9156_v50  ;;  %v4899_v25 = vpop.f32.mrb[173].mxu1 }
 0xd20   :  { %v4993_v17 = vadd.f32 %v9156_v50, %v4899_v25  ;;  %v6296_v14 = vpop.f32.mrb[174].mxu1 }
 0xd21   :  { %v5027_v16 = vmul.f32 %v4995_v2, %v4995_v2  ;;  %v4996_v19 = vadd.f32 %v6296_v14, %v9156_v50  ;;  %v4902_v20 = vpop.f32.mrb[175].mxu1 }
 0xd22   :  { %v5025_v23 = vmul.f32 %v4993_v17, %v4993_v17  ;;  %v4994_v24 = vadd.f32 %v9156_v50, %v4902_v20 }
 0xd23   :  { %5060 = vst.msk [vmem:[%s9346_s20 + $0xd0] sm:$0xff] %vm5033_vm1, %v5027_v16  ;;  %v5028_v30 = vmul.f32 %v4996_v19, %v4996_v19 }
 0xd24   :  { %5058 = vst.msk [vmem:[%s9346_s20 + $0xc0] sm:$0xff] %vm5033_vm1, %v5025_v23  ;;  %v5026_v34 = vmul.f32 %v4994_v24, %v4994_v24 }
 0xd25   :  { %5061 = vst.msk [vmem:[%s9346_s20 + $0xd8] sm:$0xff] %vm5033_vm1, %v5028_v30 }
 0xd26   :  { %5059 = vst.msk [vmem:[%s9346_s20 + $0xc8] sm:$0xff] %vm5033_vm1, %v5026_v34 }
 0xd2e   :  { %v6299_v37 = vpop.f32.mrb[176].mxu1 }
 0xd2f   :  { %v4999_v38 = vadd.f32 %v6299_v37, %v9156_v50  ;;  %v4915_v43 = vpop.f32.mrb[177].mxu1 }
 0xd30   :  { %v4997_v49 = vadd.f32 %v9156_v50, %v4915_v43  ;;  %v6300_v57 = vpop.f32.mrb[178].mxu1 }
 0xd31   :  { %v5031_v22 = vmul.f32 %v4999_v38, %v4999_v38  ;;  %v5000_v41 = vadd.f32 %v6300_v57, %v9156_v50  ;;  %v4918_v3 = vpop.f32.mrb[179].mxu1 }
 0xd32   :  { %v5029_v5 = vmul.f32 %v4997_v49, %v4997_v49  ;;  %v4998_v42 = vadd.f32 %v9156_v50, %v4918_v3 }
 0xd33   :  { %5064 = vst.msk [vmem:[%s9346_s20 + $0xf0] sm:$0xff] %vm5033_vm1, %v5031_v22  ;;  %v5032_v48 = vmul.f32 %v5000_v41, %v5000_v41 }
 0xd34   :  { %5062 = vst.msk [vmem:[%s9346_s20 + $0xe0] sm:$0xff] %vm5033_vm1, %v5029_v5  ;;  %v5030_v55 = vmul.f32 %v4998_v42, %v4998_v42 }
 0xd35   :  { %5065 = vst.msk [vmem:[%s9346_s20 + $0xf8] sm:$0xff] %vm5033_vm1, %v5032_v48 }
 0xd36   :  { %5063 = vst.msk [vmem:[%s9346_s20 + $0xe8] sm:$0xff] %vm5033_vm1, %v5030_v55 }
 0xd37   :  { %5070 = vsyncpa [#allocation4], 1 }
 0xd38   :  { %5071 = vsyncpa [#allocation6], 1 }
 0xd39   :  { %5072 = vsyncpa [#allocation9], 1 }

// kernel: model_forward.10
= control target key start
LH: loop header
LB: loop body
LE: loop exit
PB: predicated region body
PF: predicated region fallthrough
CT: control target
= control target key end

     0   :  { %v3290_v0 = vmov 0.0   ;;  %vm3291_vm0 = vmmov 0   ;;  %vm51_vm1 = vcmask 261120   ;;  %vm496_vm2 = vcmask 523264   ;;  %s4124_s1 = inlined_call_operand.vmem [shape: f32[8,32,32], index: 1, kind: input, shape index: {}]   ;;  %s4125_s0 = inlined_call_operand.vmem [shape: f32[8,32], index: 0, kind: input, shape index: {}]   ;;  %s4126_s3 = inlined_call_operand.vmem [shape: f32[128,64], index: 3, kind: input, shape index: {}]   ;;  %s4127_s2 = inlined_call_operand.vmem [shape: f32[8,1,32], index: 2, kind: input, shape index: {}]   ;;  %s4128_s4 = inlined_call_operand.vmem [shape: f32[128,128], index: 4, kind: input, shape index: {}]   ;;  %s4129_s6 = inlined_call_operand.vmem [shape: f32[3,32,32], index: 6, kind: input, shape index: {}]   ;;  %s4130_s5 = inlined_call_operand.vmem [shape: f32[128,128], index: 5, kind: input, shape index: {}]   ;;  %s4131_s7 = inlined_call_operand.vmem [shape: f32[1,32], index: 7, kind: input, shape index: {}]   ;;  %s4132_s8 = inlined_call_operand.vmem [shape: f32[3,32,8], index: 8, kind: input, shape index: {}]   ;;  %s4133_s9 = inlined_call_operand.vmem [shape: f32[1,8], index: 9, kind: input, shape index: {}]   ;;  %s4134_s10 = inlined_call_operand.vmem [shape: f32[128,8], index: 10, kind: output, shape index: {}]  }
   0x1   :  { %2632 = vmatprep.subr.bf16.mxu1 %v3290_v0  ;;  %v38_v1 = vld [vmem:[%s4124_s1] sm:$0xff]  ;;  %v39_v2 = vld [vmem:[%s4124_s1 + $0x8] sm:$0xff]  ;;  %v40_v3 = vld [vmem:[%s4124_s1 + $0x10] sm:$0xff]  ;;  %2636 = vmatprep.mubr.msk.bf16.mxu1 %vm3291_vm0, %v3290_v0 }
   0x2   :  { %v42_v4 = vpack.c.bf16 %v39_v2, %v38_v1  ;;  %v41_v5 = vld [vmem:[%s4124_s1 + $0x18] sm:$0xff]  ;;  %2648 = vmatprep.subr.bf16.mxu0 %v3290_v0  ;;  %2652 = vmatprep.mubr.msk.bf16.mxu0 %vm3291_vm0, %v3290_v0  ;;  %v36_v6 = vld [vmem:[%s4125_s0] sm:$0xff]  ;;  %v2273_v10 = vld [vmem:[%s4124_s1 + $0x48] sm:$0xff] }
   0x3   :  { %v43_v7 = vpack.c.bf16 %v41_v5, %v40_v3  ;;  %v2265_v8 = vld [vmem:[%s4124_s1 + $0x20] sm:$0xff]  ;;  %v2266_v11 = vld [vmem:[%s4124_s1 + $0x28] sm:$0xff]  ;;  %v2274_v13 = vld [vmem:[%s4124_s1 + $0x50] sm:$0xff]  ;;  %v3387_v15 = vpack.c.bf16 %v36_v6, %v36_v6 }
   0x4   :  { %2633 = vmatpush3.bf16.msra.mxu1 %v42_v4  ;;  %v2272_v9 = vld [vmem:[%s4124_s1 + $0x40] sm:$0xff]  ;;  %v2275_v14 = vld [vmem:[%s4124_s1 + $0x58] sm:$0xff]  ;;  %v100_v17 = vpack.c.bf16 %v2266_v11, %v2265_v8  ;;  %v2287_v19 = vld [vmem:[%s4124_s1 + $0x88] sm:$0xff] }
   0x5   :  { %2634 = vmatprep.subr.bf16.mxu1 %v3290_v0  ;;  %v155_v12 = vpack.c.bf16 %v2273_v10, %v2272_v9  ;;  %v156_v16 = vpack.c.bf16 %v2275_v14, %v2274_v13  ;;  %v2286_v18 = vld [vmem:[%s4124_s1 + $0x80] sm:$0xff]  ;;  %v2267_v20 = vld [vmem:[%s4124_s1 + $0x30] sm:$0xff]  ;;  %v2268_v21 = vld [vmem:[%s4124_s1 + $0x38] sm:$0xff] }
   0x6   :  { %v265_v22 = vpack.c.bf16 %v2287_v19, %v2286_v18  ;;  %v101_v23 = vpack.c.bf16 %v2268_v21, %v2267_v20  ;;  %v2288_v24 = vld [vmem:[%s4124_s1 + $0x90] sm:$0xff]  ;;  %v2289_v25 = vld [vmem:[%s4124_s1 + $0x98] sm:$0xff]  ;;  %v2279_v26 = vld [vmem:[%s4124_s1 + $0x60] sm:$0xff] }
   0x7   :  { %2649 = vmatpush3.bf16.msra.mxu0 %v155_v12  ;;  %v2280_v27 = vld [vmem:[%s4124_s1 + $0x68] sm:$0xff]  ;;  %v266_v28 = vpack.c.bf16 %v2289_v25, %v2288_v24  ;;  %v2300_v30 = vld [vmem:[%s4124_s1 + $0xc0] sm:$0xff]  ;;  %v2281_v32 = vld [vmem:[%s4124_s1 + $0x70] sm:$0xff] }
   0x8   :  { %2635 = vmatpush3.bf16.msra.mxu1 %v43_v7  ;;  %2650 = vmatprep.subr.bf16.mxu0 %v3290_v0  ;;  %v210_v29 = vpack.c.bf16 %v2280_v27, %v2279_v26  ;;  %v2301_v31 = vld [vmem:[%s4124_s1 + $0xc8] sm:$0xff]  ;;  %v2282_v33 = vld [vmem:[%s4124_s1 + $0x78] sm:$0xff]  ;;  %v2302_v36 = vld [vmem:[%s4124_s1 + $0xd0] sm:$0xff] }
   0x9   :  { %2640 = vmatprep.subr.bf16.mxu1 %v3290_v0  ;;  %v375_v34 = vpack.c.bf16 %v2301_v31, %v2300_v30  ;;  %v211_v35 = vpack.c.bf16 %v2282_v33, %v2281_v32  ;;  %v2303_v37 = vld [vmem:[%s4124_s1 + $0xd8] sm:$0xff]  ;;  %v2293_v38 = vld [vmem:[%s4124_s1 + $0xa0] sm:$0xff]  ;;  %v2294_v39 = vld [vmem:[%s4124_s1 + $0xa8] sm:$0xff] }
   0xa   :  { %v376_v40 = vpack.c.bf16 %v2303_v37, %v2302_v36  ;;  %v320_v41 = vpack.c.bf16 %v2294_v39, %v2293_v38  ;;  %v2295_v42 = vld [vmem:[%s4124_s1 + $0xb0] sm:$0xff]  ;;  %v2296_v43 = vld [vmem:[%s4124_s1 + $0xb8] sm:$0xff]  ;;  %v2307_v45 = vld [vmem:[%s4124_s1 + $0xe0] sm:$0xff] }
   0xb   :  { %2637 = vmatmul.mubr.msk.bf16.vlgmr.msra.gmra.mrb[0].mxu1 %vm51_vm1, %v3387_v15  ;;  %2651 = vmatpush3.bf16.msra.mxu0 %v156_v16  ;;  %v321_v44 = vpack.c.bf16 %v2296_v43, %v2295_v42  ;;  %v2308_v46 = vld [vmem:[%s4124_s1 + $0xe8] sm:$0xff]  ;;  %v2309_v48 = vld [vmem:[%s4124_s1 + $0xf0] sm:$0xff]  ;;  %v2310_v49 = vld [vmem:[%s4124_s1 + $0xf8] sm:$0xff] }
   0xc   :  { %2641 = vmatpush3.bf16.msra.mxu1 %v100_v17  ;;  %2644 = vmatprep.mubr.msk.bf16.mxu1 %vm3291_vm0, %v3290_v0  ;;  %v430_v47 = vpack.c.bf16 %v2308_v46, %v2307_v45  ;;  %v431_v50 = vpack.c.bf16 %v2310_v49, %v2309_v48  ;;  %v480_v51 = vld [vmem:[%s4126_s3] sm:$0xff]  ;;  %v483_v42 = vld [vmem:[%s4126_s3 + $0x18] sm:$0xff]  ;;  %v486_v45 = vld [vmem:[%s4126_s3 + $0x30] sm:$0xff] }
   0xd   :  { %2642 = vmatprep.subr.bf16.mxu1 %v3290_v0  ;;  %2664 = vmatprep.subr.bf16.mxu0 %v3290_v0  ;;  %v2263_v59 = vld [vmem:[%s4127_s2] ss:$0 sm:$0xff]  ;;  %v2270_v60 = vld [vmem:[%s4127_s2 + $0x1] ss:$0 sm:$0xff]  ;;  %v2277_v6 = vld [vmem:[%s4127_s2 + $0x2] ss:$0 sm:$0xff] }
   0xe   :  { %2653 = vmatmul.mubr.msk.bf16.vlgmr.msra.gmra.mrb[0].mxu0 %vm51_vm1, %v3387_v15  ;;  %v2284_v9 = vld [vmem:[%s4127_s2 + $0x3] ss:$0 sm:$0xff]  ;;  %v2291_v19 = vld [vmem:[%s4127_s2 + $0x4] ss:$0 sm:$0xff]  ;;  %v2305_v31 = vld [vmem:[%s4127_s2 + $0x6] ss:$0 sm:$0xff] }
   0xf   :  { %2665 = vmatpush3.bf16.msra.mxu0 %v265_v22  ;;  %2668 = vmatprep.mubr.msk.bf16.mxu0 %vm3291_vm0, %v3290_v0  ;;  %v2298_v22 = vld [vmem:[%s4127_s2 + $0x5] ss:$0 sm:$0xff]  ;;  %v2312_v32 = vld [vmem:[%s4127_s2 + $0x7] ss:$0 sm:$0xff]  ;;  %v487_v46 = vld [vmem:[%s4126_s3 + $0x38] sm:$0xff] }
  0x10   :  { %2643 = vmatpush3.bf16.msra.mxu1 %v101_v23  ;;  %2666 = vmatprep.subr.bf16.mxu0 %v3290_v0  ;;  %v484_v43 = vld [vmem:[%s4126_s3 + $0x20] sm:$0xff]  ;;  %v489_v48 = vld [vmem:[%s4126_s3 + $0x48] sm:$0xff]  ;;  %v490_v49 = vld [vmem:[%s4126_s3 + $0x50] sm:$0xff] }
  0x11   :  { %2656 = vmatprep.subr.bf16.mxu1 %v3290_v0 }
  0x13   :  { %2645 = vmatmul.mubr.msk.bf16.vlgmr.msra.gmra.mrb[4].mxu1 %vm51_vm1, %v3387_v15  ;;  %2667 = vmatpush3.bf16.msra.mxu0 %v266_v28 }
  0x14   :  { %2657 = vmatpush3.bf16.msra.mxu1 %v210_v29  ;;  %2660 = vmatprep.mubr.msk.bf16.mxu1 %vm3291_vm0, %v3290_v0 }
  0x15   :  { %2658 = vmatprep.subr.bf16.mxu1 %v3290_v0  ;;  %2680 = vmatprep.subr.bf16.mxu0 %v3290_v0 }
  0x16   :  { %2669 = vmatmul.mubr.msk.bf16.vlgmr.msra.gmra.mrb[4].mxu0 %vm51_vm1, %v3387_v15 }
  0x17   :  { %2681 = vmatpush3.bf16.msra.mxu0 %v375_v34  ;;  %2684 = vmatprep.mubr.msk.bf16.mxu0 %vm3291_vm0, %v3290_v0 }
  0x18   :  { %2659 = vmatpush3.bf16.msra.mxu1 %v211_v35  ;;  %2682 = vmatprep.subr.bf16.mxu0 %v3290_v0 }
  0x19   :  { %2672 = vmatprep.subr.bf16.mxu1 %v3290_v0 }
  0x1b   :  { %2661 = vmatmul.mubr.msk.bf16.vlgmr.msra.gmra.mrb[8].mxu1 %vm51_vm1, %v3387_v15  ;;  %2683 = vmatpush3.bf16.msra.mxu0 %v376_v40  ;;  %v481_v40 = vld [vmem:[%s4126_s3 + $0x8] sm:$0xff] }
  0x1c   :  { %2673 = vmatpush3.bf16.msra.mxu1 %v320_v41  ;;  %2676 = vmatprep.mubr.msk.bf16.mxu1 %vm3291_vm0, %v3290_v0  ;;  %v482_v41 = vld [vmem:[%s4126_s3 + $0x10] sm:$0xff] }
  0x1d   :  { %2674 = vmatprep.subr.bf16.mxu1 %v3290_v0 }
  0x1e   :  { %2685 = vmatmul.mubr.msk.bf16.vlgmr.msra.gmra.mrb[8].mxu0 %vm51_vm1, %v3387_v15 }
  0x1f   :  { %2712 = vmatprep.mubr.msk.f32.mxu0 %vm496_vm2, %v480_v51  ;;  %v492_v51 = vld [vmem:[%s4126_s3 + $0x60] sm:$0xff] }
  0x20   :  { %2675 = vmatpush3.bf16.msra.mxu1 %v321_v44  ;;  %v485_v44 = vld [vmem:[%s4126_s3 + $0x28] sm:$0xff] }
  0x21   :  { %2688 = vmatprep.subr.bf16.mxu1 %v3290_v0 }
  0x23   :  { %2677 = vmatmul.mubr.msk.bf16.vlgmr.msra.gmra.mrb[12].mxu1 %vm51_vm1, %v3387_v15 }
  0x24   :  { %2689 = vmatpush3.bf16.msra.mxu1 %v430_v47  ;;  %2692 = vmatprep.mubr.msk.bf16.mxu1 %vm3291_vm0, %v3290_v0  ;;  %v488_v47 = vld [vmem:[%s4126_s3 + $0x40] sm:$0xff] }
  0x25   :  { %2690 = vmatprep.subr.bf16.mxu1 %v3290_v0 }
  0x28   :  { %2691 = vmatpush3.bf16.msra.mxu1 %v431_v50  ;;  %v491_v50 = vld [vmem:[%s4126_s3 + $0x58] sm:$0xff] }
  0x2b   :  { %2693 = vmatmul.mubr.msk.bf16.vlgmr.msra.gmra.mrb[16].mxu1 %vm51_vm1, %v3387_v15 }
  0xde   :  { %v89_v52 = vpop.f32.mrb[0].mxu1 }
  0xdf   :  { %v2638_v53 = vpop.f32.mrb[1].mxu1  ;;  %v90_v63 = vadd.f32 %v2263_v59, %v89_v52  ;;  %v493_v52 = vld [vmem:[%s4126_s3 + $0x68] sm:$0xff] }
  0xe0   :  { %v92_v54 = vpop.f32.mrb[2].mxu1  ;;  %v494_v53 = vld [vmem:[%s4126_s3 + $0x70] sm:$0xff] }
  0xe1   :  { %v2639_v55 = vpop.f32.mrb[3].mxu1  ;;  %v199_v56 = vpop.f32.mrb[0].mxu0  ;;  %v495_v54 = vld [vmem:[%s4126_s3 + $0x78] sm:$0xff] }
  0xe2   :  { %v2654_v57 = vpop.f32.mrb[1].mxu0  ;;  %v200_v11 = vadd.f32 %v2277_v6, %v199_v56  ;;  %v690_v55 = vld [vmem:[%s4128_s4] sm:$0xff] }
  0xe3   :  { %v202_v58 = vpop.f32.mrb[2].mxu0  ;;  %2768 = vmatprep.mubr.f32.mxu1 %v690_v55 }
  0xe4   :  { %v2655_v61 = vpop.f32.mrb[3].mxu0 }
  0xe6   :  { %v144_v62 = vpop.f32.mrb[4].mxu1 }
  0xe7   :  { %v145_v0 = vadd.f32 %v2270_v60, %v144_v62  ;;  %v2646_v1 = vpop.f32.mrb[5].mxu1 }
  0xe8   :  { %v147_v2 = vpop.f32.mrb[6].mxu1 }
  0xe9   :  { %v3080_v3 = vpack.c.bf16 %v145_v0, %v90_v63  ;;  %v2647_v4 = vpop.f32.mrb[7].mxu1  ;;  %v309_v5 = vpop.f32.mrb[4].mxu0 }
  0xea   :  { %v2670_v7 = vpop.f32.mrb[5].mxu0  ;;  %v310_v24 = vadd.f32 %v2291_v19, %v309_v5  ;;  %v3642_v19 = vld [vmem:[%s4128_s4 + $0x20] sm:$0xff] }
  0xeb   :  { %3081 = vmatprep.subr.bf16.mxu0 %v3080_v3  ;;  %v312_v8 = vpop.f32.mrb[6].mxu0 }
  0xec   :  { %3083 = vmatpush3.bf16.msra.mxu0 %v3080_v3  ;;  %v2671_v10 = vpop.f32.mrb[7].mxu0 }
  0xee   :  { %v254_v12 = vpop.f32.mrb[8].mxu1 }
  0xef   :  { %v255_v13 = vadd.f32 %v2284_v9, %v254_v12  ;;  %v2662_v14 = vpop.f32.mrb[9].mxu1 }
  0xf0   :  { %v257_v15 = vpop.f32.mrb[10].mxu1 }
  0xf1   :  { %v3084_v16 = vpack.c.bf16 %v255_v13, %v200_v11  ;;  %v2663_v17 = vpop.f32.mrb[11].mxu1  ;;  %v419_v18 = vpop.f32.mrb[8].mxu0 }
  0xf2   :  { %v2686_v20 = vpop.f32.mrb[9].mxu0  ;;  %v420_v33 = vadd.f32 %v2305_v31, %v419_v18  ;;  %v3628_v17 = vld [vmem:[%s4128_s4 + $0x10] sm:$0xff]  ;;  %v3636_v18 = vld [vmem:[%s4128_s4 + $0x18] sm:$0xff]  ;;  %v2331_v31 = vld [vmem:[%s4129_s6 + $0x28] sm:$0xff] }
  0xf3   :  { %3085 = vmatprep.subr.bf16.mxu0 %v3084_v16  ;;  %v422_v21 = vpop.f32.mrb[10].mxu0  ;;  %v3650_v20 = vld [vmem:[%s4128_s4 + $0x28] sm:$0xff] }
  0xf4   :  { %3087 = vmatpush3.bf16.msra.mxu0 %v3084_v16  ;;  %v2687_v23 = vpop.f32.mrb[11].mxu0  ;;  %v3622_v16 = vld [vmem:[%s4128_s4 + $0x8] sm:$0xff]  ;;  %v3656_v21 = vld [vmem:[%s4128_s4 + $0x30] sm:$0xff] }
  0xf5   :  { %v3670_v23 = vld [vmem:[%s4128_s4 + $0x40] sm:$0xff] }
  0xf6   :  { %v364_v25 = vpop.f32.mrb[12].mxu1 }
  0xf7   :  { %v365_v26 = vadd.f32 %v2298_v22, %v364_v25  ;;  %v2678_v27 = vpop.f32.mrb[13].mxu1  ;;  %v3664_v22 = vld [vmem:[%s4128_s4 + $0x38] sm:$0xff]  ;;  %v3684_v25 = vld [vmem:[%s4128_s4 + $0x50] sm:$0xff] }
  0xf8   :  { %v367_v28 = vpop.f32.mrb[14].mxu1  ;;  %v3698_v27 = vld [vmem:[%s4128_s4 + $0x60] sm:$0xff] }
  0xf9   :  { %v3088_v29 = vpack.c.bf16 %v365_v26, %v310_v24  ;;  %v2679_v30 = vpop.f32.mrb[15].mxu1  ;;  %v3678_v24 = vld [vmem:[%s4128_s4 + $0x48] sm:$0xff]  ;;  %v3692_v26 = vld [vmem:[%s4128_s4 + $0x58] sm:$0xff] }
  0xfa   :  { %v3706_v28 = vld [vmem:[%s4128_s4 + $0x68] sm:$0xff]  ;;  %v2330_v30 = vld [vmem:[%s4129_s6 + $0x20] sm:$0xff] }
  0xfb   :  { %3089 = vmatprep.subr.bf16.mxu0 %v3088_v29 }
  0xfc   :  { %3091 = vmatpush3.bf16.msra.mxu0 %v3088_v29  ;;  %v3712_v29 = vld [vmem:[%s4128_s4 + $0x70] sm:$0xff] }
  0xfe   :  { %v474_v34 = vpop.f32.mrb[16].mxu1 }
  0xff   :  { %v475_v35 = vadd.f32 %v2312_v32, %v474_v34  ;;  %v2694_v36 = vpop.f32.mrb[17].mxu1  ;;  %v3726_v32 = vld [vmem:[%s4128_s4 + $0x78] sm:$0xff]  ;;  %v1039_v34 = vpack.c.bf16 %v2331_v31, %v2330_v30 }
 0x100   :  { %v477_v37 = vpop.f32.mrb[18].mxu1  ;;  %v2333_v36 = vld [vmem:[%s4129_s6 + $0x38] sm:$0xff] }
 0x101   :  { %v3092_v38 = vpack.c.bf16 %v475_v35, %v420_v33  ;;  %v2695_v39 = vpop.f32.mrb[19].mxu1  ;;  %v3732_v33 = vld [vmem:[%s4130_s5] sm:$0xff]  ;;  %v2332_v35 = vld [vmem:[%s4129_s6 + $0x30] sm:$0xff]  ;;  %v3746_v37 = vld [vmem:[%s4130_s5 + $0x8] sm:$0xff] }
 0x102   :  { %v1040_v39 = vpack.c.bf16 %v2333_v36, %v2332_v35 }
 0x103   :  { %3093 = vmatprep.subr.bf16.mxu0 %v3092_v38 }
 0x104   :  { %3095 = vmatpush3.bf16.msra.mxu0 %v3092_v38  ;;  %v3751_v38 = vld [vmem:[%s4130_s5 + $0x10] sm:$0xff] }
 0x107   :  { %2713 = vmatmul.mubr.msk.f32.vlgmr.msra.gmra.mrb[12].mxu0 %vm496_vm2, %v481_v40  ;;  %v1020_v40 = vld [vmem:[%s4129_s6] sm:$0xff] }
 0x108   :  { %2715 = vmatprep.mubr.msk.f32.mxu0 %vm496_vm2, %v482_v41  ;;  %v1021_v41 = vld [vmem:[%s4129_s6 + $0x8] sm:$0xff] }
 0x10b   :  { %2716 = vmatmul.mubr.msk.f32.gmra.mrb[14].mxu0 %vm496_vm2, %v483_v42  ;;  %v3764_v42 = vld [vmem:[%s4130_s5 + $0x18] sm:$0xff] }
 0x10c   :  { %2718 = vmatprep.mubr.msk.f32.mxu0 %vm496_vm2, %v484_v43  ;;  %v3769_v43 = vld [vmem:[%s4130_s5 + $0x20] sm:$0xff] }
 0x10f   :  { %2719 = vmatmul.mubr.msk.f32.gmra.mrb[16].mxu0 %vm496_vm2, %v485_v44  ;;  %v1024_v44 = vpack.c.bf16 %v1021_v41, %v1020_v40 }
 0x110   :  { %2721 = vmatprep.mubr.msk.f32.mxu0 %vm496_vm2, %v486_v45  ;;  %v3776_v45 = vld [vmem:[%s4130_s5 + $0x28] sm:$0xff] }
 0x113   :  { %2722 = vmatmul.mubr.msk.f32.gmra.mrb[18].mxu0 %vm496_vm2, %v487_v46  ;;  %v3781_v46 = vld [vmem:[%s4130_s5 + $0x30] sm:$0xff] }
 0x114   :  { %2724 = vmatprep.mubr.msk.f32.mxu0 %vm496_vm2, %v488_v47  ;;  %v3788_v47 = vld [vmem:[%s4130_s5 + $0x38] sm:$0xff] }
 0x117   :  { %2725 = vmatmul.mubr.msk.f32.gmra.mrb[20].mxu0 %vm496_vm2, %v489_v48  ;;  %v3793_v48 = vld [vmem:[%s4130_s5 + $0x40] sm:$0xff] }
 0x118   :  { %2727 = vmatprep.mubr.msk.f32.mxu0 %vm496_vm2, %v490_v49  ;;  %v3800_v49 = vld [vmem:[%s4130_s5 + $0x48] sm:$0xff] }
 0x11b   :  { %2728 = vmatmul.mubr.msk.f32.gmra.mrb[22].mxu0 %vm496_vm2, %v491_v50  ;;  %v3805_v50 = vld [vmem:[%s4130_s5 + $0x50] sm:$0xff] }
 0x11c   :  { %2730 = vmatprep.mubr.msk.f32.mxu0 %vm496_vm2, %v492_v51  ;;  %v3812_v51 = vld [vmem:[%s4130_s5 + $0x58] sm:$0xff] }
 0x11f   :  { %2731 = vmatmul.mubr.msk.f32.gmra.mrb[24].mxu0 %vm496_vm2, %v493_v52  ;;  %v3817_v52 = vld [vmem:[%s4130_s5 + $0x60] sm:$0xff] }
 0x120   :  { %2733 = vmatprep.mubr.msk.f32.mxu0 %vm496_vm2, %v494_v53  ;;  %v3824_v53 = vld [vmem:[%s4130_s5 + $0x68] sm:$0xff] }
 0x123   :  { %2734 = vmatmul.mubr.msk.f32.gmra.mrb[26].mxu0 %vm496_vm2, %v495_v54  ;;  %v3829_v54 = vld [vmem:[%s4130_s5 + $0x70] sm:$0xff] }
 0x124   :  { %2940 = vmatprep.mubr.f32.mxu0 %v690_v55  ;;  %v3836_v55 = vld [vmem:[%s4130_s5 + $0x78] sm:$0xff] }
 0x1da   :  { %v2714_v56 = vpop.f32.mrb[12].mxu0 }
 0x1db   :  { %v611_v57 = vpop.f32.mrb[13].mxu0 }
 0x1dc   :  { %v3587_v58 = vpack.c.bf16 %v2714_v56, %v611_v57  ;;  %v1022_v56 = vld [vmem:[%s4129_s6 + $0x10] sm:$0xff]  ;;  %v1023_v57 = vld [vmem:[%s4129_s6 + $0x18] sm:$0xff] }
 0x1de   :  { %v2717_v59 = vpop.f32.mrb[14].mxu0  ;;  %3097 = vmatprep.subr.bf16.mxu1 %v3587_v58 }
 0x1df   :  { %v621_v60 = vpop.f32.mrb[15].mxu0  ;;  %3099 = vmatpush3.bf16.msra.mxu1 %v3587_v58 }
 0x1e0   :  { %v3591_v61 = vpack.c.bf16 %v2717_v59, %v621_v60  ;;  %v1025_v59 = vpack.c.bf16 %v1023_v57, %v1022_v56  ;;  %v2351_v60 = vld [vmem:[%s4129_s6 + $0x48] sm:$0xff] }
 0x1e2   :  { %v2720_v62 = vpop.f32.mrb[16].mxu0  ;;  %3101 = vmatprep.subr.bf16.mxu1 %v3591_v61 }
 0x1e3   :  { %v631_v63 = vpop.f32.mrb[17].mxu0  ;;  %3103 = vmatpush3.bf16.msra.mxu1 %v3591_v61 }
 0x1e4   :  { %v3595_v0 = vpack.c.bf16 %v2720_v62, %v631_v63 }
 0x1e6   :  { %v2723_v1 = vpop.f32.mrb[18].mxu0  ;;  %3105 = vmatprep.subr.bf16.mxu1 %v3595_v0 }
 0x1e7   :  { %v641_v2 = vpop.f32.mrb[19].mxu0  ;;  %3107 = vmatpush3.bf16.msra.mxu1 %v3595_v0 }
 0x1e8   :  { %v3599_v3 = vpack.c.bf16 %v2723_v1, %v641_v2  ;;  %v2352_v1 = vld [vmem:[%s4129_s6 + $0x50] sm:$0xff]  ;;  %v2353_v2 = vld [vmem:[%s4129_s6 + $0x58] sm:$0xff] }
 0x1ea   :  { %v2726_v4 = vpop.f32.mrb[20].mxu0  ;;  %3109 = vmatprep.subr.bf16.mxu1 %v3599_v3 }
 0x1eb   :  { %v651_v5 = vpop.f32.mrb[21].mxu0  ;;  %3111 = vmatpush3.bf16.msra.mxu1 %v3599_v3 }
 0x1ec   :  { %v3603_v6 = vpack.c.bf16 %v2726_v4, %v651_v5 }
 0x1ee   :  { %v2729_v7 = vpop.f32.mrb[22].mxu0  ;;  %3113 = vmatprep.subr.bf16.mxu1 %v3603_v6 }
 0x1ef   :  { %v661_v8 = vpop.f32.mrb[23].mxu0  ;;  %3115 = vmatpush3.bf16.msra.mxu1 %v3603_v6 }
 0x1f0   :  { %v3607_v9 = vpack.c.bf16 %v2729_v7, %v661_v8 }
 0x1f2   :  { %v2732_v10 = vpop.f32.mrb[24].mxu0  ;;  %3117 = vmatprep.subr.bf16.mxu1 %v3607_v9 }
 0x1f3   :  { %v671_v11 = vpop.f32.mrb[25].mxu0  ;;  %3119 = vmatpush3.bf16.msra.mxu1 %v3607_v9 }
 0x1f4   :  { %v3611_v12 = vpack.c.bf16 %v2732_v10, %v671_v11 }
 0x1f6   :  { %v2735_v13 = vpop.f32.mrb[26].mxu0  ;;  %3121 = vmatprep.subr.bf16.mxu1 %v3611_v12 }
 0x1f7   :  { %v681_v14 = vpop.f32.mrb[27].mxu0  ;;  %3123 = vmatpush3.bf16.msra.mxu1 %v3611_v12 }
 0x1f8   :  { %v3615_v15 = vpack.c.bf16 %v2735_v13, %v681_v14 }
 0x1fa   :  { %3125 = vmatprep.subr.bf16.mxu1 %v3615_v15 }
 0x1fb   :  { %3127 = vmatpush3.bf16.msra.mxu1 %v3615_v15 }
 0x1fc   :  { %3129 = vmatprep.subr.bf16.mxu1 %v3587_v58 }
 0x1fe   :  { %2769 = vmatmul.mubr.f32.vlgmr.msra.gmra.mrb[20].mxu1 %v3622_v16 }
 0x1ff   :  { %3131 = vmatpush3.bf16.msra.mxu1 %v3587_v58  ;;  %2771 = vmatprep.mubr.f32.mxu1 %v3628_v17 }
 0x200   :  { %3133 = vmatprep.subr.bf16.mxu1 %v3591_v61 }
 0x202   :  { %2772 = vmatmul.mubr.f32.gmra.mrb[22].mxu1 %v3636_v18 }
 0x203   :  { %3135 = vmatpush3.bf16.msra.mxu1 %v3591_v61  ;;  %2774 = vmatprep.mubr.f32.mxu1 %v3642_v19 }
 0x204   :  { %3137 = vmatprep.subr.bf16.mxu1 %v3595_v0 }
 0x206   :  { %2775 = vmatmul.mubr.f32.gmra.mrb[24].mxu1 %v3650_v20 }
 0x207   :  { %3139 = vmatpush3.bf16.msra.mxu1 %v3595_v0  ;;  %2777 = vmatprep.mubr.f32.mxu1 %v3656_v21 }
 0x208   :  { %3141 = vmatprep.subr.bf16.mxu1 %v3599_v3 }
 0x20a   :  { %2778 = vmatmul.mubr.f32.gmra.mrb[26].mxu1 %v3664_v22 }
 0x20b   :  { %3143 = vmatpush3.bf16.msra.mxu1 %v3599_v3  ;;  %2780 = vmatprep.mubr.f32.mxu1 %v3670_v23 }
 0x20c   :  { %3145 = vmatprep.subr.bf16.mxu1 %v3603_v6 }
 0x20e   :  { %2781 = vmatmul.mubr.f32.gmra.mrb[28].mxu1 %v3678_v24 }
 0x20f   :  { %3147 = vmatpush3.bf16.msra.mxu1 %v3603_v6  ;;  %2783 = vmatprep.mubr.f32.mxu1 %v3684_v25 }
 0x210   :  { %3149 = vmatprep.subr.bf16.mxu1 %v3607_v9 }
 0x212   :  { %2784 = vmatmul.mubr.f32.gmra.mrb[30].mxu1 %v3692_v26 }
 0x213   :  { %3151 = vmatpush3.bf16.msra.mxu1 %v3607_v9  ;;  %2786 = vmatprep.mubr.f32.mxu1 %v3698_v27 }
 0x214   :  { %3153 = vmatprep.subr.bf16.mxu1 %v3611_v12 }
 0x216   :  { %2787 = vmatmul.mubr.f32.gmra.mrb[32].mxu1 %v3706_v28 }
 0x217   :  { %3155 = vmatpush3.bf16.msra.mxu1 %v3611_v12  ;;  %2789 = vmatprep.mubr.f32.mxu1 %v3712_v29 }
 0x218   :  { %3157 = vmatprep.subr.bf16.mxu1 %v3615_v15 }
 0x21a   :  { %2790 = vmatmul.mubr.f32.gmra.mrb[34].mxu1 %v3726_v32 }
 0x21b   :  { %3159 = vmatpush3.bf16.msra.mxu1 %v3615_v15  ;;  %2824 = vmatprep.mubr.f32.mxu1 %v3732_v33 }
 0x21c   :  { %2848 = vmatprep.subr.bf16.mxu1 %v1039_v34 }
 0x21e   :  { %2825 = vmatmul.mubr.f32.vlgmr.msra.gmra.mrb[36].mxu1 %v3746_v37 }
 0x21f   :  { %2827 = vmatprep.mubr.f32.mxu1 %v3751_v38  ;;  %2849 = vmatpush3.bf16.msra.mxu1 %v1039_v34 }
 0x220   :  { %2850 = vmatprep.subr.bf16.mxu1 %v1040_v39 }
 0x222   :  { %2828 = vmatmul.mubr.f32.gmra.mrb[38].mxu1 %v3764_v42 }
 0x223   :  { %2830 = vmatprep.mubr.f32.mxu1 %v3769_v43  ;;  %2851 = vmatpush3.bf16.msra.mxu1 %v1040_v39 }
 0x224   :  { %2868 = vmatprep.subr.bf16.mxu1 %v1024_v44 }
 0x226   :  { %2831 = vmatmul.mubr.f32.gmra.mrb[40].mxu1 %v3776_v45 }
 0x227   :  { %2833 = vmatprep.mubr.f32.mxu1 %v3781_v46 }
 0x22a   :  { %2834 = vmatmul.mubr.f32.gmra.mrb[42].mxu1 %v3788_v47 }
 0x22b   :  { %2836 = vmatprep.mubr.f32.mxu1 %v3793_v48 }
 0x22e   :  { %2837 = vmatmul.mubr.f32.gmra.mrb[44].mxu1 %v3800_v49 }
 0x22f   :  { %2839 = vmatprep.mubr.f32.mxu1 %v3805_v50 }
 0x232   :  { %2840 = vmatmul.mubr.f32.gmra.mrb[46].mxu1 %v3812_v51 }
 0x233   :  { %2842 = vmatprep.mubr.f32.mxu1 %v3817_v52 }
 0x236   :  { %2843 = vmatmul.mubr.f32.gmra.mrb[48].mxu1 %v3824_v53 }
 0x237   :  { %2845 = vmatprep.mubr.f32.mxu1 %v3829_v54 }
 0x23a   :  { %2846 = vmatmul.mubr.f32.gmra.mrb[50].mxu1 %v3836_v55 }
 0x23b   :  { %2852 = vmatprep.mubr.msk.bf16.mxu1 %vm51_vm1, %v3587_v58  ;;  %v2350_v58 = vld [vmem:[%s4129_s6 + $0x40] sm:$0xff] }
 0x23e   :  { %2853 = vmatmul.mubr.msk.bf16.vlgmr.msra.gmra.mrb[52].mxu1 %vm51_vm1, %v3591_v61  ;;  %v1296_v61 = vpack.c.bf16 %v2351_v60, %v2350_v58 }
 0x23f   :  { %2856 = vmatprep.mubr.msk.bf16.mxu1 %vm51_vm1, %v3595_v0  ;;  %2869 = vmatpush3.bf16.msra.mxu1 %v1024_v44 }
 0x240   :  { %2870 = vmatprep.subr.bf16.mxu1 %v1025_v59 }
 0x243   :  { %2871 = vmatpush3.bf16.msra.mxu1 %v1025_v59 }
 0x244   :  { %2888 = vmatprep.subr.bf16.mxu1 %v1296_v61 }
 0x246   :  { %2857 = vmatmul.mubr.msk.bf16.gmra.mrb[56].mxu1 %vm51_vm1, %v3599_v3 }
 0x247   :  { %2860 = vmatprep.mubr.msk.bf16.mxu1 %vm51_vm1, %v3603_v6  ;;  %v1297_v6 = vpack.c.bf16 %v2353_v2, %v2352_v1 }
 0x24e   :  { %2861 = vmatmul.mubr.msk.bf16.gmra.mrb[60].mxu1 %vm51_vm1, %v3607_v9 }
 0x24f   :  { %2864 = vmatprep.mubr.msk.bf16.mxu1 %vm51_vm1, %v3611_v12 }
 0x256   :  { %2865 = vmatmul.mubr.msk.bf16.gmra.mrb[64].mxu1 %vm51_vm1, %v3615_v15 }
 0x2d1   :  { %v2770_v62 = vpop.f32.mrb[20].mxu1 }
 0x2d2   :  { %v772_v63 = vpop.f32.mrb[21].mxu1 }
 0x2d3   :  { %v1012_v0 = vpack.c.bf16 %v2770_v62, %v772_v63 }
 0x2d5   :  { %v2773_v3 = vpop.f32.mrb[22].mxu1  ;;  %2872 = vmatprep.mubr.msk.bf16.mxu1 %vm51_vm1, %v1012_v0 }
 0x2d6   :  { %v782_v4 = vpop.f32.mrb[23].mxu1 }
 0x2d7   :  { %v1013_v5 = vpack.c.bf16 %v2773_v3, %v782_v4 }
 0x2d9   :  { %v2776_v7 = vpop.f32.mrb[24].mxu1  ;;  %2873 = vmatmul.mubr.msk.bf16.vlgmr.msra.gmra.mrb[52].mxu1 %vm51_vm1, %v1013_v5 }
 0x2da   :  { %v792_v8 = vpop.f32.mrb[25].mxu1  ;;  %2889 = vmatpush3.bf16.msra.mxu1 %v1296_v61 }
 0x2db   :  { %v1014_v9 = vpack.c.bf16 %v2776_v7, %v792_v8  ;;  %2890 = vmatprep.subr.bf16.mxu1 %v1297_v6 }
 0x2dd   :  { %v2779_v10 = vpop.f32.mrb[26].mxu1  ;;  %2876 = vmatprep.mubr.msk.bf16.mxu1 %vm51_vm1, %v1014_v9 }
 0x2de   :  { %v802_v11 = vpop.f32.mrb[27].mxu1  ;;  %2891 = vmatpush3.bf16.msra.mxu1 %v1297_v6 }
 0x2df   :  { %v1015_v12 = vpack.c.bf16 %v2779_v10, %v802_v11 }
 0x2e1   :  { %v2782_v13 = vpop.f32.mrb[28].mxu1  ;;  %2877 = vmatmul.mubr.msk.bf16.gmra.mrb[56].mxu1 %vm51_vm1, %v1015_v12 }
 0x2e2   :  { %v812_v14 = vpop.f32.mrb[29].mxu1 }
 0x2e3   :  { %v1016_v15 = vpack.c.bf16 %v2782_v13, %v812_v14 }
 0x2e5   :  { %v2785_v30 = vpop.f32.mrb[30].mxu1  ;;  %2880 = vmatprep.mubr.msk.bf16.mxu1 %vm51_vm1, %v1016_v15 }
 0x2e6   :  { %v822_v31 = vpop.f32.mrb[31].mxu1 }
 0x2e7   :  { %v1017_v34 = vpack.c.bf16 %v2785_v30, %v822_v31  ;;  %v3892_v30 = vld [vmem:[%s4131_s7] ss:$0 sm:$0xff] }
 0x2e9   :  { %v2788_v35 = vpop.f32.mrb[32].mxu1  ;;  %2881 = vmatmul.mubr.msk.bf16.gmra.mrb[60].mxu1 %vm51_vm1, %v1017_v34 }
 0x2ea   :  { %v832_v36 = vpop.f32.mrb[33].mxu1 }
 0x2eb   :  { %v1018_v39 = vpack.c.bf16 %v2788_v35, %v832_v36 }
 0x2ed   :  { %v2791_v40 = vpop.f32.mrb[34].mxu1  ;;  %2884 = vmatprep.mubr.msk.bf16.mxu1 %vm51_vm1, %v1018_v39 }
 0x2ee   :  { %v842_v41 = vpop.f32.mrb[35].mxu1 }
 0x2ef   :  { %v1019_v44 = vpack.c.bf16 %v2791_v40, %v842_v41 }
 0x2f1   :  { %v2826_v56 = vpop.f32.mrb[36].mxu1  ;;  %2885 = vmatmul.mubr.msk.bf16.gmra.mrb[64].mxu1 %vm51_vm1, %v1019_v44 }
 0x2f2   :  { %v933_v57 = vpop.f32.mrb[37].mxu1 }
 0x2f3   :  { %v1283_v59 = vpack.c.bf16 %v2826_v56, %v933_v57 }
 0x2f5   :  { %v2829_v58 = vpop.f32.mrb[38].mxu1  ;;  %2892 = vmatprep.mubr.msk.bf16.mxu1 %vm51_vm1, %v1283_v59 }
 0x2f6   :  { %v943_v60 = vpop.f32.mrb[39].mxu1 }
 0x2f7   :  { %v1284_v61 = vpack.c.bf16 %v2829_v58, %v943_v60 }
 0x2f9   :  { %v2832_v62 = vpop.f32.mrb[40].mxu1  ;;  %2893 = vmatmul.mubr.msk.bf16.vlgmr.msra.gmra.mrb[52].mxu1 %vm51_vm1, %v1284_v61 }
 0x2fa   :  { %v953_v63 = vpop.f32.mrb[41].mxu1 }
 0x2fb   :  { %v1285_v0 = vpack.c.bf16 %v2832_v62, %v953_v63 }
 0x2fd   :  { %v2835_v1 = vpop.f32.mrb[42].mxu1  ;;  %2896 = vmatprep.mubr.msk.bf16.mxu1 %vm51_vm1, %v1285_v0 }
 0x2fe   :  { %v963_v2 = vpop.f32.mrb[43].mxu1 }
 0x2ff   :  { %v1286_v3 = vpack.c.bf16 %v2835_v1, %v963_v2 }
 0x301   :  { %v2838_v4 = vpop.f32.mrb[44].mxu1  ;;  %2897 = vmatmul.mubr.msk.bf16.gmra.mrb[56].mxu1 %vm51_vm1, %v1286_v3 }
 0x302   :  { %v973_v5 = vpop.f32.mrb[45].mxu1 }
 0x303   :  { %v1287_v6 = vpack.c.bf16 %v2838_v4, %v973_v5 }
 0x305   :  { %v2841_v7 = vpop.f32.mrb[46].mxu1  ;;  %2900 = vmatprep.mubr.msk.bf16.mxu1 %vm51_vm1, %v1287_v6 }
 0x306   :  { %v983_v8 = vpop.f32.mrb[47].mxu1 }
 0x307   :  { %v1288_v9 = vpack.c.bf16 %v2841_v7, %v983_v8 }
 0x309   :  { %v2844_v10 = vpop.f32.mrb[48].mxu1  ;;  %2901 = vmatmul.mubr.msk.bf16.gmra.mrb[60].mxu1 %vm51_vm1, %v1288_v9 }
 0x30a   :  { %v993_v11 = vpop.f32.mrb[49].mxu1 }
 0x30b   :  { %v1289_v12 = vpack.c.bf16 %v2844_v10, %v993_v11 }
 0x30d   :  { %v2847_v13 = vpop.f32.mrb[50].mxu1  ;;  %2904 = vmatprep.mubr.msk.bf16.mxu1 %vm51_vm1, %v1289_v12 }
 0x30e   :  { %v1003_v14 = vpop.f32.mrb[51].mxu1 }
 0x30f   :  { %v1290_v15 = vpack.c.bf16 %v2847_v13, %v1003_v14 }
 0x311   :  { %2905 = vmatmul.mubr.msk.bf16.gmra.mrb[64].mxu1 %vm51_vm1, %v1290_v15 }
 0x3cc   :  { %v2894_v31 = vpop.f32.mrb[52].mxu1 }
 0x3cd   :  { %v1444_v34 = vadd.f32 %v2894_v31, %v3892_v30  ;;  %v1356_v35 = vpop.f32.mrb[53].mxu1 }
 0x3ce   :  { %v1442_v36 = vadd.f32 %v3892_v30, %v1356_v35  ;;  %v2895_v39 = vpop.f32.mrb[54].mxu1 }
 0x3cf   :  { %v1476_v40 = vmul.f32 0.2, %v1444_v34  ;;  %v1445_v41 = vadd.f32 %v2895_v39, %v3892_v30  ;;  %v1359_v44 = vpop.f32.mrb[55].mxu1  ;;  %vm1460_vm3 = vcmp.gt.f32.partialorder %v1444_v34, 0.0 }
 0x3d0   :  { %v1474_v56 = vmul.f32 0.2, %v1442_v36  ;;  %v1443_v57 = vadd.f32 %v3892_v30, %v1359_v44  ;;  %vm1458_vm4 = vcmp.gt.f32.partialorder %v1442_v36, 0.0 }
 0x3d1   :  { %vm1461_vm5 = vcmp.gt.f32.partialorder %v1445_v41, 0.0  ;;  %v1477_v59 = vmul.f32 0.2, %v1445_v41  ;;  %v1492_v60 = vsel %vm1460_vm3, %v1444_v34, %v1476_v40 }
 0x3d2   :  { %vm1459_vm6 = vcmp.gt.f32.partialorder %v1443_v57, 0.0  ;;  %v1475_v58 = vmul.f32 0.2, %v1443_v57  ;;  %v1490_v62 = vsel %vm1458_vm4, %v1442_v36, %v1474_v56  ;;  %vm2242_vm4 = vcmask 64512  }
 0x3d3   :  { %v1493_v61 = vsel %vm1461_vm5, %v1445_v41, %v1477_v59 }
 0x3d4   :  { %v3898_v63 = vpack.c.bf16 %v1493_v61, %v1492_v60  ;;  %v1491_v0 = vsel %vm1459_vm6, %v1443_v57, %v1475_v58  ;;  %v2898_v1 = vpop.f32.mrb[56].mxu1 }
 0x3d5   :  { %v3900_v2 = vpack.c.bf16 %v1491_v0, %v1490_v62  ;;  %v1448_v3 = vadd.f32 %v2898_v1, %v3892_v30  ;;  %v1372_v4 = vpop.f32.mrb[57].mxu1 }
 0x3d6   :  { %v1446_v5 = vadd.f32 %v3892_v30, %v1372_v4  ;;  %v2899_v6 = vpop.f32.mrb[58].mxu1 }
 0x3d7   :  { %v1480_v7 = vmul.f32 0.2, %v1448_v3  ;;  %v1449_v8 = vadd.f32 %v2899_v6, %v3892_v30  ;;  %v1375_v9 = vpop.f32.mrb[59].mxu1  ;;  %3161 = vmatprep.subr.bf16.mxu0 %v3900_v2  ;;  %vm1464_vm7 = vcmp.gt.f32.partialorder %v1448_v3, 0.0 }
 0x3d8   :  { %v1478_v10 = vmul.f32 0.2, %v1446_v5  ;;  %v1447_v11 = vadd.f32 %v3892_v30, %v1375_v9  ;;  %3163 = vmatpush3.bf16.msra.mxu0 %v3900_v2  ;;  %vm1462_vm8 = vcmp.gt.f32.partialorder %v1446_v5, 0.0 }
 0x3d9   :  { %vm1465_vm9 = vcmp.gt.f32.partialorder %v1449_v8, 0.0  ;;  %v1481_v12 = vmul.f32 0.2, %v1449_v8  ;;  %3165 = vmatprep.subr.bf16.mxu0 %v3898_v63  ;;  %v1496_v14 = vsel %vm1464_vm7, %v1448_v3, %v1480_v7 }
 0x3da   :  { %vm1463_vm10 = vcmp.gt.f32.partialorder %v1447_v11, 0.0  ;;  %v1479_v13 = vmul.f32 0.2, %v1447_v11  ;;  %v1494_v31 = vsel %vm1462_vm8, %v1446_v5, %v1478_v10 }
 0x3db   :  { %v1497_v15 = vsel %vm1465_vm9, %v1449_v8, %v1481_v12 }
 0x3dc   :  { %v3909_v34 = vpack.c.bf16 %v1497_v15, %v1496_v14  ;;  %v1495_v35 = vsel %vm1463_vm10, %v1447_v11, %v1479_v13  ;;  %v2902_v36 = vpop.f32.mrb[60].mxu1  ;;  %3167 = vmatpush3.bf16.msra.mxu0 %v3898_v63 }
 0x3dd   :  { %v3912_v39 = vpack.c.bf16 %v1495_v35, %v1494_v31  ;;  %v1452_v40 = vadd.f32 %v2902_v36, %v3892_v30  ;;  %v1388_v41 = vpop.f32.mrb[61].mxu1 }
 0x3de   :  { %v1450_v44 = vadd.f32 %v3892_v30, %v1388_v41  ;;  %v2903_v56 = vpop.f32.mrb[62].mxu1 }
 0x3df   :  { %v1484_v57 = vmul.f32 0.2, %v1452_v40  ;;  %v1453_v59 = vadd.f32 %v2903_v56, %v3892_v30  ;;  %v1391_v58 = vpop.f32.mrb[63].mxu1  ;;  %3169 = vmatprep.subr.bf16.mxu0 %v3912_v39  ;;  %vm1468_vm11 = vcmp.gt.f32.partialorder %v1452_v40, 0.0 }
 0x3e0   :  { %v1482_v60 = vmul.f32 0.2, %v1450_v44  ;;  %v1451_v61 = vadd.f32 %v3892_v30, %v1391_v58  ;;  %3171 = vmatpush3.bf16.msra.mxu0 %v3912_v39  ;;  %vm1466_vm12 = vcmp.gt.f32.partialorder %v1450_v44, 0.0 }
 0x3e1   :  { %vm1469_vm13 = vcmp.gt.f32.partialorder %v1453_v59, 0.0  ;;  %v1485_v62 = vmul.f32 0.2, %v1453_v59  ;;  %3173 = vmatprep.subr.bf16.mxu0 %v3909_v34  ;;  %v1500_v1 = vsel %vm1468_vm11, %v1452_v40, %v1484_v57 }
 0x3e2   :  { %vm1467_vm14 = vcmp.gt.f32.partialorder %v1451_v61, 0.0  ;;  %v1483_v0 = vmul.f32 0.2, %v1451_v61  ;;  %v1498_v4 = vsel %vm1466_vm12, %v1450_v44, %v1482_v60 }
 0x3e3   :  { %v1501_v3 = vsel %vm1469_vm13, %v1453_v59, %v1485_v62 }
 0x3e4   :  { %v3921_v5 = vpack.c.bf16 %v1501_v3, %v1500_v1  ;;  %v1499_v6 = vsel %vm1467_vm14, %v1451_v61, %v1483_v0  ;;  %v2906_v7 = vpop.f32.mrb[64].mxu1  ;;  %3175 = vmatpush3.bf16.msra.mxu0 %v3909_v34 }
 0x3e5   :  { %v3924_v8 = vpack.c.bf16 %v1499_v6, %v1498_v4  ;;  %v1456_v9 = vadd.f32 %v2906_v7, %v3892_v30  ;;  %v1404_v10 = vpop.f32.mrb[65].mxu1 }
 0x3e6   :  { %v1454_v11 = vadd.f32 %v3892_v30, %v1404_v10  ;;  %v2907_v12 = vpop.f32.mrb[66].mxu1 }
 0x3e7   :  { %v1488_v13 = vmul.f32 0.2, %v1456_v9  ;;  %v1457_v14 = vadd.f32 %v2907_v12, %v3892_v30  ;;  %v1407_v15 = vpop.f32.mrb[67].mxu1  ;;  %3177 = vmatprep.subr.bf16.mxu0 %v3924_v8  ;;  %vm1472_vm15 = vcmp.gt.f32.partialorder %v1456_v9, 0.0 }
 0x3e8   :  { %v1486_v31 = vmul.f32 0.2, %v1454_v11  ;;  %v1455_v35 = vadd.f32 %v3892_v30, %v1407_v15  ;;  %3179 = vmatpush3.bf16.msra.mxu0 %v3924_v8  ;;  %vm1470_vm0 = vcmp.gt.f32.partialorder %v1454_v11, 0.0 }
 0x3e9   :  { %vm1473_vm2 = vcmp.gt.f32.partialorder %v1457_v14, 0.0  ;;  %v1489_v36 = vmul.f32 0.2, %v1457_v14  ;;  %3181 = vmatprep.subr.bf16.mxu0 %v3921_v5  ;;  %v1504_v41 = vsel %vm1472_vm15, %v1456_v9, %v1488_v13 }
 0x3ea   :  { %vm1471_vm3 = vcmp.gt.f32.partialorder %v1455_v35, 0.0  ;;  %v1487_v40 = vmul.f32 0.2, %v1455_v35  ;;  %v1502_v56 = vsel %vm1470_vm0, %v1454_v11, %v1486_v31 }
 0x3eb   :  { %v1505_v44 = vsel %vm1473_vm2, %v1457_v14, %v1489_v36 }
 0x3ec   :  { %v3933_v57 = vpack.c.bf16 %v1505_v44, %v1504_v41  ;;  %v1503_v59 = vsel %vm1471_vm3, %v1455_v35, %v1487_v40  ;;  %3183 = vmatpush3.bf16.msra.mxu0 %v3921_v5 }
 0x3ed   :  { %v3936_v58 = vpack.c.bf16 %v1503_v59, %v1502_v56 }
 0x3ef   :  { %3185 = vmatprep.subr.bf16.mxu0 %v3936_v58 }
 0x3f0   :  { %3187 = vmatpush3.bf16.msra.mxu0 %v3936_v58 }
 0x3f1   :  { %3189 = vmatprep.subr.bf16.mxu0 %v3933_v57 }
 0x3f4   :  { %3191 = vmatpush3.bf16.msra.mxu0 %v3933_v57 }
 0x3f5   :  { %3193 = vmatprep.subr.bf16.mxu0 %v3900_v2 }
 0x3f7   :  { %2941 = vmatmul.mubr.f32.vlgmr.msra.gmra.mrb[28].mxu0 %v3622_v16  ;;  %v2363_v16 = vld [vmem:[%s4132_s8 + $0x20] sm:$0xff] }
 0x3f8   :  { %3195 = vmatpush3.bf16.msra.mxu0 %v3900_v2  ;;  %2943 = vmatprep.mubr.f32.mxu0 %v3628_v17  ;;  %v2364_v17 = vld [vmem:[%s4132_s8 + $0x28] sm:$0xff] }
 0x3f9   :  { %3197 = vmatprep.subr.bf16.mxu0 %v3898_v63 }
 0x3fb   :  { %2944 = vmatmul.mubr.f32.gmra.mrb[30].mxu0 %v3636_v18  ;;  %v1823_v18 = vpack.c.bf16 %v2364_v17, %v2363_v16 }
 0x3fc   :  { %3199 = vmatpush3.bf16.msra.mxu0 %v3898_v63  ;;  %2946 = vmatprep.mubr.f32.mxu0 %v3642_v19  ;;  %v2365_v19 = vld [vmem:[%s4132_s8 + $0x30] sm:$0xff] }
 0x3fd   :  { %3201 = vmatprep.subr.bf16.mxu0 %v3912_v39 }
 0x3ff   :  { %2947 = vmatmul.mubr.f32.gmra.mrb[32].mxu0 %v3650_v20  ;;  %v2366_v20 = vld [vmem:[%s4132_s8 + $0x38] sm:$0xff] }
 0x400   :  { %3203 = vmatpush3.bf16.msra.mxu0 %v3912_v39  ;;  %2949 = vmatprep.mubr.f32.mxu0 %v3656_v21  ;;  %v1824_v21 = vpack.c.bf16 %v2366_v20, %v2365_v19 }
 0x401   :  { %3205 = vmatprep.subr.bf16.mxu0 %v3909_v34 }
 0x403   :  { %2950 = vmatmul.mubr.f32.gmra.mrb[34].mxu0 %v3664_v22  ;;  %v1804_v22 = vld [vmem:[%s4132_s8] sm:$0xff] }
 0x404   :  { %3207 = vmatpush3.bf16.msra.mxu0 %v3909_v34  ;;  %2952 = vmatprep.mubr.f32.mxu0 %v3670_v23  ;;  %v1805_v23 = vld [vmem:[%s4132_s8 + $0x8] sm:$0xff] }
 0x405   :  { %3209 = vmatprep.subr.bf16.mxu0 %v3924_v8 }
 0x407   :  { %2953 = vmatmul.mubr.f32.gmra.mrb[36].mxu0 %v3678_v24  ;;  %v1808_v24 = vpack.c.bf16 %v1805_v23, %v1804_v22 }
 0x408   :  { %3211 = vmatpush3.bf16.msra.mxu0 %v3924_v8  ;;  %2955 = vmatprep.mubr.f32.mxu0 %v3684_v25  ;;  %v1806_v25 = vld [vmem:[%s4132_s8 + $0x10] sm:$0xff] }
 0x409   :  { %3213 = vmatprep.subr.bf16.mxu0 %v3921_v5 }
 0x40b   :  { %2956 = vmatmul.mubr.f32.gmra.mrb[38].mxu0 %v3692_v26  ;;  %v1807_v26 = vld [vmem:[%s4132_s8 + $0x18] sm:$0xff] }
 0x40c   :  { %3215 = vmatpush3.bf16.msra.mxu0 %v3921_v5  ;;  %2958 = vmatprep.mubr.f32.mxu0 %v3698_v27  ;;  %v1809_v27 = vpack.c.bf16 %v1807_v26, %v1806_v25 }
 0x40d   :  { %3217 = vmatprep.subr.bf16.mxu0 %v3936_v58 }
 0x40f   :  { %2959 = vmatmul.mubr.f32.gmra.mrb[40].mxu0 %v3706_v28  ;;  %v2383_v28 = vld [vmem:[%s4132_s8 + $0x40] sm:$0xff] }
 0x410   :  { %3219 = vmatpush3.bf16.msra.mxu0 %v3936_v58  ;;  %2961 = vmatprep.mubr.f32.mxu0 %v3712_v29  ;;  %v2384_v29 = vld [vmem:[%s4132_s8 + $0x48] sm:$0xff] }
 0x411   :  { %3221 = vmatprep.subr.bf16.mxu0 %v3933_v57 }
 0x413   :  { %2962 = vmatmul.mubr.f32.gmra.mrb[42].mxu0 %v3726_v32  ;;  %v2080_v32 = vpack.c.bf16 %v2384_v29, %v2383_v28 }
 0x414   :  { %3223 = vmatpush3.bf16.msra.mxu0 %v3933_v57  ;;  %2996 = vmatprep.mubr.f32.mxu0 %v3732_v33 }
 0x415   :  { %3020 = vmatprep.subr.bf16.mxu0 %v1823_v18 }
 0x417   :  { %2997 = vmatmul.mubr.f32.vlgmr.msra.gmra.mrb[44].mxu0 %v3746_v37 }
 0x418   :  { %2999 = vmatprep.mubr.f32.mxu0 %v3751_v38  ;;  %3021 = vmatpush3.bf16.msra.mxu0 %v1823_v18  ;;  %v2395_v18 = vld [vmem:[%s4133_s9] ss:$0 sm:$0xff] }
 0x419   :  { %3022 = vmatprep.subr.bf16.mxu0 %v1824_v21 }
 0x41b   :  { %3000 = vmatmul.mubr.f32.gmra.mrb[46].mxu0 %v3764_v42  ;;  %v2385_v42 = vld [vmem:[%s4132_s8 + $0x50] sm:$0xff] }
 0x41c   :  { %3002 = vmatprep.mubr.f32.mxu0 %v3769_v43  ;;  %3023 = vmatpush3.bf16.msra.mxu0 %v1824_v21  ;;  %v2386_v43 = vld [vmem:[%s4132_s8 + $0x58] sm:$0xff] }
 0x41d   :  { %3040 = vmatprep.subr.bf16.mxu0 %v1808_v24 }
 0x41f   :  { %3003 = vmatmul.mubr.f32.gmra.mrb[48].mxu0 %v3776_v45 }
 0x420   :  { %3005 = vmatprep.mubr.f32.mxu0 %v3781_v46 }
 0x423   :  { %3006 = vmatmul.mubr.f32.gmra.mrb[50].mxu0 %v3788_v47 }
 0x424   :  { %3008 = vmatprep.mubr.f32.mxu0 %v3793_v48  ;;  %v2081_v48 = vpack.c.bf16 %v2386_v43, %v2385_v42 }
 0x427   :  { %3009 = vmatmul.mubr.f32.gmra.mrb[52].mxu0 %v3800_v49 }
 0x428   :  { %3011 = vmatprep.mubr.f32.mxu0 %v3805_v50 }
 0x42b   :  { %3012 = vmatmul.mubr.f32.gmra.mrb[54].mxu0 %v3812_v51 }
 0x42c   :  { %3014 = vmatprep.mubr.f32.mxu0 %v3817_v52 }
 0x42f   :  { %3015 = vmatmul.mubr.f32.gmra.mrb[56].mxu0 %v3824_v53 }
 0x430   :  { %3017 = vmatprep.mubr.f32.mxu0 %v3829_v54 }
 0x433   :  { %3018 = vmatmul.mubr.f32.gmra.mrb[58].mxu0 %v3836_v55 }
 0x434   :  { %3024 = vmatprep.mubr.msk.bf16.mxu0 %vm51_vm1, %v3900_v2 }
 0x437   :  { %3025 = vmatmul.mubr.msk.bf16.vlgmr.msra.gmra.mrb[60].mxu0 %vm51_vm1, %v3898_v63 }
 0x438   :  { %3028 = vmatprep.mubr.msk.bf16.mxu0 %vm51_vm1, %v3912_v39  ;;  %3041 = vmatpush3.bf16.msra.mxu0 %v1808_v24 }
 0x439   :  { %3042 = vmatprep.subr.bf16.mxu0 %v1809_v27 }
 0x43c   :  { %3043 = vmatpush3.bf16.msra.mxu0 %v1809_v27 }
 0x43d   :  { %3060 = vmatprep.subr.bf16.mxu0 %v2080_v32 }
 0x43f   :  { %3029 = vmatmul.mubr.msk.bf16.gmra.mrb[64].mxu0 %vm51_vm1, %v3909_v34 }
 0x440   :  { %3032 = vmatprep.mubr.msk.bf16.mxu0 %vm51_vm1, %v3924_v8 }
 0x447   :  { %3033 = vmatmul.mubr.msk.bf16.gmra.mrb[68].mxu0 %vm51_vm1, %v3921_v5 }
 0x448   :  { %3036 = vmatprep.mubr.msk.bf16.mxu0 %vm51_vm1, %v3936_v58 }
 0x44f   :  { %3037 = vmatmul.mubr.msk.bf16.gmra.mrb[72].mxu0 %vm51_vm1, %v3933_v57 }
 0x4ca   :  { %v2942_v33 = vpop.f32.mrb[28].mxu0 }
 0x4cb   :  { %v1572_v37 = vpop.f32.mrb[29].mxu0 }
 0x4cc   :  { %v1796_v38 = vpack.c.bf16 %v2942_v33, %v1572_v37 }
 0x4ce   :  { %v2945_v45 = vpop.f32.mrb[30].mxu0  ;;  %3044 = vmatprep.mubr.msk.bf16.mxu0 %vm51_vm1, %v1796_v38 }
 0x4cf   :  { %v1582_v46 = vpop.f32.mrb[31].mxu0 }
 0x4d0   :  { %v1797_v47 = vpack.c.bf16 %v2945_v45, %v1582_v46 }
 0x4d2   :  { %v2948_v49 = vpop.f32.mrb[32].mxu0  ;;  %3045 = vmatmul.mubr.msk.bf16.vlgmr.msra.gmra.mrb[60].mxu0 %vm51_vm1, %v1797_v47 }
 0x4d3   :  { %v1592_v50 = vpop.f32.mrb[33].mxu0  ;;  %3061 = vmatpush3.bf16.msra.mxu0 %v2080_v32 }
 0x4d4   :  { %v1798_v51 = vpack.c.bf16 %v2948_v49, %v1592_v50  ;;  %3062 = vmatprep.subr.bf16.mxu0 %v2081_v48 }
 0x4d6   :  { %v2951_v52 = vpop.f32.mrb[34].mxu0  ;;  %3048 = vmatprep.mubr.msk.bf16.mxu0 %vm51_vm1, %v1798_v51 }
 0x4d7   :  { %v1602_v53 = vpop.f32.mrb[35].mxu0  ;;  %3063 = vmatpush3.bf16.msra.mxu0 %v2081_v48 }
 0x4d8   :  { %v1799_v54 = vpack.c.bf16 %v2951_v52, %v1602_v53 }
 0x4da   :  { %v2954_v55 = vpop.f32.mrb[36].mxu0  ;;  %3049 = vmatmul.mubr.msk.bf16.gmra.mrb[64].mxu0 %vm51_vm1, %v1799_v54 }
 0x4db   :  { %v1612_v30 = vpop.f32.mrb[37].mxu0 }
 0x4dc   :  { %v1800_v63 = vpack.c.bf16 %v2954_v55, %v1612_v30 }
 0x4de   :  { %v2957_v2 = vpop.f32.mrb[38].mxu0  ;;  %3052 = vmatprep.mubr.msk.bf16.mxu0 %vm51_vm1, %v1800_v63 }
 0x4df   :  { %v1622_v34 = vpop.f32.mrb[39].mxu0 }
 0x4e0   :  { %v1801_v39 = vpack.c.bf16 %v2957_v2, %v1622_v34 }
 0x4e2   :  { %v2960_v60 = vpop.f32.mrb[40].mxu0  ;;  %3053 = vmatmul.mubr.msk.bf16.gmra.mrb[68].mxu0 %vm51_vm1, %v1801_v39 }
 0x4e3   :  { %v1632_v61 = vpop.f32.mrb[41].mxu0 }
 0x4e4   :  { %v1802_v62 = vpack.c.bf16 %v2960_v60, %v1632_v61 }
 0x4e6   :  { %v2963_v0 = vpop.f32.mrb[42].mxu0  ;;  %3056 = vmatprep.mubr.msk.bf16.mxu0 %vm51_vm1, %v1802_v62 }
 0x4e7   :  { %v1642_v1 = vpop.f32.mrb[43].mxu0 }
 0x4e8   :  { %v1803_v3 = vpack.c.bf16 %v2963_v0, %v1642_v1 }
 0x4ea   :  { %v2998_v4 = vpop.f32.mrb[44].mxu0  ;;  %3057 = vmatmul.mubr.msk.bf16.gmra.mrb[72].mxu0 %vm51_vm1, %v1803_v3 }
 0x4eb   :  { %v1717_v5 = vpop.f32.mrb[45].mxu0 }
 0x4ec   :  { %v2067_v6 = vpack.c.bf16 %v2998_v4, %v1717_v5 }
 0x4ee   :  { %v3001_v7 = vpop.f32.mrb[46].mxu0  ;;  %3064 = vmatprep.mubr.msk.bf16.mxu0 %vm51_vm1, %v2067_v6 }
 0x4ef   :  { %v1727_v8 = vpop.f32.mrb[47].mxu0 }
 0x4f0   :  { %v2068_v9 = vpack.c.bf16 %v3001_v7, %v1727_v8 }
 0x4f2   :  { %v3004_v10 = vpop.f32.mrb[48].mxu0  ;;  %3065 = vmatmul.mubr.msk.bf16.vlgmr.msra.gmra.mrb[60].mxu0 %vm51_vm1, %v2068_v9 }
 0x4f3   :  { %v1737_v11 = vpop.f32.mrb[49].mxu0 }
 0x4f4   :  { %v2069_v12 = vpack.c.bf16 %v3004_v10, %v1737_v11 }
 0x4f6   :  { %v3007_v13 = vpop.f32.mrb[50].mxu0  ;;  %3068 = vmatprep.mubr.msk.bf16.mxu0 %vm51_vm1, %v2069_v12 }
 0x4f7   :  { %v1747_v14 = vpop.f32.mrb[51].mxu0 }
 0x4f8   :  { %v2070_v15 = vpack.c.bf16 %v3007_v13, %v1747_v14 }
 0x4fa   :  { %v3010_v31 = vpop.f32.mrb[52].mxu0  ;;  %3069 = vmatmul.mubr.msk.bf16.gmra.mrb[64].mxu0 %vm51_vm1, %v2070_v15 }
 0x4fb   :  { %v1757_v35 = vpop.f32.mrb[53].mxu0 }
 0x4fc   :  { %v2071_v36 = vpack.c.bf16 %v3010_v31, %v1757_v35 }
 0x4fe   :  { %v3013_v40 = vpop.f32.mrb[54].mxu0  ;;  %3072 = vmatprep.mubr.msk.bf16.mxu0 %vm51_vm1, %v2071_v36 }
 0x4ff   :  { %v1767_v41 = vpop.f32.mrb[55].mxu0 }
 0x500   :  { %v2072_v44 = vpack.c.bf16 %v3013_v40, %v1767_v41 }
 0x502   :  { %v3016_v56 = vpop.f32.mrb[56].mxu0  ;;  %3073 = vmatmul.mubr.msk.bf16.gmra.mrb[68].mxu0 %vm51_vm1, %v2072_v44 }
 0x503   :  { %v1777_v57 = vpop.f32.mrb[57].mxu0 }
 0x504   :  { %v2073_v59 = vpack.c.bf16 %v3016_v56, %v1777_v57 }
 0x506   :  { %v3019_v58 = vpop.f32.mrb[58].mxu0  ;;  %3076 = vmatprep.mubr.msk.bf16.mxu0 %vm51_vm1, %v2073_v59 }
 0x507   :  { %v1787_v16 = vpop.f32.mrb[59].mxu0 }
 0x508   :  { %v2074_v17 = vpack.c.bf16 %v3019_v58, %v1787_v16 }
 0x50a   :  { %3077 = vmatmul.mubr.msk.bf16.gmra.mrb[72].mxu0 %vm51_vm1, %v2074_v17 }
 0x5c5   :  { %v3066_v19 = vpop.f32.mrb[60].mxu0 }
 0x5c6   :  { %v2228_v20 = vadd.f32 %v3066_v19, %v2395_v18  ;;  %v2140_v21 = vpop.f32.mrb[61].mxu0 }
 0x5c7   :  { %v2226_v22 = vadd.f32 %v2395_v18, %v2140_v21  ;;  %v3067_v23 = vpop.f32.mrb[62].mxu0 }
 0x5c8   :  { %2245 = vst.msk [vmem:[%s4134_s10 + $0x10] sm:$0xff] %vm2242_vm4, %v2228_v20  ;;  %v2229_v24 = vadd.f32 %v3067_v23, %v2395_v18  ;;  %v2143_v25 = vpop.f32.mrb[63].mxu0 }
 0x5c9   :  { %2243 = vst.msk [vmem:[%s4134_s10] sm:$0xff] %vm2242_vm4, %v2226_v22  ;;  %v2227_v26 = vadd.f32 %v2395_v18, %v2143_v25 }
 0x5ca   :  { %2246 = vst.msk [vmem:[%s4134_s10 + $0x18] sm:$0xff] %vm2242_vm4, %v2229_v24 }
 0x5cb   :  { %2244 = vst.msk [vmem:[%s4134_s10 + $0x8] sm:$0xff] %vm2242_vm4, %v2227_v26 }
 0x5cd   :  { %v3070_v27 = vpop.f32.mrb[64].mxu0 }
 0x5ce   :  { %v2232_v28 = vadd.f32 %v3070_v27, %v2395_v18  ;;  %v2156_v29 = vpop.f32.mrb[65].mxu0 }
 0x5cf   :  { %v2230_v32 = vadd.f32 %v2395_v18, %v2156_v29  ;;  %v3071_v33 = vpop.f32.mrb[66].mxu0 }
 0x5d0   :  { %2249 = vst.msk [vmem:[%s4134_s10 + $0x30] sm:$0xff] %vm2242_vm4, %v2232_v28  ;;  %v2233_v37 = vadd.f32 %v3071_v33, %v2395_v18  ;;  %v2159_v38 = vpop.f32.mrb[67].mxu0 }
 0x5d1   :  { %2247 = vst.msk [vmem:[%s4134_s10 + $0x20] sm:$0xff] %vm2242_vm4, %v2230_v32  ;;  %v2231_v42 = vadd.f32 %v2395_v18, %v2159_v38 }
 0x5d2   :  { %2250 = vst.msk [vmem:[%s4134_s10 + $0x38] sm:$0xff] %vm2242_vm4, %v2233_v37 }
 0x5d3   :  { %2248 = vst.msk [vmem:[%s4134_s10 + $0x28] sm:$0xff] %vm2242_vm4, %v2231_v42 }
 0x5d5   :  { %v3074_v43 = vpop.f32.mrb[68].mxu0 }
 0x5d6   :  { %v2236_v45 = vadd.f32 %v3074_v43, %v2395_v18  ;;  %v2172_v46 = vpop.f32.mrb[69].mxu0 }
 0x5d7   :  { %v2234_v47 = vadd.f32 %v2395_v18, %v2172_v46  ;;  %v3075_v48 = vpop.f32.mrb[70].mxu0 }
 0x5d8   :  { %2253 = vst.msk [vmem:[%s4134_s10 + $0x50] sm:$0xff] %vm2242_vm4, %v2236_v45  ;;  %v2237_v49 = vadd.f32 %v3075_v48, %v2395_v18  ;;  %v2175_v50 = vpop.f32.mrb[71].mxu0 }
 0x5d9   :  { %2251 = vst.msk [vmem:[%s4134_s10 + $0x40] sm:$0xff] %vm2242_vm4, %v2234_v47  ;;  %v2235_v51 = vadd.f32 %v2395_v18, %v2175_v50 }
 0x5da   :  { %2254 = vst.msk [vmem:[%s4134_s10 + $0x58] sm:$0xff] %vm2242_vm4, %v2237_v49 }
 0x5db   :  { %2252 = vst.msk [vmem:[%s4134_s10 + $0x48] sm:$0xff] %vm2242_vm4, %v2235_v51 }
 0x5dd   :  { %v3078_v52 = vpop.f32.mrb[72].mxu0 }
 0x5de   :  { %v2240_v53 = vadd.f32 %v3078_v52, %v2395_v18  ;;  %v2188_v54 = vpop.f32.mrb[73].mxu0 }
 0x5df   :  { %v2238_v55 = vadd.f32 %v2395_v18, %v2188_v54  ;;  %v3079_v30 = vpop.f32.mrb[74].mxu0 }
 0x5e0   :  { %2257 = vst.msk [vmem:[%s4134_s10 + $0x70] sm:$0xff] %vm2242_vm4, %v2240_v53  ;;  %v2241_v63 = vadd.f32 %v3079_v30, %v2395_v18  ;;  %v2191_v2 = vpop.f32.mrb[75].mxu0 }
 0x5e1   :  { %2255 = vst.msk [vmem:[%s4134_s10 + $0x60] sm:$0xff] %vm2242_vm4, %v2238_v55  ;;  %v2239_v34 = vadd.f32 %v2395_v18, %v2191_v2 }
 0x5e2   :  { %2258 = vst.msk [vmem:[%s4134_s10 + $0x78] sm:$0xff] %vm2242_vm4, %v2241_v63 }
 0x5e3   :  { %2256 = vst.msk [vmem:[%s4134_s10 + $0x68] sm:$0xff] %vm2242_vm4, %v2239_v34 }

// kernel: model_forward.11
= control target key start
LH: loop header
LB: loop body
LE: loop exit
PB: predicated region body
PF: predicated region fallthrough
CT: control target
= control target key end

     0   :  { %s2722_s0 = inlined_call_operand.vmem [shape: f32[8,16,1024], index: 0, kind: input, shape index: {}]   ;;  %s2723_s1 = inlined_call_operand.vmem [shape: f32[16,1024], index: 1, kind: input, shape index: {}]   ;;  %s2724_s2 = inlined_call_operand.vmem [shape: f32[8,1,1024], index: 2, kind: output, shape index: {}]  }
   0x1   :  { %v11_v0 = vld [vmem:[%s2722_s0] sm:$0xff]  ;;  %v12_v1 = vld [vmem:[%s2722_s0 + $0x8] sm:$0xff]  ;;  %v13_v2 = vld [vmem:[%s2722_s0 + $0x10] sm:$0xff] }
   0x2   :  { %v14_v3 = vld [vmem:[%s2722_s0 + $0x18] sm:$0xff]  ;;  %v15_v4 = vld [vmem:[%s2722_s0 + $0x20] sm:$0xff]  ;;  %v16_v5 = vld [vmem:[%s2722_s0 + $0x28] sm:$0xff] }
   0x3   :  { %v17_v6 = vld [vmem:[%s2722_s0 + $0x30] sm:$0xff]  ;;  %v27_v7 = vld [vmem:[%s2722_s0 + $0x80] sm:$0xff]  ;;  %v18_v10 = vld [vmem:[%s2722_s0 + $0x38] sm:$0xff] }
   0x4   :  { %v43_v8 = vld [vmem:[%s2722_s0 + $0x100] sm:$0xff]  ;;  %v20_v12 = vld [vmem:[%s2722_s0 + $0x48] sm:$0xff]  ;;  %v29_v14 = vld [vmem:[%s2722_s0 + $0x90] sm:$0xff] }
   0x5   :  { %v59_v9 = vld [vmem:[%s2722_s0 + $0x180] sm:$0xff]  ;;  %v28_v13 = vld [vmem:[%s2722_s0 + $0x88] sm:$0xff]  ;;  %v21_v15 = vld [vmem:[%s2722_s0 + $0x50] sm:$0xff] }
   0x6   :  { %v19_v11 = vld [vmem:[%s2722_s0 + $0x40] sm:$0xff]  ;;  %v22_v16 = vld [vmem:[%s2722_s0 + $0x58] sm:$0xff]  ;;  %v24_v21 = vld [vmem:[%s2722_s0 + $0x68] sm:$0xff] }
   0x7   :  { %v23_v17 = vld [vmem:[%s2722_s0 + $0x60] sm:$0xff]  ;;  %v30_v18 = vld [vmem:[%s2722_s0 + $0x98] sm:$0xff]  ;;  %v25_v22 = vld [vmem:[%s2722_s0 + $0x70] sm:$0xff] }
   0x8   :  { %v31_v19 = vld [vmem:[%s2722_s0 + $0xa0] sm:$0xff]  ;;  %v26_v23 = vld [vmem:[%s2722_s0 + $0x78] sm:$0xff]  ;;  %v32_v24 = vld [vmem:[%s2722_s0 + $0xa8] sm:$0xff] }
   0x9   :  { %v1351_v20 = vld [vmem:[%s2723_s1] sm:$0xff]  ;;  %v1368_v25 = vld [vmem:[%s2723_s1 + $0x8] sm:$0xff]  ;;  %v1373_v26 = vld [vmem:[%s2723_s1 + $0x10] sm:$0xff] }
   0xa   :  { %v1378_v27 = vld [vmem:[%s2723_s1 + $0x18] sm:$0xff]  ;;  %v1381_v28 = vmul.f32 %v1351_v20, %v11_v0  ;;  %v1384_v29 = vmul.f32 %v1351_v20, %v27_v7  ;;  %v1387_v30 = vmul.f32 %v1351_v20, %v43_v8  ;;  %v1390_v31 = vmul.f32 %v1351_v20, %v59_v9  ;;  %v33_v32 = vld [vmem:[%s2722_s0 + $0xb0] sm:$0xff]  ;;  %v35_v34 = vld [vmem:[%s2722_s0 + $0xc0] sm:$0xff] }
   0xb   :  { %v34_v33 = vld [vmem:[%s2722_s0 + $0xb8] sm:$0xff]  ;;  %v36_v35 = vld [vmem:[%s2722_s0 + $0xc8] sm:$0xff]  ;;  %v1407_v36 = vld [vmem:[%s2723_s1 + $0x20] sm:$0xff]  ;;  %v1420_v39 = vmul.f32 %v1368_v25, %v12_v1  ;;  %v1423_v40 = vmul.f32 %v1373_v26, %v13_v2  ;;  %v1426_v41 = vmul.f32 %v1378_v27, %v14_v3  ;;  %v1429_v42 = vmul.f32 %v1368_v25, %v28_v13 }
   0xc   :  { %2725 = vst [vmem:[#allocation2_spill] sm:$0xff] %v1387_v30  ;;  %2726 = vst [vmem:[#allocation3_spill] sm:$0xff] %v1390_v31  ;;  %v1412_v37 = vld [vmem:[%s2723_s1 + $0x28] sm:$0xff]  ;;  %v1417_v38 = vld [vmem:[%s2723_s1 + $0x30] sm:$0xff]  ;;  %v1459_v50 = vmul.f32 %v1407_v36, %v15_v4  ;;  %v1468_v53 = vmul.f32 %v1373_v26, %v29_v14  ;;  %v1507_v0 = vmul.f32 %v1378_v27, %v30_v18 }
   0xd   :  { %2727 = vst [vmem:[#allocation4_spill] sm:$0xff] %v1429_v42  ;;  %v37_v43 = vld [vmem:[%s2722_s0 + $0xd0] sm:$0xff]  ;;  %v38_v44 = vld [vmem:[%s2722_s0 + $0xd8] sm:$0xff]  ;;  %v39_v45 = vld [vmem:[%s2722_s0 + $0xe0] sm:$0xff]  ;;  %v1462_v51 = vmul.f32 %v1412_v37, %v16_v5  ;;  %v1465_v52 = vmul.f32 %v1417_v38, %v17_v6 }
   0xe   :  { %v40_v46 = vld [vmem:[%s2722_s0 + $0xe8] sm:$0xff]  ;;  %v1446_v47 = vld [vmem:[%s2723_s1 + $0x38] sm:$0xff]  ;;  %v1451_v48 = vld [vmem:[%s2723_s1 + $0x40] sm:$0xff]  ;;  %2728 = vst [vmem:[#allocation5_spill] sm:$0xff] %v1468_v53 }
   0xf   :  { %v1456_v49 = vld [vmem:[%s2723_s1 + $0x48] sm:$0xff]  ;;  %v41_v54 = vld [vmem:[%s2722_s0 + $0xf0] sm:$0xff]  ;;  %v42_v55 = vld [vmem:[%s2722_s0 + $0xf8] sm:$0xff]  ;;  %v1498_v61 = vmul.f32 %v1446_v47, %v18_v10  ;;  %v1501_v62 = vmul.f32 %v1451_v48, %v19_v11  ;;  %2729 = vst [vmem:[#allocation6_spill] sm:$0xff] %v1507_v0  ;;  %v1546_v11 = vmul.f32 %v1407_v36, %v31_v19  ;;  %v1570_v19 = vmul.f32 %v1412_v37, %v32_v24 }
  0x10   :  { %v44_v56 = vld [vmem:[%s2722_s0 + $0x108] sm:$0xff]  ;;  %v45_v57 = vld [vmem:[%s2722_s0 + $0x110] sm:$0xff]  ;;  %v1490_v59 = vld [vmem:[%s2723_s1 + $0x58] sm:$0xff]  ;;  %v1504_v63 = vmul.f32 %v1456_v49, %v20_v12  ;;  %v1588_v24 = vmul.f32 %v1446_v47, %v34_v33 }
  0x11   :  { %v1485_v58 = vld [vmem:[%s2723_s1 + $0x50] sm:$0xff]  ;;  %v1495_v60 = vld [vmem:[%s2723_s1 + $0x60] sm:$0xff]  ;;  %v46_v1 = vld [vmem:[%s2722_s0 + $0x118] sm:$0xff]  ;;  %v1540_v9 = vmul.f32 %v1490_v59, %v22_v16  ;;  %2730 = vst [vmem:[#allocation7_spill] sm:$0xff] %v1546_v11  ;;  %v1594_v11 = vmul.f32 %v1456_v49, %v36_v35  ;;  %v1612_v35 = vmul.f32 %v1490_v59, %v38_v44 }
  0x12   :  { %v47_v2 = vld [vmem:[%s2722_s0 + $0x120] sm:$0xff]  ;;  %v48_v3 = vld [vmem:[%s2722_s0 + $0x128] sm:$0xff]  ;;  %v49_v4 = vld [vmem:[%s2722_s0 + $0x130] sm:$0xff]  ;;  %v1537_v8 = vmul.f32 %v1485_v58, %v21_v15  ;;  %v1543_v10 = vmul.f32 %v1495_v60, %v23_v17  ;;  %2731 = vst [vmem:[#allocation8_spill] sm:$0xff] %v1570_v19  ;;  %v1591_v19 = vmul.f32 %v1451_v48, %v35_v34  ;;  %v1609_v34 = vmul.f32 %v1485_v58, %v37_v43 }
  0x13   :  { %v1524_v5 = vld [vmem:[%s2723_s1 + $0x68] sm:$0xff]  ;;  %v1529_v6 = vld [vmem:[%s2723_s1 + $0x70] sm:$0xff]  ;;  %v1534_v7 = vld [vmem:[%s2723_s1 + $0x78] sm:$0xff]  ;;  %2733 = vst [vmem:[#allocation10_spill] sm:$0xff] %v1588_v24  ;;  %v1615_v24 = vmul.f32 %v1495_v60, %v39_v45 }
  0x14   :  { %v50_v12 = vld [vmem:[%s2722_s0 + $0x138] sm:$0xff]  ;;  %v51_v13 = vld [vmem:[%s2722_s0 + $0x140] sm:$0xff]  ;;  %v52_v14 = vld [vmem:[%s2722_s0 + $0x148] sm:$0xff]  ;;  %v1561_v16 = vmul.f32 %v1524_v5, %v24_v21  ;;  %v1564_v17 = vmul.f32 %v1529_v6, %v25_v22  ;;  %v1567_v18 = vmul.f32 %v1534_v7, %v26_v23  ;;  %v1585_v23 = vmul.f32 %v1417_v38, %v33_v32  ;;  %2734 = vst [vmem:[#allocation11_spill] sm:$0xff] %v1594_v11 }
  0x15   :  { %v53_v15 = vld [vmem:[%s2722_s0 + $0x150] sm:$0xff]  ;;  %v54_v31 = vld [vmem:[%s2722_s0 + $0x158] sm:$0xff]  ;;  %v55_v30 = vld [vmem:[%s2722_s0 + $0x160] sm:$0xff]  ;;  %2735 = vst [vmem:[#allocation12_spill] sm:$0xff] %v1609_v34  ;;  %v1633_v45 = vmul.f32 %v1529_v6, %v41_v54 }
  0x16   :  { %v56_v21 = vld [vmem:[%s2722_s0 + $0x168] sm:$0xff]  ;;  %v57_v22 = vld [vmem:[%s2722_s0 + $0x170] sm:$0xff]  ;;  %2732 = vst [vmem:[#allocation9_spill] sm:$0xff] %v1585_v23  ;;  %v58_v0 = vld [vmem:[%s2722_s0 + $0x178] sm:$0xff]  ;;  %v1618_v23 = vmul.f32 %v1524_v5, %v40_v46  ;;  %v1636_v46 = vmul.f32 %v1534_v7, %v42_v55 }
  0x17   :  { %v60_v53 = vld [vmem:[%s2722_s0 + $0x188] sm:$0xff]  ;;  %v61_v32 = vld [vmem:[%s2722_s0 + $0x190] sm:$0xff]  ;;  %v62_v33 = vld [vmem:[%s2722_s0 + $0x198] sm:$0xff]  ;;  %2736 = vst [vmem:[#allocation13_spill] sm:$0xff] %v1612_v35 }
  0x18   :  { %2737 = vst [vmem:[#allocation14_spill] sm:$0xff] %v1615_v24  ;;  %2738 = vst [vmem:[#allocation15_spill] sm:$0xff] %v1618_v23  ;;  %v63_v11 = vld [vmem:[%s2722_s0 + $0x1a0] sm:$0xff]  ;;  %v64_v42 = vld [vmem:[%s2722_s0 + $0x1a8] sm:$0xff]  ;;  %v1639_v23 = vmul.f32 %v1368_v25, %v44_v56  ;;  %v1642_v24 = vmul.f32 %v1373_v26, %v45_v57  ;;  %v1657_v56 = vmul.f32 %v1378_v27, %v46_v1 }
  0x19   :  { %v65_v43 = vld [vmem:[%s2722_s0 + $0x1b0] sm:$0xff]  ;;  %v66_v44 = vld [vmem:[%s2722_s0 + $0x1b8] sm:$0xff]  ;;  %2739 = vst [vmem:[#allocation16_spill] sm:$0xff] %v1633_v45  ;;  %2740 = vst [vmem:[#allocation17_spill] sm:$0xff] %v1636_v46  ;;  %v1660_v57 = vmul.f32 %v1407_v36, %v47_v2 }
  0x1a   :  { %2741 = vst [vmem:[#allocation18_spill] sm:$0xff] %v1639_v23  ;;  %2742 = vst [vmem:[#allocation19_spill] sm:$0xff] %v1642_v24  ;;  %v67_v35 = vld [vmem:[%s2722_s0 + $0x1c0] sm:$0xff]  ;;  %v68_v34 = vld [vmem:[%s2722_s0 + $0x1c8] sm:$0xff]  ;;  %v1663_v24 = vmul.f32 %v1412_v37, %v48_v3  ;;  %v1666_v23 = vmul.f32 %v1417_v38, %v49_v4  ;;  %v1681_v3 = vmul.f32 %v1446_v47, %v50_v12 }
  0x1b   :  { %v69_v54 = vld [vmem:[%s2722_s0 + $0x1d0] sm:$0xff]  ;;  %v70_v55 = vld [vmem:[%s2722_s0 + $0x1d8] sm:$0xff]  ;;  %2743 = vst [vmem:[#allocation20_spill] sm:$0xff] %v1657_v56  ;;  %2744 = vst [vmem:[#allocation21_spill] sm:$0xff] %v1660_v57  ;;  %v1684_v4 = vmul.f32 %v1451_v48, %v51_v13 }
  0x1c   :  { %2745 = vst [vmem:[#allocation22_spill] sm:$0xff] %v1663_v24  ;;  %2746 = vst [vmem:[#allocation23_spill] sm:$0xff] %v1666_v23  ;;  %v71_v46 = vld [vmem:[%s2722_s0 + $0x1e0] sm:$0xff]  ;;  %v72_v45 = vld [vmem:[%s2722_s0 + $0x1e8] sm:$0xff]  ;;  %v1687_v23 = vmul.f32 %v1456_v49, %v52_v14  ;;  %v1690_v24 = vmul.f32 %v1485_v58, %v53_v15  ;;  %v1705_v14 = vmul.f32 %v1490_v59, %v54_v31 }
  0x1d   :  { %v73_v1 = vld [vmem:[%s2722_s0 + $0x1f0] sm:$0xff]  ;;  %v74_v2 = vld [vmem:[%s2722_s0 + $0x1f8] sm:$0xff]  ;;  %2747 = vst [vmem:[#allocation24_spill] sm:$0xff] %v1681_v3  ;;  %2748 = vst [vmem:[#allocation25_spill] sm:$0xff] %v1684_v4  ;;  %v1708_v15 = vmul.f32 %v1495_v60, %v55_v30  ;;  %v1711_v3 = vmul.f32 %v1524_v5, %v56_v21  ;;  %v1729_v21 = vmul.f32 %v1534_v7, %v58_v0 }
  0x1e   :  { %2749 = vst [vmem:[#allocation26_spill] sm:$0xff] %v1687_v23  ;;  %2750 = vst [vmem:[#allocation27_spill] sm:$0xff] %v1690_v24  ;;  %v75_v57 = vld [vmem:[%s2722_s0 + $0x200] sm:$0xff]  ;;  %v76_v56 = vld [vmem:[%s2722_s0 + $0x208] sm:$0xff]  ;;  %v1714_v24 = vmul.f32 %v1529_v6, %v57_v22  ;;  %v1732_v22 = vmul.f32 %v1368_v25, %v60_v53 }
  0x1f   :  { %v77_v12 = vld [vmem:[%s2722_s0 + $0x210] sm:$0xff]  ;;  %v78_v13 = vld [vmem:[%s2722_s0 + $0x218] sm:$0xff]  ;;  %2751 = vst [vmem:[#allocation28_spill] sm:$0xff] %v1705_v14  ;;  %2752 = vst [vmem:[#allocation29_spill] sm:$0xff] %v1708_v15 }
  0x20   :  { %2753 = vst [vmem:[#allocation30_spill] sm:$0xff] %v1711_v3  ;;  %2754 = vst [vmem:[#allocation31_spill] sm:$0xff] %v1714_v24  ;;  %v79_v23 = vld [vmem:[%s2722_s0 + $0x220] sm:$0xff]  ;;  %v80_v4 = vld [vmem:[%s2722_s0 + $0x228] sm:$0xff]  ;;  %v1735_v24 = vmul.f32 %v1373_v26, %v61_v32  ;;  %v1738_v3 = vmul.f32 %v1378_v27, %v62_v33  ;;  %v1753_v32 = vmul.f32 %v1407_v36, %v63_v11 }
  0x21   :  { %v81_v31 = vld [vmem:[%s2722_s0 + $0x230] sm:$0xff]  ;;  %v82_v30 = vld [vmem:[%s2722_s0 + $0x238] sm:$0xff]  ;;  %2755 = vst [vmem:[#allocation32_spill] sm:$0xff] %v1729_v21  ;;  %2756 = vst [vmem:[#allocation33_spill] sm:$0xff] %v1732_v22  ;;  %v1756_v33 = vmul.f32 %v1412_v37, %v64_v42 }
  0x22   :  { %2757 = vst [vmem:[#allocation34_spill] sm:$0xff] %v1735_v24  ;;  %2758 = vst [vmem:[#allocation35_spill] sm:$0xff] %v1738_v3  ;;  %v83_v15 = vld [vmem:[%s2722_s0 + $0x240] sm:$0xff]  ;;  %v84_v14 = vld [vmem:[%s2722_s0 + $0x248] sm:$0xff]  ;;  %v1759_v3 = vmul.f32 %v1417_v38, %v65_v43  ;;  %v1762_v24 = vmul.f32 %v1446_v47, %v66_v44  ;;  %v1777_v43 = vmul.f32 %v1451_v48, %v67_v35 }
  0x23   :  { %v85_v0 = vld [vmem:[%s2722_s0 + $0x250] sm:$0xff]  ;;  %v86_v53 = vld [vmem:[%s2722_s0 + $0x258] sm:$0xff]  ;;  %2759 = vst [vmem:[#allocation36_spill] sm:$0xff] %v1753_v32  ;;  %2760 = vst [vmem:[#allocation37_spill] sm:$0xff] %v1756_v33  ;;  %v1780_v44 = vmul.f32 %v1456_v49, %v68_v34 }
  0x24   :  { %2761 = vst [vmem:[#allocation38_spill] sm:$0xff] %v1759_v3  ;;  %2762 = vst [vmem:[#allocation39_spill] sm:$0xff] %v1762_v24  ;;  %v87_v22 = vld [vmem:[%s2722_s0 + $0x260] sm:$0xff]  ;;  %v88_v21 = vld [vmem:[%s2722_s0 + $0x268] sm:$0xff]  ;;  %v1783_v24 = vmul.f32 %v1485_v58, %v69_v54  ;;  %v1786_v3 = vmul.f32 %v1490_v59, %v70_v55  ;;  %v1801_v54 = vmul.f32 %v1495_v60, %v71_v46 }
  0x25   :  { %v89_v11 = vld [vmem:[%s2722_s0 + $0x270] sm:$0xff]  ;;  %v90_v42 = vld [vmem:[%s2722_s0 + $0x278] sm:$0xff]  ;;  %2763 = vst [vmem:[#allocation40_spill] sm:$0xff] %v1777_v43  ;;  %2764 = vst [vmem:[#allocation41_spill] sm:$0xff] %v1780_v44  ;;  %v1804_v55 = vmul.f32 %v1524_v5, %v72_v45 }
  0x26   :  { %2765 = vst [vmem:[#allocation42_spill] sm:$0xff] %v1783_v24  ;;  %2766 = vst [vmem:[#allocation43_spill] sm:$0xff] %v1786_v3  ;;  %v91_v33 = vld [vmem:[%s2722_s0 + $0x280] sm:$0xff]  ;;  %v92_v32 = vld [vmem:[%s2722_s0 + $0x288] sm:$0xff]  ;;  %v1807_v3 = vmul.f32 %v1529_v6, %v73_v1  ;;  %v1810_v24 = vmul.f32 %v1534_v7, %v74_v2  ;;  %v1825_v1 = vmul.f32 %v1351_v20, %v75_v57 }
  0x27   :  { %v93_v35 = vld [vmem:[%s2722_s0 + $0x290] sm:$0xff]  ;;  %v94_v34 = vld [vmem:[%s2722_s0 + $0x298] sm:$0xff]  ;;  %2767 = vst [vmem:[#allocation44_spill] sm:$0xff] %v1801_v54  ;;  %2768 = vst [vmem:[#allocation45_spill] sm:$0xff] %v1804_v55  ;;  %v1828_v2 = vmul.f32 %v1368_v25, %v76_v56 }
  0x28   :  { %2769 = vst [vmem:[#allocation46_spill] sm:$0xff] %v1807_v3  ;;  %2770 = vst [vmem:[#allocation47_spill] sm:$0xff] %v1810_v24  ;;  %v95_v44 = vld [vmem:[%s2722_s0 + $0x2a0] sm:$0xff]  ;;  %v96_v43 = vld [vmem:[%s2722_s0 + $0x2a8] sm:$0xff]  ;;  %v1831_v24 = vmul.f32 %v1373_v26, %v77_v12  ;;  %v1834_v3 = vmul.f32 %v1378_v27, %v78_v13  ;;  %v1849_v12 = vmul.f32 %v1407_v36, %v79_v23 }
  0x29   :  { %v97_v46 = vld [vmem:[%s2722_s0 + $0x2b0] sm:$0xff]  ;;  %v98_v45 = vld [vmem:[%s2722_s0 + $0x2b8] sm:$0xff]  ;;  %2771 = vst [vmem:[#allocation48_spill] sm:$0xff] %v1825_v1  ;;  %2772 = vst [vmem:[#allocation49_spill] sm:$0xff] %v1828_v2  ;;  %v1852_v13 = vmul.f32 %v1412_v37, %v80_v4 }
  0x2a   :  { %2773 = vst [vmem:[#allocation50_spill] sm:$0xff] %v1831_v24  ;;  %2774 = vst [vmem:[#allocation51_spill] sm:$0xff] %v1834_v3  ;;  %v99_v55 = vld [vmem:[%s2722_s0 + $0x2c0] sm:$0xff]  ;;  %v100_v54 = vld [vmem:[%s2722_s0 + $0x2c8] sm:$0xff]  ;;  %v1855_v3 = vmul.f32 %v1417_v38, %v81_v31  ;;  %v1858_v24 = vmul.f32 %v1446_v47, %v82_v30  ;;  %v1873_v31 = vmul.f32 %v1451_v48, %v83_v15 }
  0x2b   :  { %v101_v57 = vld [vmem:[%s2722_s0 + $0x2d0] sm:$0xff]  ;;  %v102_v56 = vld [vmem:[%s2722_s0 + $0x2d8] sm:$0xff]  ;;  %2775 = vst [vmem:[#allocation52_spill] sm:$0xff] %v1849_v12  ;;  %2776 = vst [vmem:[#allocation53_spill] sm:$0xff] %v1852_v13  ;;  %v1876_v30 = vmul.f32 %v1456_v49, %v84_v14 }
  0x2c   :  { %2777 = vst [vmem:[#allocation54_spill] sm:$0xff] %v1855_v3  ;;  %2778 = vst [vmem:[#allocation55_spill] sm:$0xff] %v1858_v24  ;;  %v103_v2 = vld [vmem:[%s2722_s0 + $0x2e0] sm:$0xff]  ;;  %v104_v1 = vld [vmem:[%s2722_s0 + $0x2e8] sm:$0xff]  ;;  %v1879_v24 = vmul.f32 %v1485_v58, %v85_v0  ;;  %v1882_v3 = vmul.f32 %v1490_v59, %v86_v53  ;;  %v1897_v0 = vmul.f32 %v1495_v60, %v87_v22 }
  0x2d   :  { %v105_v23 = vld [vmem:[%s2722_s0 + $0x2f0] sm:$0xff]  ;;  %v106_v4 = vld [vmem:[%s2722_s0 + $0x2f8] sm:$0xff]  ;;  %2779 = vst [vmem:[#allocation56_spill] sm:$0xff] %v1873_v31  ;;  %2780 = vst [vmem:[#allocation57_spill] sm:$0xff] %v1876_v30  ;;  %v1900_v53 = vmul.f32 %v1524_v5, %v88_v21 }
  0x2e   :  { %2781 = vst [vmem:[#allocation58_spill] sm:$0xff] %v1879_v24  ;;  %2782 = vst [vmem:[#allocation59_spill] sm:$0xff] %v1882_v3  ;;  %v107_v13 = vld [vmem:[%s2722_s0 + $0x300] sm:$0xff]  ;;  %v108_v12 = vld [vmem:[%s2722_s0 + $0x308] sm:$0xff]  ;;  %v1903_v3 = vmul.f32 %v1529_v6, %v89_v11  ;;  %v1906_v24 = vmul.f32 %v1534_v7, %v90_v42  ;;  %v1921_v11 = vmul.f32 %v1351_v20, %v91_v33 }
  0x2f   :  { %v109_v15 = vld [vmem:[%s2722_s0 + $0x310] sm:$0xff]  ;;  %v110_v14 = vld [vmem:[%s2722_s0 + $0x318] sm:$0xff]  ;;  %2783 = vst [vmem:[#allocation60_spill] sm:$0xff] %v1897_v0  ;;  %2784 = vst [vmem:[#allocation61_spill] sm:$0xff] %v1900_v53  ;;  %v1924_v42 = vmul.f32 %v1368_v25, %v92_v32  ;;  %v1942_v32 = vmul.f32 %v1407_v36, %v95_v44 }
  0x30   :  { %2785 = vst [vmem:[#allocation62_spill] sm:$0xff] %v1903_v3  ;;  %2786 = vst [vmem:[#allocation63_spill] sm:$0xff] %v1906_v24  ;;  %v111_v30 = vld [vmem:[%s2722_s0 + $0x320] sm:$0xff]  ;;  %v112_v31 = vld [vmem:[%s2722_s0 + $0x328] sm:$0xff]  ;;  %v1927_v24 = vmul.f32 %v1373_v26, %v93_v35  ;;  %v1930_v3 = vmul.f32 %v1378_v27, %v94_v34  ;;  %v1945_v35 = vmul.f32 %v1412_v37, %v96_v43 }
  0x31   :  { %v113_v22 = vld [vmem:[%s2722_s0 + $0x330] sm:$0xff]  ;;  %v114_v21 = vld [vmem:[%s2722_s0 + $0x338] sm:$0xff]  ;;  %2787 = vst [vmem:[#allocation64_spill] sm:$0xff] %v1924_v42  ;;  %v115_v53 = vld [vmem:[%s2722_s0 + $0x340] sm:$0xff]  ;;  %v1948_v34 = vmul.f32 %v1417_v38, %v97_v46  ;;  %v1963_v43 = vmul.f32 %v1451_v48, %v99_v55  ;;  %v1966_v46 = vmul.f32 %v1456_v49, %v100_v54  ;;  %v1984_v54 = vmul.f32 %v1495_v60, %v103_v2 }
  0x32   :  { %2788 = vst [vmem:[#allocation65_spill] sm:$0xff] %v1927_v24  ;;  %2789 = vst [vmem:[#allocation66_spill] sm:$0xff] %v1930_v3  ;;  %v116_v0 = vld [vmem:[%s2722_s0 + $0x348] sm:$0xff]  ;;  %v117_v33 = vld [vmem:[%s2722_s0 + $0x350] sm:$0xff]  ;;  %v1951_v3 = vmul.f32 %v1446_v47, %v98_v45  ;;  %v1969_v45 = vmul.f32 %v1485_v58, %v101_v57  ;;  %v1987_v57 = vmul.f32 %v1524_v5, %v104_v1 }
  0x33   :  { %2790 = vst [vmem:[#allocation67_spill] sm:$0xff] %v1942_v32  ;;  %2791 = vst [vmem:[#allocation68_spill] sm:$0xff] %v1945_v35  ;;  %v118_v24 = vld [vmem:[%s2722_s0 + $0x358] sm:$0xff]  ;;  %v119_v42 = vld [vmem:[%s2722_s0 + $0x360] sm:$0xff]  ;;  %v1993_v32 = vmul.f32 %v1534_v7, %v106_v4  ;;  %v2005_v1 = vmul.f32 %v1351_v20, %v107_v13  ;;  %v2011_v4 = vmul.f32 %v1373_v26, %v109_v15 }
  0x34   :  { %2792 = vst [vmem:[#allocation69_spill] sm:$0xff] %v1948_v34  ;;  %2793 = vst [vmem:[#allocation70_spill] sm:$0xff] %v1951_v3  ;;  %v120_v44 = vld [vmem:[%s2722_s0 + $0x368] sm:$0xff]  ;;  %v1972_v3 = vmul.f32 %v1490_v59, %v102_v56  ;;  %v121_v34 = vld [vmem:[%s2722_s0 + $0x370] sm:$0xff]  ;;  %v1990_v56 = vmul.f32 %v1529_v6, %v105_v23  ;;  %v2008_v23 = vmul.f32 %v1368_v25, %v108_v12 }
  0x35   :  { %2794 = vst [vmem:[#allocation71_spill] sm:$0xff] %v1969_v45  ;;  %v122_v35 = vld [vmem:[%s2722_s0 + $0x378] sm:$0xff]  ;;  %v123_v55 = vld [vmem:[%s2722_s0 + $0x380] sm:$0xff]  ;;  %2796 = vst [vmem:[#allocation73_spill] sm:$0xff] %v1987_v57  ;;  %v2026_v12 = vmul.f32 %v1407_v36, %v111_v30  ;;  %v2029_v15 = vmul.f32 %v1412_v37, %v112_v31  ;;  %v2047_v31 = vmul.f32 %v1451_v48, %v115_v53 }
  0x36   :  { %2795 = vst [vmem:[#allocation72_spill] sm:$0xff] %v1972_v3  ;;  %2797 = vst [vmem:[#allocation74_spill] sm:$0xff] %v1990_v56  ;;  %v124_v3 = vld [vmem:[%s2722_s0 + $0x388] sm:$0xff]  ;;  %v125_v45 = vld [vmem:[%s2722_s0 + $0x390] sm:$0xff] }
  0x37   :  { %2798 = vst [vmem:[#allocation75_spill] sm:$0xff] %v1993_v32  ;;  %v126_v2 = vld [vmem:[%s2722_s0 + $0x398] sm:$0xff]  ;;  %2799 = vst [vmem:[#allocation76_spill] sm:$0xff] %v2008_v23  ;;  %v2014_v32 = vmul.f32 %v1378_v27, %v110_v14  ;;  %v127_v56 = vld [vmem:[%s2722_s0 + $0x3a0] sm:$0xff]  ;;  %v2032_v14 = vmul.f32 %v1417_v38, %v113_v22  ;;  %v2050_v22 = vmul.f32 %v1456_v49, %v116_v0 }
  0x38   :  { %2800 = vst [vmem:[#allocation77_spill] sm:$0xff] %v2011_v4  ;;  %v128_v57 = vld [vmem:[%s2722_s0 + $0x3a8] sm:$0xff]  ;;  %v129_v13 = vld [vmem:[%s2722_s0 + $0x3b0] sm:$0xff]  ;;  %2802 = vst [vmem:[#allocation79_spill] sm:$0xff] %v2026_v12  ;;  %v2068_v0 = vmul.f32 %v1495_v60, %v119_v42  ;;  %v2077_v12 = vmul.f32 %v1534_v7, %v122_v35  ;;  %v2095_v35 = vmul.f32 %v1373_v26, %v125_v45 }
  0x39   :  { %2801 = vst [vmem:[#allocation78_spill] sm:$0xff] %v2014_v32  ;;  %2803 = vst [vmem:[#allocation80_spill] sm:$0xff] %v2029_v15  ;;  %v2035_v32 = vmul.f32 %v1446_v47, %v114_v21  ;;  %v130_v4 = vld [vmem:[%s2722_s0 + $0x3b8] sm:$0xff]  ;;  %v131_v23 = vld [vmem:[%s2722_s0 + $0x3c0] sm:$0xff]  ;;  %v2053_v21 = vmul.f32 %v1485_v58, %v117_v33  ;;  %v2071_v33 = vmul.f32 %v1524_v5, %v120_v44 }
  0x3a   :  { %2804 = vst [vmem:[#allocation81_spill] sm:$0xff] %v2032_v14  ;;  %v132_v30 = vld [vmem:[%s2722_s0 + $0x3c8] sm:$0xff]  ;;  %v133_v14 = vld [vmem:[%s2722_s0 + $0x3d0] sm:$0xff]  ;;  %v134_v15 = vld [vmem:[%s2722_s0 + $0x3d8] sm:$0xff]  ;;  %v2089_v44 = vmul.f32 %v1351_v20, %v123_v55  ;;  %v2110_v20 = vmul.f32 %v1446_v47, %v130_v4 }
  0x3b   :  { %2805 = vst [vmem:[#allocation82_spill] sm:$0xff] %v2035_v32  ;;  %2806 = vst [vmem:[#allocation83_spill] sm:$0xff] %v2053_v21  ;;  %v2056_v32 = vmul.f32 %v1490_v59, %v118_v24  ;;  %v135_v53 = vld [vmem:[%s2722_s0 + $0x3e0] sm:$0xff]  ;;  %v2074_v24 = vmul.f32 %v1529_v6, %v121_v34  ;;  %v137_v21 = vld [vmem:[%s2722_s0 + $0x3f0] sm:$0xff]  ;;  %v2092_v34 = vmul.f32 %v1368_v25, %v124_v3 }
  0x3c   :  { %2808 = vst [vmem:[#allocation85_spill] sm:$0xff] %v2068_v0  ;;  %2809 = vst [vmem:[#allocation86_spill] sm:$0xff] %v2071_v33  ;;  %v138_v42 = vld [vmem:[%s2722_s0 + $0x3f8] sm:$0xff]  ;;  %v2104_v33 = vmul.f32 %v1412_v37, %v128_v57  ;;  %v2107_v0 = vmul.f32 %v1417_v38, %v129_v13  ;;  %v2113_v25 = vmul.f32 %v1451_v48, %v131_v23 }
  0x3d   :  { %2807 = vst [vmem:[#allocation84_spill] sm:$0xff] %v2056_v32  ;;  %2810 = vst [vmem:[#allocation87_spill] sm:$0xff] %v2074_v24  ;;  %v136_v32 = vld [vmem:[%s2722_s0 + $0x3e8] sm:$0xff]  ;;  %v2101_v24 = vmul.f32 %v1407_v36, %v127_v56  ;;  %v2116_v26 = vmul.f32 %v1456_v49, %v132_v30  ;;  %v2122_v36 = vmul.f32 %v1490_v59, %v134_v15 }
  0x3e   :  { %2811 = vst [vmem:[#allocation88_spill] sm:$0xff] %v2077_v12  ;;  %v2098_v12 = vmul.f32 %v1378_v27, %v126_v2  ;;  %v2119_v27 = vmul.f32 %v1485_v58, %v133_v14  ;;  %v2125_v37 = vmul.f32 %v1495_v60, %v135_v53  ;;  %v2128_v38 = vmul.f32 %v1524_v5, %v136_v32 }
  0x3f   :  { %v2131_v47 = vmul.f32 %v1529_v6, %v137_v21  ;;  %v2134_v48 = vmul.f32 %v1534_v7, %v138_v42  ;;  %v283_v49 = vadd.f32 %v1501_v62, %v1381_v28  ;;  %v290_v58 = vadd.f32 %v1504_v63, %v1420_v39 }
  0x40   :  { %v297_v59 = vadd.f32 %v1537_v8, %v1423_v40  ;;  %v304_v60 = vadd.f32 %v1540_v9, %v1426_v41  ;;  %v311_v5 = vadd.f32 %v1543_v10, %v1459_v50  ;;  %v318_v6 = vadd.f32 %v1561_v16, %v1462_v51 }
  0x41   :  { %v325_v7 = vadd.f32 %v1564_v17, %v1465_v52  ;;  %v332_v28 = vadd.f32 %v1567_v18, %v1498_v61  ;;  %v284_v62 = vrot.slane %v283_v49, 4  ;;  %v291_v39 = vrot.slane %v290_v58, 4 }
  0x42   :  { %v298_v63 = vrot.slane %v297_v59, 4  ;;  %v305_v3 = vrot.slane %v304_v60, 4  ;;  %v312_v40 = vrot.slane %v311_v5, 4  ;;  %v319_v8 = vrot.slane %v318_v6, 4 }
  0x43   :  { %v326_v32 = vrot.slane %v325_v7, 4  ;;  %v333_v41 = vrot.slane %v332_v28, 4  ;;  %v285_v9 = vadd.f32 %v284_v62, %v283_v49  ;;  %v292_v45 = vadd.f32 %v291_v39, %v290_v58 }
  0x44   :  { %v299_v50 = vadd.f32 %v298_v63, %v297_v59  ;;  %v306_v10 = vadd.f32 %v305_v3, %v304_v60  ;;  %v313_v55 = vadd.f32 %v312_v40, %v311_v5  ;;  %v320_v51 = vadd.f32 %v319_v8, %v318_v6 }
  0x45   :  { %v327_v16 = vadd.f32 %v326_v32, %v325_v7  ;;  %v334_v57 = vadd.f32 %v333_v41, %v332_v28  ;;  %v286_v52 = vrot.slane %v285_v9, 2  ;;  %v293_v17 = vrot.slane %v292_v45, 2 }
  0x46   :  { %v300_v56 = vrot.slane %v299_v50, 2  ;;  %v307_v61 = vrot.slane %v306_v10, 2  ;;  %v314_v18 = vrot.slane %v313_v55, 2  ;;  %v321_v2 = vrot.slane %v320_v51, 2 }
  0x47   :  { %v328_v23 = vrot.slane %v327_v16, 2  ;;  %v335_v4 = vrot.slane %v334_v57, 2  ;;  %v287_v13 = vadd.f32 %v286_v52, %v285_v9  ;;  %v294_v15 = vadd.f32 %v293_v17, %v292_v45  ;;  %v2819_v52 = vld [vmem:[#allocation6_spill] sm:$0xff]  ;;  %v2820_v17 = vld [vmem:[#allocation13_spill] sm:$0xff] }
  0x48   :  { %v301_v14 = vadd.f32 %v300_v56, %v299_v50  ;;  %v308_v30 = vadd.f32 %v307_v61, %v306_v10  ;;  %v315_v21 = vadd.f32 %v314_v18, %v313_v55  ;;  %v322_v53 = vadd.f32 %v321_v2, %v320_v51  ;;  %v2815_v50 = vld [vmem:[#allocation4_spill] sm:$0xff]  ;;  %v2816_v10 = vld [vmem:[#allocation11_spill] sm:$0xff]  ;;  %v2817_v51 = vld [vmem:[#allocation5_spill] sm:$0xff] }
  0x49   :  { %v329_v42 = vadd.f32 %v328_v23, %v327_v16  ;;  %v336_v49 = vadd.f32 %v335_v4, %v334_v57  ;;  %v288_v58 = vrot.slane %v287_v13, 1  ;;  %v295_v59 = vrot.slane %v294_v15, 1  ;;  %v2818_v16 = vld [vmem:[#allocation12_spill] sm:$0xff]  ;;  %v2821_v61 = vld [vmem:[#allocation7_spill] sm:$0xff]  ;;  %v2822_v18 = vld [vmem:[#allocation14_spill] sm:$0xff] }
  0x4a   :  { %v302_v60 = vrot.slane %v301_v14, 1  ;;  %v309_v5 = vrot.slane %v308_v30, 1  ;;  %v316_v6 = vrot.slane %v315_v21, 1  ;;  %v323_v7 = vrot.slane %v322_v53, 1  ;;  %v2823_v23 = vld [vmem:[#allocation8_spill] sm:$0xff]  ;;  %v2824_v4 = vld [vmem:[#allocation15_spill] sm:$0xff] }
  0x4b   :  { %v330_v28 = vrot.slane %v329_v42, 1  ;;  %v337_v62 = vrot.slane %v336_v49, 1  ;;  %v2152_v39 = vadd.f32 %v288_v58, %v287_v13  ;;  %v2154_v63 = vadd.f32 %v295_v59, %v294_v15  ;;  %v2825_v15 = vld [vmem:[#allocation9_spill] sm:$0xff] }
  0x4c   :  { %v2156_v3 = vadd.f32 %v302_v60, %v301_v14  ;;  %v2158_v40 = vadd.f32 %v309_v5, %v308_v30  ;;  %v2160_v8 = vadd.f32 %v316_v6, %v315_v21  ;;  %v2162_v32 = vadd.f32 %v323_v7, %v322_v53  ;;  %v2826_v14 = vld [vmem:[#allocation16_spill] sm:$0xff]  ;;  %v2827_v21 = vld [vmem:[#allocation10_spill] sm:$0xff] }
  0x4d   :  { %v2164_v41 = vadd.f32 %v330_v28, %v329_v42  ;;  %v2166_v9 = vadd.f32 %v337_v62, %v336_v49  ;;  %v339_v45 = vadd.f32 %v1591_v19, %v1384_v29  ;;  %v346_v55 = vadd.f32 %v2816_v10, %v2815_v50  ;;  %v2828_v29 = vld [vmem:[#allocation17_spill] sm:$0xff] }
  0x4e   :  { %2812 = vst [vmem:[#allocation89_spill] sm:$0xff] %v2162_v32  ;;  %v353_v57 = vadd.f32 %v2818_v16, %v2817_v51  ;;  %v360_v56 = vadd.f32 %v2820_v17, %v2819_v52  ;;  %v367_v2 = vadd.f32 %v2822_v18, %v2821_v61  ;;  %v374_v13 = vadd.f32 %v2824_v4, %v2823_v23 }
  0x4f   :  { %2813 = vst [vmem:[#allocation90_spill] sm:$0xff] %v2164_v41  ;;  %2814 = vst [vmem:[#allocation91_spill] sm:$0xff] %v2166_v9  ;;  %v381_v30 = vadd.f32 %v2826_v14, %v2825_v15  ;;  %v388_v19 = vadd.f32 %v2828_v29, %v2827_v21  ;;  %v340_v53 = vrot.slane %v339_v45, 4  ;;  %v347_v42 = vrot.slane %v346_v55, 4 }
  0x50   :  { %v354_v49 = vrot.slane %v353_v57, 4  ;;  %v361_v58 = vrot.slane %v360_v56, 4  ;;  %v368_v59 = vrot.slane %v367_v2, 4  ;;  %v375_v60 = vrot.slane %v374_v13, 4 }
  0x51   :  { %v382_v5 = vrot.slane %v381_v30, 4  ;;  %v389_v6 = vrot.slane %v388_v19, 4  ;;  %v341_v7 = vadd.f32 %v340_v53, %v339_v45  ;;  %v348_v28 = vadd.f32 %v347_v42, %v346_v55 }
  0x52   :  { %v355_v62 = vadd.f32 %v354_v49, %v353_v57  ;;  %v362_v50 = vadd.f32 %v361_v58, %v360_v56  ;;  %v369_v10 = vadd.f32 %v368_v59, %v367_v2  ;;  %v376_v51 = vadd.f32 %v375_v60, %v374_v13 }
  0x53   :  { %v383_v16 = vadd.f32 %v382_v5, %v381_v30  ;;  %v390_v52 = vadd.f32 %v389_v6, %v388_v19  ;;  %v342_v17 = vrot.slane %v341_v7, 2  ;;  %v349_v61 = vrot.slane %v348_v28, 2 }
  0x54   :  { %v356_v18 = vrot.slane %v355_v62, 2  ;;  %v363_v23 = vrot.slane %v362_v50, 2  ;;  %v370_v4 = vrot.slane %v369_v10, 2  ;;  %v377_v15 = vrot.slane %v376_v51, 2 }
  0x55   :  { %v384_v14 = vrot.slane %v383_v16, 2  ;;  %v391_v21 = vrot.slane %v390_v52, 2  ;;  %v343_v29 = vadd.f32 %v342_v17, %v341_v7  ;;  %v350_v9 = vadd.f32 %v349_v61, %v348_v28  ;;  %v2840_v17 = vld [vmem:[#allocation26_spill] sm:$0xff] }
  0x56   :  { %v357_v41 = vadd.f32 %v356_v18, %v355_v62  ;;  %v364_v32 = vadd.f32 %v363_v23, %v362_v50  ;;  %v371_v45 = vadd.f32 %v370_v4, %v369_v10  ;;  %v378_v55 = vadd.f32 %v377_v15, %v376_v51  ;;  %v2837_v10 = vld [vmem:[#allocation2_spill] sm:$0xff]  ;;  %v2838_v51 = vld [vmem:[#allocation25_spill] sm:$0xff]  ;;  %v2842_v18 = vld [vmem:[#allocation27_spill] sm:$0xff] }
  0x57   :  { %v385_v57 = vadd.f32 %v384_v14, %v383_v16  ;;  %v392_v56 = vadd.f32 %v391_v21, %v390_v52  ;;  %v344_v2 = vrot.slane %v343_v29, 1  ;;  %v351_v13 = vrot.slane %v350_v9, 1  ;;  %v2839_v52 = vld [vmem:[#allocation18_spill] sm:$0xff]  ;;  %v2843_v23 = vld [vmem:[#allocation20_spill] sm:$0xff]  ;;  %v2845_v15 = vld [vmem:[#allocation21_spill] sm:$0xff] }
  0x58   :  { %v358_v30 = vrot.slane %v357_v41, 1  ;;  %v365_v19 = vrot.slane %v364_v32, 1  ;;  %v372_v53 = vrot.slane %v371_v45, 1  ;;  %v379_v42 = vrot.slane %v378_v55, 1  ;;  %v2846_v14 = vld [vmem:[#allocation29_spill] sm:$0xff] }
  0x59   :  { %v386_v49 = vrot.slane %v385_v57, 1  ;;  %v393_v58 = vrot.slane %v392_v56, 1  ;;  %v2184_v59 = vadd.f32 %v344_v2, %v343_v29  ;;  %v2186_v60 = vadd.f32 %v351_v13, %v350_v9  ;;  %v2841_v9 = vld [vmem:[#allocation19_spill] sm:$0xff]  ;;  %v2847_v29 = vld [vmem:[#allocation22_spill] sm:$0xff]  ;;  %v2851_v13 = vld [vmem:[#allocation24_spill] sm:$0xff] }
  0x5a   :  { %v2188_v5 = vadd.f32 %v358_v30, %v357_v41  ;;  %v2190_v6 = vadd.f32 %v365_v19, %v364_v32  ;;  %v2192_v7 = vadd.f32 %v372_v53, %v371_v45  ;;  %v2194_v28 = vadd.f32 %v379_v42, %v378_v55  ;;  %v2844_v32 = vld [vmem:[#allocation28_spill] sm:$0xff]  ;;  %v2848_v45 = vld [vmem:[#allocation30_spill] sm:$0xff] }
  0x5b   :  { %2829 = vst [vmem:[#allocation4_spill] sm:$0xff] %v2184_v59  ;;  %2830 = vst [vmem:[#allocation11_spill] sm:$0xff] %v2186_v60  ;;  %v2196_v62 = vadd.f32 %v386_v49, %v385_v57  ;;  %v2198_v50 = vadd.f32 %v393_v58, %v392_v56  ;;  %v395_v16 = vadd.f32 %v2838_v51, %v2837_v10  ;;  %v2849_v57 = vld [vmem:[#allocation23_spill] sm:$0xff]  ;;  %v2852_v30 = vld [vmem:[#allocation32_spill] sm:$0xff] }
  0x5c   :  { %2831 = vst [vmem:[#allocation5_spill] sm:$0xff] %v2188_v5  ;;  %2832 = vst [vmem:[#allocation12_spill] sm:$0xff] %v2190_v6  ;;  %v402_v61 = vadd.f32 %v2840_v17, %v2839_v52  ;;  %v409_v41 = vadd.f32 %v2842_v18, %v2841_v9  ;;  %v416_v4 = vadd.f32 %v2844_v32, %v2843_v23  ;;  %v2850_v56 = vld [vmem:[#allocation31_spill] sm:$0xff] }
  0x5d   :  { %2833 = vst [vmem:[#allocation6_spill] sm:$0xff] %v2192_v7  ;;  %2834 = vst [vmem:[#allocation13_spill] sm:$0xff] %v2194_v28  ;;  %v423_v21 = vadd.f32 %v2846_v14, %v2845_v15  ;;  %v430_v55 = vadd.f32 %v2848_v45, %v2847_v29  ;;  %v437_v2 = vadd.f32 %v2850_v56, %v2849_v57  ;;  %v396_v53 = vrot.slane %v395_v16, 4 }
  0x5e   :  { %2835 = vst [vmem:[#allocation7_spill] sm:$0xff] %v2196_v62  ;;  %2836 = vst [vmem:[#allocation14_spill] sm:$0xff] %v2198_v50  ;;  %v444_v19 = vadd.f32 %v2852_v30, %v2851_v13  ;;  %v403_v42 = vrot.slane %v402_v61, 4  ;;  %v410_v49 = vrot.slane %v409_v41, 4  ;;  %v417_v58 = vrot.slane %v416_v4, 4 }
  0x5f   :  { %v424_v10 = vrot.slane %v423_v21, 4  ;;  %v431_v51 = vrot.slane %v430_v55, 4  ;;  %v438_v52 = vrot.slane %v437_v2, 4  ;;  %v397_v9 = vadd.f32 %v396_v53, %v395_v16 }
  0x60   :  { %v445_v17 = vrot.slane %v444_v19, 4  ;;  %v404_v18 = vadd.f32 %v403_v42, %v402_v61  ;;  %v411_v23 = vadd.f32 %v410_v49, %v409_v41  ;;  %v418_v32 = vadd.f32 %v417_v58, %v416_v4 }
  0x61   :  { %v425_v15 = vadd.f32 %v424_v10, %v423_v21  ;;  %v432_v14 = vadd.f32 %v431_v51, %v430_v55  ;;  %v439_v29 = vadd.f32 %v438_v52, %v437_v2  ;;  %v398_v57 = vrot.slane %v397_v9, 2 }
  0x62   :  { %v446_v45 = vadd.f32 %v445_v17, %v444_v19  ;;  %v405_v56 = vrot.slane %v404_v18, 2  ;;  %v412_v50 = vrot.slane %v411_v23, 2  ;;  %v419_v13 = vrot.slane %v418_v32, 2 }
  0x63   :  { %v426_v30 = vrot.slane %v425_v15, 2  ;;  %v433_v62 = vrot.slane %v432_v14, 2  ;;  %v440_v28 = vrot.slane %v439_v29, 2  ;;  %v399_v6 = vadd.f32 %v398_v57, %v397_v9  ;;  %v2861_v9 = vld [vmem:[#allocation3_spill] sm:$0xff]  ;;  %v2869_v57 = vld [vmem:[#allocation36_spill] sm:$0xff] }
  0x64   :  { %v447_v7 = vrot.slane %v446_v45, 2  ;;  %v406_v5 = vadd.f32 %v405_v56, %v404_v18  ;;  %v413_v60 = vadd.f32 %v412_v50, %v411_v23  ;;  %v420_v59 = vadd.f32 %v419_v13, %v418_v32  ;;  %v2862_v18 = vld [vmem:[#allocation40_spill] sm:$0xff]  ;;  %v2863_v32 = vld [vmem:[#allocation33_spill] sm:$0xff] }
  0x65   :  { %v427_v16 = vadd.f32 %v426_v30, %v425_v15  ;;  %v434_v61 = vadd.f32 %v433_v62, %v432_v14  ;;  %v441_v41 = vadd.f32 %v440_v28, %v439_v29  ;;  %v400_v21 = vrot.slane %v399_v6, 1  ;;  %v2866_v14 = vld [vmem:[#allocation42_spill] sm:$0xff]  ;;  %v2867_v29 = vld [vmem:[#allocation35_spill] sm:$0xff]  ;;  %v2870_v56 = vld [vmem:[#allocation44_spill] sm:$0xff] }
  0x66   :  { %v448_v4 = vadd.f32 %v447_v7, %v446_v45  ;;  %v407_v55 = vrot.slane %v406_v5, 1  ;;  %v414_v2 = vrot.slane %v413_v60, 1  ;;  %v421_v19 = vrot.slane %v420_v59, 1  ;;  %v2871_v30 = vld [vmem:[#allocation37_spill] sm:$0xff] }
  0x67   :  { %v428_v53 = vrot.slane %v427_v16, 1  ;;  %v435_v42 = vrot.slane %v434_v61, 1  ;;  %v442_v49 = vrot.slane %v441_v41, 1  ;;  %v2216_v10 = vadd.f32 %v400_v21, %v399_v6  ;;  %v2864_v6 = vld [vmem:[#allocation41_spill] sm:$0xff] }
  0x68   :  { %v449_v58 = vrot.slane %v448_v4, 1  ;;  %v2218_v51 = vadd.f32 %v407_v55, %v406_v5  ;;  %v2220_v52 = vadd.f32 %v414_v2, %v413_v60  ;;  %v2222_v50 = vadd.f32 %v421_v19, %v420_v59  ;;  %v2865_v5 = vld [vmem:[#allocation34_spill] sm:$0xff]  ;;  %v2868_v59 = vld [vmem:[#allocation43_spill] sm:$0xff] }
  0x69   :  { %2853 = vst [vmem:[#allocation8_spill] sm:$0xff] %v2216_v10  ;;  %v2224_v17 = vadd.f32 %v428_v53, %v427_v16  ;;  %v2226_v28 = vadd.f32 %v435_v42, %v434_v61  ;;  %v2228_v7 = vadd.f32 %v442_v49, %v441_v41  ;;  %v451_v23 = vadd.f32 %v2862_v18, %v2861_v9  ;;  %v2872_v16 = vld [vmem:[#allocation45_spill] sm:$0xff]  ;;  %v2873_v41 = vld [vmem:[#allocation38_spill] sm:$0xff]  ;;  %v2875_v55 = vld [vmem:[#allocation39_spill] sm:$0xff] }
  0x6a   :  { %2854 = vst [vmem:[#allocation15_spill] sm:$0xff] %v2218_v51  ;;  %2855 = vst [vmem:[#allocation9_spill] sm:$0xff] %v2220_v52  ;;  %v2230_v62 = vadd.f32 %v449_v58, %v448_v4  ;;  %v458_v15 = vadd.f32 %v2864_v6, %v2863_v32  ;;  %v465_v60 = vadd.f32 %v2866_v14, %v2865_v5  ;;  %v2874_v4 = vld [vmem:[#allocation46_spill] sm:$0xff]  ;;  %v2876_v2 = vld [vmem:[#allocation47_spill] sm:$0xff] }
  0x6b   :  { %2856 = vst [vmem:[#allocation16_spill] sm:$0xff] %v2222_v50  ;;  %2857 = vst [vmem:[#allocation10_spill] sm:$0xff] %v2224_v17  ;;  %v472_v45 = vadd.f32 %v2868_v59, %v2867_v29  ;;  %v479_v13 = vadd.f32 %v2870_v56, %v2869_v57  ;;  %v486_v61 = vadd.f32 %v2872_v16, %v2871_v30  ;;  %v452_v53 = vrot.slane %v451_v23, 4 }
  0x6c   :  { %2858 = vst [vmem:[#allocation17_spill] sm:$0xff] %v2226_v28  ;;  %2859 = vst [vmem:[#allocation2_spill] sm:$0xff] %v2228_v7  ;;  %v493_v21 = vadd.f32 %v2874_v4, %v2873_v41  ;;  %v500_v19 = vadd.f32 %v2876_v2, %v2875_v55  ;;  %v459_v42 = vrot.slane %v458_v15, 4  ;;  %v466_v49 = vrot.slane %v465_v60, 4 }
  0x6d   :  { %2860 = vst [vmem:[#allocation25_spill] sm:$0xff] %v2230_v62  ;;  %v473_v58 = vrot.slane %v472_v45, 4  ;;  %v480_v9 = vrot.slane %v479_v13, 4  ;;  %v487_v18 = vrot.slane %v486_v61, 4  ;;  %v453_v5 = vadd.f32 %v452_v53, %v451_v23 }
  0x6e   :  { %v494_v32 = vrot.slane %v493_v21, 4  ;;  %v501_v6 = vrot.slane %v500_v19, 4  ;;  %v460_v14 = vadd.f32 %v459_v42, %v458_v15  ;;  %v467_v29 = vadd.f32 %v466_v49, %v465_v60 }
  0x6f   :  { %v474_v59 = vadd.f32 %v473_v58, %v472_v45  ;;  %v481_v57 = vadd.f32 %v480_v9, %v479_v13  ;;  %v488_v56 = vadd.f32 %v487_v18, %v486_v61  ;;  %v454_v41 = vrot.slane %v453_v5, 2 }
  0x70   :  { %v495_v30 = vadd.f32 %v494_v32, %v493_v21  ;;  %v502_v16 = vadd.f32 %v501_v6, %v500_v19  ;;  %v461_v4 = vrot.slane %v460_v14, 2  ;;  %v468_v62 = vrot.slane %v467_v29, 2 }
  0x71   :  { %v475_v55 = vrot.slane %v474_v59, 2  ;;  %v482_v2 = vrot.slane %v481_v57, 2  ;;  %v489_v7 = vrot.slane %v488_v56, 2  ;;  %v455_v50 = vadd.f32 %v454_v41, %v453_v5  ;;  %v2885_v5 = vld [vmem:[#allocation48_spill] sm:$0xff] }
  0x72   :  { %v496_v28 = vrot.slane %v495_v30, 2  ;;  %v503_v17 = vrot.slane %v502_v16, 2  ;;  %v462_v52 = vadd.f32 %v461_v4, %v460_v14  ;;  %v469_v51 = vadd.f32 %v468_v62, %v467_v29  ;;  %v2886_v14 = vld [vmem:[#allocation56_spill] sm:$0xff] }
  0x73   :  { %v476_v10 = vadd.f32 %v475_v55, %v474_v59  ;;  %v483_v23 = vadd.f32 %v482_v2, %v481_v57  ;;  %v490_v15 = vadd.f32 %v489_v7, %v488_v56  ;;  %v456_v13 = vrot.slane %v455_v50, 1  ;;  %v2887_v59 = vld [vmem:[#allocation49_spill] sm:$0xff]  ;;  %v2890_v56 = vld [vmem:[#allocation58_spill] sm:$0xff]  ;;  %v2893_v41 = vld [vmem:[#allocation52_spill] sm:$0xff] }
  0x74   :  { %v497_v60 = vadd.f32 %v496_v28, %v495_v30  ;;  %v504_v45 = vadd.f32 %v503_v17, %v502_v16  ;;  %v463_v61 = vrot.slane %v462_v52, 1  ;;  %v470_v21 = vrot.slane %v469_v51, 1  ;;  %v2891_v30 = vld [vmem:[#allocation51_spill] sm:$0xff]  ;;  %v2894_v4 = vld [vmem:[#allocation60_spill] sm:$0xff]  ;;  %v2895_v2 = vld [vmem:[#allocation53_spill] sm:$0xff] }
  0x75   :  { %v477_v19 = vrot.slane %v476_v10, 1  ;;  %v484_v53 = vrot.slane %v483_v23, 1  ;;  %v491_v42 = vrot.slane %v490_v15, 1  ;;  %v2248_v9 = vadd.f32 %v456_v13, %v455_v50  ;;  %v2888_v50 = vld [vmem:[#allocation57_spill] sm:$0xff] }
  0x76   :  { %v498_v49 = vrot.slane %v497_v60, 1  ;;  %v505_v58 = vrot.slane %v504_v45, 1  ;;  %v2250_v18 = vadd.f32 %v463_v61, %v462_v52  ;;  %v2252_v32 = vadd.f32 %v470_v21, %v469_v51  ;;  %v2889_v52 = vld [vmem:[#allocation50_spill] sm:$0xff]  ;;  %v2899_v61 = vld [vmem:[#allocation55_spill] sm:$0xff] }
  0x77   :  { %2877 = vst [vmem:[#allocation18_spill] sm:$0xff] %v2248_v9  ;;  %v2254_v62 = vadd.f32 %v477_v19, %v476_v10  ;;  %v2256_v6 = vadd.f32 %v484_v53, %v483_v23  ;;  %v2258_v28 = vadd.f32 %v491_v42, %v490_v15  ;;  %v507_v29 = vadd.f32 %v2886_v14, %v2885_v5  ;;  %v2892_v10 = vld [vmem:[#allocation59_spill] sm:$0xff]  ;;  %v2896_v23 = vld [vmem:[#allocation61_spill] sm:$0xff] }
  0x78   :  { %2878 = vst [vmem:[#allocation26_spill] sm:$0xff] %v2250_v18  ;;  %2879 = vst [vmem:[#allocation19_spill] sm:$0xff] %v2252_v32  ;;  %v2260_v17 = vadd.f32 %v498_v49, %v497_v60  ;;  %v2262_v7 = vadd.f32 %v505_v58, %v504_v45  ;;  %v514_v57 = vadd.f32 %v2888_v50, %v2887_v59  ;;  %v2897_v60 = vld [vmem:[#allocation54_spill] sm:$0xff]  ;;  %v2900_v21 = vld [vmem:[#allocation63_spill] sm:$0xff] }
  0x79   :  { %2880 = vst [vmem:[#allocation27_spill] sm:$0xff] %v2254_v62  ;;  %2881 = vst [vmem:[#allocation20_spill] sm:$0xff] %v2256_v6  ;;  %v521_v51 = vadd.f32 %v2890_v56, %v2889_v52  ;;  %v528_v16 = vadd.f32 %v2892_v10, %v2891_v30  ;;  %v535_v55 = vadd.f32 %v2894_v4, %v2893_v41  ;;  %v2898_v45 = vld [vmem:[#allocation62_spill] sm:$0xff]  ;;  %v508_v53 = vrot.slane %v507_v29, 4 }
  0x7a   :  { %2882 = vst [vmem:[#allocation28_spill] sm:$0xff] %v2258_v28  ;;  %2883 = vst [vmem:[#allocation21_spill] sm:$0xff] %v2260_v17  ;;  %v542_v15 = vadd.f32 %v2896_v23, %v2895_v2  ;;  %v549_v13 = vadd.f32 %v2898_v45, %v2897_v60  ;;  %v556_v19 = vadd.f32 %v2900_v21, %v2899_v61  ;;  %v515_v42 = vrot.slane %v514_v57, 4 }
  0x7b   :  { %2884 = vst [vmem:[#allocation29_spill] sm:$0xff] %v2262_v7  ;;  %v522_v49 = vrot.slane %v521_v51, 4  ;;  %v529_v58 = vrot.slane %v528_v16, 4  ;;  %v536_v5 = vrot.slane %v535_v55, 4  ;;  %v509_v52 = vadd.f32 %v508_v53, %v507_v29 }
  0x7c   :  { %v543_v14 = vrot.slane %v542_v15, 4  ;;  %v550_v59 = vrot.slane %v549_v13, 4  ;;  %v557_v50 = vrot.slane %v556_v19, 4  ;;  %v516_v56 = vadd.f32 %v515_v42, %v514_v57 }
  0x7d   :  { %v523_v30 = vadd.f32 %v522_v49, %v521_v51  ;;  %v530_v10 = vadd.f32 %v529_v58, %v528_v16  ;;  %v537_v41 = vadd.f32 %v536_v5, %v535_v55  ;;  %v510_v60 = vrot.slane %v509_v52, 2 }
  0x7e   :  { %v544_v4 = vadd.f32 %v543_v14, %v542_v15  ;;  %v551_v2 = vadd.f32 %v550_v59, %v549_v13  ;;  %v558_v23 = vadd.f32 %v557_v50, %v556_v19  ;;  %v517_v45 = vrot.slane %v516_v56, 2 }
  0x7f   :  { %v524_v7 = vrot.slane %v523_v30, 2  ;;  %v531_v61 = vrot.slane %v530_v10, 2  ;;  %v538_v21 = vrot.slane %v537_v41, 2  ;;  %v511_v62 = vadd.f32 %v510_v60, %v509_v52  ;;  %v2912_v60 = vld [vmem:[#allocation73_spill] sm:$0xff] }
  0x80   :  { %v545_v17 = vrot.slane %v544_v4, 2  ;;  %v552_v28 = vrot.slane %v551_v2, 2  ;;  %v559_v6 = vrot.slane %v558_v23, 2  ;;  %v518_v32 = vadd.f32 %v517_v45, %v516_v56  ;;  %v2905_v56 = vld [vmem:[#allocation64_spill] sm:$0xff] }
  0x81   :  { %v525_v18 = vadd.f32 %v524_v7, %v523_v30  ;;  %v532_v9 = vadd.f32 %v531_v61, %v530_v10  ;;  %v539_v29 = vadd.f32 %v538_v21, %v537_v41  ;;  %v512_v55 = vrot.slane %v511_v62, 1  ;;  %v2907_v30 = vld [vmem:[#allocation71_spill] sm:$0xff]  ;;  %v2908_v10 = vld [vmem:[#allocation66_spill] sm:$0xff]  ;;  %v2913_v61 = vld [vmem:[#allocation69_spill] sm:$0xff] }
  0x82   :  { %v546_v57 = vadd.f32 %v545_v17, %v544_v4  ;;  %v553_v51 = vadd.f32 %v552_v28, %v551_v2  ;;  %v560_v16 = vadd.f32 %v559_v6, %v558_v23  ;;  %v519_v15 = vrot.slane %v518_v32, 1  ;;  %v2910_v4 = vld [vmem:[#allocation67_spill] sm:$0xff]  ;;  %v2911_v23 = vld [vmem:[#allocation68_spill] sm:$0xff]  ;;  %v2914_v21 = vld [vmem:[#allocation74_spill] sm:$0xff] }
  0x83   :  { %v526_v13 = vrot.slane %v525_v18, 1  ;;  %v533_v19 = vrot.slane %v532_v9, 1  ;;  %v540_v53 = vrot.slane %v539_v29, 1  ;;  %v2280_v5 = vadd.f32 %v512_v55, %v511_v62 }
  0x84   :  { %v547_v42 = vrot.slane %v546_v57, 1  ;;  %v554_v49 = vrot.slane %v553_v51, 1  ;;  %v561_v58 = vrot.slane %v560_v16, 1  ;;  %v2282_v14 = vadd.f32 %v519_v15, %v518_v32  ;;  %v2906_v32 = vld [vmem:[#allocation65_spill] sm:$0xff] }
  0x85   :  { %v2284_v59 = vadd.f32 %v526_v13, %v525_v18  ;;  %v2286_v7 = vadd.f32 %v533_v19, %v532_v9  ;;  %v2288_v50 = vadd.f32 %v540_v53, %v539_v29  ;;  %v563_v52 = vadd.f32 %v1963_v43, %v1921_v11  ;;  %v2909_v9 = vld [vmem:[#allocation72_spill] sm:$0xff]  ;;  %v2916_v11 = vld [vmem:[#allocation75_spill] sm:$0xff] }
  0x86   :  { %v2290_v28 = vadd.f32 %v547_v42, %v546_v57  ;;  %v2292_v6 = vadd.f32 %v554_v49, %v553_v51  ;;  %v2294_v17 = vadd.f32 %v561_v58, %v560_v16  ;;  %v570_v62 = vadd.f32 %v1966_v46, %v2905_v56  ;;  %v2915_v57 = vld [vmem:[#allocation70_spill] sm:$0xff] }
  0x87   :  { %2901 = vst [vmem:[#allocation22_spill] sm:$0xff] %v2288_v50  ;;  %v577_v18 = vadd.f32 %v2907_v30, %v2906_v32  ;;  %v584_v41 = vadd.f32 %v2909_v9, %v2908_v10  ;;  %v591_v2 = vadd.f32 %v1984_v54, %v2910_v4  ;;  %v598_v45 = vadd.f32 %v2912_v60, %v2911_v23 }
  0x88   :  { %2902 = vst [vmem:[#allocation30_spill] sm:$0xff] %v2290_v28  ;;  %2903 = vst [vmem:[#allocation23_spill] sm:$0xff] %v2292_v6  ;;  %v605_v29 = vadd.f32 %v2914_v21, %v2913_v61  ;;  %v612_v43 = vadd.f32 %v2916_v11, %v2915_v57  ;;  %v564_v51 = vrot.slane %v563_v52, 4  ;;  %v571_v46 = vrot.slane %v570_v62, 4 }
  0x89   :  { %2904 = vst [vmem:[#allocation31_spill] sm:$0xff] %v2294_v17  ;;  %v578_v16 = vrot.slane %v577_v18, 4  ;;  %v585_v55 = vrot.slane %v584_v41, 4  ;;  %v592_v15 = vrot.slane %v591_v2, 4  ;;  %v599_v13 = vrot.slane %v598_v45, 4 }
  0x8a   :  { %v606_v19 = vrot.slane %v605_v29, 4  ;;  %v613_v53 = vrot.slane %v612_v43, 4  ;;  %v565_v42 = vadd.f32 %v564_v51, %v563_v52  ;;  %v572_v49 = vadd.f32 %v571_v46, %v570_v62 }
  0x8b   :  { %v579_v54 = vadd.f32 %v578_v16, %v577_v18  ;;  %v586_v58 = vadd.f32 %v585_v55, %v584_v41  ;;  %v593_v56 = vadd.f32 %v592_v15, %v591_v2  ;;  %v600_v32 = vadd.f32 %v599_v13, %v598_v45 }
  0x8c   :  { %v607_v30 = vadd.f32 %v606_v19, %v605_v29  ;;  %v614_v10 = vadd.f32 %v613_v53, %v612_v43  ;;  %v566_v9 = vrot.slane %v565_v42, 2  ;;  %v573_v4 = vrot.slane %v572_v49, 2 }
  0x8d   :  { %v580_v23 = vrot.slane %v579_v54, 2  ;;  %v587_v60 = vrot.slane %v586_v58, 2  ;;  %v594_v61 = vrot.slane %v593_v56, 2  ;;  %v601_v21 = vrot.slane %v600_v32, 2 }
  0x8e   :  { %v608_v57 = vrot.slane %v607_v30, 2  ;;  %v615_v11 = vrot.slane %v614_v10, 2  ;;  %v567_v17 = vadd.f32 %v566_v9, %v565_v42  ;;  %v574_v6 = vadd.f32 %v573_v4, %v572_v49  ;;  %v2927_v4 = vld [vmem:[#allocation79_spill] sm:$0xff] }
  0x8f   :  { %v581_v28 = vadd.f32 %v580_v23, %v579_v54  ;;  %v588_v50 = vadd.f32 %v587_v60, %v586_v58  ;;  %v595_v52 = vadd.f32 %v594_v61, %v593_v56  ;;  %v602_v62 = vadd.f32 %v601_v21, %v600_v32  ;;  %v2922_v32 = vld [vmem:[#allocation76_spill] sm:$0xff]  ;;  %v2928_v23 = vld [vmem:[#allocation85_spill] sm:$0xff]  ;;  %v2930_v21 = vld [vmem:[#allocation86_spill] sm:$0xff] }
  0x90   :  { %v609_v18 = vadd.f32 %v608_v57, %v607_v30  ;;  %v616_v41 = vadd.f32 %v615_v11, %v614_v10  ;;  %v568_v2 = vrot.slane %v567_v17, 1  ;;  %v575_v45 = vrot.slane %v574_v6, 1  ;;  %v2924_v30 = vld [vmem:[#allocation83_spill] sm:$0xff]  ;;  %v2925_v10 = vld [vmem:[#allocation78_spill] sm:$0xff]  ;;  %v2929_v61 = vld [vmem:[#allocation80_spill] sm:$0xff] }
  0x91   :  { %v582_v29 = vrot.slane %v581_v28, 1  ;;  %v589_v43 = vrot.slane %v588_v50, 1  ;;  %v596_v51 = vrot.slane %v595_v52, 1  ;;  %v603_v46 = vrot.slane %v602_v62, 1  ;;  %v2931_v11 = vld [vmem:[#allocation81_spill] sm:$0xff] }
  0x92   :  { %v610_v16 = vrot.slane %v609_v18, 1  ;;  %v617_v55 = vrot.slane %v616_v41, 1  ;;  %v2312_v15 = vadd.f32 %v568_v2, %v567_v17  ;;  %v2314_v13 = vadd.f32 %v575_v45, %v574_v6  ;;  %v2923_v6 = vld [vmem:[#allocation77_spill] sm:$0xff] }
  0x93   :  { %v2316_v19 = vadd.f32 %v582_v29, %v581_v28  ;;  %v2318_v53 = vadd.f32 %v589_v43, %v588_v50  ;;  %v2320_v42 = vadd.f32 %v596_v51, %v595_v52  ;;  %v2322_v49 = vadd.f32 %v603_v46, %v602_v62  ;;  %v2926_v50 = vld [vmem:[#allocation84_spill] sm:$0xff]  ;;  %v2932_v52 = vld [vmem:[#allocation87_spill] sm:$0xff] }
  0x94   :  { %v2324_v54 = vadd.f32 %v610_v16, %v609_v18  ;;  %v2326_v58 = vadd.f32 %v617_v55, %v616_v41  ;;  %v619_v56 = vadd.f32 %v2047_v31, %v2005_v1  ;;  %v626_v17 = vadd.f32 %v2050_v22, %v2922_v32  ;;  %v2933_v18 = vld [vmem:[#allocation82_spill] sm:$0xff]  ;;  %v2934_v1 = vld [vmem:[#allocation88_spill] sm:$0xff] }
  0x95   :  { %2917 = vst [vmem:[#allocation24_spill] sm:$0xff] %v2318_v53  ;;  %2918 = vst [vmem:[#allocation32_spill] sm:$0xff] %v2320_v42  ;;  %v633_v28 = vadd.f32 %v2924_v30, %v2923_v6  ;;  %v640_v9 = vadd.f32 %v2926_v50, %v2925_v10  ;;  %v647_v60 = vadd.f32 %v2928_v23, %v2927_v4 }
  0x96   :  { %2919 = vst [vmem:[#allocation3_spill] sm:$0xff] %v2322_v49  ;;  %2920 = vst [vmem:[#allocation40_spill] sm:$0xff] %v2324_v54  ;;  %v654_v57 = vadd.f32 %v2930_v21, %v2929_v61  ;;  %v661_v62 = vadd.f32 %v2932_v52, %v2931_v11  ;;  %v668_v31 = vadd.f32 %v2934_v1, %v2933_v18  ;;  %v620_v41 = vrot.slane %v619_v56, 4 }
  0x97   :  { %2921 = vst [vmem:[#allocation33_spill] sm:$0xff] %v2326_v58  ;;  %v627_v22 = vrot.slane %v626_v17, 4  ;;  %v634_v2 = vrot.slane %v633_v28, 4  ;;  %v641_v45 = vrot.slane %v640_v9, 4  ;;  %v648_v29 = vrot.slane %v647_v60, 4 }
  0x98   :  { %v655_v43 = vrot.slane %v654_v57, 4  ;;  %v662_v51 = vrot.slane %v661_v62, 4  ;;  %v669_v46 = vrot.slane %v668_v31, 4  ;;  %v621_v16 = vadd.f32 %v620_v41, %v619_v56 }
  0x99   :  { %v628_v55 = vadd.f32 %v627_v22, %v626_v17  ;;  %v635_v32 = vadd.f32 %v634_v2, %v633_v28  ;;  %v642_v6 = vadd.f32 %v641_v45, %v640_v9  ;;  %v649_v30 = vadd.f32 %v648_v29, %v647_v60 }
  0x9a   :  { %v656_v10 = vadd.f32 %v655_v43, %v654_v57  ;;  %v663_v50 = vadd.f32 %v662_v51, %v661_v62  ;;  %v670_v4 = vadd.f32 %v669_v46, %v668_v31  ;;  %v622_v23 = vrot.slane %v621_v16, 2 }
  0x9b   :  { %v629_v61 = vrot.slane %v628_v55, 2  ;;  %v636_v21 = vrot.slane %v635_v32, 2  ;;  %v643_v11 = vrot.slane %v642_v6, 2  ;;  %v650_v52 = vrot.slane %v649_v30, 2 }
  0x9c   :  { %v657_v18 = vrot.slane %v656_v10, 2  ;;  %v664_v1 = vrot.slane %v663_v50, 2  ;;  %v671_v58 = vrot.slane %v670_v4, 2  ;;  %v623_v54 = vadd.f32 %v622_v23, %v621_v16 }
  0x9d   :  { %v630_v49 = vadd.f32 %v629_v61, %v628_v55  ;;  %v637_v42 = vadd.f32 %v636_v21, %v635_v32  ;;  %v644_v53 = vadd.f32 %v643_v11, %v642_v6  ;;  %v651_v56 = vadd.f32 %v650_v52, %v649_v30 }
  0x9e   :  { %v658_v17 = vadd.f32 %v657_v18, %v656_v10  ;;  %v665_v28 = vadd.f32 %v664_v1, %v663_v50  ;;  %v672_v9 = vadd.f32 %v671_v58, %v670_v4  ;;  %v624_v60 = vrot.slane %v623_v54, 1 }
  0x9f   :  { %v631_v57 = vrot.slane %v630_v49, 1  ;;  %v638_v62 = vrot.slane %v637_v42, 1  ;;  %v645_v31 = vrot.slane %v644_v53, 1  ;;  %v652_v41 = vrot.slane %v651_v56, 1 }
  0xa0   :  { %v659_v22 = vrot.slane %v658_v17, 1  ;;  %v666_v2 = vrot.slane %v665_v28, 1  ;;  %v673_v45 = vrot.slane %v672_v9, 1  ;;  %v2344_v29 = vadd.f32 %v624_v60, %v623_v54 }
  0xa1   :  { %v2346_v43 = vadd.f32 %v631_v57, %v630_v49  ;;  %v2348_v51 = vadd.f32 %v638_v62, %v637_v42  ;;  %v2350_v46 = vadd.f32 %v645_v31, %v644_v53  ;;  %v2352_v16 = vadd.f32 %v652_v41, %v651_v56 }
  0xa2   :  { %v2354_v55 = vadd.f32 %v659_v22, %v658_v17  ;;  %v2356_v58 = vadd.f32 %v666_v2, %v665_v28  ;;  %v2358_v32 = vadd.f32 %v673_v45, %v672_v9  ;;  %v675_v6 = vadd.f32 %v2113_v25, %v2089_v44 }
  0xa3   :  { %v682_v54 = vadd.f32 %v2116_v26, %v2092_v34  ;;  %v689_v42 = vadd.f32 %v2119_v27, %v2095_v35  ;;  %v696_v53 = vadd.f32 %v2122_v36, %v2098_v12  ;;  %v703_v49 = vadd.f32 %v2125_v37, %v2101_v24 }
  0xa4   :  { %v710_v30 = vadd.f32 %v2128_v38, %v2104_v33  ;;  %v717_v10 = vadd.f32 %v2131_v47, %v2107_v0  ;;  %v724_v44 = vadd.f32 %v2134_v48, %v2110_v20  ;;  %v676_v25 = vrot.slane %v675_v6, 4 }
  0xa5   :  { %v683_v34 = vrot.slane %v682_v54, 4  ;;  %v690_v26 = vrot.slane %v689_v42, 4  ;;  %v697_v50 = vrot.slane %v696_v53, 4  ;;  %v704_v35 = vrot.slane %v703_v49, 4 }
  0xa6   :  { %v711_v27 = vrot.slane %v710_v30, 4  ;;  %v718_v4 = vrot.slane %v717_v10, 4  ;;  %v725_v12 = vrot.slane %v724_v44, 4  ;;  %v677_v36 = vadd.f32 %v676_v25, %v675_v6 }
  0xa7   :  { %v684_v23 = vadd.f32 %v683_v34, %v682_v54  ;;  %v691_v24 = vadd.f32 %v690_v26, %v689_v42  ;;  %v698_v37 = vadd.f32 %v697_v50, %v696_v53  ;;  %v705_v61 = vadd.f32 %v704_v35, %v703_v49 }
  0xa8   :  { %v712_v33 = vadd.f32 %v711_v27, %v710_v30  ;;  %v719_v38 = vadd.f32 %v718_v4, %v717_v10  ;;  %v726_v21 = vadd.f32 %v725_v12, %v724_v44  ;;  %v678_v0 = vrot.slane %v677_v36, 2 }
  0xa9   :  { %v685_v47 = vrot.slane %v684_v23, 2  ;;  %v692_v11 = vrot.slane %v691_v24, 2  ;;  %v699_v20 = vrot.slane %v698_v37, 2  ;;  %v706_v48 = vrot.slane %v705_v61, 2 }
  0xaa   :  { %v713_v52 = vrot.slane %v712_v33, 2  ;;  %v720_v18 = vrot.slane %v719_v38, 2  ;;  %v727_v1 = vrot.slane %v726_v21, 2  ;;  %v679_v56 = vadd.f32 %v678_v0, %v677_v36 }
  0xab   :  { %v686_v17 = vadd.f32 %v685_v47, %v684_v23  ;;  %v693_v28 = vadd.f32 %v692_v11, %v691_v24  ;;  %v700_v9 = vadd.f32 %v699_v20, %v698_v37  ;;  %v707_v60 = vadd.f32 %v706_v48, %v705_v61  ;;  %v2935_v23 = vld [vmem:[#allocation89_spill] sm:$0xff]  ;;  %v2936_v37 = vld [vmem:[#allocation90_spill] sm:$0xff] }
  0xac   :  { %v714_v57 = vadd.f32 %v713_v52, %v712_v33  ;;  %v721_v62 = vadd.f32 %v720_v18, %v719_v38  ;;  %v728_v31 = vadd.f32 %v727_v1, %v726_v21  ;;  %v680_v41 = vrot.slane %v679_v56, 1  ;;  %v2942_v11 = vld [vmem:[#allocation6_spill] sm:$0xff]  ;;  %v2943_v48 = vld [vmem:[#allocation13_spill] sm:$0xff]  ;;  %v2944_v18 = vld [vmem:[#allocation7_spill] sm:$0xff] }
  0xad   :  { %v687_v22 = vrot.slane %v686_v17, 1  ;;  %v694_v2 = vrot.slane %v693_v28, 1  ;;  %v701_v45 = vrot.slane %v700_v9, 1  ;;  %v708_v6 = vrot.slane %v707_v60, 1 }
  0xae   :  { %v715_v54 = vrot.slane %v714_v57, 1  ;;  %v722_v42 = vrot.slane %v721_v62, 1  ;;  %v729_v53 = vrot.slane %v728_v31, 1  ;;  %v2376_v49 = vadd.f32 %v680_v41, %v679_v56  ;;  %v2945_v56 = vld [vmem:[#allocation14_spill] sm:$0xff]  ;;  %v2949_v41 = vld [vmem:[#allocation16_spill] sm:$0xff] }
  0xaf   :  { %v2378_v30 = vadd.f32 %v687_v22, %v686_v17  ;;  %v2380_v10 = vadd.f32 %v694_v2, %v693_v28  ;;  %v2382_v44 = vadd.f32 %v701_v45, %v700_v9  ;;  %v2384_v25 = vadd.f32 %v708_v6, %v707_v60  ;;  %v2946_v28 = vld [vmem:[#allocation8_spill] sm:$0xff]  ;;  %v2947_v60 = vld [vmem:[#allocation15_spill] sm:$0xff]  ;;  %v2950_v2 = vld [vmem:[#allocation10_spill] sm:$0xff] }
  0xb0   :  { %v2386_v34 = vadd.f32 %v715_v54, %v714_v57  ;;  %v2388_v26 = vadd.f32 %v722_v42, %v721_v62  ;;  %v2390_v50 = vadd.f32 %v729_v53, %v728_v31  ;;  %v2393_v35 = vmul.f32 0.0625, %v2152_v39  ;;  %v2937_v39 = vld [vmem:[#allocation91_spill] sm:$0xff]  ;;  %v2948_v62 = vld [vmem:[#allocation9_spill] sm:$0xff]  ;;  %v2952_v42 = vld [vmem:[#allocation2_spill] sm:$0xff] }
  0xb1   :  { %v2396_v27 = vmul.f32 0.0625, %v2154_v63  ;;  %v2399_v4 = vmul.f32 0.0625, %v2156_v3  ;;  %v2402_v12 = vmul.f32 0.0625, %v2158_v40  ;;  %v2405_v36 = vmul.f32 0.0625, %v2160_v8  ;;  %v2938_v63 = vld [vmem:[#allocation4_spill] sm:$0xff]  ;;  %v2939_v3 = vld [vmem:[#allocation11_spill] sm:$0xff] }
  0xb2   :  { %v2408_v24 = vmul.f32 0.0625, %v2935_v23  ;;  %v2411_v61 = vmul.f32 0.0625, %v2936_v37  ;;  %v2414_v33 = vmul.f32 0.0625, %v2937_v39  ;;  %v2417_v38 = vmul.f32 0.0625, %v2938_v63  ;;  %v2940_v40 = vld [vmem:[#allocation5_spill] sm:$0xff]  ;;  %v2941_v8 = vld [vmem:[#allocation12_spill] sm:$0xff] }
  0xb3   :  { %v2420_v21 = vmul.f32 0.0625, %v2939_v3  ;;  %v2423_v0 = vmul.f32 0.0625, %v2940_v40  ;;  %v2426_v47 = vmul.f32 0.0625, %v2941_v8  ;;  %v2429_v20 = vmul.f32 0.0625, %v2942_v11  ;;  %v2951_v6 = vld [vmem:[#allocation17_spill] sm:$0xff]  ;;  %v2954_v39 = vld [vmem:[#allocation18_spill] sm:$0xff] }
  0xb4   :  { %v2432_v52 = vmul.f32 0.0625, %v2943_v48  ;;  %v2435_v1 = vmul.f32 0.0625, %v2944_v18  ;;  %v2438_v17 = vmul.f32 0.0625, %v2945_v56  ;;  %v2441_v9 = vmul.f32 0.0625, %v2946_v28  ;;  %v2953_v23 = vld [vmem:[#allocation25_spill] sm:$0xff]  ;;  %v2955_v3 = vld [vmem:[#allocation26_spill] sm:$0xff] }
  0xb5   :  { %v2444_v57 = vmul.f32 0.0625, %v2947_v60  ;;  %v2447_v31 = vmul.f32 0.0625, %v2948_v62  ;;  %v2450_v22 = vmul.f32 0.0625, %v2949_v41  ;;  %v2453_v45 = vmul.f32 0.0625, %v2950_v2  ;;  %v2956_v8 = vld [vmem:[#allocation19_spill] sm:$0xff]  ;;  %v2958_v56 = vld [vmem:[#allocation20_spill] sm:$0xff] }
  0xb6   :  { %v2456_v54 = vmul.f32 0.0625, %v2951_v6  ;;  %v2459_v53 = vmul.f32 0.0625, %v2952_v42  ;;  %v2462_v37 = vmul.f32 0.0625, %v2953_v23  ;;  %v2465_v63 = vmul.f32 0.0625, %v2954_v39  ;;  %v2957_v48 = vld [vmem:[#allocation27_spill] sm:$0xff]  ;;  %v2959_v60 = vld [vmem:[#allocation28_spill] sm:$0xff] }
  0xb7   :  { %v2468_v40 = vmul.f32 0.0625, %v2955_v3  ;;  %v2471_v11 = vmul.f32 0.0625, %v2956_v8  ;;  %v2474_v18 = vmul.f32 0.0625, %v2957_v48  ;;  %v2477_v28 = vmul.f32 0.0625, %v2958_v56  ;;  %v2960_v41 = vld [vmem:[#allocation21_spill] sm:$0xff]  ;;  %v2964_v48 = vld [vmem:[#allocation22_spill] sm:$0xff] }
  0xb8   :  { %v2480_v62 = vmul.f32 0.0625, %v2959_v60  ;;  %v2483_v2 = vmul.f32 0.0625, %v2960_v41  ;;  %v2962_v6 = vld [vmem:[#allocation29_spill] sm:$0xff]  ;;  %v2489_v23 = vmul.f32 0.0625, %v2280_v5  ;;  %v2492_v39 = vmul.f32 0.0625, %v2282_v14  ;;  %v2966_v60 = vld [vmem:[#allocation30_spill] sm:$0xff] }
  0xb9   :  { %v2486_v42 = vmul.f32 0.0625, %v2962_v6  ;;  %v2495_v3 = vmul.f32 0.0625, %v2284_v59  ;;  %v2498_v8 = vmul.f32 0.0625, %v2286_v7  ;;  %v2501_v56 = vmul.f32 0.0625, %v2964_v48  ;;  %v2968_v6 = vld [vmem:[#allocation23_spill] sm:$0xff]  ;;  %v2973_v48 = vld [vmem:[#allocation24_spill] sm:$0xff] }
  0xba   :  { %2961 = vst [vmem:[#allocation41_spill] sm:$0xff] %v2483_v2  ;;  %2963 = vst [vmem:[#allocation34_spill] sm:$0xff] %v2489_v23  ;;  %v2504_v41 = vmul.f32 0.0625, %v2966_v60  ;;  %v2507_v2 = vmul.f32 0.0625, %v2968_v6  ;;  %v2970_v5 = vld [vmem:[#allocation31_spill] sm:$0xff]  ;;  %v2513_v14 = vmul.f32 0.0625, %v2312_v15 }
  0xbb   :  { %2965 = vst [vmem:[#allocation42_spill] sm:$0xff] %v2501_v56  ;;  %v2510_v23 = vmul.f32 0.0625, %v2970_v5  ;;  %v2516_v59 = vmul.f32 0.0625, %v2314_v13  ;;  %v2519_v7 = vmul.f32 0.0625, %v2316_v19  ;;  %v2522_v56 = vmul.f32 0.0625, %v2973_v48  ;;  %v2974_v60 = vld [vmem:[#allocation32_spill] sm:$0xff] }
  0xbc   :  { %2967 = vst [vmem:[#allocation35_spill] sm:$0xff] %v2504_v41  ;;  %2969 = vst [vmem:[#allocation43_spill] sm:$0xff] %v2507_v2  ;;  %v2525_v41 = vmul.f32 0.0625, %v2974_v60  ;;  %v2975_v6 = vld [vmem:[#allocation3_spill] sm:$0xff]  ;;  %v2976_v5 = vld [vmem:[#allocation40_spill] sm:$0xff]  ;;  %v2537_v13 = vmul.f32 0.0625, %v2344_v29 }
  0xbd   :  { %2971 = vst [vmem:[#allocation36_spill] sm:$0xff] %v2510_v23  ;;  %2972 = vst [vmem:[#allocation44_spill] sm:$0xff] %v2513_v14  ;;  %v2528_v2 = vmul.f32 0.0625, %v2975_v6  ;;  %v2531_v23 = vmul.f32 0.0625, %v2976_v5  ;;  %v2977_v15 = vld [vmem:[#allocation33_spill] sm:$0xff]  ;;  %v2540_v19 = vmul.f32 0.0625, %v2346_v43 }
  0xbe   :  { %v2534_v14 = vmul.f32 0.0625, %v2977_v15  ;;  %v2543_v48 = vmul.f32 0.0625, %v2348_v51  ;;  %v2546_v60 = vmul.f32 0.0625, %v2350_v46  ;;  %v2549_v6 = vmul.f32 0.0625, %v2352_v16 }
  0xbf   :  { %v2552_v5 = vmul.f32 0.0625, %v2354_v55  ;;  %v2555_v15 = vmul.f32 0.0625, %v2356_v58  ;;  %v2558_v29 = vmul.f32 0.0625, %v2358_v32  ;;  %v2561_v43 = vmul.f32 0.0625, %v2376_v49 }
  0xc0   :  { %v2564_v51 = vmul.f32 0.0625, %v2378_v30  ;;  %v2567_v46 = vmul.f32 0.0625, %v2380_v10  ;;  %v2570_v16 = vmul.f32 0.0625, %v2382_v44  ;;  %v2573_v55 = vmul.f32 0.0625, %v2384_v25 }
  0xc1   :  { %v2576_v58 = vmul.f32 0.0625, %v2386_v34  ;;  %v2579_v32 = vmul.f32 0.0625, %v2388_v26  ;;  %v2582_v49 = vmul.f32 0.0625, %v2390_v50  ;;  %v859_v30 = vcombine.low %v2393_v35, %v2396_v27 }
  0xc2   :  { %v860_v10 = vcombine.low %v2399_v4, %v2402_v12  ;;  %v861_v44 = vcombine.low %v2405_v36, %v2408_v24  ;;  %v862_v25 = vcombine.low %v2411_v61, %v2414_v33  ;;  %v866_v34 = vlaneseq }
  0xc3   :  { %2978 = vst [vmem:[#allocation37_spill] sm:$0xff] %v2579_v32  ;;  %2979 = vst [vmem:[#allocation45_spill] sm:$0xff] %v2582_v49  ;;  %v908_v26 = vcombine.low %v2417_v38, %v2420_v21  ;;  %v909_v50 = vcombine.low %v2423_v0, %v2426_v47  ;;  %v1272_v32 = vmov 1966171168   ;;  %v910_v35 = vcombine.low %v2429_v20, %v2432_v52  ;;  %v2980_v47 = vld [vmem:[#allocation41_spill] sm:$0xff]  ;;  %v2981_v52 = vld [vmem:[#allocation34_spill] sm:$0xff] }
  0xc4   :  { %v864_v49 = vunpack.c.l.s4 %v1272_v32  ;;  %v911_v27 = vcombine.low %v2435_v1, %v2438_v17  ;;  %v957_v4 = vcombine.low %v2441_v9, %v2444_v57  ;;  %v867_v12 = vshrl.u32 %v866_v34, 7  ;;  %v2982_v9 = vld [vmem:[#allocation35_spill] sm:$0xff]  ;;  %v2983_v57 = vld [vmem:[#allocation42_spill] sm:$0xff] }
  0xc5   :  { %v958_v36 = vcombine.low %v2447_v31, %v2450_v22  ;;  %v959_v24 = vcombine.low %v2453_v45, %v2456_v54  ;;  %v960_v61 = vcombine.low %v2459_v53, %v2462_v37  ;;  %v1006_v38 = vcombine.low %v2465_v63, %v2468_v40  ;;  %v2984_v45 = vld [vmem:[#allocation36_spill] sm:$0xff]  ;;  %v2985_v54 = vld [vmem:[#allocation43_spill] sm:$0xff] }
  0xc6   :  { %v865_v33 = vunpack.c.0.s8 %v864_v49  ;;  %v1007_v21 = vcombine.low %v2471_v11, %v2474_v18  ;;  %v1008_v0 = vcombine.low %v2477_v28, %v2480_v62  ;;  %v1009_v20 = vcombine.low %v2980_v47, %v2486_v42  ;;  %v2986_v37 = vld [vmem:[#allocation44_spill] sm:$0xff] }
  0xc7   :  { %v1055_v1 = vcombine.low %v2981_v52, %v2492_v39  ;;  %v1056_v17 = vcombine.low %v2495_v3, %v2498_v8  ;;  %v1057_v31 = vcombine.low %v2983_v57, %v2982_v9  ;;  %v1058_v53 = vcombine.low %v2985_v54, %v2984_v45 }
  0xc8   :  { %v2622_v22 = vsub.s32 %v865_v33, %v867_v12  ;;  %v1104_v63 = vcombine.low %v2986_v37, %v2516_v59  ;;  %v1105_v40 = vcombine.low %v2519_v7, %v2522_v56  ;;  %v1106_v11 = vcombine.low %v2525_v41, %v2528_v2 }
  0xc9   :  { %v1107_v18 = vcombine.low %v2531_v23, %v2534_v14  ;;  %v1153_v28 = vcombine.low %v2537_v13, %v2540_v19  ;;  %v1154_v62 = vcombine.low %v2543_v48, %v2546_v60  ;;  %v1155_v37 = vcombine.low %v2549_v6, %v2552_v5 }
  0xca   :  { %v869_v42 = vrot.slane %v859_v30, %v2622_v22  ;;  %v876_v39 = vrot.slane %v860_v10, %v2622_v22  ;;  %v883_v3 = vrot.slane %v861_v44, %v2622_v22  ;;  %v890_v8 = vrot.slane %v862_v25, %v2622_v22 }
  0xcb   :  { %v918_v56 = vrot.slane %v908_v26, %v2622_v22  ;;  %v925_v2 = vrot.slane %v909_v50, %v2622_v22  ;;  %v932_v23 = vrot.slane %v910_v35, %v2622_v22  ;;  %v939_v41 = vrot.slane %v911_v27, %v2622_v22 }
  0xcc   :  { %v891_v14 = vcombine.low %v869_v42, %v876_v39  ;;  %v892_v59 = vcombine.low %v883_v3, %v890_v8  ;;  %v967_v7 = vrot.slane %v957_v4, %v2622_v22  ;;  %v974_v13 = vrot.slane %v958_v36, %v2622_v22 }
  0xcd   :  { %v940_v19 = vcombine.low %v918_v56, %v925_v2  ;;  %v941_v48 = vcombine.low %v932_v23, %v939_v41  ;;  %v981_v60 = vrot.slane %v959_v24, %v2622_v22  ;;  %v988_v32 = vrot.slane %v960_v61, %v2622_v22  ;;  %v2987_v23 = vld [vmem:[#allocation45_spill] sm:$0xff] }
  0xce   :  { %v899_v49 = vrot.slane %v891_v14, %v2622_v22  ;;  %v906_v30 = vrot.slane %v892_v59, %v2622_v22  ;;  %v989_v10 = vcombine.low %v967_v7, %v974_v13  ;;  %v1016_v44 = vrot.slane %v1006_v38, %v2622_v22  ;;  %v2988_v41 = vld [vmem:[#allocation37_spill] sm:$0xff] }
  0xcf   :  { %v948_v25 = vrot.slane %v940_v19, %v2622_v22  ;;  %v955_v34 = vrot.slane %v941_v48, %v2622_v22  ;;  %v990_v26 = vcombine.low %v981_v60, %v988_v32  ;;  %v1023_v50 = vrot.slane %v1007_v21, %v2622_v22 }
  0xd0   :  { %v907_v35 = vcombine.low %v899_v49, %v906_v30  ;;  %v997_v27 = vrot.slane %v989_v10, %v2622_v22  ;;  %v1030_v4 = vrot.slane %v1008_v0, %v2622_v22  ;;  %v1037_v12 = vrot.slane %v1009_v20, %v2622_v22 }
  0xd1   :  { %v956_v36 = vcombine.low %v948_v25, %v955_v34  ;;  %v1004_v24 = vrot.slane %v990_v26, %v2622_v22  ;;  %v1038_v61 = vcombine.low %v1016_v44, %v1023_v50  ;;  %v1065_v33 = vrot.slane %v1055_v1, %v2622_v22 }
  0xd2   :  { %v1039_v38 = vcombine.low %v1030_v4, %v1037_v12  ;;  %v1072_v47 = vrot.slane %v1056_v17, %v2622_v22  ;;  %v1079_v52 = vrot.slane %v1057_v31, %v2622_v22  ;;  %v1086_v21 = vrot.slane %v1058_v53, %v2622_v22  ;;  %1259 = vst [vmem:[%s2724_s2] sm:$0xff] %v907_v35 }
  0xd3   :  { %v1005_v0 = vcombine.low %v997_v27, %v1004_v24  ;;  %v1046_v20 = vrot.slane %v1038_v61, %v2622_v22  ;;  %v1114_v9 = vrot.slane %v1104_v63, %v2622_v22  ;;  %v1121_v57 = vrot.slane %v1105_v40, %v2622_v22  ;;  %1260 = vst [vmem:[%s2724_s2 + $0x8] sm:$0xff] %v956_v36 }
  0xd4   :  { %v1053_v1 = vrot.slane %v1039_v38, %v2622_v22  ;;  %v1087_v17 = vcombine.low %v1065_v33, %v1072_v47  ;;  %v1088_v31 = vcombine.low %v1079_v52, %v1086_v21  ;;  %v1128_v45 = vrot.slane %v1106_v11, %v2622_v22 }
  0xd5   :  { %v1135_v54 = vrot.slane %v1107_v18, %v2622_v22  ;;  %v1136_v53 = vcombine.low %v1114_v9, %v1121_v57  ;;  %v1156_v63 = vcombine.low %v2555_v15, %v2558_v29  ;;  %1261 = vst [vmem:[%s2724_s2 + $0x10] sm:$0xff] %v1005_v0  ;;  %v1163_v11 = vrot.slane %v1153_v28, %v2622_v22 }
  0xd6   :  { %v1054_v40 = vcombine.low %v1046_v20, %v1053_v1  ;;  %v1095_v42 = vrot.slane %v1087_v17, %v2622_v22  ;;  %v1102_v39 = vrot.slane %v1088_v31, %v2622_v22  ;;  %v1170_v8 = vrot.slane %v1154_v62, %v2622_v22 }
  0xd7   :  { %v1137_v3 = vcombine.low %v1128_v45, %v1135_v54  ;;  %v1144_v18 = vrot.slane %v1136_v53, %v2622_v22  ;;  %v1177_v6 = vrot.slane %v1155_v37, %v2622_v22  ;;  %v1184_v15 = vrot.slane %v1156_v63, %v2622_v22 }
  0xd8   :  { %v1103_v5 = vcombine.low %v1095_v42, %v1102_v39  ;;  %v1202_v29 = vcombine.low %v2561_v43, %v2564_v51  ;;  %v1203_v56 = vcombine.low %v2567_v46, %v2570_v16  ;;  %1262 = vst [vmem:[%s2724_s2 + $0x18] sm:$0xff] %v1054_v40  ;;  %v1185_v2 = vcombine.low %v1163_v11, %v1170_v8 }
  0xd9   :  { %v1151_v28 = vrot.slane %v1137_v3, %v2622_v22  ;;  %v1204_v62 = vcombine.low %v2573_v55, %v2576_v58  ;;  %v1205_v14 = vcombine.low %v2988_v41, %v2987_v23  ;;  %v1186_v59 = vcombine.low %v1177_v6, %v1184_v15 }
  0xda   :  { %v1212_v7 = vrot.slane %v1202_v29, %v2622_v22  ;;  %v1219_v43 = vrot.slane %v1203_v56, %v2622_v22  ;;  %1263 = vst [vmem:[%s2724_s2 + $0x20] sm:$0xff] %v1103_v5  ;;  %v1193_v46 = vrot.slane %v1185_v2, %v2622_v22 }
  0xdb   :  { %v1152_v51 = vcombine.low %v1144_v18, %v1151_v28  ;;  %v1226_v16 = vrot.slane %v1204_v62, %v2622_v22  ;;  %v1233_v13 = vrot.slane %v1205_v14, %v2622_v22  ;;  %v1200_v55 = vrot.slane %v1186_v59, %v2622_v22 }
  0xdc   :  { %v1234_v58 = vcombine.low %v1212_v7, %v1219_v43 }
  0xdd   :  { %v1235_v19 = vcombine.low %v1226_v16, %v1233_v13  ;;  %1264 = vst [vmem:[%s2724_s2 + $0x28] sm:$0xff] %v1152_v51  ;;  %v1201_v48 = vcombine.low %v1193_v46, %v1200_v55 }
  0xde   :  { %v1242_v60 = vrot.slane %v1234_v58, %v2622_v22 }
  0xdf   :  { %v1249_v32 = vrot.slane %v1235_v19, %v2622_v22  ;;  %1265 = vst [vmem:[%s2724_s2 + $0x30] sm:$0xff] %v1201_v48 }
  0xe1   :  { %v1250_v49 = vcombine.low %v1242_v60, %v1249_v32 }
  0xe3   :  { %1266 = vst [vmem:[%s2724_s2 + $0x38] sm:$0xff] %v1250_v49 }

// kernel: reverse.3
= control target key start
LH: loop header
LB: loop body
LE: loop exit
PB: predicated region body
PF: predicated region fallthrough
CT: control target
= control target key end

     0   :  { %v2_v0 = vlaneseq  ;;  %s318_s0 = inlined_call_operand.vmem [shape: f32[8,1,1024], index: 0, kind: input, shape index: {}]   ;;  %s319_s1 = inlined_call_operand.vmem [shape: f32[8,1,1024], index: 1, kind: output, shape index: {}]  }
   0x2   :  { %v3_v1 = vsub.s32 127, %v2_v0 }
   0x4   :  { %4 = vset.pattern.permute.xlu0 %v3_v1 }
   0x5   :  { %s281_s6 = smov 0   ;;  %s283_s7 = smov 0  }
   0x6   :  { %s285_s8 = smov 0  }
   0x7 LB: > { %s211_s9 = sadd.s32 4294967295, %s269_s8   ;;  %s22_s10 = sadd.s32 1, %s265_s7  ;;  %s269_s8 = sphi %s285_s8, %s10_s8   ;;  %s265_s7 = sphi %s283_s7, %s321_s7   ;;  %s261_s6 = sphi %s281_s6, %s320_s6  }
   0x8   : > { %p23_p0 = scmp.ge.s32.totalorder %s22_s10, 8  ;;  %p213_p1 = scmp.ge.s32.totalorder %s269_s8, 8 }
   0x9   : > { %s45_s11 = sand.u32 (!%p213_p1), 1, %s269_s8   ;;  %s48_s12 = ssub.s32 (!%p213_p1), 7, %s265_s7 }
   0xa   : > { %s323_s10 = smov (%p23_p0, %s22_s10), 0  ;;  %43 = sbr.rel (%p213_p1) target bundleno = 17 (0x11), region = 16 }
   0xb   : > { %s214_s13 = sshll.u32 (!%p213_p1), %s45_s11, 3  ;;  %s215_s14 = sshll.u32 (!%p213_p1), %s48_s12, 3 }
   0xc   : > { %s54_s17 = scalar_lea.vmem (!%p213_p1), %s318_s0, %s215_s14  ;;  %s47_s18 = scalar_lea.vmem (!%p213_p1), [#allocation0], %s214_s13 }
   0xd   : > { %v82_v2 = vld [vmem:[%s54_s17] sm:$0xff] (!%p213_p1) }
   0xe   : > { %83 = vst [vmem:[%s47_s18] sm:$0xff] (!%p213_p1), %v82_v2 }
  0x11 PF: > { %p216_p2 = scmp.ge.s32.totalorder %s269_s8, 1  ;;  %p88_p3 = scmp.lt.s32.totalorder %s269_s8, 9 }
  0x13   : > { %p89_p4 = pnand %p216_p2, %p88_p3 }
  0x14   : > { %s95_s19 = sand.u32 (!%p89_p4), 1, %s211_s9   ;;  %s220_s22 = sshll.u32 (!%p89_p4), %s261_s6, 3 }
  0x15   : > { %92 = sbr.rel (%p89_p4) target bundleno = 153 (0x99), region = 54  ;;  %s217_s20 = sshll.u32 (!%p89_p4), %s95_s19, 3 }
  0x16   : > { %s97_s21 = scalar_lea.vmem (!%p89_p4), [#allocation0], %s217_s20  ;;  %s120_s25 = scalar_lea.vmem (!%p89_p4), %s319_s1, %s220_s22 }
  0x17   : > { %v107_v3 = vld [vmem:[%s97_s21] sm:$0xff] (!%p89_p4) }
  0x18   : > { %108 = vperm.xlu0 (!%p89_p4), %4, %v107_v3  }
  0x97   : > { %v109_v4 = vpop.permute.xlu0 %108 }
  0x98   : > { %149 = vst [vmem:[%s120_s25] sm:$0xff] %v109_v4 }
  0x99 PF: > { %s10_s8 = sadd.s32 1, %s269_s8   ;;  %s320_s6 = smov %s265_s7 }
  0x9a   : > { %p7_p5 = scmp.ge.s32.totalorder %s10_s8, 10   ;;  %s321_s7 = smov %s323_s10 }
  0x9c   :  { %9 = sbr.rel (!%p7_p5) target bundleno = 7 (0x7), region = 118 }

</bundles_post_ra>
